<compile_context>
chip_gen: v7x
topology: tpu7x:2x2x1
jax: 0.10.0
libtpu: 0.0.40
codegen_flags: <defaults>
</compile_context>

<pallas_src>
import functools
import math
import numpy as np
import jax
import jax.numpy as jnp
from jax import lax
from jax.experimental import pallas as pl
from jax.experimental.pallas import tpu as pltpu

F32 = jnp.float32
BF16 = jnp.bfloat16


# ----------------------------- small helpers --------------------------------

def _const2(_):
    return (0, 0)


@functools.lru_cache(maxsize=1)
def _vmem_bytes():
    try:
        info = pltpu.get_tpu_info()
        return int(getattr(info, "vmem_capacity_bytes", 64 << 20))
    except Exception:
        return 64 << 20


def _row_call(kernel, M, out_cols, row_arrays, const_arrays):
    """Run `kernel` on row-wise-independent 2-D slabs.

    Picks the largest (8,128)-friendly block_m that divides M — generation aware
    (up to 1024 rows on 128-MiB-VMEM v5e/v6e, 256 on v7x's 64 MiB) — with
    "parallel" semantics; otherwise falls back to one full-extent block
    (tiny demo shapes)."""
    big_vmem = _vmem_bytes() >= (96 << 20)
    max_bm = 1024 if big_vmem else 256
    bm = None
    for cand in (1024, 512, 256, 128, 64, 32, 16, 8):
        if cand <= max_bm and M % cand == 0 and M // cand > 1:
            bm = cand
            break
    if bm is None:
        bm, grid, sem = M, (1,), ("arbitrary",)
    else:
        grid, sem = (M // bm,), ("parallel",)
    in_specs = ([pl.BlockSpec((bm, a.shape[1]), lambda i: (i, 0)) for a in row_arrays]
                + [pl.BlockSpec(a.shape, _const2) for a in const_arrays])
    vmem_limit = (96 << 20) if big_vmem else None
    return pl.pallas_call(
        kernel,
        out_shape=jax.ShapeDtypeStruct((M, out_cols), F32),
        grid=grid,
        in_specs=in_specs,
        out_specs=pl.BlockSpec((bm, out_cols), lambda i: (i, 0)),
        compiler_params=pltpu.CompilerParams(dimension_semantics=sem,
                                             vmem_limit_bytes=vmem_limit),
    )(*row_arrays, *const_arrays)


# ----------------------------- row-wise fused kernels ------------------------

def _linear_kernel(x_ref, w_ref, b_ref, o_ref):
    o_ref[...] = jnp.dot(x_ref[...].astype(BF16), w_ref[...],
                         preferred_element_type=F32) + b_ref[...]


def _add_linear_kernel(x_ref, y_ref, w_ref, b_ref, o_ref):
    o_ref[...] = jnp.dot((x_ref[...] + y_ref[...]).astype(BF16), w_ref[...],
                         preferred_element_type=F32) + b_ref[...]


def _ln_kernel(x_ref, g_ref, b_ref, o_ref):
    x = x_ref[...]
    mu = jnp.mean(x, axis=-1, keepdims=True)
    xc = x - mu
    var = jnp.mean(xc * xc, axis=-1, keepdims=True)
    o_ref[...] = xc * lax.rsqrt(var + 1e-5) * g_ref[...] + b_ref[...]


def _add3_ln_kernel(x_ref, a_ref, b_ref, g_ref, beta_ref, o_ref):
    # LayerNorm(x + fwd + bwd) fused (residual adds + LN1 of the encoder layer).
    s = x_ref[...] + a_ref[...] + b_ref[...]
    mu = jnp.mean(s, axis=-1, keepdims=True)
    sc = s - mu
    var = jnp.mean(sc * sc, axis=-1, keepdims=True)
    o_ref[...] = sc * lax.rsqrt(var + 1e-5) * g_ref[...] + beta_ref[...]


def _ffn_ln_kernel(x_ref, w1_ref, b1_ref, w2_ref, b2_ref, g_ref, beta_ref, o_ref):
    # Fused FFN: relu(x@w1+b1)@w2+b2, residual add, LayerNorm2 (bf16 MXU, f32 LN).
    x = x_ref[...]
    h = jnp.maximum(jnp.dot(x.astype(BF16), w1_ref[...],
                            preferred_element_type=F32) + b1_ref[...], 0.0)
    y = jnp.dot(h.astype(BF16), w2_ref[...], preferred_element_type=F32) + b2_ref[...]
    s = x + y
    mu = jnp.mean(s, axis=-1, keepdims=True)
    sc = s - mu
    var = jnp.mean(sc * sc, axis=-1, keepdims=True)
    o_ref[...] = sc * lax.rsqrt(var + 1e-5) * g_ref[...] + beta_ref[...]


def _gated_head_kernel(x_ref, gw_ref, gb_ref, lw_ref, lb_ref, o_ref):
    # Flatten_Head: x * SiLU(gate(x)) -> linear, fused.
    # TODO(synk): at production nf (= d_model*patch_num) the (nf,nf) gate weight should be
    #             K-tiled over the contraction with an f32 accumulator instead of one block.
    x = x_ref[...]
    g = jnp.dot(x.astype(BF16), gw_ref[...], preferred_element_type=F32) + gb_ref[...]
    xg = x * (g * jax.nn.sigmoid(g))
    o_ref[...] = jnp.dot(xg.astype(BF16), lw_ref[...],
                         preferred_element_type=F32) + lb_ref[...]


def _horizon_kernel(z_ref, v1w_ref, v1b_ref, v2w_ref, v2b_ref,
                    v3w_ref, v3b_ref, v4w_ref, v4b_ref, o_ref):
    # Both horizon views (view_1/view_2 and view_3/view_4) for one batch element.
    zb = z_ref[...]                                                          # (T, N)
    p = jnp.dot(zb, v1w_ref[...], preferred_element_type=F32) + v1b_ref[...]   # (T, 1)
    n = jnp.dot(zb, v3w_ref[...], preferred_element_type=F32) + v3b_ref[...]
    row_p = jnp.sum(p * v2w_ref[...], axis=0, keepdims=True) + v2b_ref[...]
    row_n = jnp.sum(n * v4w_ref[...], axis=0, keepdims=True) + v4b_ref[...]
    o_ref[...] = jnp.concatenate([row_p, row_n], axis=0)        # one lane-dense (2,dm) store


# ----------------------------- fused Mamba block kernel -----------------------

def _mamba_kernel(x_ref, inwx_ref, inwz_ref, convw_ref, convb_ref,
                  bcdt_ref, dtb_ref, a_ref, d_ref, outw_ref,
                  o_ref,
                  xs_ref, delta_ref, du_ref, bs_ref, cs_ref, y_ref,
                  *, L, Lp, Lc, reverse):
    ds_, di = a_ref.shape

    x = x_ref[...].astype(BF16)                                      # (L, dm)

    # in_proj (split x / z halves so every matmul output stays lane-dense)
    x_in = jnp.dot(x, inwx_ref[...], preferred_element_type=F32)     # (L, di)
    z_g = jnp.dot(x, inwz_ref[...], preferred_element_type=F32)      # (L, di)

    # causal depthwise conv (k=2) + SiLU.  The t-1 neighbour (t+1 for the reverse pass)
    # is fetched by staging x_in in VMEM with zero guard rows and re-slicing the ref:
    # O(L*di), no O(L^2) shift matmul, no HBM x_prev tensor.
    xs_ref[0:1, :] = jnp.zeros((1, di), F32)
    xs_ref[1:L + 1, :] = x_in
    xs_ref[L + 1:L + 2, :] = jnp.zeros((1, di), F32)
    neigh = xs_ref[2:L + 2, :] if reverse else xs_ref[0:L, :]
    yc = neigh * convw_ref[0:1, :] + x_in * convw_ref[1:2, :] + convb_ref[...]
    u = yc * jax.nn.sigmoid(yc)                                      # (L, di)

    # fused dt/B/C projection: ONE lane-dense matmul, then in-VMEM slices.
    bcdt = jnp.dot(u.astype(BF16), bcdt_ref[...], preferred_element_type=F32)
    dtr = bcdt[:, 0:di] + dtb_ref[...]
    delta = jnp.maximum(dtr, 0.0) + jnp.log(1.0 + jnp.exp(-jnp.abs(dtr)))    # softplus
    Bs = bcdt[:, di:di + ds_]
    Cs = bcdt[:, di + ds_:di + 2 * ds_]

    # stage zero-padded (to a multiple of Lc) time-major operands for the chunked scan;
    # the zero pads make the extra timesteps identity steps of the recurrence.
    delta_ref[0:L, :] = delta
    du_ref[0:L, :] = delta * u
    bs_ref[0:L, :] = Bs
    cs_ref[0:L, :] = Cs
    if Lp > L:
        pad = Lp - L
        delta_ref[L:Lp, :] = jnp.zeros((pad, di), F32)
        du_ref[L:Lp, :] = jnp.zeros((pad, di), F32)
        bs_ref[L:Lp, :] = jnp.zeros((pad, ds_), F32)
        cs_ref[L:Lp, :] = jnp.zeros((pad, ds_), F32)

    A = a_ref[...]                                                   # (ds, di)
    nc = Lp // Lc

    # chunked serial recurrence: per chunk, exp(delta*A)/B*(delta*u) are materialized only
    # for Lc timesteps, Lc serial FMAs update h, and y is accumulated vectorized — no
    # (L, ds, di) tensors, no per-timestep VMEM stores.
    def chunk_body(i, h):
        c = (nc - 1 - i) if reverse else i
        off = pl.multiple_of(c * Lc, Lc)
        d_c = delta_ref[pl.ds(off, Lc), :]                           # (Lc, di)
        du_c = du_ref[pl.ds(off, Lc), :]
        b_c = bs_ref[pl.ds(off, Lc), :]
        c_c = cs_ref[pl.ds(off, Lc), :]
        exp_dA = jnp.exp(d_c[:, None, :] * A[None, :, :])            # (Lc, ds, di)
        dBu = b_c[:, :, None] * du_c[:, None, :]                     # (Lc, ds, di)
        hs = [None] * Lc
        steps = range(Lc - 1, -1, -1) if reverse else range(Lc)
        for t in steps:                                              # Lc static serial steps
            h = exp_dA[t] * h + dBu[t]
            hs[t] = h
        hstack = jnp.stack(hs, axis=0)                               # (Lc, ds, di)
        y_ref[pl.ds(off, Lc), :] = jnp.sum(hstack * c_c[:, :, None], axis=1)
        return h

    lax.fori_loop(0, nc, chunk_body, jnp.zeros((ds_, di), F32), unroll=(nc <= 8))

    y = y_ref[0:L, :] + d_ref[...] * u
    y = y * (z_g * jax.nn.sigmoid(z_g))                              # SiLU gate
    o_ref[...] = jnp.dot(y.astype(BF16), outw_ref[...], preferred_element_type=F32)


def pallas_mamba_block(x, mp, reverse=False):
    B, L, dm = x.shape
    ds_, di = mp["A"].shape
    bcdt_cols = mp["bcdt_w"].shape[1]
    Lc = 8
    Lp = ((L + Lc - 1) // Lc) * Lc
    bmap = lambda b: (b, 0, 0)
    kern = functools.partial(_mamba_kernel, L=L, Lp=Lp, Lc=Lc, reverse=reverse)
    return pl.pallas_call(
        kern,
        out_shape=jax.ShapeDtypeStruct((B, L, dm), F32),
        grid=(B,),
        in_specs=[
            pl.BlockSpec((None, L, dm), bmap),
            pl.BlockSpec((dm, di), _const2),
            pl.BlockSpec((dm, di), _const2),
            pl.BlockSpec((2, di), _const2),
            pl.BlockSpec((1, di), _const2),
            pl.BlockSpec((di, bcdt_cols), _const2),
            pl.BlockSpec((1, di), _const2),
            pl.BlockSpec((ds_, di), _const2),
            pl.BlockSpec((1, di), _const2),
            pl.BlockSpec((di, dm), _const2),
        ],
        out_specs=pl.BlockSpec((None, L, dm), bmap),
        scratch_shapes=[pltpu.VMEM((Lp + 8, di), F32),    # staged x_in (+ guard rows)
                        pltpu.VMEM((Lp, di), F32),        # delta
                        pltpu.VMEM((Lp, di), F32),        # delta * u
                        pltpu.VMEM((Lp, ds_), F32),       # B_t
                        pltpu.VMEM((Lp, ds_), F32),       # C_t
                        pltpu.VMEM((Lp, di), F32)],       # y
        compiler_params=pltpu.CompilerParams(dimension_semantics=("parallel",)),
    )(x, mp["in_w_x"], mp["in_w_z"], mp["conv_w"], mp["conv_b"].reshape(1, di),
      mp["bcdt_w"], mp["dt_b"].reshape(1, di), mp["A"], mp["D"].reshape(1, di),
      mp["out_w"])


# ----------------------------- wrapper ops -----------------------------------

def pallas_linear(x, w, b=None):
    K = x.shape[-1]
    N = w.shape[1]
    lead = x.shape[:-1]
    M = int(np.prod(lead)) if lead else 1
    bb = (jnp.zeros((N,), F32) if b is None else b).reshape(1, N)
    out = _row_call(_linear_kernel, M, N, [x.reshape(M, K)], [w, bb])
    return out.reshape(lead + (N,))


def pallas_horizon(zn, pr):
    B, T, N = zn.shape
    dm = pr["view2_w"].shape[1]
    consts = [pr["view1_w"], pr["view1_b"].reshape(1, 1),
              pr["view2_w"], pr["view2_b"].reshape(1, dm),
              pr["view3_w"], pr["view3_b"].reshape(1, 1),
              pr["view4_w"], pr["view4_b"].reshape(1, dm)]
    out = pl.pallas_call(
        _horizon_kernel,
        out_shape=jax.ShapeDtypeStruct((B, 2, dm), F32),
        grid=(B,),
        in_specs=[pl.BlockSpec((None, T, N), lambda b: (b, 0, 0))]
                 + [pl.BlockSpec(a.shape, _const2) for a in consts],
        out_specs=pl.BlockSpec((None, 2, dm), lambda b: (b, 0, 0)),
        compiler_params=pltpu.CompilerParams(dimension_semantics=("parallel",)),
    )(zn, *consts)
    return out[:, 0:1, :], out[:, 1:2, :]


# ----------------------------- model pieces (glue + kernels) ------------------

def encoder_layer(x, lp):
    B, L, dm = x.shape
    M = B * L
    fwd = pallas_mamba_block(x, lp["mamba_f"], reverse=False)
    # backward branch runs time-reversed in-kernel: no jnp.flip HBM round trips
    bwd = pallas_mamba_block(x, lp["mamba_b"], reverse=True)
    x1 = _row_call(_add3_ln_kernel, M, dm,
                   [x.reshape(M, dm), fwd.reshape(M, dm), bwd.reshape(M, dm)],
                   [lp["ln1_g"].reshape(1, dm), lp["ln1_b"].reshape(1, dm)])
    out = _row_call(_ffn_ln_kernel, M, dm,
                    [x1],
                    [lp["ffn_w1"], lp["ffn_b1"].reshape(1, -1),
                     lp["ffn_w2"], lp["ffn_b2"].reshape(1, dm),
                     lp["ln2_g"].reshape(1, dm), lp["ln2_b"].reshape(1, dm)])
    return out.reshape(B, L, dm)


def encoder(x, layers, norm_g, norm_b):
    for lp in layers:
        x = encoder_layer(x, lp)
    B, L, dm = x.shape
    out = _row_call(_ln_kernel, B * L, dm, [x.reshape(B * L, dm)],
                    [norm_g.reshape(1, dm), norm_b.reshape(1, dm)])
    return out.reshape(B, L, dm)


def tsti_encoder(zp, pview, pr):
    # zp: (B, N, P, patch_len)  ->  (B, N, d_model, P)
    x = pallas_linear(zp, pr["W_P_w"], pr["W_P_b"])
    B, N, P, dm = x.shape
    u = x.reshape(B, N * P, dm)
    u = jnp.concatenate([u, pview], axis=1)                 # (B, N*P+1, dm)
    z = encoder(u, pr["patch_layers"], pr["patch_norm_g"], pr["patch_norm_b"])
    z = z[:, :-1, :].reshape(B, N, P, dm)
    return jnp.transpose(z, (0, 1, 3, 2))


def flatten_head(x, pr):
    B, N, dm, P = x.shape
    nf = dm * P
    out = _row_call(_gated_head_kernel, B * N, dm,
                    [x.reshape(B * N, nf)],
                    [pr["head_gate_w"], pr["head_gate_b"].reshape(1, nf),
                     pr["head_lin_w"], pr["head_lin_b"].reshape(1, dm)])
    return out.reshape(B, N, dm)


def pamba_forward(params, cfg, z, x_mark_enc=None, x_dec=None, x_mark_dec=None):
    B, T, N = z.shape
    # RevIN-style instance normalization (inline, as in the PyTorch forward; unbiased=False)
    means = jnp.mean(z, axis=1, keepdims=True)
    zc = z - means
    stdev = jnp.sqrt(jnp.var(zc, axis=1, keepdims=True) + 1e-5)
    zn = zc / stdev

    pview, nview = pallas_horizon(zn, params)                           # (B,1,dm) each

    # patching: end replication-pad + unfold (indexing glue)
    zt = jnp.transpose(zn, (0, 2, 1))                                   # (B, N, T)
    zt = jnp.concatenate([zt, jnp.repeat(zt[:, :, -1:], cfg["stride"], axis=2)], axis=2)
    idx = (jnp.arange(cfg["patch_num"]) * cfg["stride"])[:, None] + \
          jnp.arange(cfg["patch_len"])[None, :]
    zp = zt[:, :, idx]                                                  # (B, N, P, patch_len)

    zz = tsti_encoder(zp, pview, params)                                # (B, N, dm, P)
    zh = flatten_head(zz, params)                                       # (B, N, dm)

    out = jnp.concatenate([zh, nview], axis=1)                          # (B, N+1, dm)
    out = encoder(out, params["final_layers"],
                  params["final_norm_g"], params["final_norm_b"])
    out = out[:, :-1, :]

    dm = zh.shape[-1]
    pred_len = params["nvh_w"].shape[1]
    r = _row_call(_add_linear_kernel, B * N, pred_len,
                  [zh.reshape(B * N, dm), out.reshape(B * N, dm)],
                  [params["nvh_w"], params["nvh_b"].reshape(1, pred_len)])
    r = jnp.transpose(r.reshape(B, N, pred_len), (0, 2, 1))             # (B, pred_len, N)
    r = r * stdev[:, 0, :][:, None, :] + means[:, 0, :][:, None, :]
    return r


# ----------------------------- deterministic parameter init ------------------

def _init_linear(key, fan_in, fan_out, bias=True):
    kw, kb = jax.random.split(key)
    s = 1.0 / math.sqrt(fan_in)
    w = jax.random.uniform(kw, (fan_in, fan_out), F32, -s, s)
    b = jax.random.uniform(kb, (fan_out,), F32, -s, s) if bias else None
    return w, b


def _init_mamba(key, dm, d_state):
    d_inner = dm                                 # expand = 1
    dt_rank = max(1, math.ceil(dm / 16))
    ks = jax.random.split(key, 6)
    in_w, _ = _init_linear(ks[0], dm, 2 * d_inner, bias=False)
    conv_w = jax.random.uniform(ks[1], (2, d_inner), F32, -1.0, 1.0) / math.sqrt(2.0)
    conv_b = jax.random.uniform(ks[2], (d_inner,), F32, -0.5, 0.5) / math.sqrt(2.0)
    xproj_w, _ = _init_linear(ks[3], d_inner, dt_rank + 2 * d_state, bias=False)
    dt_w, dt_b = _init_linear(ks[4], dt_rank, d_inner, bias=True)
    A_log = jnp.log(jnp.tile(jnp.arange(1, d_state + 1, dtype=F32)[None, :], (d_inner, 1)))
    D = jnp.ones((d_inner,), F32)
    out_w, _ = _init_linear(ks[5], d_inner, dm, bias=False)
    # pre-fused forms consumed by the Pallas kernel:
    #   dt_full = x_proj(dt slice) @ dt_proj  (exact: no nonlinearity between them)
    #   bcdt_w  = [dt_full | B_w | C_w]       (one lane-dense matmul in-kernel)
    dt_full_w = jnp.dot(xproj_w[:, :dt_rank], dt_w)
    bcdt_w = jnp.concatenate([dt_full_w,
                              xproj_w[:, dt_rank:dt_rank + d_state],
                              xproj_w[:, dt_rank + d_state:]], axis=1)
    return dict(
        in_w_x=in_w[:, :d_inner].astype(BF16),
        in_w_z=in_w[:, d_inner:].astype(BF16),
        conv_w=conv_w, conv_b=conv_b,                        # row0 = t-1 tap, row1 = t tap
        bcdt_w=bcdt_w.astype(BF16), dt_b=dt_b,
        A=-jnp.exp(A_log).T,                                 # (d_state, d_inner)
        D=D, out_w=out_w.astype(BF16))


def _init_encoder_layer(key, dm, d_ff, d_state):
    ks = jax.random.split(key, 4)
    w1, b1 = _init_linear(ks[2], dm, d_ff)
    w2, b2 = _init_linear(ks[3], d_ff, dm)
    return dict(mamba_f=_init_mamba(ks[0], dm, d_state),
                mamba_b=_init_mamba(ks[1], dm, d_state),
                ffn_w1=w1.astype(BF16), ffn_b1=b1,
                ffn_w2=w2.astype(BF16), ffn_b2=b2,
                ln1_g=jnp.ones((dm,), F32), ln1_b=jnp.zeros((dm,), F32),
                ln2_g=jnp.ones((dm,), F32), ln2_b=jnp.zeros((dm,), F32))


def init_params(key, cfg):
    dm, dff, ds = cfg["d_model"], cfg["d_ff"], cfg["d_state"]
    T, N, P = cfg["seq_len"], cfg["enc_in"], cfg["patch_num"]
    nf = dm * P
    ks = jax.random.split(key, 10)
    v1w, v1b = _init_linear(ks[0], N, 1)
    v2w, v2b = _init_linear(ks[1], T, dm)
    v3w, v3b = _init_linear(ks[2], N, 1)
    v4w, v4b = _init_linear(ks[3], T, dm)
    wpw, wpb = _init_linear(ks[4], cfg["patch_len"], dm)
    gw, gb = _init_linear(ks[5], nf, nf)
    lw, lb = _init_linear(ks[6], nf, dm)
    nvw, nvb = _init_linear(ks[7], dm, cfg["pred_len"])
    patch_layers = [_init_encoder_layer(k, dm, dff, ds)
                    for k in jax.random.split(ks[8], cfg["e_layers"])]
    final_layers = [_init_encoder_layer(k, dm, dff, ds)
                    for k in jax.random.split(ks[9], cfg["e_layers"])]
    return dict(
        view1_w=v1w, view1_b=v1b, view2_w=v2w, view2_b=v2b,
        view3_w=v3w, view3_b=v3b, view4_w=v4w, view4_b=v4b,
        W_P_w=wpw.astype(BF16), W_P_b=wpb,
        head_gate_w=gw.astype(BF16), head_gate_b=gb,
        head_lin_w=lw.astype(BF16), head_lin_b=lb,
        nvh_w=nvw.astype(BF16), nvh_b=nvb,
        patch_layers=patch_layers,
        patch_norm_g=jnp.ones((dm,), F32),
        patch_norm_b=jnp.zeros((dm,), F32),
        final_layers=final_layers,
        final_norm_g=jnp.ones((dm,), F32),
        final_norm_b=jnp.zeros((dm,), F32),
    )


# ----------------------------- main -------------------------------------------

if __name__ == "__main__":
    cfg = dict(seq_len=16, pred_len=8, enc_in=4, d_model=32, d_ff=64, d_state=8,
               e_layers=1, patch_len=8, stride=4, padding_patch="end", revin=True,
               dropout=0.0, head_dropout=0.0, activation="relu", individual=False)
    cfg["patch_num"] = (cfg["seq_len"] - cfg["patch_len"]) // cfg["stride"] + 1 + 1  # +1: end pad

    key = jax.random.PRNGKey(0)
    kp, kx = jax.random.split(key)
    params = init_params(kp, cfg)

    B = 2
    z = jax.random.normal(kx, (B, cfg["seq_len"], cfg["enc_in"]), F32)
    x_mark_enc = jnp.zeros((B, cfg["seq_len"], 4), F32)            # unused by forward
    x_dec = jnp.zeros((B, cfg["pred_len"], cfg["enc_in"]), F32)    # unused
    x_mark_dec = jnp.zeros((B, cfg["pred_len"], 4), F32)           # unused

    fwd = jax.jit(lambda p, zz: pamba_forward(p, cfg, zz))
    r = jax.block_until_ready(fwd(params, z))
    assert r.shape == (B, cfg["pred_len"], cfg["enc_in"]), r.shape
    assert bool(jnp.all(jnp.isfinite(r)))
    print("KERNEL_OK")
</pallas_src>

<mosaic_0001>
module attributes {stable_mosaic.version = 11 : i64} {
  func.func @_linear_kernel(%arg0: i32, %arg1: memref<16x8xf32, #tpu.memory_space<vmem>>, %arg2: memref<8x32xbf16, #tpu.memory_space<vmem>>, %arg3: memref<1x32xf32, #tpu.memory_space<vmem>>, %arg4: memref<16x32xf32, #tpu.memory_space<vmem>>) attributes {dimension_semantics = [#tpu.dimension_semantics<parallel>], iteration_bounds = array<i64: 2>, scalar_prefetch = 0 : i64, scratch_operands = 0 : i64, tpu.core_type = #tpu.core_type<tc>, window_params = [{transform_indices = @transform_0, window_bounds = array<i64: 16, 8>}, {pipeline_mode = #tpu.pipeline_mode<synchronous>, transform_indices = @transform_1, window_bounds = array<i64: 8, 32>}, {pipeline_mode = #tpu.pipeline_mode<synchronous>, transform_indices = @transform_2, window_bounds = array<i64: 1, 32>}, {transform_indices = @transform_3, window_bounds = array<i64: 16, 32>}]} {
    %c0 = arith.constant 0 : index
    %c0_0 = arith.constant 0 : index
    %0 = vector.load %arg1[%c0, %c0_0] : memref<16x8xf32, #tpu.memory_space<vmem>>, vector<16x8xf32>
    %1 = arith.truncf %0 : vector<16x8xf32> to vector<16x8xbf16>
    %c0_1 = arith.constant 0 : index
    %c0_2 = arith.constant 0 : index
    %2 = vector.load %arg2[%c0_1, %c0_2] : memref<8x32xbf16, #tpu.memory_space<vmem>>, vector<8x32xbf16>
    %cst = arith.constant dense<0.000000e+00> : vector<16x32xf32>
    %3 = tpu.matmul %1, %2, %cst {dimension_numbers = #tpu.dot_dimension_numbers<[1], [0], [0], [1], [0, 0, 1, 1], [], []>} : vector<16x8xbf16>, vector<8x32xbf16>, vector<16x32xf32> -> vector<16x32xf32>
    %c0_3 = arith.constant 0 : index
    %c0_4 = arith.constant 0 : index
    %4 = vector.load %arg3[%c0_3, %c0_4] : memref<1x32xf32, #tpu.memory_space<vmem>>, vector<1x32xf32>
    %5 = vector.broadcast %4 : vector<1x32xf32> to vector<16x32xf32>
    %6 = arith.addf %3, %5 : vector<16x32xf32>
    %c0_5 = arith.constant 0 : index
    %c0_6 = arith.constant 0 : index
    %7 = vector.load %arg4[%c0_5, %c0_6] : memref<16x32xf32, #tpu.memory_space<vmem>>, vector<16x32xf32>
    tpu.vector_store %arg4[%c0_5, %c0_6], %6 {strides = array<i32>} : memref<16x32xf32, #tpu.memory_space<vmem>>, vector<16x32xf32>,
    return
  }
  func.func @transform_0(%arg0: i32) -> (i32, i32) {
    %c0_i32 = arith.constant 0 : i32
    %c0_i32_0 = arith.constant 0 : i32
    return %arg0, %c0_i32 : i32, i32
  }
  func.func @transform_1(%arg0: i32) -> (i32, i32) {
    %c0_i32 = arith.constant 0 : i32
    %c0_i32_0 = arith.constant 0 : i32
    %c0_i32_1 = arith.constant 0 : i32
    return %c0_i32, %c0_i32_0 : i32, i32
  }
  func.func @transform_2(%arg0: i32) -> (i32, i32) {
    %c0_i32 = arith.constant 0 : i32
    %c0_i32_0 = arith.constant 0 : i32
    %c0_i32_1 = arith.constant 0 : i32
    return %c0_i32, %c0_i32_0 : i32, i32
  }
  func.func @transform_3(%arg0: i32) -> (i32, i32) {
    %c0_i32 = arith.constant 0 : i32
    %c0_i32_0 = arith.constant 0 : i32
    return %arg0, %c0_i32 : i32, i32
  }
}

module attributes {stable_mosaic.version = 11 : i64} {
  func.func @_horizon_kernel(%arg0: i32, %arg1: memref<1x16x4xf32, #tpu.memory_space<vmem>>, %arg2: memref<4x1xf32, #tpu.memory_space<vmem>>, %arg3: memref<1x1xf32, #tpu.memory_space<vmem>>, %arg4: memref<16x32xf32, #tpu.memory_space<vmem>>, %arg5: memref<1x32xf32, #tpu.memory_space<vmem>>, %arg6: memref<4x1xf32, #tpu.memory_space<vmem>>, %arg7: memref<1x1xf32, #tpu.memory_space<vmem>>, %arg8: memref<16x32xf32, #tpu.memory_space<vmem>>, %arg9: memref<1x32xf32, #tpu.memory_space<vmem>>, %arg10: memref<1x2x32xf32, #tpu.memory_space<vmem>>) attributes {dimension_semantics = [#tpu.dimension_semantics<parallel>], iteration_bounds = array<i64: 2>, scalar_prefetch = 0 : i64, scratch_operands = 0 : i64, tpu.core_type = #tpu.core_type<tc>, window_params = [{transform_indices = @transform_0, window_bounds = array<i64: 1, 16, 4>}, {pipeline_mode = #tpu.pipeline_mode<synchronous>, transform_indices = @transform_1, window_bounds = array<i64: 4, 1>}, {pipeline_mode = #tpu.pipeline_mode<synchronous>, transform_indices = @transform_2, window_bounds = array<i64: 1, 1>}, {pipeline_mode = #tpu.pipeline_mode<synchronous>, transform_indices = @transform_3, window_bounds = array<i64: 16, 32>}, {pipeline_mode = #tpu.pipeline_mode<synchronous>, transform_indices = @transform_4, window_bounds = array<i64: 1, 32>}, {pipeline_mode = #tpu.pipeline_mode<synchronous>, transform_indices = @transform_5, window_bounds = array<i64: 4, 1>}, {pipeline_mode = #tpu.pipeline_mode<synchronous>, transform_indices = @transform_6, window_bounds = array<i64: 1, 1>}, {pipeline_mode = #tpu.pipeline_mode<synchronous>, transform_indices = @transform_7, window_bounds = array<i64: 16, 32>}, {pipeline_mode = #tpu.pipeline_mode<synchronous>, transform_indices = @transform_8, window_bounds = array<i64: 1, 32>}, {transform_indices = @transform_9, window_bounds = array<i64: 1, 2, 32>}]} {
    %c0 = arith.constant 0 : index
    %c0_0 = arith.constant 0 : index
    %c0_1 = arith.constant 0 : index
    %0 = vector.load %arg1[%c0, %c0_0, %c0_1] : memref<1x16x4xf32, #tpu.memory_space<vmem>>, vector<1x16x4xf32>
    %1 = vector.shape_cast %0 : vector<1x16x4xf32> to vector<16x4xf32>
    %c0_2 = arith.constant 0 : index
    %c0_3 = arith.constant 0 : index
    %2 = vector.load %arg2[%c0_2, %c0_3] : memref<4x1xf32, #tpu.memory_space<vmem>>, vector<4x1xf32>
    %cst = arith.constant dense<0.000000e+00> : vector<16x1xf32>
    %3 = tpu.matmul %1, %2, %cst {dimension_numbers = #tpu.dot_dimension_numbers<[1], [0], [0], [1], [0, 0, 1, 1], [], []>} : vector<16x4xf32>, vector<4x1xf32>, vector<16x1xf32> -> vector<16x1xf32>
    %c0_4 = arith.constant 0 : index
    %c0_5 = arith.constant 0 : index
    %4 = vector.load %arg3[%c0_4, %c0_5] : memref<1x1xf32, #tpu.memory_space<vmem>>, vector<1x1xf32>
    %5 = vector.broadcast %4 : vector<1x1xf32> to vector<16x1xf32>
    %6 = arith.addf %3, %5 : vector<16x1xf32>
    %c0_6 = arith.constant 0 : index
    %c0_7 = arith.constant 0 : index
    %7 = vector.load %arg6[%c0_6, %c0_7] : memref<4x1xf32, #tpu.memory_space<vmem>>, vector<4x1xf32>
    %cst_8 = arith.constant dense<0.000000e+00> : vector<16x1xf32>
    %8 = tpu.matmul %1, %7, %cst_8 {dimension_numbers = #tpu.dot_dimension_numbers<[1], [0], [0], [1], [0, 0, 1, 1], [], []>} : vector<16x4xf32>, vector<4x1xf32>, vector<16x1xf32> -> vector<16x1xf32>
    %c0_9 = arith.constant 0 : index
    %c0_10 = arith.constant 0 : index
    %9 = vector.load %arg7[%c0_9, %c0_10] : memref<1x1xf32, #tpu.memory_space<vmem>>, vector<1x1xf32>
    %10 = vector.broadcast %9 : vector<1x1xf32> to vector<16x1xf32>
    %11 = arith.addf %8, %10 : vector<16x1xf32>
    %c0_11 = arith.constant 0 : index
    %c0_12 = arith.constant 0 : index
    %12 = vector.load %arg4[%c0_11, %c0_12] : memref<16x32xf32, #tpu.memory_space<vmem>>, vector<16x32xf32>
    %13 = vector.broadcast %6 : vector<16x1xf32> to vector<16x32xf32>
    %14 = arith.mulf %13, %12 : vector<16x32xf32>
    %cst_13 = arith.constant dense<0.000000e+00> : vector<32xf32>
    %15 = vector.multi_reduction <add>, %14, %cst_13 [0] : vector<16x32xf32> to vector<32xf32>
    %16 = vector.shape_cast %15 : vector<32xf32> to vector<1x32xf32>
    %c0_14 = arith.constant 0 : index
    %c0_15 = arith.constant 0 : index
    %17 = vector.load %arg5[%c0_14, %c0_15] : memref<1x32xf32, #tpu.memory_space<vmem>>, vector<1x32xf32>
    %18 = arith.addf %16, %17 : vector<1x32xf32>
    %c0_16 = arith.constant 0 : index
    %c0_17 = arith.constant 0 : index
    %19 = vector.load %arg8[%c0_16, %c0_17] : memref<16x32xf32, #tpu.memory_space<vmem>>, vector<16x32xf32>
    %20 = vector.broadcast %11 : vector<16x1xf32> to vector<16x32xf32>
    %21 = arith.mulf %20, %19 : vector<16x32xf32>
    %cst_18 = arith.constant dense<0.000000e+00> : vector<32xf32>
    %22 = vector.multi_reduction <add>, %21, %cst_18 [0] : vector<16x32xf32> to vector<32xf32>
    %23 = vector.shape_cast %22 : vector<32xf32> to vector<1x32xf32>
    %c0_19 = arith.constant 0 : index
    %c0_20 = arith.constant 0 : index
    %24 = vector.load %arg9[%c0_19, %c0_20] : memref<1x32xf32, #tpu.memory_space<vmem>>, vector<1x32xf32>
    %25 = arith.addf %23, %24 : vector<1x32xf32>
    %26 = tpu.concatenate %18, %25 in 0 : vector<1x32xf32>, vector<1x32xf32> -> vector<2x32xf32>
    %c0_21 = arith.constant 0 : index
    %c0_22 = arith.constant 0 : index
    %c0_23 = arith.constant 0 : index
    %27 = vector.load %arg10[%c0_21, %c0_22, %c0_23] : memref<1x2x32xf32, #tpu.memory_space<vmem>>, vector<1x2x32xf32>
    %28 = vector.shape_cast %27 : vector<1x2x32xf32> to vector<2x32xf32>
    %29 = vector.shape_cast %26 : vector<2x32xf32> to vector<1x2x32xf32>
    tpu.vector_store %arg10[%c0_21, %c0_22, %c0_23], %29 {strides = array<i32>} : memref<1x2x32xf32, #tpu.memory_space<vmem>>, vector<1x2x32xf32>,
    return
  }
  func.func @transform_0(%arg0: i32) -> (i32, i32, i32) {
    %c0_i32 = arith.constant 0 : i32
    %c0_i32_0 = arith.constant 0 : i32
    %c0_i32_1 = arith.constant 0 : i32
    return %arg0, %c0_i32, %c0_i32_0 : i32, i32, i32
  }
  func.func @transform_1(%arg0: i32) -> (i32, i32) {
    %c0_i32 = arith.constant 0 : i32
    %c0_i32_0 = arith.constant 0 : i32
    %c0_i32_1 = arith.constant 0 : i32
    return %c0_i32, %c0_i32_0 : i32, i32
  }
  func.func @transform_2(%arg0: i32) -> (i32, i32) {
    %c0_i32 = arith.constant 0 : i32
    %c0_i32_0 = arith.constant 0 : i32
    %c0_i32_1 = arith.constant 0 : i32
    return %c0_i32, %c0_i32_0 : i32, i32
  }
  func.func @transform_3(%arg0: i32) -> (i32, i32) {
    %c0_i32 = arith.constant 0 : i32
    %c0_i32_0 = arith.constant 0 : i32
    %c0_i32_1 = arith.constant 0 : i32
    return %c0_i32, %c0_i32_0 : i32, i32
  }
  func.func @transform_4(%arg0: i32) -> (i32, i32) {
    %c0_i32 = arith.constant 0 : i32
    %c0_i32_0 = arith.constant 0 : i32
    %c0_i32_1 = arith.constant 0 : i32
    return %c0_i32, %c0_i32_0 : i32, i32
  }
  func.func @transform_5(%arg0: i32) -> (i32, i32) {
    %c0_i32 = arith.constant 0 : i32
    %c0_i32_0 = arith.constant 0 : i32
    %c0_i32_1 = arith.constant 0 : i32
    return %c0_i32, %c0_i32_0 : i32, i32
  }
  func.func @transform_6(%arg0: i32) -> (i32, i32) {
    %c0_i32 = arith.constant 0 : i32
    %c0_i32_0 = arith.constant 0 : i32
    %c0_i32_1 = arith.constant 0 : i32
    return %c0_i32, %c0_i32_0 : i32, i32
  }
  func.func @transform_7(%arg0: i32) -> (i32, i32) {
    %c0_i32 = arith.constant 0 : i32
    %c0_i32_0 = arith.constant 0 : i32
    %c0_i32_1 = arith.constant 0 : i32
    return %c0_i32, %c0_i32_0 : i32, i32
  }
  func.func @transform_8(%arg0: i32) -> (i32, i32) {
    %c0_i32 = arith.constant 0 : i32
    %c0_i32_0 = arith.constant 0 : i32
    %c0_i32_1 = arith.constant 0 : i32
    return %c0_i32, %c0_i32_0 : i32, i32
  }
  func.func @transform_9(%arg0: i32) -> (i32, i32, i32) {
    %c0_i32 = arith.constant 0 : i32
    %c0_i32_0 = arith.constant 0 : i32
    %c0_i32_1 = arith.constant 0 : i32
    return %arg0, %c0_i32, %c0_i32_0 : i32, i32, i32
  }
}

module attributes {stable_mosaic.version = 11 : i64} {
  func.func @_mamba_kernel(%arg0: i32, %arg1: memref<1x17x32xf32, #tpu.memory_space<vmem>>, %arg2: memref<32x32xbf16, #tpu.memory_space<vmem>>, %arg3: memref<32x32xbf16, #tpu.memory_space<vmem>>, %arg4: memref<2x32xf32, #tpu.memory_space<vmem>>, %arg5: memref<1x32xf32, #tpu.memory_space<vmem>>, %arg6: memref<32x48xbf16, #tpu.memory_space<vmem>>, %arg7: memref<1x32xf32, #tpu.memory_space<vmem>>, %arg8: memref<8x32xf32, #tpu.memory_space<vmem>>, %arg9: memref<1x32xf32, #tpu.memory_space<vmem>>, %arg10: memref<32x32xbf16, #tpu.memory_space<vmem>>, %arg11: memref<1x17x32xf32, #tpu.memory_space<vmem>>, %arg12: memref<32x32xf32, #tpu.memory_space<vmem>>, %arg13: memref<24x32xf32, #tpu.memory_space<vmem>>, %arg14: memref<24x32xf32, #tpu.memory_space<vmem>>, %arg15: memref<24x8xf32, #tpu.memory_space<vmem>>, %arg16: memref<24x8xf32, #tpu.memory_space<vmem>>, %arg17: memref<24x32xf32, #tpu.memory_space<vmem>>) attributes {dimension_semantics = [#tpu.dimension_semantics<parallel>], iteration_bounds = array<i64: 2>, scalar_prefetch = 0 : i64, scratch_operands = 6 : i64, tpu.core_type = #tpu.core_type<tc>, window_params = [{transform_indices = @transform_0, window_bounds = array<i64: 1, 17, 32>}, {pipeline_mode = #tpu.pipeline_mode<synchronous>, transform_indices = @transform_1, window_bounds = array<i64: 32, 32>}, {pipeline_mode = #tpu.pipeline_mode<synchronous>, transform_indices = @transform_2, window_bounds = array<i64: 32, 32>}, {pipeline_mode = #tpu.pipeline_mode<synchronous>, transform_indices = @transform_3, window_bounds = array<i64: 2, 32>}, {pipeline_mode = #tpu.pipeline_mode<synchronous>, transform_indices = @transform_4, window_bounds = array<i64: 1, 32>}, {pipeline_mode = #tpu.pipeline_mode<synchronous>, transform_indices = @transform_5, window_bounds = array<i64: 32, 48>}, {pipeline_mode = #tpu.pipeline_mode<synchronous>, transform_indices = @transform_6, window_bounds = array<i64: 1, 32>}, {pipeline_mode = #tpu.pipeline_mode<synchronous>, transform_indices = @transform_7, window_bounds = array<i64: 8, 32>}, {pipeline_mode = #tpu.pipeline_mode<synchronous>, transform_indices = @transform_8, window_bounds = array<i64: 1, 32>}, {pipeline_mode = #tpu.pipeline_mode<synchronous>, transform_indices = @transform_9, window_bounds = array<i64: 32, 32>}, {transform_indices = @transform_10, window_bounds = array<i64: 1, 17, 32>}]} {
    %c0 = arith.constant 0 : index
    %c0_0 = arith.constant 0 : index
    %c0_1 = arith.constant 0 : index
    %0 = vector.load %arg1[%c0, %c0_0, %c0_1] : memref<1x17x32xf32, #tpu.memory_space<vmem>>, vector<1x17x32xf32>
    %1 = vector.shape_cast %0 : vector<1x17x32xf32> to vector<17x32xf32>
    %2 = arith.truncf %1 : vector<17x32xf32> to vector<17x32xbf16>
    %c0_2 = arith.constant 0 : index
    %c0_3 = arith.constant 0 : index
    %3 = vector.load %arg2[%c0_2, %c0_3] : memref<32x32xbf16, #tpu.memory_space<vmem>>, vector<32x32xbf16>
    %cst = arith.constant dense<0.000000e+00> : vector<17x32xf32>
    %4 = tpu.matmul %2, %3, %cst {dimension_numbers = #tpu.dot_dimension_numbers<[1], [0], [0], [1], [0, 0, 1, 1], [], []>} : vector<17x32xbf16>, vector<32x32xbf16>, vector<17x32xf32> -> vector<17x32xf32>
    %c0_4 = arith.constant 0 : index
    %c0_5 = arith.constant 0 : index
    %5 = vector.load %arg3[%c0_4, %c0_5] : memref<32x32xbf16, #tpu.memory_space<vmem>>, vector<32x32xbf16>
    %cst_6 = arith.constant dense<0.000000e+00> : vector<17x32xf32>
    %6 = tpu.matmul %2, %5, %cst_6 {dimension_numbers = #tpu.dot_dimension_numbers<[1], [0], [0], [1], [0, 0, 1, 1], [], []>} : vector<17x32xbf16>, vector<32x32xbf16>, vector<17x32xf32> -> vector<17x32xf32>
    %cst_7 = arith.constant 0.000000e+00 : f32
    %7 = vector.broadcast %cst_7 : f32 to vector<1x32xf32>
    %c0_8 = arith.constant 0 : index
    %c0_9 = arith.constant 0 : index
    %8 = vector.load %arg12[%c0_8, %c0_9] : memref<32x32xf32, #tpu.memory_space<vmem>>, vector<1x32xf32>
    tpu.vector_store %arg12[%c0_8, %c0_9], %7 {strides = array<i32>} : memref<32x32xf32, #tpu.memory_space<vmem>>, vector<1x32xf32>,
    %c1 = arith.constant 1 : index
    %c0_10 = arith.constant 0 : index
    %9 = vector.load %arg12[%c1, %c0_10] : memref<32x32xf32, #tpu.memory_space<vmem>>, vector<17x32xf32>
    tpu.vector_store %arg12[%c1, %c0_10], %4 {strides = array<i32>} : memref<32x32xf32, #tpu.memory_space<vmem>>, vector<17x32xf32>,
    %cst_11 = arith.constant 0.000000e+00 : f32
    %10 = vector.broadcast %cst_11 : f32 to vector<1x32xf32>
    %c18 = arith.constant 18 : index
    %c0_12 = arith.constant 0 : index
    %11 = vector.load %arg12[%c18, %c0_12] : memref<32x32xf32, #tpu.memory_space<vmem>>, vector<1x32xf32>
    tpu.vector_store %arg12[%c18, %c0_12], %10 {strides = array<i32>} : memref<32x32xf32, #tpu.memory_space<vmem>>, vector<1x32xf32>,
    %c0_13 = arith.constant 0 : index
    %c0_14 = arith.constant 0 : index
    %12 = vector.load %arg12[%c0_13, %c0_14] : memref<32x32xf32, #tpu.memory_space<vmem>>, vector<17x32xf32>
    %c0_15 = arith.constant 0 : index
    %c0_16 = arith.constant 0 : index
    %13 = vector.load %arg4[%c0_15, %c0_16] : memref<2x32xf32, #tpu.memory_space<vmem>>, vector<1x32xf32>
    %14 = vector.broadcast %13 : vector<1x32xf32> to vector<17x32xf32>
    %15 = arith.mulf %12, %14 : vector<17x32xf32>
    %c1_17 = arith.constant 1 : index
    %c0_18 = arith.constant 0 : index
    %16 = vector.load %arg4[%c1_17, %c0_18] : memref<2x32xf32, #tpu.memory_space<vmem>>, vector<1x32xf32>
    %17 = vector.broadcast %16 : vector<1x32xf32> to vector<17x32xf32>
    %18 = arith.mulf %4, %17 : vector<17x32xf32>
    %19 = arith.addf %15, %18 : vector<17x32xf32>
    %c0_19 = arith.constant 0 : index
    %c0_20 = arith.constant 0 : index
    %20 = vector.load %arg5[%c0_19, %c0_20] : memref<1x32xf32, #tpu.memory_space<vmem>>, vector<1x32xf32>
    %21 = vector.broadcast %20 : vector<1x32xf32> to vector<17x32xf32>
    %22 = arith.addf %19, %21 : vector<17x32xf32>
    %23 = arith.negf %22 : vector<17x32xf32>
    %24 = math.exp %23 : vector<17x32xf32>
    %cst_21 = arith.constant 1.000000e+00 : f32
    %25 = vector.broadcast %cst_21 : f32 to vector<17x32xf32>
    %26 = arith.addf %25, %24 : vector<17x32xf32>
    %27 = arith.divf %25, %26 : vector<17x32xf32>
    %28 = arith.mulf %22, %27 : vector<17x32xf32>
    %29 = arith.truncf %28 : vector<17x32xf32> to vector<17x32xbf16>
    %c0_22 = arith.constant 0 : index
    %c0_23 = arith.constant 0 : index
    %30 = vector.load %arg6[%c0_22, %c0_23] : memref<32x48xbf16, #tpu.memory_space<vmem>>, vector<32x48xbf16>
    %cst_24 = arith.constant dense<0.000000e+00> : vector<17x48xf32>
    %31 = tpu.matmul %29, %30, %cst_24 {dimension_numbers = #tpu.dot_dimension_numbers<[1], [0], [0], [1], [0, 0, 1, 1], [], []>} : vector<17x32xbf16>, vector<32x48xbf16>, vector<17x48xf32> -> vector<17x48xf32>
    %32 = vector.extract_strided_slice %31 {offsets = [0, 0], sizes = [17, 32], strides = [1, 1]} : vector<17x48xf32> to vector<17x32xf32>
    %c0_25 = arith.constant 0 : index
    %c0_26 = arith.constant 0 : index
    %33 = vector.load %arg7[%c0_25, %c0_26] : memref<1x32xf32, #tpu.memory_space<vmem>>, vector<1x32xf32>
    %34 = vector.broadcast %33 : vector<1x32xf32> to vector<17x32xf32>
    %35 = arith.addf %32, %34 : vector<17x32xf32>
    %cst_27 = arith.constant 0.000000e+00 : f32
    %36 = vector.broadcast %cst_27 : f32 to vector<17x32xf32>
    %37 = arith.maximumf %35, %36 : vector<17x32xf32>
    %38 = math.absf %35 : vector<17x32xf32>
    %cst_28 = arith.constant 0.000000e+00 : f32
    %39 = vector.broadcast %cst_28 : f32 to vector<17x32xf32>
    %40 = arith.subf %39, %38 : vector<17x32xf32>
    %41 = math.exp %40 : vector<17x32xf32>
    %cst_29 = arith.constant 1.000000e+00 : f32
    %42 = vector.broadcast %cst_29 : f32 to vector<17x32xf32>
    %43 = arith.addf %42, %41 : vector<17x32xf32>
    %44 = math.log %43 : vector<17x32xf32>
    %45 = arith.addf %37, %44 : vector<17x32xf32>
    %46 = vector.extract_strided_slice %31 {offsets = [0, 32], sizes = [17, 8], strides = [1, 1]} : vector<17x48xf32> to vector<17x8xf32>
    %47 = vector.extract_strided_slice %31 {offsets = [0, 40], sizes = [17, 8], strides = [1, 1]} : vector<17x48xf32> to vector<17x8xf32>
    %c0_30 = arith.constant 0 : index
    %c0_31 = arith.constant 0 : index
    %48 = vector.load %arg13[%c0_30, %c0_31] : memref<24x32xf32, #tpu.memory_space<vmem>>, vector<17x32xf32>
    tpu.vector_store %arg13[%c0_30, %c0_31], %45 {strides = array<i32>} : memref<24x32xf32, #tpu.memory_space<vmem>>, vector<17x32xf32>,
    %49 = arith.mulf %45, %28 : vector<17x32xf32>
    %c0_32 = arith.constant 0 : index
    %c0_33 = arith.constant 0 : index
    %50 = vector.load %arg14[%c0_32, %c0_33] : memref<24x32xf32, #tpu.memory_space<vmem>>, vector<17x32xf32>
    tpu.vector_store %arg14[%c0_32, %c0_33], %49 {strides = array<i32>} : memref<24x32xf32, #tpu.memory_space<vmem>>, vector<17x32xf32>,
    %c0_34 = arith.constant 0 : index
    %c0_35 = arith.constant 0 : index
    %51 = vector.load %arg15[%c0_34, %c0_35] : memref<24x8xf32, #tpu.memory_space<vmem>>, vector<17x8xf32>
    tpu.vector_store %arg15[%c0_34, %c0_35], %46 {strides = array<i32>} : memref<24x8xf32, #tpu.memory_space<vmem>>, vector<17x8xf32>,
    %c0_36 = arith.constant 0 : index
    %c0_37 = arith.constant 0 : index
    %52 = vector.load %arg16[%c0_36, %c0_37] : memref<24x8xf32, #tpu.memory_space<vmem>>, vector<17x8xf32>
    tpu.vector_store %arg16[%c0_36, %c0_37], %47 {strides = array<i32>} : memref<24x8xf32, #tpu.memory_space<vmem>>, vector<17x8xf32>,
    %cst_38 = arith.constant 0.000000e+00 : f32
    %53 = vector.broadcast %cst_38 : f32 to vector<7x32xf32>
    %c17 = arith.constant 17 : index
    %c0_39 = arith.constant 0 : index
    %54 = vector.load %arg13[%c17, %c0_39] : memref<24x32xf32, #tpu.memory_space<vmem>>, vector<7x32xf32>
    tpu.vector_store %arg13[%c17, %c0_39], %53 {strides = array<i32>} : memref<24x32xf32, #tpu.memory_space<vmem>>, vector<7x32xf32>,
    %cst_40 = arith.constant 0.000000e+00 : f32
    %55 = vector.broadcast %cst_40 : f32 to vector<7x32xf32>
    %c17_41 = arith.constant 17 : index
    %c0_42 = arith.constant 0 : index
    %56 = vector.load %arg14[%c17_41, %c0_42] : memref<24x32xf32, #tpu.memory_space<vmem>>, vector<7x32xf32>
    tpu.vector_store %arg14[%c17_41, %c0_42], %55 {strides = array<i32>} : memref<24x32xf32, #tpu.memory_space<vmem>>, vector<7x32xf32>,
    %cst_43 = arith.constant 0.000000e+00 : f32
    %57 = vector.broadcast %cst_43 : f32 to vector<7x8xf32>
    %c17_44 = arith.constant 17 : index
    %c0_45 = arith.constant 0 : index
    %58 = vector.load %arg15[%c17_44, %c0_45] : memref<24x8xf32, #tpu.memory_space<vmem>>, vector<7x8xf32>
    tpu.vector_store %arg15[%c17_44, %c0_45], %57 {strides = array<i32>} : memref<24x8xf32, #tpu.memory_space<vmem>>, vector<7x8xf32>,
    %cst_46 = arith.constant 0.000000e+00 : f32
    %59 = vector.broadcast %cst_46 : f32 to vector<7x8xf32>
    %c17_47 = arith.constant 17 : index
    %c0_48 = arith.constant 0 : index
    %60 = vector.load %arg16[%c17_47, %c0_48] : memref<24x8xf32, #tpu.memory_space<vmem>>, vector<7x8xf32>
    tpu.vector_store %arg16[%c17_47, %c0_48], %59 {strides = array<i32>} : memref<24x8xf32, #tpu.memory_space<vmem>>, vector<7x8xf32>,
    %c0_49 = arith.constant 0 : index
    %c0_50 = arith.constant 0 : index
    %61 = vector.load %arg8[%c0_49, %c0_50] : memref<8x32xf32, #tpu.memory_space<vmem>>, vector<8x32xf32>
    %cst_51 = arith.constant 0.000000e+00 : f32
    %62 = vector.broadcast %cst_51 : f32 to vector<8x32xf32>
    %c0_i32 = arith.constant 0 : i32
    %c8_i32 = arith.constant 8 : i32
    %63 = arith.muli %c0_i32, %c8_i32 : i32
    %64 = tpu.assume_multiple %63, 8 : i32
    %65 = arith.index_cast %64 : i32 to index
    %c0_52 = arith.constant 0 : index
    %66 = vector.load %arg13[%65, %c0_52] : memref<24x32xf32, #tpu.memory_space<vmem>>, vector<8x32xf32>
    %67 = arith.index_cast %64 : i32 to index
    %c0_53 = arith.constant 0 : index
    %68 = vector.load %arg14[%67, %c0_53] : memref<24x32xf32, #tpu.memory_space<vmem>>, vector<8x32xf32>
    %69 = arith.index_cast %64 : i32 to index
    %c0_54 = arith.constant 0 : index
    %70 = vector.load %arg15[%69, %c0_54] : memref<24x8xf32, #tpu.memory_space<vmem>>, vector<8x8xf32>
    %71 = arith.index_cast %64 : i32 to index
    %c0_55 = arith.constant 0 : index
    %72 = vector.load %arg16[%71, %c0_55] : memref<24x8xf32, #tpu.memory_space<vmem>>, vector<8x8xf32>
    %73 = vector.shape_cast %66 : vector<8x32xf32> to vector<8x1x32xf32>
    %74 = vector.shape_cast %61 : vector<8x32xf32> to vector<1x8x32xf32>
    %75 = vector.broadcast %73 : vector<8x1x32xf32> to vector<8x8x32xf32>
    %76 = vector.broadcast %74 : vector<1x8x32xf32> to vector<8x8x32xf32>
    %77 = arith.mulf %75, %76 : vector<8x8x32xf32>
    %78 = math.exp %77 : vector<8x8x32xf32>
    %79 = vector.shape_cast %70 : vector<8x8xf32> to vector<8x8x1xf32>
    %80 = vector.shape_cast %68 : vector<8x32xf32> to vector<8x1x32xf32>
    %81 = vector.broadcast %79 : vector<8x8x1xf32> to vector<8x8x32xf32>
    %82 = vector.broadcast %80 : vector<8x1x32xf32> to vector<8x8x32xf32>
    %83 = arith.mulf %81, %82 : vector<8x8x32xf32>
    %84 = vector.extract_strided_slice %78 {offsets = [0, 0, 0], sizes = [1, 8, 32], strides = [1, 1, 1]} : vector<8x8x32xf32> to vector<1x8x32xf32>
    %85 = vector.shape_cast %84 : vector<1x8x32xf32> to vector<8x32xf32>
    %86 = arith.mulf %85, %62 : vector<8x32xf32>
    %87 = vector.extract_strided_slice %83 {offsets = [0, 0, 0], sizes = [1, 8, 32], strides = [1, 1, 1]} : vector<8x8x32xf32> to vector<1x8x32xf32>
    %88 = vector.shape_cast %87 : vector<1x8x32xf32> to vector<8x32xf32>
    %89 = arith.addf %86, %88 : vector<8x32xf32>
    %90 = vector.extract_strided_slice %78 {offsets = [1, 0, 0], sizes = [1, 8, 32], strides = [1, 1, 1]} : vector<8x8x32xf32> to vector<1x8x32xf32>
    %91 = vector.shape_cast %90 : vector<1x8x32xf32> to vector<8x32xf32>
    %92 = arith.mulf %91, %89 : vector<8x32xf32>
    %93 = vector.extract_strided_slice %83 {offsets = [1, 0, 0], sizes = [1, 8, 32], strides = [1, 1, 1]} : vector<8x8x32xf32> to vector<1x8x32xf32>
    %94 = vector.shape_cast %93 : vector<1x8x32xf32> to vector<8x32xf32>
    %95 = arith.addf %92, %94 : vector<8x32xf32>
    %96 = vector.extract_strided_slice %78 {offsets = [2, 0, 0], sizes = [1, 8, 32], strides = [1, 1, 1]} : vector<8x8x32xf32> to vector<1x8x32xf32>
    %97 = vector.shape_cast %96 : vector<1x8x32xf32> to vector<8x32xf32>
    %98 = arith.mulf %97, %95 : vector<8x32xf32>
    %99 = vector.extract_strided_slice %83 {offsets = [2, 0, 0], sizes = [1, 8, 32], strides = [1, 1, 1]} : vector<8x8x32xf32> to vector<1x8x32xf32>
    %100 = vector.shape_cast %99 : vector<1x8x32xf32> to vector<8x32xf32>
    %101 = arith.addf %98, %100 : vector<8x32xf32>
    %102 = vector.extract_strided_slice %78 {offsets = [3, 0, 0], sizes = [1, 8, 32], strides = [1, 1, 1]} : vector<8x8x32xf32> to vector<1x8x32xf32>
    %103 = vector.shape_cast %102 : vector<1x8x32xf32> to vector<8x32xf32>
    %104 = arith.mulf %103, %101 : vector<8x32xf32>
    %105 = vector.extract_strided_slice %83 {offsets = [3, 0, 0], sizes = [1, 8, 32], strides = [1, 1, 1]} : vector<8x8x32xf32> to vector<1x8x32xf32>
    %106 = vector.shape_cast %105 : vector<1x8x32xf32> to vector<8x32xf32>
    %107 = arith.addf %104, %106 : vector<8x32xf32>
    %108 = vector.extract_strided_slice %78 {offsets = [4, 0, 0], sizes = [1, 8, 32], strides = [1, 1, 1]} : vector<8x8x32xf32> to vector<1x8x32xf32>
    %109 = vector.shape_cast %108 : vector<1x8x32xf32> to vector<8x32xf32>
    %110 = arith.mulf %109, %107 : vector<8x32xf32>
    %111 = vector.extract_strided_slice %83 {offsets = [4, 0, 0], sizes = [1, 8, 32], strides = [1, 1, 1]} : vector<8x8x32xf32> to vector<1x8x32xf32>
    %112 = vector.shape_cast %111 : vector<1x8x32xf32> to vector<8x32xf32>
    %113 = arith.addf %110, %112 : vector<8x32xf32>
    %114 = vector.extract_strided_slice %78 {offsets = [5, 0, 0], sizes = [1, 8, 32], strides = [1, 1, 1]} : vector<8x8x32xf32> to vector<1x8x32xf32>
    %115 = vector.shape_cast %114 : vector<1x8x32xf32> to vector<8x32xf32>
    %116 = arith.mulf %115, %113 : vector<8x32xf32>
    %117 = vector.extract_strided_slice %83 {offsets = [5, 0, 0], sizes = [1, 8, 32], strides = [1, 1, 1]} : vector<8x8x32xf32> to vector<1x8x32xf32>
    %118 = vector.shape_cast %117 : vector<1x8x32xf32> to vector<8x32xf32>
    %119 = arith.addf %116, %118 : vector<8x32xf32>
    %120 = vector.extract_strided_slice %78 {offsets = [6, 0, 0], sizes = [1, 8, 32], strides = [1, 1, 1]} : vector<8x8x32xf32> to vector<1x8x32xf32>
    %121 = vector.shape_cast %120 : vector<1x8x32xf32> to vector<8x32xf32>
    %122 = arith.mulf %121, %119 : vector<8x32xf32>
    %123 = vector.extract_strided_slice %83 {offsets = [6, 0, 0], sizes = [1, 8, 32], strides = [1, 1, 1]} : vector<8x8x32xf32> to vector<1x8x32xf32>
    %124 = vector.shape_cast %123 : vector<1x8x32xf32> to vector<8x32xf32>
    %125 = arith.addf %122, %124 : vector<8x32xf32>
    %126 = vector.extract_strided_slice %78 {offsets = [7, 0, 0], sizes = [1, 8, 32], strides = [1, 1, 1]} : vector<8x8x32xf32> to vector<1x8x32xf32>
    %127 = vector.shape_cast %126 : vector<1x8x32xf32> to vector<8x32xf32>
    %128 = arith.mulf %127, %125 : vector<8x32xf32>
    %129 = vector.extract_strided_slice %83 {offsets = [7, 0, 0], sizes = [1, 8, 32], strides = [1, 1, 1]} : vector<8x8x32xf32> to vector<1x8x32xf32>
    %130 = vector.shape_cast %129 : vector<1x8x32xf32> to vector<8x32xf32>
    %131 = arith.addf %128, %130 : vector<8x32xf32>
    %132 = vector.shape_cast %89 : vector<8x32xf32> to vector<1x8x32xf32>
    %133 = vector.shape_cast %95 : vector<8x32xf32> to vector<1x8x32xf32>
    %134 = vector.shape_cast %101 : vector<8x32xf32> to vector<1x8x32xf32>
    %135 = vector.shape_cast %107 : vector<8x32xf32> to vector<1x8x32xf32>
    %136 = vector.shape_cast %113 : vector<8x32xf32> to vector<1x8x32xf32>
    %137 = vector.shape_cast %119 : vector<8x32xf32> to vector<1x8x32xf32>
    %138 = vector.shape_cast %125 : vector<8x32xf32> to vector<1x8x32xf32>
    %139 = vector.shape_cast %131 : vector<8x32xf32> to vector<1x8x32xf32>
    %140 = tpu.concatenate %132, %133, %134, %135, %136, %137, %138, %139 in 0 : vector<1x8x32xf32>, vector<1x8x32xf32>, vector<1x8x32xf32>, vector<1x8x32xf32>, vector<1x8x32xf32>, vector<1x8x32xf32>, vector<1x8x32xf32>, vector<1x8x32xf32> -> vector<8x8x32xf32>
    %141 = vector.shape_cast %72 : vector<8x8xf32> to vector<8x8x1xf32>
    %142 = vector.broadcast %141 : vector<8x8x1xf32> to vector<8x8x32xf32>
    %143 = arith.mulf %140, %142 : vector<8x8x32xf32>
    %cst_56 = arith.constant dense<0.000000e+00> : vector<8x32xf32>
    %144 = vector.multi_reduction <add>, %143, %cst_56 [1] : vector<8x8x32xf32> to vector<8x32xf32>
    %145 = arith.index_cast %64 : i32 to index
    %c0_57 = arith.constant 0 : index
    %146 = vector.load %arg17[%145, %c0_57] : memref<24x32xf32, #tpu.memory_space<vmem>>, vector<8x32xf32>
    tpu.vector_store %arg17[%145, %c0_57], %144 {strides = array<i32>} : memref<24x32xf32, #tpu.memory_space<vmem>>, vector<8x32xf32>,
    %c1_i32 = arith.constant 1 : i32
    %c8_i32_58 = arith.constant 8 : i32
    %147 = arith.muli %c1_i32, %c8_i32_58 : i32
    %148 = tpu.assume_multiple %147, 8 : i32
    %149 = arith.index_cast %148 : i32 to index
    %c0_59 = arith.constant 0 : index
    %150 = vector.load %arg13[%149, %c0_59] : memref<24x32xf32, #tpu.memory_space<vmem>>, vector<8x32xf32>
    %151 = arith.index_cast %148 : i32 to index
    %c0_60 = arith.constant 0 : index
    %152 = vector.load %arg14[%151, %c0_60] : memref<24x32xf32, #tpu.memory_space<vmem>>, vector<8x32xf32>
    %153 = arith.index_cast %148 : i32 to index
    %c0_61 = arith.constant 0 : index
    %154 = vector.load %arg15[%153, %c0_61] : memref<24x8xf32, #tpu.memory_space<vmem>>, vector<8x8xf32>
    %155 = arith.index_cast %148 : i32 to index
    %c0_62 = arith.constant 0 : index
    %156 = vector.load %arg16[%155, %c0_62] : memref<24x8xf32, #tpu.memory_space<vmem>>, vector<8x8xf32>
    %157 = vector.shape_cast %150 : vector<8x32xf32> to vector<8x1x32xf32>
    %158 = vector.shape_cast %61 : vector<8x32xf32> to vector<1x8x32xf32>
    %159 = vector.broadcast %157 : vector<8x1x32xf32> to vector<8x8x32xf32>
    %160 = vector.broadcast %158 : vector<1x8x32xf32> to vector<8x8x32xf32>
    %161 = arith.mulf %159, %160 : vector<8x8x32xf32>
    %162 = math.exp %161 : vector<8x8x32xf32>
    %163 = vector.shape_cast %154 : vector<8x8xf32> to vector<8x8x1xf32>
    %164 = vector.shape_cast %152 : vector<8x32xf32> to vector<8x1x32xf32>
    %165 = vector.broadcast %163 : vector<8x8x1xf32> to vector<8x8x32xf32>
    %166 = vector.broadcast %164 : vector<8x1x32xf32> to vector<8x8x32xf32>
    %167 = arith.mulf %165, %166 : vector<8x8x32xf32>
    %168 = vector.extract_strided_slice %162 {offsets = [0, 0, 0], sizes = [1, 8, 32], strides = [1, 1, 1]} : vector<8x8x32xf32> to vector<1x8x32xf32>
    %169 = vector.shape_cast %168 : vector<1x8x32xf32> to vector<8x32xf32>
    %170 = arith.mulf %169, %131 : vector<8x32xf32>
    %171 = vector.extract_strided_slice %167 {offsets = [0, 0, 0], sizes = [1, 8, 32], strides = [1, 1, 1]} : vector<8x8x32xf32> to vector<1x8x32xf32>
    %172 = vector.shape_cast %171 : vector<1x8x32xf32> to vector<8x32xf32>
    %173 = arith.addf %170, %172 : vector<8x32xf32>
    %174 = vector.extract_strided_slice %162 {offsets = [1, 0, 0], sizes = [1, 8, 32], strides = [1, 1, 1]} : vector<8x8x32xf32> to vector<1x8x32xf32>
    %175 = vector.shape_cast %174 : vector<1x8x32xf32> to vector<8x32xf32>
    %176 = arith.mulf %175, %173 : vector<8x32xf32>
    %177 = vector.extract_strided_slice %167 {offsets = [1, 0, 0], sizes = [1, 8, 32], strides = [1, 1, 1]} : vector<8x8x32xf32> to vector<1x8x32xf32>
    %178 = vector.shape_cast %177 : vector<1x8x32xf32> to vector<8x32xf32>
    %179 = arith.addf %176, %178 : vector<8x32xf32>
    %180 = vector.extract_strided_slice %162 {offsets = [2, 0, 0], sizes = [1, 8, 32], strides = [1, 1, 1]} : vector<8x8x32xf32> to vector<1x8x32xf32>
    %181 = vector.shape_cast %180 : vector<1x8x32xf32> to vector<8x32xf32>
    %182 = arith.mulf %181, %179 : vector<8x32xf32>
    %183 = vector.extract_strided_slice %167 {offsets = [2, 0, 0], sizes = [1, 8, 32], strides = [1, 1, 1]} : vector<8x8x32xf32> to vector<1x8x32xf32>
    %184 = vector.shape_cast %183 : vector<1x8x32xf32> to vector<8x32xf32>
    %185 = arith.addf %182, %184 : vector<8x32xf32>
    %186 = vector.extract_strided_slice %162 {offsets = [3, 0, 0], sizes = [1, 8, 32], strides = [1, 1, 1]} : vector<8x8x32xf32> to vector<1x8x32xf32>
    %187 = vector.shape_cast %186 : vector<1x8x32xf32> to vector<8x32xf32>
    %188 = arith.mulf %187, %185 : vector<8x32xf32>
    %189 = vector.extract_strided_slice %167 {offsets = [3, 0, 0], sizes = [1, 8, 32], strides = [1, 1, 1]} : vector<8x8x32xf32> to vector<1x8x32xf32>
    %190 = vector.shape_cast %189 : vector<1x8x32xf32> to vector<8x32xf32>
    %191 = arith.addf %188, %190 : vector<8x32xf32>
    %192 = vector.extract_strided_slice %162 {offsets = [4, 0, 0], sizes = [1, 8, 32], strides = [1, 1, 1]} : vector<8x8x32xf32> to vector<1x8x32xf32>
    %193 = vector.shape_cast %192 : vector<1x8x32xf32> to vector<8x32xf32>
    %194 = arith.mulf %193, %191 : vector<8x32xf32>
    %195 = vector.extract_strided_slice %167 {offsets = [4, 0, 0], sizes = [1, 8, 32], strides = [1, 1, 1]} : vector<8x8x32xf32> to vector<1x8x32xf32>
    %196 = vector.shape_cast %195 : vector<1x8x32xf32> to vector<8x32xf32>
    %197 = arith.addf %194, %196 : vector<8x32xf32>
    %198 = vector.extract_strided_slice %162 {offsets = [5, 0, 0], sizes = [1, 8, 32], strides = [1, 1, 1]} : vector<8x8x32xf32> to vector<1x8x32xf32>
    %199 = vector.shape_cast %198 : vector<1x8x32xf32> to vector<8x32xf32>
    %200 = arith.mulf %199, %197 : vector<8x32xf32>
    %201 = vector.extract_strided_slice %167 {offsets = [5, 0, 0], sizes = [1, 8, 32], strides = [1, 1, 1]} : vector<8x8x32xf32> to vector<1x8x32xf32>
    %202 = vector.shape_cast %201 : vector<1x8x32xf32> to vector<8x32xf32>
    %203 = arith.addf %200, %202 : vector<8x32xf32>
    %204 = vector.extract_strided_slice %162 {offsets = [6, 0, 0], sizes = [1, 8, 32], strides = [1, 1, 1]} : vector<8x8x32xf32> to vector<1x8x32xf32>
    %205 = vector.shape_cast %204 : vector<1x8x32xf32> to vector<8x32xf32>
    %206 = arith.mulf %205, %203 : vector<8x32xf32>
    %207 = vector.extract_strided_slice %167 {offsets = [6, 0, 0], sizes = [1, 8, 32], strides = [1, 1, 1]} : vector<8x8x32xf32> to vector<1x8x32xf32>
    %208 = vector.shape_cast %207 : vector<1x8x32xf32> to vector<8x32xf32>
    %209 = arith.addf %206, %208 : vector<8x32xf32>
    %210 = vector.extract_strided_slice %162 {offsets = [7, 0, 0], sizes = [1, 8, 32], strides = [1, 1, 1]} : vector<8x8x32xf32> to vector<1x8x32xf32>
    %211 = vector.shape_cast %210 : vector<1x8x32xf32> to vector<8x32xf32>
    %212 = arith.mulf %211, %209 : vector<8x32xf32>
    %213 = vector.extract_strided_slice %167 {offsets = [7, 0, 0], sizes = [1, 8, 32], strides = [1, 1, 1]} : vector<8x8x32xf32> to vector<1x8x32xf32>
    %214 = vector.shape_cast %213 : vector<1x8x32xf32> to vector<8x32xf32>
    %215 = arith.addf %212, %214 : vector<8x32xf32>
    %216 = vector.shape_cast %173 : vector<8x32xf32> to vector<1x8x32xf32>
    %217 = vector.shape_cast %179 : vector<8x32xf32> to vector<1x8x32xf32>
    %218 = vector.shape_cast %185 : vector<8x32xf32> to vector<1x8x32xf32>
    %219 = vector.shape_cast %191 : vector<8x32xf32> to vector<1x8x32xf32>
    %220 = vector.shape_cast %197 : vector<8x32xf32> to vector<1x8x32xf32>
    %221 = vector.shape_cast %203 : vector<8x32xf32> to vector<1x8x32xf32>
    %222 = vector.shape_cast %209 : vector<8x32xf32> to vector<1x8x32xf32>
    %223 = vector.shape_cast %215 : vector<8x32xf32> to vector<1x8x32xf32>
    %224 = tpu.concatenate %216, %217, %218, %219, %220, %221, %222, %223 in 0 : vector<1x8x32xf32>, vector<1x8x32xf32>, vector<1x8x32xf32>, vector<1x8x32xf32>, vector<1x8x32xf32>, vector<1x8x32xf32>, vector<1x8x32xf32>, vector<1x8x32xf32> -> vector<8x8x32xf32>
    %225 = vector.shape_cast %156 : vector<8x8xf32> to vector<8x8x1xf32>
    %226 = vector.broadcast %225 : vector<8x8x1xf32> to vector<8x8x32xf32>
    %227 = arith.mulf %224, %226 : vector<8x8x32xf32>
    %cst_63 = arith.constant dense<0.000000e+00> : vector<8x32xf32>
    %228 = vector.multi_reduction <add>, %227, %cst_63 [1] : vector<8x8x32xf32> to vector<8x32xf32>
    %229 = arith.index_cast %148 : i32 to index
    %c0_64 = arith.constant 0 : index
    %230 = vector.load %arg17[%229, %c0_64] : memref<24x32xf32, #tpu.memory_space<vmem>>, vector<8x32xf32>
    tpu.vector_store %arg17[%229, %c0_64], %228 {strides = array<i32>} : memref<24x32xf32, #tpu.memory_space<vmem>>, vector<8x32xf32>,
    %c2_i32 = arith.constant 2 : i32
    %c8_i32_65 = arith.constant 8 : i32
    %231 = arith.muli %c2_i32, %c8_i32_65 : i32
    %232 = tpu.assume_multiple %231, 8 : i32
    %233 = arith.index_cast %232 : i32 to index
    %c0_66 = arith.constant 0 : index
    %234 = vector.load %arg13[%233, %c0_66] : memref<24x32xf32, #tpu.memory_space<vmem>>, vector<8x32xf32>
    %235 = arith.index_cast %232 : i32 to index
    %c0_67 = arith.constant 0 : index
    %236 = vector.load %arg14[%235, %c0_67] : memref<24x32xf32, #tpu.memory_space<vmem>>, vector<8x32xf32>
    %237 = arith.index_cast %232 : i32 to index
    %c0_68 = arith.constant 0 : index
    %238 = vector.load %arg15[%237, %c0_68] : memref<24x8xf32, #tpu.memory_space<vmem>>, vector<8x8xf32>
    %239 = arith.index_cast %232 : i32 to index
    %c0_69 = arith.constant 0 : index
    %240 = vector.load %arg16[%239, %c0_69] : memref<24x8xf32, #tpu.memory_space<vmem>>, vector<8x8xf32>
    %241 = vector.shape_cast %234 : vector<8x32xf32> to vector<8x1x32xf32>
    %242 = vector.shape_cast %61 : vector<8x32xf32> to vector<1x8x32xf32>
    %243 = vector.broadcast %241 : vector<8x1x32xf32> to vector<8x8x32xf32>
    %244 = vector.broadcast %242 : vector<1x8x32xf32> to vector<8x8x32xf32>
    %245 = arith.mulf %243, %244 : vector<8x8x32xf32>
    %246 = math.exp %245 : vector<8x8x32xf32>
    %247 = vector.shape_cast %238 : vector<8x8xf32> to vector<8x8x1xf32>
    %248 = vector.shape_cast %236 : vector<8x32xf32> to vector<8x1x32xf32>
    %249 = vector.broadcast %247 : vector<8x8x1xf32> to vector<8x8x32xf32>
    %250 = vector.broadcast %248 : vector<8x1x32xf32> to vector<8x8x32xf32>
    %251 = arith.mulf %249, %250 : vector<8x8x32xf32>
    %252 = vector.extract_strided_slice %246 {offsets = [0, 0, 0], sizes = [1, 8, 32], strides = [1, 1, 1]} : vector<8x8x32xf32> to vector<1x8x32xf32>
    %253 = vector.shape_cast %252 : vector<1x8x32xf32> to vector<8x32xf32>
    %254 = arith.mulf %253, %215 : vector<8x32xf32>
    %255 = vector.extract_strided_slice %251 {offsets = [0, 0, 0], sizes = [1, 8, 32], strides = [1, 1, 1]} : vector<8x8x32xf32> to vector<1x8x32xf32>
    %256 = vector.shape_cast %255 : vector<1x8x32xf32> to vector<8x32xf32>
    %257 = arith.addf %254, %256 : vector<8x32xf32>
    %258 = vector.extract_strided_slice %246 {offsets = [1, 0, 0], sizes = [1, 8, 32], strides = [1, 1, 1]} : vector<8x8x32xf32> to vector<1x8x32xf32>
    %259 = vector.shape_cast %258 : vector<1x8x32xf32> to vector<8x32xf32>
    %260 = arith.mulf %259, %257 : vector<8x32xf32>
    %261 = vector.extract_strided_slice %251 {offsets = [1, 0, 0], sizes = [1, 8, 32], strides = [1, 1, 1]} : vector<8x8x32xf32> to vector<1x8x32xf32>
    %262 = vector.shape_cast %261 : vector<1x8x32xf32> to vector<8x32xf32>
    %263 = arith.addf %260, %262 : vector<8x32xf32>
    %264 = vector.extract_strided_slice %246 {offsets = [2, 0, 0], sizes = [1, 8, 32], strides = [1, 1, 1]} : vector<8x8x32xf32> to vector<1x8x32xf32>
    %265 = vector.shape_cast %264 : vector<1x8x32xf32> to vector<8x32xf32>
    %266 = arith.mulf %265, %263 : vector<8x32xf32>
    %267 = vector.extract_strided_slice %251 {offsets = [2, 0, 0], sizes = [1, 8, 32], strides = [1, 1, 1]} : vector<8x8x32xf32> to vector<1x8x32xf32>
    %268 = vector.shape_cast %267 : vector<1x8x32xf32> to vector<8x32xf32>
    %269 = arith.addf %266, %268 : vector<8x32xf32>
    %270 = vector.extract_strided_slice %246 {offsets = [3, 0, 0], sizes = [1, 8, 32], strides = [1, 1, 1]} : vector<8x8x32xf32> to vector<1x8x32xf32>
    %271 = vector.shape_cast %270 : vector<1x8x32xf32> to vector<8x32xf32>
    %272 = arith.mulf %271, %269 : vector<8x32xf32>
    %273 = vector.extract_strided_slice %251 {offsets = [3, 0, 0], sizes = [1, 8, 32], strides = [1, 1, 1]} : vector<8x8x32xf32> to vector<1x8x32xf32>
    %274 = vector.shape_cast %273 : vector<1x8x32xf32> to vector<8x32xf32>
    %275 = arith.addf %272, %274 : vector<8x32xf32>
    %276 = vector.extract_strided_slice %246 {offsets = [4, 0, 0], sizes = [1, 8, 32], strides = [1, 1, 1]} : vector<8x8x32xf32> to vector<1x8x32xf32>
    %277 = vector.shape_cast %276 : vector<1x8x32xf32> to vector<8x32xf32>
    %278 = arith.mulf %277, %275 : vector<8x32xf32>
    %279 = vector.extract_strided_slice %251 {offsets = [4, 0, 0], sizes = [1, 8, 32], strides = [1, 1, 1]} : vector<8x8x32xf32> to vector<1x8x32xf32>
    %280 = vector.shape_cast %279 : vector<1x8x32xf32> to vector<8x32xf32>
    %281 = arith.addf %278, %280 : vector<8x32xf32>
    %282 = vector.extract_strided_slice %246 {offsets = [5, 0, 0], sizes = [1, 8, 32], strides = [1, 1, 1]} : vector<8x8x32xf32> to vector<1x8x32xf32>
    %283 = vector.shape_cast %282 : vector<1x8x32xf32> to vector<8x32xf32>
    %284 = arith.mulf %283, %281 : vector<8x32xf32>
    %285 = vector.extract_strided_slice %251 {offsets = [5, 0, 0], sizes = [1, 8, 32], strides = [1, 1, 1]} : vector<8x8x32xf32> to vector<1x8x32xf32>
    %286 = vector.shape_cast %285 : vector<1x8x32xf32> to vector<8x32xf32>
    %287 = arith.addf %284, %286 : vector<8x32xf32>
    %288 = vector.extract_strided_slice %246 {offsets = [6, 0, 0], sizes = [1, 8, 32], strides = [1, 1, 1]} : vector<8x8x32xf32> to vector<1x8x32xf32>
    %289 = vector.shape_cast %288 : vector<1x8x32xf32> to vector<8x32xf32>
    %290 = arith.mulf %289, %287 : vector<8x32xf32>
    %291 = vector.extract_strided_slice %251 {offsets = [6, 0, 0], sizes = [1, 8, 32], strides = [1, 1, 1]} : vector<8x8x32xf32> to vector<1x8x32xf32>
    %292 = vector.shape_cast %291 : vector<1x8x32xf32> to vector<8x32xf32>
    %293 = arith.addf %290, %292 : vector<8x32xf32>
    %294 = vector.extract_strided_slice %246 {offsets = [7, 0, 0], sizes = [1, 8, 32], strides = [1, 1, 1]} : vector<8x8x32xf32> to vector<1x8x32xf32>
    %295 = vector.shape_cast %294 : vector<1x8x32xf32> to vector<8x32xf32>
    %296 = arith.mulf %295, %293 : vector<8x32xf32>
    %297 = vector.extract_strided_slice %251 {offsets = [7, 0, 0], sizes = [1, 8, 32], strides = [1, 1, 1]} : vector<8x8x32xf32> to vector<1x8x32xf32>
    %298 = vector.shape_cast %297 : vector<1x8x32xf32> to vector<8x32xf32>
    %299 = arith.addf %296, %298 : vector<8x32xf32>
    %300 = vector.shape_cast %257 : vector<8x32xf32> to vector<1x8x32xf32>
    %301 = vector.shape_cast %263 : vector<8x32xf32> to vector<1x8x32xf32>
    %302 = vector.shape_cast %269 : vector<8x32xf32> to vector<1x8x32xf32>
    %303 = vector.shape_cast %275 : vector<8x32xf32> to vector<1x8x32xf32>
    %304 = vector.shape_cast %281 : vector<8x32xf32> to vector<1x8x32xf32>
    %305 = vector.shape_cast %287 : vector<8x32xf32> to vector<1x8x32xf32>
    %306 = vector.shape_cast %293 : vector<8x32xf32> to vector<1x8x32xf32>
    %307 = vector.shape_cast %299 : vector<8x32xf32> to vector<1x8x32xf32>
    %308 = tpu.concatenate %300, %301, %302, %303, %304, %305, %306, %307 in 0 : vector<1x8x32xf32>, vector<1x8x32xf32>, vector<1x8x32xf32>, vector<1x8x32xf32>, vector<1x8x32xf32>, vector<1x8x32xf32>, vector<1x8x32xf32>, vector<1x8x32xf32> -> vector<8x8x32xf32>
    %309 = vector.shape_cast %240 : vector<8x8xf32> to vector<8x8x1xf32>
    %310 = vector.broadcast %309 : vector<8x8x1xf32> to vector<8x8x32xf32>
    %311 = arith.mulf %308, %310 : vector<8x8x32xf32>
    %cst_70 = arith.constant dense<0.000000e+00> : vector<8x32xf32>
    %312 = vector.multi_reduction <add>, %311, %cst_70 [1] : vector<8x8x32xf32> to vector<8x32xf32>
    %313 = arith.index_cast %232 : i32 to index
    %c0_71 = arith.constant 0 : index
    %314 = vector.load %arg17[%313, %c0_71] : memref<24x32xf32, #tpu.memory_space<vmem>>, vector<8x32xf32>
    tpu.vector_store %arg17[%313, %c0_71], %312 {strides = array<i32>} : memref<24x32xf32, #tpu.memory_space<vmem>>, vector<8x32xf32>,
    %c3_i32 = arith.constant 3 : i32
    %c0_72 = arith.constant 0 : index
    %c0_73 = arith.constant 0 : index
    %315 = vector.load %arg17[%c0_72, %c0_73] : memref<24x32xf32, #tpu.memory_space<vmem>>, vector<17x32xf32>
    %c0_74 = arith.constant 0 : index
    %c0_75 = arith.constant 0 : index
    %316 = vector.load %arg9[%c0_74, %c0_75] : memref<1x32xf32, #tpu.memory_space<vmem>>, vector<1x32xf32>
    %317 = vector.broadcast %316 : vector<1x32xf32> to vector<17x32xf32>
    %318 = arith.mulf %317, %28 : vector<17x32xf32>
    %319 = arith.addf %315, %318 : vector<17x32xf32>
    %320 = arith.negf %6 : vector<17x32xf32>
    %321 = math.exp %320 : vector<17x32xf32>
    %cst_76 = arith.constant 1.000000e+00 : f32
    %322 = vector.broadcast %cst_76 : f32 to vector<17x32xf32>
    %323 = arith.addf %322, %321 : vector<17x32xf32>
    %324 = arith.divf %322, %323 : vector<17x32xf32>
    %325 = arith.mulf %6, %324 : vector<17x32xf32>
    %326 = arith.mulf %319, %325 : vector<17x32xf32>
    %327 = arith.truncf %326 : vector<17x32xf32> to vector<17x32xbf16>
    %c0_77 = arith.constant 0 : index
    %c0_78 = arith.constant 0 : index
    %328 = vector.load %arg10[%c0_77, %c0_78] : memref<32x32xbf16, #tpu.memory_space<vmem>>, vector<32x32xbf16>
    %cst_79 = arith.constant dense<0.000000e+00> : vector<17x32xf32>
    %329 = tpu.matmul %327, %328, %cst_79 {dimension_numbers = #tpu.dot_dimension_numbers<[1], [0], [0], [1], [0, 0, 1, 1], [], []>} : vector<17x32xbf16>, vector<32x32xbf16>, vector<17x32xf32> -> vector<17x32xf32>
    %c0_80 = arith.constant 0 : index
    %c0_81 = arith.constant 0 : index
    %c0_82 = arith.constant 0 : index
    %330 = vector.load %arg11[%c0_80, %c0_81, %c0_82] : memref<1x17x32xf32, #tpu.memory_space<vmem>>, vector<1x17x32xf32>
    %331 = vector.shape_cast %330 : vector<1x17x32xf32> to vector<17x32xf32>
    %332 = vector.shape_cast %329 : vector<17x32xf32> to vector<1x17x32xf32>
    tpu.vector_store %arg11[%c0_80, %c0_81, %c0_82], %332 {strides = array<i32>} : memref<1x17x32xf32, #tpu.memory_space<vmem>>, vector<1x17x32xf32>,
    return
  }
  func.func @transform_0(%arg0: i32) -> (i32, i32, i32) {
    %c0_i32 = arith.constant 0 : i32
    %c0_i32_0 = arith.constant 0 : i32
    %c0_i32_1 = arith.constant 0 : i32
    return %arg0, %c0_i32, %c0_i32_0 : i32, i32, i32
  }
  func.func @transform_1(%arg0: i32) -> (i32, i32) {
    %c0_i32 = arith.constant 0 : i32
    %c0_i32_0 = arith.constant 0 : i32
    %c0_i32_1 = arith.constant 0 : i32
    return %c0_i32, %c0_i32_0 : i32, i32
  }
  func.func @transform_2(%arg0: i32) -> (i32, i32) {
    %c0_i32 = arith.constant 0 : i32
    %c0_i32_0 = arith.constant 0 : i32
    %c0_i32_1 = arith.constant 0 : i32
    return %c0_i32, %c0_i32_0 : i32, i32
  }
  func.func @transform_3(%arg0: i32) -> (i32, i32) {
    %c0_i32 = arith.constant 0 : i32
    %c0_i32_0 = arith.constant 0 : i32
    %c0_i32_1 = arith.constant 0 : i32
    return %c0_i32, %c0_i32_0 : i32, i32
  }
  func.func @transform_4(%arg0: i32) -> (i32, i32) {
    %c0_i32 = arith.constant 0 : i32
    %c0_i32_0 = arith.constant 0 : i32
    %c0_i32_1 = arith.constant 0 : i32
    return %c0_i32, %c0_i32_0 : i32, i32
  }
  func.func @transform_5(%arg0: i32) -> (i32, i32) {
    %c0_i32 = arith.constant 0 : i32
    %c0_i32_0 = arith.constant 0 : i32
    %c0_i32_1 = arith.constant 0 : i32
    return %c0_i32, %c0_i32_0 : i32, i32
  }
  func.func @transform_6(%arg0: i32) -> (i32, i32) {
    %c0_i32 = arith.constant 0 : i32
    %c0_i32_0 = arith.constant 0 : i32
    %c0_i32_1 = arith.constant 0 : i32
    return %c0_i32, %c0_i32_0 : i32, i32
  }
  func.func @transform_7(%arg0: i32) -> (i32, i32) {
    %c0_i32 = arith.constant 0 : i32
    %c0_i32_0 = arith.constant 0 : i32
    %c0_i32_1 = arith.constant 0 : i32
    return %c0_i32, %c0_i32_0 : i32, i32
  }
  func.func @transform_8(%arg0: i32) -> (i32, i32) {
    %c0_i32 = arith.constant 0 : i32
    %c0_i32_0 = arith.constant 0 : i32
    %c0_i32_1 = arith.constant 0 : i32
    return %c0_i32, %c0_i32_0 : i32, i32
  }
  func.func @transform_9(%arg0: i32) -> (i32, i32) {
    %c0_i32 = arith.constant 0 : i32
    %c0_i32_0 = arith.constant 0 : i32
    %c0_i32_1 = arith.constant 0 : i32
    return %c0_i32, %c0_i32_0 : i32, i32
  }
  func.func @transform_10(%arg0: i32) -> (i32, i32, i32) {
    %c0_i32 = arith.constant 0 : i32
    %c0_i32_0 = arith.constant 0 : i32
    %c0_i32_1 = arith.constant 0 : i32
    return %arg0, %c0_i32, %c0_i32_0 : i32, i32, i32
  }
}

module attributes {stable_mosaic.version = 11 : i64} {
  func.func @_mamba_kernel(%arg0: i32, %arg1: memref<1x17x32xf32, #tpu.memory_space<vmem>>, %arg2: memref<32x32xbf16, #tpu.memory_space<vmem>>, %arg3: memref<32x32xbf16, #tpu.memory_space<vmem>>, %arg4: memref<2x32xf32, #tpu.memory_space<vmem>>, %arg5: memref<1x32xf32, #tpu.memory_space<vmem>>, %arg6: memref<32x48xbf16, #tpu.memory_space<vmem>>, %arg7: memref<1x32xf32, #tpu.memory_space<vmem>>, %arg8: memref<8x32xf32, #tpu.memory_space<vmem>>, %arg9: memref<1x32xf32, #tpu.memory_space<vmem>>, %arg10: memref<32x32xbf16, #tpu.memory_space<vmem>>, %arg11: memref<1x17x32xf32, #tpu.memory_space<vmem>>, %arg12: memref<32x32xf32, #tpu.memory_space<vmem>>, %arg13: memref<24x32xf32, #tpu.memory_space<vmem>>, %arg14: memref<24x32xf32, #tpu.memory_space<vmem>>, %arg15: memref<24x8xf32, #tpu.memory_space<vmem>>, %arg16: memref<24x8xf32, #tpu.memory_space<vmem>>, %arg17: memref<24x32xf32, #tpu.memory_space<vmem>>) attributes {dimension_semantics = [#tpu.dimension_semantics<parallel>], iteration_bounds = array<i64: 2>, scalar_prefetch = 0 : i64, scratch_operands = 6 : i64, tpu.core_type = #tpu.core_type<tc>, window_params = [{transform_indices = @transform_0, window_bounds = array<i64: 1, 17, 32>}, {pipeline_mode = #tpu.pipeline_mode<synchronous>, transform_indices = @transform_1, window_bounds = array<i64: 32, 32>}, {pipeline_mode = #tpu.pipeline_mode<synchronous>, transform_indices = @transform_2, window_bounds = array<i64: 32, 32>}, {pipeline_mode = #tpu.pipeline_mode<synchronous>, transform_indices = @transform_3, window_bounds = array<i64: 2, 32>}, {pipeline_mode = #tpu.pipeline_mode<synchronous>, transform_indices = @transform_4, window_bounds = array<i64: 1, 32>}, {pipeline_mode = #tpu.pipeline_mode<synchronous>, transform_indices = @transform_5, window_bounds = array<i64: 32, 48>}, {pipeline_mode = #tpu.pipeline_mode<synchronous>, transform_indices = @transform_6, window_bounds = array<i64: 1, 32>}, {pipeline_mode = #tpu.pipeline_mode<synchronous>, transform_indices = @transform_7, window_bounds = array<i64: 8, 32>}, {pipeline_mode = #tpu.pipeline_mode<synchronous>, transform_indices = @transform_8, window_bounds = array<i64: 1, 32>}, {pipeline_mode = #tpu.pipeline_mode<synchronous>, transform_indices = @transform_9, window_bounds = array<i64: 32, 32>}, {transform_indices = @transform_10, window_bounds = array<i64: 1, 17, 32>}]} {
    %c0 = arith.constant 0 : index
    %c0_0 = arith.constant 0 : index
    %c0_1 = arith.constant 0 : index
    %0 = vector.load %arg1[%c0, %c0_0, %c0_1] : memref<1x17x32xf32, #tpu.memory_space<vmem>>, vector<1x17x32xf32>
    %1 = vector.shape_cast %0 : vector<1x17x32xf32> to vector<17x32xf32>
    %2 = arith.truncf %1 : vector<17x32xf32> to vector<17x32xbf16>
    %c0_2 = arith.constant 0 : index
    %c0_3 = arith.constant 0 : index
    %3 = vector.load %arg2[%c0_2, %c0_3] : memref<32x32xbf16, #tpu.memory_space<vmem>>, vector<32x32xbf16>
    %cst = arith.constant dense<0.000000e+00> : vector<17x32xf32>
    %4 = tpu.matmul %2, %3, %cst {dimension_numbers = #tpu.dot_dimension_numbers<[1], [0], [0], [1], [0, 0, 1, 1], [], []>} : vector<17x32xbf16>, vector<32x32xbf16>, vector<17x32xf32> -> vector<17x32xf32>
    %c0_4 = arith.constant 0 : index
    %c0_5 = arith.constant 0 : index
    %5 = vector.load %arg3[%c0_4, %c0_5] : memref<32x32xbf16, #tpu.memory_space<vmem>>, vector<32x32xbf16>
    %cst_6 = arith.constant dense<0.000000e+00> : vector<17x32xf32>
    %6 = tpu.matmul %2, %5, %cst_6 {dimension_numbers = #tpu.dot_dimension_numbers<[1], [0], [0], [1], [0, 0, 1, 1], [], []>} : vector<17x32xbf16>, vector<32x32xbf16>, vector<17x32xf32> -> vector<17x32xf32>
    %cst_7 = arith.constant 0.000000e+00 : f32
    %7 = vector.broadcast %cst_7 : f32 to vector<1x32xf32>
    %c0_8 = arith.constant 0 : index
    %c0_9 = arith.constant 0 : index
    %8 = vector.load %arg12[%c0_8, %c0_9] : memref<32x32xf32, #tpu.memory_space<vmem>>, vector<1x32xf32>
    tpu.vector_store %arg12[%c0_8, %c0_9], %7 {strides = array<i32>} : memref<32x32xf32, #tpu.memory_space<vmem>>, vector<1x32xf32>,
    %c1 = arith.constant 1 : index
    %c0_10 = arith.constant 0 : index
    %9 = vector.load %arg12[%c1, %c0_10] : memref<32x32xf32, #tpu.memory_space<vmem>>, vector<17x32xf32>
    tpu.vector_store %arg12[%c1, %c0_10], %4 {strides = array<i32>} : memref<32x32xf32, #tpu.memory_space<vmem>>, vector<17x32xf32>,
    %cst_11 = arith.constant 0.000000e+00 : f32
    %10 = vector.broadcast %cst_11 : f32 to vector<1x32xf32>
    %c18 = arith.constant 18 : index
    %c0_12 = arith.constant 0 : index
    %11 = vector.load %arg12[%c18, %c0_12] : memref<32x32xf32, #tpu.memory_space<vmem>>, vector<1x32xf32>
    tpu.vector_store %arg12[%c18, %c0_12], %10 {strides = array<i32>} : memref<32x32xf32, #tpu.memory_space<vmem>>, vector<1x32xf32>,
    %c2 = arith.constant 2 : index
    %c0_13 = arith.constant 0 : index
    %12 = vector.load %arg12[%c2, %c0_13] : memref<32x32xf32, #tpu.memory_space<vmem>>, vector<17x32xf32>
    %c0_14 = arith.constant 0 : index
    %c0_15 = arith.constant 0 : index
    %13 = vector.load %arg4[%c0_14, %c0_15] : memref<2x32xf32, #tpu.memory_space<vmem>>, vector<1x32xf32>
    %14 = vector.broadcast %13 : vector<1x32xf32> to vector<17x32xf32>
    %15 = arith.mulf %12, %14 : vector<17x32xf32>
    %c1_16 = arith.constant 1 : index
    %c0_17 = arith.constant 0 : index
    %16 = vector.load %arg4[%c1_16, %c0_17] : memref<2x32xf32, #tpu.memory_space<vmem>>, vector<1x32xf32>
    %17 = vector.broadcast %16 : vector<1x32xf32> to vector<17x32xf32>
    %18 = arith.mulf %4, %17 : vector<17x32xf32>
    %19 = arith.addf %15, %18 : vector<17x32xf32>
    %c0_18 = arith.constant 0 : index
    %c0_19 = arith.constant 0 : index
    %20 = vector.load %arg5[%c0_18, %c0_19] : memref<1x32xf32, #tpu.memory_space<vmem>>, vector<1x32xf32>
    %21 = vector.broadcast %20 : vector<1x32xf32> to vector<17x32xf32>
    %22 = arith.addf %19, %21 : vector<17x32xf32>
    %23 = arith.negf %22 : vector<17x32xf32>
    %24 = math.exp %23 : vector<17x32xf32>
    %cst_20 = arith.constant 1.000000e+00 : f32
    %25 = vector.broadcast %cst_20 : f32 to vector<17x32xf32>
    %26 = arith.addf %25, %24 : vector<17x32xf32>
    %27 = arith.divf %25, %26 : vector<17x32xf32>
    %28 = arith.mulf %22, %27 : vector<17x32xf32>
    %29 = arith.truncf %28 : vector<17x32xf32> to vector<17x32xbf16>
    %c0_21 = arith.constant 0 : index
    %c0_22 = arith.constant 0 : index
    %30 = vector.load %arg6[%c0_21, %c0_22] : memref<32x48xbf16, #tpu.memory_space<vmem>>, vector<32x48xbf16>
    %cst_23 = arith.constant dense<0.000000e+00> : vector<17x48xf32>
    %31 = tpu.matmul %29, %30, %cst_23 {dimension_numbers = #tpu.dot_dimension_numbers<[1], [0], [0], [1], [0, 0, 1, 1], [], []>} : vector<17x32xbf16>, vector<32x48xbf16>, vector<17x48xf32> -> vector<17x48xf32>
    %32 = vector.extract_strided_slice %31 {offsets = [0, 0], sizes = [17, 32], strides = [1, 1]} : vector<17x48xf32> to vector<17x32xf32>
    %c0_24 = arith.constant 0 : index
    %c0_25 = arith.constant 0 : index
    %33 = vector.load %arg7[%c0_24, %c0_25] : memref<1x32xf32, #tpu.memory_space<vmem>>, vector<1x32xf32>
    %34 = vector.broadcast %33 : vector<1x32xf32> to vector<17x32xf32>
    %35 = arith.addf %32, %34 : vector<17x32xf32>
    %cst_26 = arith.constant 0.000000e+00 : f32
    %36 = vector.broadcast %cst_26 : f32 to vector<17x32xf32>
    %37 = arith.maximumf %35, %36 : vector<17x32xf32>
    %38 = math.absf %35 : vector<17x32xf32>
    %cst_27 = arith.constant 0.000000e+00 : f32
    %39 = vector.broadcast %cst_27 : f32 to vector<17x32xf32>
    %40 = arith.subf %39, %38 : vector<17x32xf32>
    %41 = math.exp %40 : vector<17x32xf32>
    %cst_28 = arith.constant 1.000000e+00 : f32
    %42 = vector.broadcast %cst_28 : f32 to vector<17x32xf32>
    %43 = arith.addf %42, %41 : vector<17x32xf32>
    %44 = math.log %43 : vector<17x32xf32>
    %45 = arith.addf %37, %44 : vector<17x32xf32>
    %46 = vector.extract_strided_slice %31 {offsets = [0, 32], sizes = [17, 8], strides = [1, 1]} : vector<17x48xf32> to vector<17x8xf32>
    %47 = vector.extract_strided_slice %31 {offsets = [0, 40], sizes = [17, 8], strides = [1, 1]} : vector<17x48xf32> to vector<17x8xf32>
    %c0_29 = arith.constant 0 : index
    %c0_30 = arith.constant 0 : index
    %48 = vector.load %arg13[%c0_29, %c0_30] : memref<24x32xf32, #tpu.memory_space<vmem>>, vector<17x32xf32>
    tpu.vector_store %arg13[%c0_29, %c0_30], %45 {strides = array<i32>} : memref<24x32xf32, #tpu.memory_space<vmem>>, vector<17x32xf32>,
    %49 = arith.mulf %45, %28 : vector<17x32xf32>
    %c0_31 = arith.constant 0 : index
    %c0_32 = arith.constant 0 : index
    %50 = vector.load %arg14[%c0_31, %c0_32] : memref<24x32xf32, #tpu.memory_space<vmem>>, vector<17x32xf32>
    tpu.vector_store %arg14[%c0_31, %c0_32], %49 {strides = array<i32>} : memref<24x32xf32, #tpu.memory_space<vmem>>, vector<17x32xf32>,
    %c0_33 = arith.constant 0 : index
    %c0_34 = arith.constant 0 : index
    %51 = vector.load %arg15[%c0_33, %c0_34] : memref<24x8xf32, #tpu.memory_space<vmem>>, vector<17x8xf32>
    tpu.vector_store %arg15[%c0_33, %c0_34], %46 {strides = array<i32>} : memref<24x8xf32, #tpu.memory_space<vmem>>, vector<17x8xf32>,
    %c0_35 = arith.constant 0 : index
    %c0_36 = arith.constant 0 : index
    %52 = vector.load %arg16[%c0_35, %c0_36] : memref<24x8xf32, #tpu.memory_space<vmem>>, vector<17x8xf32>
    tpu.vector_store %arg16[%c0_35, %c0_36], %47 {strides = array<i32>} : memref<24x8xf32, #tpu.memory_space<vmem>>, vector<17x8xf32>,
    %cst_37 = arith.constant 0.000000e+00 : f32
    %53 = vector.broadcast %cst_37 : f32 to vector<7x32xf32>
    %c17 = arith.constant 17 : index
    %c0_38 = arith.constant 0 : index
    %54 = vector.load %arg13[%c17, %c0_38] : memref<24x32xf32, #tpu.memory_space<vmem>>, vector<7x32xf32>
    tpu.vector_store %arg13[%c17, %c0_38], %53 {strides = array<i32>} : memref<24x32xf32, #tpu.memory_space<vmem>>, vector<7x32xf32>,
    %cst_39 = arith.constant 0.000000e+00 : f32
    %55 = vector.broadcast %cst_39 : f32 to vector<7x32xf32>
    %c17_40 = arith.constant 17 : index
    %c0_41 = arith.constant 0 : index
    %56 = vector.load %arg14[%c17_40, %c0_41] : memref<24x32xf32, #tpu.memory_space<vmem>>, vector<7x32xf32>
    tpu.vector_store %arg14[%c17_40, %c0_41], %55 {strides = array<i32>} : memref<24x32xf32, #tpu.memory_space<vmem>>, vector<7x32xf32>,
    %cst_42 = arith.constant 0.000000e+00 : f32
    %57 = vector.broadcast %cst_42 : f32 to vector<7x8xf32>
    %c17_43 = arith.constant 17 : index
    %c0_44 = arith.constant 0 : index
    %58 = vector.load %arg15[%c17_43, %c0_44] : memref<24x8xf32, #tpu.memory_space<vmem>>, vector<7x8xf32>
    tpu.vector_store %arg15[%c17_43, %c0_44], %57 {strides = array<i32>} : memref<24x8xf32, #tpu.memory_space<vmem>>, vector<7x8xf32>,
    %cst_45 = arith.constant 0.000000e+00 : f32
    %59 = vector.broadcast %cst_45 : f32 to vector<7x8xf32>
    %c17_46 = arith.constant 17 : index
    %c0_47 = arith.constant 0 : index
    %60 = vector.load %arg16[%c17_46, %c0_47] : memref<24x8xf32, #tpu.memory_space<vmem>>, vector<7x8xf32>
    tpu.vector_store %arg16[%c17_46, %c0_47], %59 {strides = array<i32>} : memref<24x8xf32, #tpu.memory_space<vmem>>, vector<7x8xf32>,
    %c0_48 = arith.constant 0 : index
    %c0_49 = arith.constant 0 : index
    %61 = vector.load %arg8[%c0_48, %c0_49] : memref<8x32xf32, #tpu.memory_space<vmem>>, vector<8x32xf32>
    %cst_50 = arith.constant 0.000000e+00 : f32
    %62 = vector.broadcast %cst_50 : f32 to vector<8x32xf32>
    %c0_i32 = arith.constant 0 : i32
    %c2_i32 = arith.constant 2 : i32
    %63 = arith.subi %c2_i32, %c0_i32 : i32
    %c8_i32 = arith.constant 8 : i32
    %64 = arith.muli %63, %c8_i32 : i32
    %65 = tpu.assume_multiple %64, 8 : i32
    %66 = arith.index_cast %65 : i32 to index
    %c0_51 = arith.constant 0 : index
    %67 = vector.load %arg13[%66, %c0_51] : memref<24x32xf32, #tpu.memory_space<vmem>>, vector<8x32xf32>
    %68 = arith.index_cast %65 : i32 to index
    %c0_52 = arith.constant 0 : index
    %69 = vector.load %arg14[%68, %c0_52] : memref<24x32xf32, #tpu.memory_space<vmem>>, vector<8x32xf32>
    %70 = arith.index_cast %65 : i32 to index
    %c0_53 = arith.constant 0 : index
    %71 = vector.load %arg15[%70, %c0_53] : memref<24x8xf32, #tpu.memory_space<vmem>>, vector<8x8xf32>
    %72 = arith.index_cast %65 : i32 to index
    %c0_54 = arith.constant 0 : index
    %73 = vector.load %arg16[%72, %c0_54] : memref<24x8xf32, #tpu.memory_space<vmem>>, vector<8x8xf32>
    %74 = vector.shape_cast %67 : vector<8x32xf32> to vector<8x1x32xf32>
    %75 = vector.shape_cast %61 : vector<8x32xf32> to vector<1x8x32xf32>
    %76 = vector.broadcast %74 : vector<8x1x32xf32> to vector<8x8x32xf32>
    %77 = vector.broadcast %75 : vector<1x8x32xf32> to vector<8x8x32xf32>
    %78 = arith.mulf %76, %77 : vector<8x8x32xf32>
    %79 = math.exp %78 : vector<8x8x32xf32>
    %80 = vector.shape_cast %71 : vector<8x8xf32> to vector<8x8x1xf32>
    %81 = vector.shape_cast %69 : vector<8x32xf32> to vector<8x1x32xf32>
    %82 = vector.broadcast %80 : vector<8x8x1xf32> to vector<8x8x32xf32>
    %83 = vector.broadcast %81 : vector<8x1x32xf32> to vector<8x8x32xf32>
    %84 = arith.mulf %82, %83 : vector<8x8x32xf32>
    %85 = vector.extract_strided_slice %79 {offsets = [7, 0, 0], sizes = [1, 8, 32], strides = [1, 1, 1]} : vector<8x8x32xf32> to vector<1x8x32xf32>
    %86 = vector.shape_cast %85 : vector<1x8x32xf32> to vector<8x32xf32>
    %87 = arith.mulf %86, %62 : vector<8x32xf32>
    %88 = vector.extract_strided_slice %84 {offsets = [7, 0, 0], sizes = [1, 8, 32], strides = [1, 1, 1]} : vector<8x8x32xf32> to vector<1x8x32xf32>
    %89 = vector.shape_cast %88 : vector<1x8x32xf32> to vector<8x32xf32>
    %90 = arith.addf %87, %89 : vector<8x32xf32>
    %91 = vector.extract_strided_slice %79 {offsets = [6, 0, 0], sizes = [1, 8, 32], strides = [1, 1, 1]} : vector<8x8x32xf32> to vector<1x8x32xf32>
    %92 = vector.shape_cast %91 : vector<1x8x32xf32> to vector<8x32xf32>
    %93 = arith.mulf %92, %90 : vector<8x32xf32>
    %94 = vector.extract_strided_slice %84 {offsets = [6, 0, 0], sizes = [1, 8, 32], strides = [1, 1, 1]} : vector<8x8x32xf32> to vector<1x8x32xf32>
    %95 = vector.shape_cast %94 : vector<1x8x32xf32> to vector<8x32xf32>
    %96 = arith.addf %93, %95 : vector<8x32xf32>
    %97 = vector.extract_strided_slice %79 {offsets = [5, 0, 0], sizes = [1, 8, 32], strides = [1, 1, 1]} : vector<8x8x32xf32> to vector<1x8x32xf32>
    %98 = vector.shape_cast %97 : vector<1x8x32xf32> to vector<8x32xf32>
    %99 = arith.mulf %98, %96 : vector<8x32xf32>
    %100 = vector.extract_strided_slice %84 {offsets = [5, 0, 0], sizes = [1, 8, 32], strides = [1, 1, 1]} : vector<8x8x32xf32> to vector<1x8x32xf32>
    %101 = vector.shape_cast %100 : vector<1x8x32xf32> to vector<8x32xf32>
    %102 = arith.addf %99, %101 : vector<8x32xf32>
    %103 = vector.extract_strided_slice %79 {offsets = [4, 0, 0], sizes = [1, 8, 32], strides = [1, 1, 1]} : vector<8x8x32xf32> to vector<1x8x32xf32>
    %104 = vector.shape_cast %103 : vector<1x8x32xf32> to vector<8x32xf32>
    %105 = arith.mulf %104, %102 : vector<8x32xf32>
    %106 = vector.extract_strided_slice %84 {offsets = [4, 0, 0], sizes = [1, 8, 32], strides = [1, 1, 1]} : vector<8x8x32xf32> to vector<1x8x32xf32>
    %107 = vector.shape_cast %106 : vector<1x8x32xf32> to vector<8x32xf32>
    %108 = arith.addf %105, %107 : vector<8x32xf32>
    %109 = vector.extract_strided_slice %79 {offsets = [3, 0, 0], sizes = [1, 8, 32], strides = [1, 1, 1]} : vector<8x8x32xf32> to vector<1x8x32xf32>
    %110 = vector.shape_cast %109 : vector<1x8x32xf32> to vector<8x32xf32>
    %111 = arith.mulf %110, %108 : vector<8x32xf32>
    %112 = vector.extract_strided_slice %84 {offsets = [3, 0, 0], sizes = [1, 8, 32], strides = [1, 1, 1]} : vector<8x8x32xf32> to vector<1x8x32xf32>
    %113 = vector.shape_cast %112 : vector<1x8x32xf32> to vector<8x32xf32>
    %114 = arith.addf %111, %113 : vector<8x32xf32>
    %115 = vector.extract_strided_slice %79 {offsets = [2, 0, 0], sizes = [1, 8, 32], strides = [1, 1, 1]} : vector<8x8x32xf32> to vector<1x8x32xf32>
    %116 = vector.shape_cast %115 : vector<1x8x32xf32> to vector<8x32xf32>
    %117 = arith.mulf %116, %114 : vector<8x32xf32>
    %118 = vector.extract_strided_slice %84 {offsets = [2, 0, 0], sizes = [1, 8, 32], strides = [1, 1, 1]} : vector<8x8x32xf32> to vector<1x8x32xf32>
    %119 = vector.shape_cast %118 : vector<1x8x32xf32> to vector<8x32xf32>
    %120 = arith.addf %117, %119 : vector<8x32xf32>
    %121 = vector.extract_strided_slice %79 {offsets = [1, 0, 0], sizes = [1, 8, 32], strides = [1, 1, 1]} : vector<8x8x32xf32> to vector<1x8x32xf32>
    %122 = vector.shape_cast %121 : vector<1x8x32xf32> to vector<8x32xf32>
    %123 = arith.mulf %122, %120 : vector<8x32xf32>
    %124 = vector.extract_strided_slice %84 {offsets = [1, 0, 0], sizes = [1, 8, 32], strides = [1, 1, 1]} : vector<8x8x32xf32> to vector<1x8x32xf32>
    %125 = vector.shape_cast %124 : vector<1x8x32xf32> to vector<8x32xf32>
    %126 = arith.addf %123, %125 : vector<8x32xf32>
    %127 = vector.extract_strided_slice %79 {offsets = [0, 0, 0], sizes = [1, 8, 32], strides = [1, 1, 1]} : vector<8x8x32xf32> to vector<1x8x32xf32>
    %128 = vector.shape_cast %127 : vector<1x8x32xf32> to vector<8x32xf32>
    %129 = arith.mulf %128, %126 : vector<8x32xf32>
    %130 = vector.extract_strided_slice %84 {offsets = [0, 0, 0], sizes = [1, 8, 32], strides = [1, 1, 1]} : vector<8x8x32xf32> to vector<1x8x32xf32>
    %131 = vector.shape_cast %130 : vector<1x8x32xf32> to vector<8x32xf32>
    %132 = arith.addf %129, %131 : vector<8x32xf32>
    %133 = vector.shape_cast %132 : vector<8x32xf32> to vector<1x8x32xf32>
    %134 = vector.shape_cast %126 : vector<8x32xf32> to vector<1x8x32xf32>
    %135 = vector.shape_cast %120 : vector<8x32xf32> to vector<1x8x32xf32>
    %136 = vector.shape_cast %114 : vector<8x32xf32> to vector<1x8x32xf32>
    %137 = vector.shape_cast %108 : vector<8x32xf32> to vector<1x8x32xf32>
    %138 = vector.shape_cast %102 : vector<8x32xf32> to vector<1x8x32xf32>
    %139 = vector.shape_cast %96 : vector<8x32xf32> to vector<1x8x32xf32>
    %140 = vector.shape_cast %90 : vector<8x32xf32> to vector<1x8x32xf32>
    %141 = tpu.concatenate %133, %134, %135, %136, %137, %138, %139, %140 in 0 : vector<1x8x32xf32>, vector<1x8x32xf32>, vector<1x8x32xf32>, vector<1x8x32xf32>, vector<1x8x32xf32>, vector<1x8x32xf32>, vector<1x8x32xf32>, vector<1x8x32xf32> -> vector<8x8x32xf32>
    %142 = vector.shape_cast %73 : vector<8x8xf32> to vector<8x8x1xf32>
    %143 = vector.broadcast %142 : vector<8x8x1xf32> to vector<8x8x32xf32>
    %144 = arith.mulf %141, %143 : vector<8x8x32xf32>
    %cst_55 = arith.constant dense<0.000000e+00> : vector<8x32xf32>
    %145 = vector.multi_reduction <add>, %144, %cst_55 [1] : vector<8x8x32xf32> to vector<8x32xf32>
    %146 = arith.index_cast %65 : i32 to index
    %c0_56 = arith.constant 0 : index
    %147 = vector.load %arg17[%146, %c0_56] : memref<24x32xf32, #tpu.memory_space<vmem>>, vector<8x32xf32>
    tpu.vector_store %arg17[%146, %c0_56], %145 {strides = array<i32>} : memref<24x32xf32, #tpu.memory_space<vmem>>, vector<8x32xf32>,
    %c1_i32 = arith.constant 1 : i32
    %c2_i32_57 = arith.constant 2 : i32
    %148 = arith.subi %c2_i32_57, %c1_i32 : i32
    %c8_i32_58 = arith.constant 8 : i32
    %149 = arith.muli %148, %c8_i32_58 : i32
    %150 = tpu.assume_multiple %149, 8 : i32
    %151 = arith.index_cast %150 : i32 to index
    %c0_59 = arith.constant 0 : index
    %152 = vector.load %arg13[%151, %c0_59] : memref<24x32xf32, #tpu.memory_space<vmem>>, vector<8x32xf32>
    %153 = arith.index_cast %150 : i32 to index
    %c0_60 = arith.constant 0 : index
    %154 = vector.load %arg14[%153, %c0_60] : memref<24x32xf32, #tpu.memory_space<vmem>>, vector<8x32xf32>
    %155 = arith.index_cast %150 : i32 to index
    %c0_61 = arith.constant 0 : index
    %156 = vector.load %arg15[%155, %c0_61] : memref<24x8xf32, #tpu.memory_space<vmem>>, vector<8x8xf32>
    %157 = arith.index_cast %150 : i32 to index
    %c0_62 = arith.constant 0 : index
    %158 = vector.load %arg16[%157, %c0_62] : memref<24x8xf32, #tpu.memory_space<vmem>>, vector<8x8xf32>
    %159 = vector.shape_cast %152 : vector<8x32xf32> to vector<8x1x32xf32>
    %160 = vector.shape_cast %61 : vector<8x32xf32> to vector<1x8x32xf32>
    %161 = vector.broadcast %159 : vector<8x1x32xf32> to vector<8x8x32xf32>
    %162 = vector.broadcast %160 : vector<1x8x32xf32> to vector<8x8x32xf32>
    %163 = arith.mulf %161, %162 : vector<8x8x32xf32>
    %164 = math.exp %163 : vector<8x8x32xf32>
    %165 = vector.shape_cast %156 : vector<8x8xf32> to vector<8x8x1xf32>
    %166 = vector.shape_cast %154 : vector<8x32xf32> to vector<8x1x32xf32>
    %167 = vector.broadcast %165 : vector<8x8x1xf32> to vector<8x8x32xf32>
    %168 = vector.broadcast %166 : vector<8x1x32xf32> to vector<8x8x32xf32>
    %169 = arith.mulf %167, %168 : vector<8x8x32xf32>
    %170 = vector.extract_strided_slice %164 {offsets = [7, 0, 0], sizes = [1, 8, 32], strides = [1, 1, 1]} : vector<8x8x32xf32> to vector<1x8x32xf32>
    %171 = vector.shape_cast %170 : vector<1x8x32xf32> to vector<8x32xf32>
    %172 = arith.mulf %171, %132 : vector<8x32xf32>
    %173 = vector.extract_strided_slice %169 {offsets = [7, 0, 0], sizes = [1, 8, 32], strides = [1, 1, 1]} : vector<8x8x32xf32> to vector<1x8x32xf32>
    %174 = vector.shape_cast %173 : vector<1x8x32xf32> to vector<8x32xf32>
    %175 = arith.addf %172, %174 : vector<8x32xf32>
    %176 = vector.extract_strided_slice %164 {offsets = [6, 0, 0], sizes = [1, 8, 32], strides = [1, 1, 1]} : vector<8x8x32xf32> to vector<1x8x32xf32>
    %177 = vector.shape_cast %176 : vector<1x8x32xf32> to vector<8x32xf32>
    %178 = arith.mulf %177, %175 : vector<8x32xf32>
    %179 = vector.extract_strided_slice %169 {offsets = [6, 0, 0], sizes = [1, 8, 32], strides = [1, 1, 1]} : vector<8x8x32xf32> to vector<1x8x32xf32>
    %180 = vector.shape_cast %179 : vector<1x8x32xf32> to vector<8x32xf32>
    %181 = arith.addf %178, %180 : vector<8x32xf32>
    %182 = vector.extract_strided_slice %164 {offsets = [5, 0, 0], sizes = [1, 8, 32], strides = [1, 1, 1]} : vector<8x8x32xf32> to vector<1x8x32xf32>
    %183 = vector.shape_cast %182 : vector<1x8x32xf32> to vector<8x32xf32>
    %184 = arith.mulf %183, %181 : vector<8x32xf32>
    %185 = vector.extract_strided_slice %169 {offsets = [5, 0, 0], sizes = [1, 8, 32], strides = [1, 1, 1]} : vector<8x8x32xf32> to vector<1x8x32xf32>
    %186 = vector.shape_cast %185 : vector<1x8x32xf32> to vector<8x32xf32>
    %187 = arith.addf %184, %186 : vector<8x32xf32>
    %188 = vector.extract_strided_slice %164 {offsets = [4, 0, 0], sizes = [1, 8, 32], strides = [1, 1, 1]} : vector<8x8x32xf32> to vector<1x8x32xf32>
    %189 = vector.shape_cast %188 : vector<1x8x32xf32> to vector<8x32xf32>
    %190 = arith.mulf %189, %187 : vector<8x32xf32>
    %191 = vector.extract_strided_slice %169 {offsets = [4, 0, 0], sizes = [1, 8, 32], strides = [1, 1, 1]} : vector<8x8x32xf32> to vector<1x8x32xf32>
    %192 = vector.shape_cast %191 : vector<1x8x32xf32> to vector<8x32xf32>
    %193 = arith.addf %190, %192 : vector<8x32xf32>
    %194 = vector.extract_strided_slice %164 {offsets = [3, 0, 0], sizes = [1, 8, 32], strides = [1, 1, 1]} : vector<8x8x32xf32> to vector<1x8x32xf32>
    %195 = vector.shape_cast %194 : vector<1x8x32xf32> to vector<8x32xf32>
    %196 = arith.mulf %195, %193 : vector<8x32xf32>
    %197 = vector.extract_strided_slice %169 {offsets = [3, 0, 0], sizes = [1, 8, 32], strides = [1, 1, 1]} : vector<8x8x32xf32> to vector<1x8x32xf32>
    %198 = vector.shape_cast %197 : vector<1x8x32xf32> to vector<8x32xf32>
    %199 = arith.addf %196, %198 : vector<8x32xf32>
    %200 = vector.extract_strided_slice %164 {offsets = [2, 0, 0], sizes = [1, 8, 32], strides = [1, 1, 1]} : vector<8x8x32xf32> to vector<1x8x32xf32>
    %201 = vector.shape_cast %200 : vector<1x8x32xf32> to vector<8x32xf32>
    %202 = arith.mulf %201, %199 : vector<8x32xf32>
    %203 = vector.extract_strided_slice %169 {offsets = [2, 0, 0], sizes = [1, 8, 32], strides = [1, 1, 1]} : vector<8x8x32xf32> to vector<1x8x32xf32>
    %204 = vector.shape_cast %203 : vector<1x8x32xf32> to vector<8x32xf32>
    %205 = arith.addf %202, %204 : vector<8x32xf32>
    %206 = vector.extract_strided_slice %164 {offsets = [1, 0, 0], sizes = [1, 8, 32], strides = [1, 1, 1]} : vector<8x8x32xf32> to vector<1x8x32xf32>
    %207 = vector.shape_cast %206 : vector<1x8x32xf32> to vector<8x32xf32>
    %208 = arith.mulf %207, %205 : vector<8x32xf32>
    %209 = vector.extract_strided_slice %169 {offsets = [1, 0, 0], sizes = [1, 8, 32], strides = [1, 1, 1]} : vector<8x8x32xf32> to vector<1x8x32xf32>
    %210 = vector.shape_cast %209 : vector<1x8x32xf32> to vector<8x32xf32>
    %211 = arith.addf %208, %210 : vector<8x32xf32>
    %212 = vector.extract_strided_slice %164 {offsets = [0, 0, 0], sizes = [1, 8, 32], strides = [1, 1, 1]} : vector<8x8x32xf32> to vector<1x8x32xf32>
    %213 = vector.shape_cast %212 : vector<1x8x32xf32> to vector<8x32xf32>
    %214 = arith.mulf %213, %211 : vector<8x32xf32>
    %215 = vector.extract_strided_slice %169 {offsets = [0, 0, 0], sizes = [1, 8, 32], strides = [1, 1, 1]} : vector<8x8x32xf32> to vector<1x8x32xf32>
    %216 = vector.shape_cast %215 : vector<1x8x32xf32> to vector<8x32xf32>
    %217 = arith.addf %214, %216 : vector<8x32xf32>
    %218 = vector.shape_cast %217 : vector<8x32xf32> to vector<1x8x32xf32>
    %219 = vector.shape_cast %211 : vector<8x32xf32> to vector<1x8x32xf32>
    %220 = vector.shape_cast %205 : vector<8x32xf32> to vector<1x8x32xf32>
    %221 = vector.shape_cast %199 : vector<8x32xf32> to vector<1x8x32xf32>
    %222 = vector.shape_cast %193 : vector<8x32xf32> to vector<1x8x32xf32>
    %223 = vector.shape_cast %187 : vector<8x32xf32> to vector<1x8x32xf32>
    %224 = vector.shape_cast %181 : vector<8x32xf32> to vector<1x8x32xf32>
    %225 = vector.shape_cast %175 : vector<8x32xf32> to vector<1x8x32xf32>
    %226 = tpu.concatenate %218, %219, %220, %221, %222, %223, %224, %225 in 0 : vector<1x8x32xf32>, vector<1x8x32xf32>, vector<1x8x32xf32>, vector<1x8x32xf32>, vector<1x8x32xf32>, vector<1x8x32xf32>, vector<1x8x32xf32>, vector<1x8x32xf32> -> vector<8x8x32xf32>
    %227 = vector.shape_cast %158 : vector<8x8xf32> to vector<8x8x1xf32>
    %228 = vector.broadcast %227 : vector<8x8x1xf32> to vector<8x8x32xf32>
    %229 = arith.mulf %226, %228 : vector<8x8x32xf32>
    %cst_63 = arith.constant dense<0.000000e+00> : vector<8x32xf32>
    %230 = vector.multi_reduction <add>, %229, %cst_63 [1] : vector<8x8x32xf32> to vector<8x32xf32>
    %231 = arith.index_cast %150 : i32 to index
    %c0_64 = arith.constant 0 : index
    %232 = vector.load %arg17[%231, %c0_64] : memref<24x32xf32, #tpu.memory_space<vmem>>, vector<8x32xf32>
    tpu.vector_store %arg17[%231, %c0_64], %230 {strides = array<i32>} : memref<24x32xf32, #tpu.memory_space<vmem>>, vector<8x32xf32>,
    %c2_i32_65 = arith.constant 2 : i32
    %c2_i32_66 = arith.constant 2 : i32
    %233 = arith.subi %c2_i32_66, %c2_i32_65 : i32
    %c8_i32_67 = arith.constant 8 : i32
    %234 = arith.muli %233, %c8_i32_67 : i32
    %235 = tpu.assume_multiple %234, 8 : i32
    %236 = arith.index_cast %235 : i32 to index
    %c0_68 = arith.constant 0 : index
    %237 = vector.load %arg13[%236, %c0_68] : memref<24x32xf32, #tpu.memory_space<vmem>>, vector<8x32xf32>
    %238 = arith.index_cast %235 : i32 to index
    %c0_69 = arith.constant 0 : index
    %239 = vector.load %arg14[%238, %c0_69] : memref<24x32xf32, #tpu.memory_space<vmem>>, vector<8x32xf32>
    %240 = arith.index_cast %235 : i32 to index
    %c0_70 = arith.constant 0 : index
    %241 = vector.load %arg15[%240, %c0_70] : memref<24x8xf32, #tpu.memory_space<vmem>>, vector<8x8xf32>
    %242 = arith.index_cast %235 : i32 to index
    %c0_71 = arith.constant 0 : index
    %243 = vector.load %arg16[%242, %c0_71] : memref<24x8xf32, #tpu.memory_space<vmem>>, vector<8x8xf32>
    %244 = vector.shape_cast %237 : vector<8x32xf32> to vector<8x1x32xf32>
    %245 = vector.shape_cast %61 : vector<8x32xf32> to vector<1x8x32xf32>
    %246 = vector.broadcast %244 : vector<8x1x32xf32> to vector<8x8x32xf32>
    %247 = vector.broadcast %245 : vector<1x8x32xf32> to vector<8x8x32xf32>
    %248 = arith.mulf %246, %247 : vector<8x8x32xf32>
    %249 = math.exp %248 : vector<8x8x32xf32>
    %250 = vector.shape_cast %241 : vector<8x8xf32> to vector<8x8x1xf32>
    %251 = vector.shape_cast %239 : vector<8x32xf32> to vector<8x1x32xf32>
    %252 = vector.broadcast %250 : vector<8x8x1xf32> to vector<8x8x32xf32>
    %253 = vector.broadcast %251 : vector<8x1x32xf32> to vector<8x8x32xf32>
    %254 = arith.mulf %252, %253 : vector<8x8x32xf32>
    %255 = vector.extract_strided_slice %249 {offsets = [7, 0, 0], sizes = [1, 8, 32], strides = [1, 1, 1]} : vector<8x8x32xf32> to vector<1x8x32xf32>
    %256 = vector.shape_cast %255 : vector<1x8x32xf32> to vector<8x32xf32>
    %257 = arith.mulf %256, %217 : vector<8x32xf32>
    %258 = vector.extract_strided_slice %254 {offsets = [7, 0, 0], sizes = [1, 8, 32], strides = [1, 1, 1]} : vector<8x8x32xf32> to vector<1x8x32xf32>
    %259 = vector.shape_cast %258 : vector<1x8x32xf32> to vector<8x32xf32>
    %260 = arith.addf %257, %259 : vector<8x32xf32>
    %261 = vector.extract_strided_slice %249 {offsets = [6, 0, 0], sizes = [1, 8, 32], strides = [1, 1, 1]} : vector<8x8x32xf32> to vector<1x8x32xf32>
    %262 = vector.shape_cast %261 : vector<1x8x32xf32> to vector<8x32xf32>
    %263 = arith.mulf %262, %260 : vector<8x32xf32>
    %264 = vector.extract_strided_slice %254 {offsets = [6, 0, 0], sizes = [1, 8, 32], strides = [1, 1, 1]} : vector<8x8x32xf32> to vector<1x8x32xf32>
    %265 = vector.shape_cast %264 : vector<1x8x32xf32> to vector<8x32xf32>
    %266 = arith.addf %263, %265 : vector<8x32xf32>
    %267 = vector.extract_strided_slice %249 {offsets = [5, 0, 0], sizes = [1, 8, 32], strides = [1, 1, 1]} : vector<8x8x32xf32> to vector<1x8x32xf32>
    %268 = vector.shape_cast %267 : vector<1x8x32xf32> to vector<8x32xf32>
    %269 = arith.mulf %268, %266 : vector<8x32xf32>
    %270 = vector.extract_strided_slice %254 {offsets = [5, 0, 0], sizes = [1, 8, 32], strides = [1, 1, 1]} : vector<8x8x32xf32> to vector<1x8x32xf32>
    %271 = vector.shape_cast %270 : vector<1x8x32xf32> to vector<8x32xf32>
    %272 = arith.addf %269, %271 : vector<8x32xf32>
    %273 = vector.extract_strided_slice %249 {offsets = [4, 0, 0], sizes = [1, 8, 32], strides = [1, 1, 1]} : vector<8x8x32xf32> to vector<1x8x32xf32>
    %274 = vector.shape_cast %273 : vector<1x8x32xf32> to vector<8x32xf32>
    %275 = arith.mulf %274, %272 : vector<8x32xf32>
    %276 = vector.extract_strided_slice %254 {offsets = [4, 0, 0], sizes = [1, 8, 32], strides = [1, 1, 1]} : vector<8x8x32xf32> to vector<1x8x32xf32>
    %277 = vector.shape_cast %276 : vector<1x8x32xf32> to vector<8x32xf32>
    %278 = arith.addf %275, %277 : vector<8x32xf32>
    %279 = vector.extract_strided_slice %249 {offsets = [3, 0, 0], sizes = [1, 8, 32], strides = [1, 1, 1]} : vector<8x8x32xf32> to vector<1x8x32xf32>
    %280 = vector.shape_cast %279 : vector<1x8x32xf32> to vector<8x32xf32>
    %281 = arith.mulf %280, %278 : vector<8x32xf32>
    %282 = vector.extract_strided_slice %254 {offsets = [3, 0, 0], sizes = [1, 8, 32], strides = [1, 1, 1]} : vector<8x8x32xf32> to vector<1x8x32xf32>
    %283 = vector.shape_cast %282 : vector<1x8x32xf32> to vector<8x32xf32>
    %284 = arith.addf %281, %283 : vector<8x32xf32>
    %285 = vector.extract_strided_slice %249 {offsets = [2, 0, 0], sizes = [1, 8, 32], strides = [1, 1, 1]} : vector<8x8x32xf32> to vector<1x8x32xf32>
    %286 = vector.shape_cast %285 : vector<1x8x32xf32> to vector<8x32xf32>
    %287 = arith.mulf %286, %284 : vector<8x32xf32>
    %288 = vector.extract_strided_slice %254 {offsets = [2, 0, 0], sizes = [1, 8, 32], strides = [1, 1, 1]} : vector<8x8x32xf32> to vector<1x8x32xf32>
    %289 = vector.shape_cast %288 : vector<1x8x32xf32> to vector<8x32xf32>
    %290 = arith.addf %287, %289 : vector<8x32xf32>
    %291 = vector.extract_strided_slice %249 {offsets = [1, 0, 0], sizes = [1, 8, 32], strides = [1, 1, 1]} : vector<8x8x32xf32> to vector<1x8x32xf32>
    %292 = vector.shape_cast %291 : vector<1x8x32xf32> to vector<8x32xf32>
    %293 = arith.mulf %292, %290 : vector<8x32xf32>
    %294 = vector.extract_strided_slice %254 {offsets = [1, 0, 0], sizes = [1, 8, 32], strides = [1, 1, 1]} : vector<8x8x32xf32> to vector<1x8x32xf32>
    %295 = vector.shape_cast %294 : vector<1x8x32xf32> to vector<8x32xf32>
    %296 = arith.addf %293, %295 : vector<8x32xf32>
    %297 = vector.extract_strided_slice %249 {offsets = [0, 0, 0], sizes = [1, 8, 32], strides = [1, 1, 1]} : vector<8x8x32xf32> to vector<1x8x32xf32>
    %298 = vector.shape_cast %297 : vector<1x8x32xf32> to vector<8x32xf32>
    %299 = arith.mulf %298, %296 : vector<8x32xf32>
    %300 = vector.extract_strided_slice %254 {offsets = [0, 0, 0], sizes = [1, 8, 32], strides = [1, 1, 1]} : vector<8x8x32xf32> to vector<1x8x32xf32>
    %301 = vector.shape_cast %300 : vector<1x8x32xf32> to vector<8x32xf32>
    %302 = arith.addf %299, %301 : vector<8x32xf32>
    %303 = vector.shape_cast %302 : vector<8x32xf32> to vector<1x8x32xf32>
    %304 = vector.shape_cast %296 : vector<8x32xf32> to vector<1x8x32xf32>
    %305 = vector.shape_cast %290 : vector<8x32xf32> to vector<1x8x32xf32>
    %306 = vector.shape_cast %284 : vector<8x32xf32> to vector<1x8x32xf32>
    %307 = vector.shape_cast %278 : vector<8x32xf32> to vector<1x8x32xf32>
    %308 = vector.shape_cast %272 : vector<8x32xf32> to vector<1x8x32xf32>
    %309 = vector.shape_cast %266 : vector<8x32xf32> to vector<1x8x32xf32>
    %310 = vector.shape_cast %260 : vector<8x32xf32> to vector<1x8x32xf32>
    %311 = tpu.concatenate %303, %304, %305, %306, %307, %308, %309, %310 in 0 : vector<1x8x32xf32>, vector<1x8x32xf32>, vector<1x8x32xf32>, vector<1x8x32xf32>, vector<1x8x32xf32>, vector<1x8x32xf32>, vector<1x8x32xf32>, vector<1x8x32xf32> -> vector<8x8x32xf32>
    %312 = vector.shape_cast %243 : vector<8x8xf32> to vector<8x8x1xf32>
    %313 = vector.broadcast %312 : vector<8x8x1xf32> to vector<8x8x32xf32>
    %314 = arith.mulf %311, %313 : vector<8x8x32xf32>
    %cst_72 = arith.constant dense<0.000000e+00> : vector<8x32xf32>
    %315 = vector.multi_reduction <add>, %314, %cst_72 [1] : vector<8x8x32xf32> to vector<8x32xf32>
    %316 = arith.index_cast %235 : i32 to index
    %c0_73 = arith.constant 0 : index
    %317 = vector.load %arg17[%316, %c0_73] : memref<24x32xf32, #tpu.memory_space<vmem>>, vector<8x32xf32>
    tpu.vector_store %arg17[%316, %c0_73], %315 {strides = array<i32>} : memref<24x32xf32, #tpu.memory_space<vmem>>, vector<8x32xf32>,
    %c3_i32 = arith.constant 3 : i32
    %c0_74 = arith.constant 0 : index
    %c0_75 = arith.constant 0 : index
    %318 = vector.load %arg17[%c0_74, %c0_75] : memref<24x32xf32, #tpu.memory_space<vmem>>, vector<17x32xf32>
    %c0_76 = arith.constant 0 : index
    %c0_77 = arith.constant 0 : index
    %319 = vector.load %arg9[%c0_76, %c0_77] : memref<1x32xf32, #tpu.memory_space<vmem>>, vector<1x32xf32>
    %320 = vector.broadcast %319 : vector<1x32xf32> to vector<17x32xf32>
    %321 = arith.mulf %320, %28 : vector<17x32xf32>
    %322 = arith.addf %318, %321 : vector<17x32xf32>
    %323 = arith.negf %6 : vector<17x32xf32>
    %324 = math.exp %323 : vector<17x32xf32>
    %cst_78 = arith.constant 1.000000e+00 : f32
    %325 = vector.broadcast %cst_78 : f32 to vector<17x32xf32>
    %326 = arith.addf %325, %324 : vector<17x32xf32>
    %327 = arith.divf %325, %326 : vector<17x32xf32>
    %328 = arith.mulf %6, %327 : vector<17x32xf32>
    %329 = arith.mulf %322, %328 : vector<17x32xf32>
    %330 = arith.truncf %329 : vector<17x32xf32> to vector<17x32xbf16>
    %c0_79 = arith.constant 0 : index
    %c0_80 = arith.constant 0 : index
    %331 = vector.load %arg10[%c0_79, %c0_80] : memref<32x32xbf16, #tpu.memory_space<vmem>>, vector<32x32xbf16>
    %cst_81 = arith.constant dense<0.000000e+00> : vector<17x32xf32>
    %332 = tpu.matmul %330, %331, %cst_81 {dimension_numbers = #tpu.dot_dimension_numbers<[1], [0], [0], [1], [0, 0, 1, 1], [], []>} : vector<17x32xbf16>, vector<32x32xbf16>, vector<17x32xf32> -> vector<17x32xf32>
    %c0_82 = arith.constant 0 : index
    %c0_83 = arith.constant 0 : index
    %c0_84 = arith.constant 0 : index
    %333 = vector.load %arg11[%c0_82, %c0_83, %c0_84] : memref<1x17x32xf32, #tpu.memory_space<vmem>>, vector<1x17x32xf32>
    %334 = vector.shape_cast %333 : vector<1x17x32xf32> to vector<17x32xf32>
    %335 = vector.shape_cast %332 : vector<17x32xf32> to vector<1x17x32xf32>
    tpu.vector_store %arg11[%c0_82, %c0_83, %c0_84], %335 {strides = array<i32>} : memref<1x17x32xf32, #tpu.memory_space<vmem>>, vector<1x17x32xf32>,
    return
  }
  func.func @transform_0(%arg0: i32) -> (i32, i32, i32) {
    %c0_i32 = arith.constant 0 : i32
    %c0_i32_0 = arith.constant 0 : i32
    %c0_i32_1 = arith.constant 0 : i32
    return %arg0, %c0_i32, %c0_i32_0 : i32, i32, i32
  }
  func.func @transform_1(%arg0: i32) -> (i32, i32) {
    %c0_i32 = arith.constant 0 : i32
    %c0_i32_0 = arith.constant 0 : i32
    %c0_i32_1 = arith.constant 0 : i32
    return %c0_i32, %c0_i32_0 : i32, i32
  }
  func.func @transform_2(%arg0: i32) -> (i32, i32) {
    %c0_i32 = arith.constant 0 : i32
    %c0_i32_0 = arith.constant 0 : i32
    %c0_i32_1 = arith.constant 0 : i32
    return %c0_i32, %c0_i32_0 : i32, i32
  }
  func.func @transform_3(%arg0: i32) -> (i32, i32) {
    %c0_i32 = arith.constant 0 : i32
    %c0_i32_0 = arith.constant 0 : i32
    %c0_i32_1 = arith.constant 0 : i32
    return %c0_i32, %c0_i32_0 : i32, i32
  }
  func.func @transform_4(%arg0: i32) -> (i32, i32) {
    %c0_i32 = arith.constant 0 : i32
    %c0_i32_0 = arith.constant 0 : i32
    %c0_i32_1 = arith.constant 0 : i32
    return %c0_i32, %c0_i32_0 : i32, i32
  }
  func.func @transform_5(%arg0: i32) -> (i32, i32) {
    %c0_i32 = arith.constant 0 : i32
    %c0_i32_0 = arith.constant 0 : i32
    %c0_i32_1 = arith.constant 0 : i32
    return %c0_i32, %c0_i32_0 : i32, i32
  }
  func.func @transform_6(%arg0: i32) -> (i32, i32) {
    %c0_i32 = arith.constant 0 : i32
    %c0_i32_0 = arith.constant 0 : i32
    %c0_i32_1 = arith.constant 0 : i32
    return %c0_i32, %c0_i32_0 : i32, i32
  }
  func.func @transform_7(%arg0: i32) -> (i32, i32) {
    %c0_i32 = arith.constant 0 : i32
    %c0_i32_0 = arith.constant 0 : i32
    %c0_i32_1 = arith.constant 0 : i32
    return %c0_i32, %c0_i32_0 : i32, i32
  }
  func.func @transform_8(%arg0: i32) -> (i32, i32) {
    %c0_i32 = arith.constant 0 : i32
    %c0_i32_0 = arith.constant 0 : i32
    %c0_i32_1 = arith.constant 0 : i32
    return %c0_i32, %c0_i32_0 : i32, i32
  }
  func.func @transform_9(%arg0: i32) -> (i32, i32) {
    %c0_i32 = arith.constant 0 : i32
    %c0_i32_0 = arith.constant 0 : i32
    %c0_i32_1 = arith.constant 0 : i32
    return %c0_i32, %c0_i32_0 : i32, i32
  }
  func.func @transform_10(%arg0: i32) -> (i32, i32, i32) {
    %c0_i32 = arith.constant 0 : i32
    %c0_i32_0 = arith.constant 0 : i32
    %c0_i32_1 = arith.constant 0 : i32
    return %arg0, %c0_i32, %c0_i32_0 : i32, i32, i32
  }
}

module attributes {stable_mosaic.version = 11 : i64} {
  func.func @_add3_ln_kernel(%arg0: i32, %arg1: memref<34x32xf32, #tpu.memory_space<vmem>>, %arg2: memref<34x32xf32, #tpu.memory_space<vmem>>, %arg3: memref<34x32xf32, #tpu.memory_space<vmem>>, %arg4: memref<1x32xf32, #tpu.memory_space<vmem>>, %arg5: memref<1x32xf32, #tpu.memory_space<vmem>>, %arg6: memref<34x32xf32, #tpu.memory_space<vmem>>) attributes {dimension_semantics = [#tpu.dimension_semantics<arbitrary>], iteration_bounds = array<i64: 1>, scalar_prefetch = 0 : i64, scratch_operands = 0 : i64, tpu.core_type = #tpu.core_type<tc>, window_params = [{transform_indices = @transform_0, window_bounds = array<i64: 34, 32>}, {transform_indices = @transform_1, window_bounds = array<i64: 34, 32>}, {transform_indices = @transform_2, window_bounds = array<i64: 34, 32>}, {pipeline_mode = #tpu.pipeline_mode<synchronous>, transform_indices = @transform_3, window_bounds = array<i64: 1, 32>}, {pipeline_mode = #tpu.pipeline_mode<synchronous>, transform_indices = @transform_4, window_bounds = array<i64: 1, 32>}, {transform_indices = @transform_5, window_bounds = array<i64: 34, 32>}]} {
    %c0 = arith.constant 0 : index
    %c0_0 = arith.constant 0 : index
    %0 = vector.load %arg1[%c0, %c0_0] : memref<34x32xf32, #tpu.memory_space<vmem>>, vector<34x32xf32>
    %c0_1 = arith.constant 0 : index
    %c0_2 = arith.constant 0 : index
    %1 = vector.load %arg2[%c0_1, %c0_2] : memref<34x32xf32, #tpu.memory_space<vmem>>, vector<34x32xf32>
    %2 = arith.addf %0, %1 : vector<34x32xf32>
    %c0_3 = arith.constant 0 : index
    %c0_4 = arith.constant 0 : index
    %3 = vector.load %arg3[%c0_3, %c0_4] : memref<34x32xf32, #tpu.memory_space<vmem>>, vector<34x32xf32>
    %4 = arith.addf %2, %3 : vector<34x32xf32>
    %cst = arith.constant dense<0.000000e+00> : vector<34xf32>
    %5 = vector.multi_reduction <add>, %4, %cst [1] : vector<34x32xf32> to vector<34xf32>
    %6 = vector.shape_cast %5 : vector<34xf32> to vector<34x1xf32>
    %cst_5 = arith.constant 3.200000e+01 : f32
    %7 = vector.broadcast %cst_5 : f32 to vector<34x1xf32>
    %8 = arith.divf %6, %7 : vector<34x1xf32>
    %9 = vector.broadcast %8 : vector<34x1xf32> to vector<34x32xf32>
    %10 = arith.subf %4, %9 : vector<34x32xf32>
    %11 = arith.mulf %10, %10 : vector<34x32xf32>
    %cst_6 = arith.constant dense<0.000000e+00> : vector<34xf32>
    %12 = vector.multi_reduction <add>, %11, %cst_6 [1] : vector<34x32xf32> to vector<34xf32>
    %13 = vector.shape_cast %12 : vector<34xf32> to vector<34x1xf32>
    %cst_7 = arith.constant 3.200000e+01 : f32
    %14 = vector.broadcast %cst_7 : f32 to vector<34x1xf32>
    %15 = arith.divf %13, %14 : vector<34x1xf32>
    %cst_8 = arith.constant 9.99999974E-6 : f32
    %16 = vector.broadcast %cst_8 : f32 to vector<34x1xf32>
    %17 = arith.addf %15, %16 : vector<34x1xf32>
    %18 = math.rsqrt %17 : vector<34x1xf32>
    %19 = vector.broadcast %18 : vector<34x1xf32> to vector<34x32xf32>
    %20 = arith.mulf %10, %19 : vector<34x32xf32>
    %c0_9 = arith.constant 0 : index
    %c0_10 = arith.constant 0 : index
    %21 = vector.load %arg4[%c0_9, %c0_10] : memref<1x32xf32, #tpu.memory_space<vmem>>, vector<1x32xf32>
    %22 = vector.broadcast %21 : vector<1x32xf32> to vector<34x32xf32>
    %23 = arith.mulf %20, %22 : vector<34x32xf32>
    %c0_11 = arith.constant 0 : index
    %c0_12 = arith.constant 0 : index
    %24 = vector.load %arg5[%c0_11, %c0_12] : memref<1x32xf32, #tpu.memory_space<vmem>>, vector<1x32xf32>
    %25 = vector.broadcast %24 : vector<1x32xf32> to vector<34x32xf32>
    %26 = arith.addf %23, %25 : vector<34x32xf32>
    %c0_13 = arith.constant 0 : index
    %c0_14 = arith.constant 0 : index
    %27 = vector.load %arg6[%c0_13, %c0_14] : memref<34x32xf32, #tpu.memory_space<vmem>>, vector<34x32xf32>
    tpu.vector_store %arg6[%c0_13, %c0_14], %26 {strides = array<i32>} : memref<34x32xf32, #tpu.memory_space<vmem>>, vector<34x32xf32>,
    return
  }
  func.func @transform_0(%arg0: i32) -> (i32, i32) {
    %c0_i32 = arith.constant 0 : i32
    %c0_i32_0 = arith.constant 0 : i32
    return %arg0, %c0_i32 : i32, i32
  }
  func.func @transform_1(%arg0: i32) -> (i32, i32) {
    %c0_i32 = arith.constant 0 : i32
    %c0_i32_0 = arith.constant 0 : i32
    return %arg0, %c0_i32 : i32, i32
  }
  func.func @transform_2(%arg0: i32) -> (i32, i32) {
    %c0_i32 = arith.constant 0 : i32
    %c0_i32_0 = arith.constant 0 : i32
    return %arg0, %c0_i32 : i32, i32
  }
  func.func @transform_3(%arg0: i32) -> (i32, i32) {
    %c0_i32 = arith.constant 0 : i32
    %c0_i32_0 = arith.constant 0 : i32
    %c0_i32_1 = arith.constant 0 : i32
    return %c0_i32, %c0_i32_0 : i32, i32
  }
  func.func @transform_4(%arg0: i32) -> (i32, i32) {
    %c0_i32 = arith.constant 0 : i32
    %c0_i32_0 = arith.constant 0 : i32
    %c0_i32_1 = arith.constant 0 : i32
    return %c0_i32, %c0_i32_0 : i32, i32
  }
  func.func @transform_5(%arg0: i32) -> (i32, i32) {
    %c0_i32 = arith.constant 0 : i32
    %c0_i32_0 = arith.constant 0 : i32
    return %arg0, %c0_i32 : i32, i32
  }
}

module attributes {stable_mosaic.version = 11 : i64} {
  func.func @_ffn_ln_kernel(%arg0: i32, %arg1: memref<34x32xf32, #tpu.memory_space<vmem>>, %arg2: memref<32x64xbf16, #tpu.memory_space<vmem>>, %arg3: memref<1x64xf32, #tpu.memory_space<vmem>>, %arg4: memref<64x32xbf16, #tpu.memory_space<vmem>>, %arg5: memref<1x32xf32, #tpu.memory_space<vmem>>, %arg6: memref<1x32xf32, #tpu.memory_space<vmem>>, %arg7: memref<1x32xf32, #tpu.memory_space<vmem>>, %arg8: memref<34x32xf32, #tpu.memory_space<vmem>>) attributes {dimension_semantics = [#tpu.dimension_semantics<arbitrary>], iteration_bounds = array<i64: 1>, scalar_prefetch = 0 : i64, scratch_operands = 0 : i64, tpu.core_type = #tpu.core_type<tc>, window_params = [{transform_indices = @transform_0, window_bounds = array<i64: 34, 32>}, {pipeline_mode = #tpu.pipeline_mode<synchronous>, transform_indices = @transform_1, window_bounds = array<i64: 32, 64>}, {pipeline_mode = #tpu.pipeline_mode<synchronous>, transform_indices = @transform_2, window_bounds = array<i64: 1, 64>}, {pipeline_mode = #tpu.pipeline_mode<synchronous>, transform_indices = @transform_3, window_bounds = array<i64: 64, 32>}, {pipeline_mode = #tpu.pipeline_mode<synchronous>, transform_indices = @transform_4, window_bounds = array<i64: 1, 32>}, {pipeline_mode = #tpu.pipeline_mode<synchronous>, transform_indices = @transform_5, window_bounds = array<i64: 1, 32>}, {pipeline_mode = #tpu.pipeline_mode<synchronous>, transform_indices = @transform_6, window_bounds = array<i64: 1, 32>}, {transform_indices = @transform_7, window_bounds = array<i64: 34, 32>}]} {
    %c0 = arith.constant 0 : index
    %c0_0 = arith.constant 0 : index
    %0 = vector.load %arg1[%c0, %c0_0] : memref<34x32xf32, #tpu.memory_space<vmem>>, vector<34x32xf32>
    %1 = arith.truncf %0 : vector<34x32xf32> to vector<34x32xbf16>
    %c0_1 = arith.constant 0 : index
    %c0_2 = arith.constant 0 : index
    %2 = vector.load %arg2[%c0_1, %c0_2] : memref<32x64xbf16, #tpu.memory_space<vmem>>, vector<32x64xbf16>
    %cst = arith.constant dense<0.000000e+00> : vector<34x64xf32>
    %3 = tpu.matmul %1, %2, %cst {dimension_numbers = #tpu.dot_dimension_numbers<[1], [0], [0], [1], [0, 0, 1, 1], [], []>} : vector<34x32xbf16>, vector<32x64xbf16>, vector<34x64xf32> -> vector<34x64xf32>
    %c0_3 = arith.constant 0 : index
    %c0_4 = arith.constant 0 : index
    %4 = vector.load %arg3[%c0_3, %c0_4] : memref<1x64xf32, #tpu.memory_space<vmem>>, vector<1x64xf32>
    %5 = vector.broadcast %4 : vector<1x64xf32> to vector<34x64xf32>
    %6 = arith.addf %3, %5 : vector<34x64xf32>
    %cst_5 = arith.constant 0.000000e+00 : f32
    %7 = vector.broadcast %cst_5 : f32 to vector<34x64xf32>
    %8 = arith.maximumf %6, %7 : vector<34x64xf32>
    %9 = arith.truncf %8 : vector<34x64xf32> to vector<34x64xbf16>
    %c0_6 = arith.constant 0 : index
    %c0_7 = arith.constant 0 : index
    %10 = vector.load %arg4[%c0_6, %c0_7] : memref<64x32xbf16, #tpu.memory_space<vmem>>, vector<64x32xbf16>
    %cst_8 = arith.constant dense<0.000000e+00> : vector<34x32xf32>
    %11 = tpu.matmul %9, %10, %cst_8 {dimension_numbers = #tpu.dot_dimension_numbers<[1], [0], [0], [1], [0, 0, 1, 1], [], []>} : vector<34x64xbf16>, vector<64x32xbf16>, vector<34x32xf32> -> vector<34x32xf32>
    %c0_9 = arith.constant 0 : index
    %c0_10 = arith.constant 0 : index
    %12 = vector.load %arg5[%c0_9, %c0_10] : memref<1x32xf32, #tpu.memory_space<vmem>>, vector<1x32xf32>
    %13 = vector.broadcast %12 : vector<1x32xf32> to vector<34x32xf32>
    %14 = arith.addf %11, %13 : vector<34x32xf32>
    %15 = arith.addf %0, %14 : vector<34x32xf32>
    %cst_11 = arith.constant dense<0.000000e+00> : vector<34xf32>
    %16 = vector.multi_reduction <add>, %15, %cst_11 [1] : vector<34x32xf32> to vector<34xf32>
    %17 = vector.shape_cast %16 : vector<34xf32> to vector<34x1xf32>
    %cst_12 = arith.constant 3.200000e+01 : f32
    %18 = vector.broadcast %cst_12 : f32 to vector<34x1xf32>
    %19 = arith.divf %17, %18 : vector<34x1xf32>
    %20 = vector.broadcast %19 : vector<34x1xf32> to vector<34x32xf32>
    %21 = arith.subf %15, %20 : vector<34x32xf32>
    %22 = arith.mulf %21, %21 : vector<34x32xf32>
    %cst_13 = arith.constant dense<0.000000e+00> : vector<34xf32>
    %23 = vector.multi_reduction <add>, %22, %cst_13 [1] : vector<34x32xf32> to vector<34xf32>
    %24 = vector.shape_cast %23 : vector<34xf32> to vector<34x1xf32>
    %cst_14 = arith.constant 3.200000e+01 : f32
    %25 = vector.broadcast %cst_14 : f32 to vector<34x1xf32>
    %26 = arith.divf %24, %25 : vector<34x1xf32>
    %cst_15 = arith.constant 9.99999974E-6 : f32
    %27 = vector.broadcast %cst_15 : f32 to vector<34x1xf32>
    %28 = arith.addf %26, %27 : vector<34x1xf32>
    %29 = math.rsqrt %28 : vector<34x1xf32>
    %30 = vector.broadcast %29 : vector<34x1xf32> to vector<34x32xf32>
    %31 = arith.mulf %21, %30 : vector<34x32xf32>
    %c0_16 = arith.constant 0 : index
    %c0_17 = arith.constant 0 : index
    %32 = vector.load %arg6[%c0_16, %c0_17] : memref<1x32xf32, #tpu.memory_space<vmem>>, vector<1x32xf32>
    %33 = vector.broadcast %32 : vector<1x32xf32> to vector<34x32xf32>
    %34 = arith.mulf %31, %33 : vector<34x32xf32>
    %c0_18 = arith.constant 0 : index
    %c0_19 = arith.constant 0 : index
    %35 = vector.load %arg7[%c0_18, %c0_19] : memref<1x32xf32, #tpu.memory_space<vmem>>, vector<1x32xf32>
    %36 = vector.broadcast %35 : vector<1x32xf32> to vector<34x32xf32>
    %37 = arith.addf %34, %36 : vector<34x32xf32>
    %c0_20 = arith.constant 0 : index
    %c0_21 = arith.constant 0 : index
    %38 = vector.load %arg8[%c0_20, %c0_21] : memref<34x32xf32, #tpu.memory_space<vmem>>, vector<34x32xf32>
    tpu.vector_store %arg8[%c0_20, %c0_21], %37 {strides = array<i32>} : memref<34x32xf32, #tpu.memory_space<vmem>>, vector<34x32xf32>,
    return
  }
  func.func @transform_0(%arg0: i32) -> (i32, i32) {
    %c0_i32 = arith.constant 0 : i32
    %c0_i32_0 = arith.constant 0 : i32
    return %arg0, %c0_i32 : i32, i32
  }
  func.func @transform_1(%arg0: i32) -> (i32, i32) {
    %c0_i32 = arith.constant 0 : i32
    %c0_i32_0 = arith.constant 0 : i32
    %c0_i32_1 = arith.constant 0 : i32
    return %c0_i32, %c0_i32_0 : i32, i32
  }
  func.func @transform_2(%arg0: i32) -> (i32, i32) {
    %c0_i32 = arith.constant 0 : i32
    %c0_i32_0 = arith.constant 0 : i32
    %c0_i32_1 = arith.constant 0 : i32
    return %c0_i32, %c0_i32_0 : i32, i32
  }
  func.func @transform_3(%arg0: i32) -> (i32, i32) {
    %c0_i32 = arith.constant 0 : i32
    %c0_i32_0 = arith.constant 0 : i32
    %c0_i32_1 = arith.constant 0 : i32
    return %c0_i32, %c0_i32_0 : i32, i32
  }
  func.func @transform_4(%arg0: i32) -> (i32, i32) {
    %c0_i32 = arith.constant 0 : i32
    %c0_i32_0 = arith.constant 0 : i32
    %c0_i32_1 = arith.constant 0 : i32
    return %c0_i32, %c0_i32_0 : i32, i32
  }
  func.func @transform_5(%arg0: i32) -> (i32, i32) {
    %c0_i32 = arith.constant 0 : i32
    %c0_i32_0 = arith.constant 0 : i32
    %c0_i32_1 = arith.constant 0 : i32
    return %c0_i32, %c0_i32_0 : i32, i32
  }
  func.func @transform_6(%arg0: i32) -> (i32, i32) {
    %c0_i32 = arith.constant 0 : i32
    %c0_i32_0 = arith.constant 0 : i32
    %c0_i32_1 = arith.constant 0 : i32
    return %c0_i32, %c0_i32_0 : i32, i32
  }
  func.func @transform_7(%arg0: i32) -> (i32, i32) {
    %c0_i32 = arith.constant 0 : i32
    %c0_i32_0 = arith.constant 0 : i32
    return %arg0, %c0_i32 : i32, i32
  }
}

module attributes {stable_mosaic.version = 11 : i64} {
  func.func @_gated_head_kernel(%arg0: i32, %arg1: memref<8x128xf32, #tpu.memory_space<vmem>>, %arg2: memref<128x128xbf16, #tpu.memory_space<vmem>>, %arg3: memref<1x128xf32, #tpu.memory_space<vmem>>, %arg4: memref<128x32xbf16, #tpu.memory_space<vmem>>, %arg5: memref<1x32xf32, #tpu.memory_space<vmem>>, %arg6: memref<8x32xf32, #tpu.memory_space<vmem>>) attributes {dimension_semantics = [#tpu.dimension_semantics<arbitrary>], iteration_bounds = array<i64: 1>, scalar_prefetch = 0 : i64, scratch_operands = 0 : i64, tpu.core_type = #tpu.core_type<tc>, window_params = [{transform_indices = @transform_0, window_bounds = array<i64: 8, 128>}, {pipeline_mode = #tpu.pipeline_mode<synchronous>, transform_indices = @transform_1, window_bounds = array<i64: 128, 128>}, {pipeline_mode = #tpu.pipeline_mode<synchronous>, transform_indices = @transform_2, window_bounds = array<i64: 1, 128>}, {pipeline_mode = #tpu.pipeline_mode<synchronous>, transform_indices = @transform_3, window_bounds = array<i64: 128, 32>}, {pipeline_mode = #tpu.pipeline_mode<synchronous>, transform_indices = @transform_4, window_bounds = array<i64: 1, 32>}, {transform_indices = @transform_5, window_bounds = array<i64: 8, 32>}]} {
    %c0 = arith.constant 0 : index
    %c0_0 = arith.constant 0 : index
    %0 = vector.load %arg1[%c0, %c0_0] : memref<8x128xf32, #tpu.memory_space<vmem>>, vector<8x128xf32>
    %1 = arith.truncf %0 : vector<8x128xf32> to vector<8x128xbf16>
    %c0_1 = arith.constant 0 : index
    %c0_2 = arith.constant 0 : index
    %2 = vector.load %arg2[%c0_1, %c0_2] : memref<128x128xbf16, #tpu.memory_space<vmem>>, vector<128x128xbf16>
    %cst = arith.constant dense<0.000000e+00> : vector<8x128xf32>
    %3 = tpu.matmul %1, %2, %cst {dimension_numbers = #tpu.dot_dimension_numbers<[1], [0], [0], [1], [0, 0, 1, 1], [], []>} : vector<8x128xbf16>, vector<128x128xbf16>, vector<8x128xf32> -> vector<8x128xf32>
    %c0_3 = arith.constant 0 : index
    %c0_4 = arith.constant 0 : index
    %4 = vector.load %arg3[%c0_3, %c0_4] : memref<1x128xf32, #tpu.memory_space<vmem>>, vector<1x128xf32>
    %5 = vector.broadcast %4 : vector<1x128xf32> to vector<8x128xf32>
    %6 = arith.addf %3, %5 : vector<8x128xf32>
    %7 = arith.negf %6 : vector<8x128xf32>
    %8 = math.exp %7 : vector<8x128xf32>
    %cst_5 = arith.constant 1.000000e+00 : f32
    %9 = vector.broadcast %cst_5 : f32 to vector<8x128xf32>
    %10 = arith.addf %9, %8 : vector<8x128xf32>
    %11 = arith.divf %9, %10 : vector<8x128xf32>
    %12 = arith.mulf %6, %11 : vector<8x128xf32>
    %13 = arith.mulf %0, %12 : vector<8x128xf32>
    %14 = arith.truncf %13 : vector<8x128xf32> to vector<8x128xbf16>
    %c0_6 = arith.constant 0 : index
    %c0_7 = arith.constant 0 : index
    %15 = vector.load %arg4[%c0_6, %c0_7] : memref<128x32xbf16, #tpu.memory_space<vmem>>, vector<128x32xbf16>
    %cst_8 = arith.constant dense<0.000000e+00> : vector<8x32xf32>
    %16 = tpu.matmul %14, %15, %cst_8 {dimension_numbers = #tpu.dot_dimension_numbers<[1], [0], [0], [1], [0, 0, 1, 1], [], []>} : vector<8x128xbf16>, vector<128x32xbf16>, vector<8x32xf32> -> vector<8x32xf32>
    %c0_9 = arith.constant 0 : index
    %c0_10 = arith.constant 0 : index
    %17 = vector.load %arg5[%c0_9, %c0_10] : memref<1x32xf32, #tpu.memory_space<vmem>>, vector<1x32xf32>
    %18 = vector.broadcast %17 : vector<1x32xf32> to vector<8x32xf32>
    %19 = arith.addf %16, %18 : vector<8x32xf32>
    %c0_11 = arith.constant 0 : index
    %c0_12 = arith.constant 0 : index
    %20 = vector.load %arg6[%c0_11, %c0_12] : memref<8x32xf32, #tpu.memory_space<vmem>>, vector<8x32xf32>
    tpu.vector_store %arg6[%c0_11, %c0_12], %19 {strides = array<i32>} : memref<8x32xf32, #tpu.memory_space<vmem>>, vector<8x32xf32>,
    return
  }
  func.func @transform_0(%arg0: i32) -> (i32, i32) {
    %c0_i32 = arith.constant 0 : i32
    %c0_i32_0 = arith.constant 0 : i32
    return %arg0, %c0_i32 : i32, i32
  }
  func.func @transform_1(%arg0: i32) -> (i32, i32) {
    %c0_i32 = arith.constant 0 : i32
    %c0_i32_0 = arith.constant 0 : i32
    %c0_i32_1 = arith.constant 0 : i32
    return %c0_i32, %c0_i32_0 : i32, i32
  }
  func.func @transform_2(%arg0: i32) -> (i32, i32) {
    %c0_i32 = arith.constant 0 : i32
    %c0_i32_0 = arith.constant 0 : i32
    %c0_i32_1 = arith.constant 0 : i32
    return %c0_i32, %c0_i32_0 : i32, i32
  }
  func.func @transform_3(%arg0: i32) -> (i32, i32) {
    %c0_i32 = arith.constant 0 : i32
    %c0_i32_0 = arith.constant 0 : i32
    %c0_i32_1 = arith.constant 0 : i32
    return %c0_i32, %c0_i32_0 : i32, i32
  }
  func.func @transform_4(%arg0: i32) -> (i32, i32) {
    %c0_i32 = arith.constant 0 : i32
    %c0_i32_0 = arith.constant 0 : i32
    %c0_i32_1 = arith.constant 0 : i32
    return %c0_i32, %c0_i32_0 : i32, i32
  }
  func.func @transform_5(%arg0: i32) -> (i32, i32) {
    %c0_i32 = arith.constant 0 : i32
    %c0_i32_0 = arith.constant 0 : i32
    return %arg0, %c0_i32 : i32, i32
  }
}

module attributes {stable_mosaic.version = 11 : i64} {
  func.func @_ln_kernel(%arg0: i32, %arg1: memref<34x32xf32, #tpu.memory_space<vmem>>, %arg2: memref<1x32xf32, #tpu.memory_space<vmem>>, %arg3: memref<1x32xf32, #tpu.memory_space<vmem>>, %arg4: memref<34x32xf32, #tpu.memory_space<vmem>>) attributes {dimension_semantics = [#tpu.dimension_semantics<arbitrary>], iteration_bounds = array<i64: 1>, scalar_prefetch = 0 : i64, scratch_operands = 0 : i64, tpu.core_type = #tpu.core_type<tc>, window_params = [{transform_indices = @transform_0, window_bounds = array<i64: 34, 32>}, {pipeline_mode = #tpu.pipeline_mode<synchronous>, transform_indices = @transform_1, window_bounds = array<i64: 1, 32>}, {pipeline_mode = #tpu.pipeline_mode<synchronous>, transform_indices = @transform_2, window_bounds = array<i64: 1, 32>}, {transform_indices = @transform_3, window_bounds = array<i64: 34, 32>}]} {
    %c0 = arith.constant 0 : index
    %c0_0 = arith.constant 0 : index
    %0 = vector.load %arg1[%c0, %c0_0] : memref<34x32xf32, #tpu.memory_space<vmem>>, vector<34x32xf32>
    %cst = arith.constant dense<0.000000e+00> : vector<34xf32>
    %1 = vector.multi_reduction <add>, %0, %cst [1] : vector<34x32xf32> to vector<34xf32>
    %2 = vector.shape_cast %1 : vector<34xf32> to vector<34x1xf32>
    %cst_1 = arith.constant 3.200000e+01 : f32
    %3 = vector.broadcast %cst_1 : f32 to vector<34x1xf32>
    %4 = arith.divf %2, %3 : vector<34x1xf32>
    %5 = vector.broadcast %4 : vector<34x1xf32> to vector<34x32xf32>
    %6 = arith.subf %0, %5 : vector<34x32xf32>
    %7 = arith.mulf %6, %6 : vector<34x32xf32>
    %cst_2 = arith.constant dense<0.000000e+00> : vector<34xf32>
    %8 = vector.multi_reduction <add>, %7, %cst_2 [1] : vector<34x32xf32> to vector<34xf32>
    %9 = vector.shape_cast %8 : vector<34xf32> to vector<34x1xf32>
    %cst_3 = arith.constant 3.200000e+01 : f32
    %10 = vector.broadcast %cst_3 : f32 to vector<34x1xf32>
    %11 = arith.divf %9, %10 : vector<34x1xf32>
    %cst_4 = arith.constant 9.99999974E-6 : f32
    %12 = vector.broadcast %cst_4 : f32 to vector<34x1xf32>
    %13 = arith.addf %11, %12 : vector<34x1xf32>
    %14 = math.rsqrt %13 : vector<34x1xf32>
    %15 = vector.broadcast %14 : vector<34x1xf32> to vector<34x32xf32>
    %16 = arith.mulf %6, %15 : vector<34x32xf32>
    %c0_5 = arith.constant 0 : index
    %c0_6 = arith.constant 0 : index
    %17 = vector.load %arg2[%c0_5, %c0_6] : memref<1x32xf32, #tpu.memory_space<vmem>>, vector<1x32xf32>
    %18 = vector.broadcast %17 : vector<1x32xf32> to vector<34x32xf32>
    %19 = arith.mulf %16, %18 : vector<34x32xf32>
    %c0_7 = arith.constant 0 : index
    %c0_8 = arith.constant 0 : index
    %20 = vector.load %arg3[%c0_7, %c0_8] : memref<1x32xf32, #tpu.memory_space<vmem>>, vector<1x32xf32>
    %21 = vector.broadcast %20 : vector<1x32xf32> to vector<34x32xf32>
    %22 = arith.addf %19, %21 : vector<34x32xf32>
    %c0_9 = arith.constant 0 : index
    %c0_10 = arith.constant 0 : index
    %23 = vector.load %arg4[%c0_9, %c0_10] : memref<34x32xf32, #tpu.memory_space<vmem>>, vector<34x32xf32>
    tpu.vector_store %arg4[%c0_9, %c0_10], %22 {strides = array<i32>} : memref<34x32xf32, #tpu.memory_space<vmem>>, vector<34x32xf32>,
    return
  }
  func.func @transform_0(%arg0: i32) -> (i32, i32) {
    %c0_i32 = arith.constant 0 : i32
    %c0_i32_0 = arith.constant 0 : i32
    return %arg0, %c0_i32 : i32, i32
  }
  func.func @transform_1(%arg0: i32) -> (i32, i32) {
    %c0_i32 = arith.constant 0 : i32
    %c0_i32_0 = arith.constant 0 : i32
    %c0_i32_1 = arith.constant 0 : i32
    return %c0_i32, %c0_i32_0 : i32, i32
  }
  func.func @transform_2(%arg0: i32) -> (i32, i32) {
    %c0_i32 = arith.constant 0 : i32
    %c0_i32_0 = arith.constant 0 : i32
    %c0_i32_1 = arith.constant 0 : i32
    return %c0_i32, %c0_i32_0 : i32, i32
  }
  func.func @transform_3(%arg0: i32) -> (i32, i32) {
    %c0_i32 = arith.constant 0 : i32
    %c0_i32_0 = arith.constant 0 : i32
    return %arg0, %c0_i32 : i32, i32
  }
}

module attributes {stable_mosaic.version = 11 : i64} {
  func.func @_mamba_kernel(%arg0: i32, %arg1: memref<1x5x32xf32, #tpu.memory_space<vmem>>, %arg2: memref<32x32xbf16, #tpu.memory_space<vmem>>, %arg3: memref<32x32xbf16, #tpu.memory_space<vmem>>, %arg4: memref<2x32xf32, #tpu.memory_space<vmem>>, %arg5: memref<1x32xf32, #tpu.memory_space<vmem>>, %arg6: memref<32x48xbf16, #tpu.memory_space<vmem>>, %arg7: memref<1x32xf32, #tpu.memory_space<vmem>>, %arg8: memref<8x32xf32, #tpu.memory_space<vmem>>, %arg9: memref<1x32xf32, #tpu.memory_space<vmem>>, %arg10: memref<32x32xbf16, #tpu.memory_space<vmem>>, %arg11: memref<1x5x32xf32, #tpu.memory_space<vmem>>, %arg12: memref<16x32xf32, #tpu.memory_space<vmem>>, %arg13: memref<8x32xf32, #tpu.memory_space<vmem>>, %arg14: memref<8x32xf32, #tpu.memory_space<vmem>>, %arg15: memref<8x8xf32, #tpu.memory_space<vmem>>, %arg16: memref<8x8xf32, #tpu.memory_space<vmem>>, %arg17: memref<8x32xf32, #tpu.memory_space<vmem>>) attributes {dimension_semantics = [#tpu.dimension_semantics<parallel>], iteration_bounds = array<i64: 2>, scalar_prefetch = 0 : i64, scratch_operands = 6 : i64, tpu.core_type = #tpu.core_type<tc>, window_params = [{transform_indices = @transform_0, window_bounds = array<i64: 1, 5, 32>}, {pipeline_mode = #tpu.pipeline_mode<synchronous>, transform_indices = @transform_1, window_bounds = array<i64: 32, 32>}, {pipeline_mode = #tpu.pipeline_mode<synchronous>, transform_indices = @transform_2, window_bounds = array<i64: 32, 32>}, {pipeline_mode = #tpu.pipeline_mode<synchronous>, transform_indices = @transform_3, window_bounds = array<i64: 2, 32>}, {pipeline_mode = #tpu.pipeline_mode<synchronous>, transform_indices = @transform_4, window_bounds = array<i64: 1, 32>}, {pipeline_mode = #tpu.pipeline_mode<synchronous>, transform_indices = @transform_5, window_bounds = array<i64: 32, 48>}, {pipeline_mode = #tpu.pipeline_mode<synchronous>, transform_indices = @transform_6, window_bounds = array<i64: 1, 32>}, {pipeline_mode = #tpu.pipeline_mode<synchronous>, transform_indices = @transform_7, window_bounds = array<i64: 8, 32>}, {pipeline_mode = #tpu.pipeline_mode<synchronous>, transform_indices = @transform_8, window_bounds = array<i64: 1, 32>}, {pipeline_mode = #tpu.pipeline_mode<synchronous>, transform_indices = @transform_9, window_bounds = array<i64: 32, 32>}, {transform_indices = @transform_10, window_bounds = array<i64: 1, 5, 32>}]} {
    %c0 = arith.constant 0 : index
    %c0_0 = arith.constant 0 : index
    %c0_1 = arith.constant 0 : index
    %0 = vector.load %arg1[%c0, %c0_0, %c0_1] : memref<1x5x32xf32, #tpu.memory_space<vmem>>, vector<1x5x32xf32>
    %1 = vector.shape_cast %0 : vector<1x5x32xf32> to vector<5x32xf32>
    %2 = arith.truncf %1 : vector<5x32xf32> to vector<5x32xbf16>
    %c0_2 = arith.constant 0 : index
    %c0_3 = arith.constant 0 : index
    %3 = vector.load %arg2[%c0_2, %c0_3] : memref<32x32xbf16, #tpu.memory_space<vmem>>, vector<32x32xbf16>
    %cst = arith.constant dense<0.000000e+00> : vector<5x32xf32>
    %4 = tpu.matmul %2, %3, %cst {dimension_numbers = #tpu.dot_dimension_numbers<[1], [0], [0], [1], [0, 0, 1, 1], [], []>} : vector<5x32xbf16>, vector<32x32xbf16>, vector<5x32xf32> -> vector<5x32xf32>
    %c0_4 = arith.constant 0 : index
    %c0_5 = arith.constant 0 : index
    %5 = vector.load %arg3[%c0_4, %c0_5] : memref<32x32xbf16, #tpu.memory_space<vmem>>, vector<32x32xbf16>
    %cst_6 = arith.constant dense<0.000000e+00> : vector<5x32xf32>
    %6 = tpu.matmul %2, %5, %cst_6 {dimension_numbers = #tpu.dot_dimension_numbers<[1], [0], [0], [1], [0, 0, 1, 1], [], []>} : vector<5x32xbf16>, vector<32x32xbf16>, vector<5x32xf32> -> vector<5x32xf32>
    %cst_7 = arith.constant 0.000000e+00 : f32
    %7 = vector.broadcast %cst_7 : f32 to vector<1x32xf32>
    %c0_8 = arith.constant 0 : index
    %c0_9 = arith.constant 0 : index
    %8 = vector.load %arg12[%c0_8, %c0_9] : memref<16x32xf32, #tpu.memory_space<vmem>>, vector<1x32xf32>
    tpu.vector_store %arg12[%c0_8, %c0_9], %7 {strides = array<i32>} : memref<16x32xf32, #tpu.memory_space<vmem>>, vector<1x32xf32>,
    %c1 = arith.constant 1 : index
    %c0_10 = arith.constant 0 : index
    %9 = vector.load %arg12[%c1, %c0_10] : memref<16x32xf32, #tpu.memory_space<vmem>>, vector<5x32xf32>
    tpu.vector_store %arg12[%c1, %c0_10], %4 {strides = array<i32>} : memref<16x32xf32, #tpu.memory_space<vmem>>, vector<5x32xf32>,
    %cst_11 = arith.constant 0.000000e+00 : f32
    %10 = vector.broadcast %cst_11 : f32 to vector<1x32xf32>
    %c6 = arith.constant 6 : index
    %c0_12 = arith.constant 0 : index
    %11 = vector.load %arg12[%c6, %c0_12] : memref<16x32xf32, #tpu.memory_space<vmem>>, vector<1x32xf32>
    tpu.vector_store %arg12[%c6, %c0_12], %10 {strides = array<i32>} : memref<16x32xf32, #tpu.memory_space<vmem>>, vector<1x32xf32>,
    %c2 = arith.constant 2 : index
    %c0_13 = arith.constant 0 : index
    %12 = vector.load %arg12[%c2, %c0_13] : memref<16x32xf32, #tpu.memory_space<vmem>>, vector<5x32xf32>
    %c0_14 = arith.constant 0 : index
    %c0_15 = arith.constant 0 : index
    %13 = vector.load %arg4[%c0_14, %c0_15] : memref<2x32xf32, #tpu.memory_space<vmem>>, vector<1x32xf32>
    %14 = vector.broadcast %13 : vector<1x32xf32> to vector<5x32xf32>
    %15 = arith.mulf %12, %14 : vector<5x32xf32>
    %c1_16 = arith.constant 1 : index
    %c0_17 = arith.constant 0 : index
    %16 = vector.load %arg4[%c1_16, %c0_17] : memref<2x32xf32, #tpu.memory_space<vmem>>, vector<1x32xf32>
    %17 = vector.broadcast %16 : vector<1x32xf32> to vector<5x32xf32>
    %18 = arith.mulf %4, %17 : vector<5x32xf32>
    %19 = arith.addf %15, %18 : vector<5x32xf32>
    %c0_18 = arith.constant 0 : index
    %c0_19 = arith.constant 0 : index
    %20 = vector.load %arg5[%c0_18, %c0_19] : memref<1x32xf32, #tpu.memory_space<vmem>>, vector<1x32xf32>
    %21 = vector.broadcast %20 : vector<1x32xf32> to vector<5x32xf32>
    %22 = arith.addf %19, %21 : vector<5x32xf32>
    %23 = arith.negf %22 : vector<5x32xf32>
    %24 = math.exp %23 : vector<5x32xf32>
    %cst_20 = arith.constant 1.000000e+00 : f32
    %25 = vector.broadcast %cst_20 : f32 to vector<5x32xf32>
    %26 = arith.addf %25, %24 : vector<5x32xf32>
    %27 = arith.divf %25, %26 : vector<5x32xf32>
    %28 = arith.mulf %22, %27 : vector<5x32xf32>
    %29 = arith.truncf %28 : vector<5x32xf32> to vector<5x32xbf16>
    %c0_21 = arith.constant 0 : index
    %c0_22 = arith.constant 0 : index
    %30 = vector.load %arg6[%c0_21, %c0_22] : memref<32x48xbf16, #tpu.memory_space<vmem>>, vector<32x48xbf16>
    %cst_23 = arith.constant dense<0.000000e+00> : vector<5x48xf32>
    %31 = tpu.matmul %29, %30, %cst_23 {dimension_numbers = #tpu.dot_dimension_numbers<[1], [0], [0], [1], [0, 0, 1, 1], [], []>} : vector<5x32xbf16>, vector<32x48xbf16>, vector<5x48xf32> -> vector<5x48xf32>
    %32 = vector.extract_strided_slice %31 {offsets = [0, 0], sizes = [5, 32], strides = [1, 1]} : vector<5x48xf32> to vector<5x32xf32>
    %c0_24 = arith.constant 0 : index
    %c0_25 = arith.constant 0 : index
    %33 = vector.load %arg7[%c0_24, %c0_25] : memref<1x32xf32, #tpu.memory_space<vmem>>, vector<1x32xf32>
    %34 = vector.broadcast %33 : vector<1x32xf32> to vector<5x32xf32>
    %35 = arith.addf %32, %34 : vector<5x32xf32>
    %cst_26 = arith.constant 0.000000e+00 : f32
    %36 = vector.broadcast %cst_26 : f32 to vector<5x32xf32>
    %37 = arith.maximumf %35, %36 : vector<5x32xf32>
    %38 = math.absf %35 : vector<5x32xf32>
    %cst_27 = arith.constant 0.000000e+00 : f32
    %39 = vector.broadcast %cst_27 : f32 to vector<5x32xf32>
    %40 = arith.subf %39, %38 : vector<5x32xf32>
    %41 = math.exp %40 : vector<5x32xf32>
    %cst_28 = arith.constant 1.000000e+00 : f32
    %42 = vector.broadcast %cst_28 : f32 to vector<5x32xf32>
    %43 = arith.addf %42, %41 : vector<5x32xf32>
    %44 = math.log %43 : vector<5x32xf32>
    %45 = arith.addf %37, %44 : vector<5x32xf32>
    %46 = vector.extract_strided_slice %31 {offsets = [0, 32], sizes = [5, 8], strides = [1, 1]} : vector<5x48xf32> to vector<5x8xf32>
    %47 = vector.extract_strided_slice %31 {offsets = [0, 40], sizes = [5, 8], strides = [1, 1]} : vector<5x48xf32> to vector<5x8xf32>
    %c0_29 = arith.constant 0 : index
    %c0_30 = arith.constant 0 : index
    %48 = vector.load %arg13[%c0_29, %c0_30] : memref<8x32xf32, #tpu.memory_space<vmem>>, vector<5x32xf32>
    tpu.vector_store %arg13[%c0_29, %c0_30], %45 {strides = array<i32>} : memref<8x32xf32, #tpu.memory_space<vmem>>, vector<5x32xf32>,
    %49 = arith.mulf %45, %28 : vector<5x32xf32>
    %c0_31 = arith.constant 0 : index
    %c0_32 = arith.constant 0 : index
    %50 = vector.load %arg14[%c0_31, %c0_32] : memref<8x32xf32, #tpu.memory_space<vmem>>, vector<5x32xf32>
    tpu.vector_store %arg14[%c0_31, %c0_32], %49 {strides = array<i32>} : memref<8x32xf32, #tpu.memory_space<vmem>>, vector<5x32xf32>,
    %c0_33 = arith.constant 0 : index
    %c0_34 = arith.constant 0 : index
    %51 = vector.load %arg15[%c0_33, %c0_34] : memref<8x8xf32, #tpu.memory_space<vmem>>, vector<5x8xf32>
    tpu.vector_store %arg15[%c0_33, %c0_34], %46 {strides = array<i32>} : memref<8x8xf32, #tpu.memory_space<vmem>>, vector<5x8xf32>,
    %c0_35 = arith.constant 0 : index
    %c0_36 = arith.constant 0 : index
    %52 = vector.load %arg16[%c0_35, %c0_36] : memref<8x8xf32, #tpu.memory_space<vmem>>, vector<5x8xf32>
    tpu.vector_store %arg16[%c0_35, %c0_36], %47 {strides = array<i32>} : memref<8x8xf32, #tpu.memory_space<vmem>>, vector<5x8xf32>,
    %cst_37 = arith.constant 0.000000e+00 : f32
    %53 = vector.broadcast %cst_37 : f32 to vector<3x32xf32>
    %c5 = arith.constant 5 : index
    %c0_38 = arith.constant 0 : index
    %54 = vector.load %arg13[%c5, %c0_38] : memref<8x32xf32, #tpu.memory_space<vmem>>, vector<3x32xf32>
    tpu.vector_store %arg13[%c5, %c0_38], %53 {strides = array<i32>} : memref<8x32xf32, #tpu.memory_space<vmem>>, vector<3x32xf32>,
    %cst_39 = arith.constant 0.000000e+00 : f32
    %55 = vector.broadcast %cst_39 : f32 to vector<3x32xf32>
    %c5_40 = arith.constant 5 : index
    %c0_41 = arith.constant 0 : index
    %56 = vector.load %arg14[%c5_40, %c0_41] : memref<8x32xf32, #tpu.memory_space<vmem>>, vector<3x32xf32>
    tpu.vector_store %arg14[%c5_40, %c0_41], %55 {strides = array<i32>} : memref<8x32xf32, #tpu.memory_space<vmem>>, vector<3x32xf32>,
    %cst_42 = arith.constant 0.000000e+00 : f32
    %57 = vector.broadcast %cst_42 : f32 to vector<3x8xf32>
    %c5_43 = arith.constant 5 : index
    %c0_44 = arith.constant 0 : index
    %58 = vector.load %arg15[%c5_43, %c0_44] : memref<8x8xf32, #tpu.memory_space<vmem>>, vector<3x8xf32>
    tpu.vector_store %arg15[%c5_43, %c0_44], %57 {strides = array<i32>} : memref<8x8xf32, #tpu.memory_space<vmem>>, vector<3x8xf32>,
    %cst_45 = arith.constant 0.000000e+00 : f32
    %59 = vector.broadcast %cst_45 : f32 to vector<3x8xf32>
    %c5_46 = arith.constant 5 : index
    %c0_47 = arith.constant 0 : index
    %60 = vector.load %arg16[%c5_46, %c0_47] : memref<8x8xf32, #tpu.memory_space<vmem>>, vector<3x8xf32>
    tpu.vector_store %arg16[%c5_46, %c0_47], %59 {strides = array<i32>} : memref<8x8xf32, #tpu.memory_space<vmem>>, vector<3x8xf32>,
    %c0_48 = arith.constant 0 : index
    %c0_49 = arith.constant 0 : index
    %61 = vector.load %arg8[%c0_48, %c0_49] : memref<8x32xf32, #tpu.memory_space<vmem>>, vector<8x32xf32>
    %cst_50 = arith.constant 0.000000e+00 : f32
    %62 = vector.broadcast %cst_50 : f32 to vector<8x32xf32>
    %c0_i32 = arith.constant 0 : i32
    %c0_i32_51 = arith.constant 0 : i32
    %63 = arith.subi %c0_i32_51, %c0_i32 : i32
    %c8_i32 = arith.constant 8 : i32
    %64 = arith.muli %63, %c8_i32 : i32
    %65 = tpu.assume_multiple %64, 8 : i32
    %66 = arith.index_cast %65 : i32 to index
    %c0_52 = arith.constant 0 : index
    %67 = vector.load %arg13[%66, %c0_52] : memref<8x32xf32, #tpu.memory_space<vmem>>, vector<8x32xf32>
    %68 = arith.index_cast %65 : i32 to index
    %c0_53 = arith.constant 0 : index
    %69 = vector.load %arg14[%68, %c0_53] : memref<8x32xf32, #tpu.memory_space<vmem>>, vector<8x32xf32>
    %70 = arith.index_cast %65 : i32 to index
    %c0_54 = arith.constant 0 : index
    %71 = vector.load %arg15[%70, %c0_54] : memref<8x8xf32, #tpu.memory_space<vmem>>, vector<8x8xf32>
    %72 = arith.index_cast %65 : i32 to index
    %c0_55 = arith.constant 0 : index
    %73 = vector.load %arg16[%72, %c0_55] : memref<8x8xf32, #tpu.memory_space<vmem>>, vector<8x8xf32>
    %74 = vector.shape_cast %67 : vector<8x32xf32> to vector<8x1x32xf32>
    %75 = vector.shape_cast %61 : vector<8x32xf32> to vector<1x8x32xf32>
    %76 = vector.broadcast %74 : vector<8x1x32xf32> to vector<8x8x32xf32>
    %77 = vector.broadcast %75 : vector<1x8x32xf32> to vector<8x8x32xf32>
    %78 = arith.mulf %76, %77 : vector<8x8x32xf32>
    %79 = math.exp %78 : vector<8x8x32xf32>
    %80 = vector.shape_cast %71 : vector<8x8xf32> to vector<8x8x1xf32>
    %81 = vector.shape_cast %69 : vector<8x32xf32> to vector<8x1x32xf32>
    %82 = vector.broadcast %80 : vector<8x8x1xf32> to vector<8x8x32xf32>
    %83 = vector.broadcast %81 : vector<8x1x32xf32> to vector<8x8x32xf32>
    %84 = arith.mulf %82, %83 : vector<8x8x32xf32>
    %85 = vector.extract_strided_slice %79 {offsets = [7, 0, 0], sizes = [1, 8, 32], strides = [1, 1, 1]} : vector<8x8x32xf32> to vector<1x8x32xf32>
    %86 = vector.shape_cast %85 : vector<1x8x32xf32> to vector<8x32xf32>
    %87 = arith.mulf %86, %62 : vector<8x32xf32>
    %88 = vector.extract_strided_slice %84 {offsets = [7, 0, 0], sizes = [1, 8, 32], strides = [1, 1, 1]} : vector<8x8x32xf32> to vector<1x8x32xf32>
    %89 = vector.shape_cast %88 : vector<1x8x32xf32> to vector<8x32xf32>
    %90 = arith.addf %87, %89 : vector<8x32xf32>
    %91 = vector.extract_strided_slice %79 {offsets = [6, 0, 0], sizes = [1, 8, 32], strides = [1, 1, 1]} : vector<8x8x32xf32> to vector<1x8x32xf32>
    %92 = vector.shape_cast %91 : vector<1x8x32xf32> to vector<8x32xf32>
    %93 = arith.mulf %92, %90 : vector<8x32xf32>
    %94 = vector.extract_strided_slice %84 {offsets = [6, 0, 0], sizes = [1, 8, 32], strides = [1, 1, 1]} : vector<8x8x32xf32> to vector<1x8x32xf32>
    %95 = vector.shape_cast %94 : vector<1x8x32xf32> to vector<8x32xf32>
    %96 = arith.addf %93, %95 : vector<8x32xf32>
    %97 = vector.extract_strided_slice %79 {offsets = [5, 0, 0], sizes = [1, 8, 32], strides = [1, 1, 1]} : vector<8x8x32xf32> to vector<1x8x32xf32>
    %98 = vector.shape_cast %97 : vector<1x8x32xf32> to vector<8x32xf32>
    %99 = arith.mulf %98, %96 : vector<8x32xf32>
    %100 = vector.extract_strided_slice %84 {offsets = [5, 0, 0], sizes = [1, 8, 32], strides = [1, 1, 1]} : vector<8x8x32xf32> to vector<1x8x32xf32>
    %101 = vector.shape_cast %100 : vector<1x8x32xf32> to vector<8x32xf32>
    %102 = arith.addf %99, %101 : vector<8x32xf32>
    %103 = vector.extract_strided_slice %79 {offsets = [4, 0, 0], sizes = [1, 8, 32], strides = [1, 1, 1]} : vector<8x8x32xf32> to vector<1x8x32xf32>
    %104 = vector.shape_cast %103 : vector<1x8x32xf32> to vector<8x32xf32>
    %105 = arith.mulf %104, %102 : vector<8x32xf32>
    %106 = vector.extract_strided_slice %84 {offsets = [4, 0, 0], sizes = [1, 8, 32], strides = [1, 1, 1]} : vector<8x8x32xf32> to vector<1x8x32xf32>
    %107 = vector.shape_cast %106 : vector<1x8x32xf32> to vector<8x32xf32>
    %108 = arith.addf %105, %107 : vector<8x32xf32>
    %109 = vector.extract_strided_slice %79 {offsets = [3, 0, 0], sizes = [1, 8, 32], strides = [1, 1, 1]} : vector<8x8x32xf32> to vector<1x8x32xf32>
    %110 = vector.shape_cast %109 : vector<1x8x32xf32> to vector<8x32xf32>
    %111 = arith.mulf %110, %108 : vector<8x32xf32>
    %112 = vector.extract_strided_slice %84 {offsets = [3, 0, 0], sizes = [1, 8, 32], strides = [1, 1, 1]} : vector<8x8x32xf32> to vector<1x8x32xf32>
    %113 = vector.shape_cast %112 : vector<1x8x32xf32> to vector<8x32xf32>
    %114 = arith.addf %111, %113 : vector<8x32xf32>
    %115 = vector.extract_strided_slice %79 {offsets = [2, 0, 0], sizes = [1, 8, 32], strides = [1, 1, 1]} : vector<8x8x32xf32> to vector<1x8x32xf32>
    %116 = vector.shape_cast %115 : vector<1x8x32xf32> to vector<8x32xf32>
    %117 = arith.mulf %116, %114 : vector<8x32xf32>
    %118 = vector.extract_strided_slice %84 {offsets = [2, 0, 0], sizes = [1, 8, 32], strides = [1, 1, 1]} : vector<8x8x32xf32> to vector<1x8x32xf32>
    %119 = vector.shape_cast %118 : vector<1x8x32xf32> to vector<8x32xf32>
    %120 = arith.addf %117, %119 : vector<8x32xf32>
    %121 = vector.extract_strided_slice %79 {offsets = [1, 0, 0], sizes = [1, 8, 32], strides = [1, 1, 1]} : vector<8x8x32xf32> to vector<1x8x32xf32>
    %122 = vector.shape_cast %121 : vector<1x8x32xf32> to vector<8x32xf32>
    %123 = arith.mulf %122, %120 : vector<8x32xf32>
    %124 = vector.extract_strided_slice %84 {offsets = [1, 0, 0], sizes = [1, 8, 32], strides = [1, 1, 1]} : vector<8x8x32xf32> to vector<1x8x32xf32>
    %125 = vector.shape_cast %124 : vector<1x8x32xf32> to vector<8x32xf32>
    %126 = arith.addf %123, %125 : vector<8x32xf32>
    %127 = vector.extract_strided_slice %79 {offsets = [0, 0, 0], sizes = [1, 8, 32], strides = [1, 1, 1]} : vector<8x8x32xf32> to vector<1x8x32xf32>
    %128 = vector.shape_cast %127 : vector<1x8x32xf32> to vector<8x32xf32>
    %129 = arith.mulf %128, %126 : vector<8x32xf32>
    %130 = vector.extract_strided_slice %84 {offsets = [0, 0, 0], sizes = [1, 8, 32], strides = [1, 1, 1]} : vector<8x8x32xf32> to vector<1x8x32xf32>
    %131 = vector.shape_cast %130 : vector<1x8x32xf32> to vector<8x32xf32>
    %132 = arith.addf %129, %131 : vector<8x32xf32>
    %133 = vector.shape_cast %132 : vector<8x32xf32> to vector<1x8x32xf32>
    %134 = vector.shape_cast %126 : vector<8x32xf32> to vector<1x8x32xf32>
    %135 = vector.shape_cast %120 : vector<8x32xf32> to vector<1x8x32xf32>
    %136 = vector.shape_cast %114 : vector<8x32xf32> to vector<1x8x32xf32>
    %137 = vector.shape_cast %108 : vector<8x32xf32> to vector<1x8x32xf32>
    %138 = vector.shape_cast %102 : vector<8x32xf32> to vector<1x8x32xf32>
    %139 = vector.shape_cast %96 : vector<8x32xf32> to vector<1x8x32xf32>
    %140 = vector.shape_cast %90 : vector<8x32xf32> to vector<1x8x32xf32>
    %141 = tpu.concatenate %133, %134, %135, %136, %137, %138, %139, %140 in 0 : vector<1x8x32xf32>, vector<1x8x32xf32>, vector<1x8x32xf32>, vector<1x8x32xf32>, vector<1x8x32xf32>, vector<1x8x32xf32>, vector<1x8x32xf32>, vector<1x8x32xf32> -> vector<8x8x32xf32>
    %142 = vector.shape_cast %73 : vector<8x8xf32> to vector<8x8x1xf32>
    %143 = vector.broadcast %142 : vector<8x8x1xf32> to vector<8x8x32xf32>
    %144 = arith.mulf %141, %143 : vector<8x8x32xf32>
    %cst_56 = arith.constant dense<0.000000e+00> : vector<8x32xf32>
    %145 = vector.multi_reduction <add>, %144, %cst_56 [1] : vector<8x8x32xf32> to vector<8x32xf32>
    %146 = arith.index_cast %65 : i32 to index
    %c0_57 = arith.constant 0 : index
    %147 = vector.load %arg17[%146, %c0_57] : memref<8x32xf32, #tpu.memory_space<vmem>>, vector<8x32xf32>
    tpu.vector_store %arg17[%146, %c0_57], %145 {strides = array<i32>} : memref<8x32xf32, #tpu.memory_space<vmem>>, vector<8x32xf32>,
    %c1_i32 = arith.constant 1 : i32
    %c0_58 = arith.constant 0 : index
    %c0_59 = arith.constant 0 : index
    %148 = vector.load %arg17[%c0_58, %c0_59] : memref<8x32xf32, #tpu.memory_space<vmem>>, vector<5x32xf32>
    %c0_60 = arith.constant 0 : index
    %c0_61 = arith.constant 0 : index
    %149 = vector.load %arg9[%c0_60, %c0_61] : memref<1x32xf32, #tpu.memory_space<vmem>>, vector<1x32xf32>
    %150 = vector.broadcast %149 : vector<1x32xf32> to vector<5x32xf32>
    %151 = arith.mulf %150, %28 : vector<5x32xf32>
    %152 = arith.addf %148, %151 : vector<5x32xf32>
    %153 = arith.negf %6 : vector<5x32xf32>
    %154 = math.exp %153 : vector<5x32xf32>
    %cst_62 = arith.constant 1.000000e+00 : f32
    %155 = vector.broadcast %cst_62 : f32 to vector<5x32xf32>
    %156 = arith.addf %155, %154 : vector<5x32xf32>
    %157 = arith.divf %155, %156 : vector<5x32xf32>
    %158 = arith.mulf %6, %157 : vector<5x32xf32>
    %159 = arith.mulf %152, %158 : vector<5x32xf32>
    %160 = arith.truncf %159 : vector<5x32xf32> to vector<5x32xbf16>
    %c0_63 = arith.constant 0 : index
    %c0_64 = arith.constant 0 : index
    %161 = vector.load %arg10[%c0_63, %c0_64] : memref<32x32xbf16, #tpu.memory_space<vmem>>, vector<32x32xbf16>
    %cst_65 = arith.constant dense<0.000000e+00> : vector<5x32xf32>
    %162 = tpu.matmul %160, %161, %cst_65 {dimension_numbers = #tpu.dot_dimension_numbers<[1], [0], [0], [1], [0, 0, 1, 1], [], []>} : vector<5x32xbf16>, vector<32x32xbf16>, vector<5x32xf32> -> vector<5x32xf32>
    %c0_66 = arith.constant 0 : index
    %c0_67 = arith.constant 0 : index
    %c0_68 = arith.constant 0 : index
    %163 = vector.load %arg11[%c0_66, %c0_67, %c0_68] : memref<1x5x32xf32, #tpu.memory_space<vmem>>, vector<1x5x32xf32>
    %164 = vector.shape_cast %163 : vector<1x5x32xf32> to vector<5x32xf32>
    %165 = vector.shape_cast %162 : vector<5x32xf32> to vector<1x5x32xf32>
    tpu.vector_store %arg11[%c0_66, %c0_67, %c0_68], %165 {strides = array<i32>} : memref<1x5x32xf32, #tpu.memory_space<vmem>>, vector<1x5x32xf32>,
    return
  }
  func.func @transform_0(%arg0: i32) -> (i32, i32, i32) {
    %c0_i32 = arith.constant 0 : i32
    %c0_i32_0 = arith.constant 0 : i32
    %c0_i32_1 = arith.constant 0 : i32
    return %arg0, %c0_i32, %c0_i32_0 : i32, i32, i32
  }
  func.func @transform_1(%arg0: i32) -> (i32, i32) {
    %c0_i32 = arith.constant 0 : i32
    %c0_i32_0 = arith.constant 0 : i32
    %c0_i32_1 = arith.constant 0 : i32
    return %c0_i32, %c0_i32_0 : i32, i32
  }
  func.func @transform_2(%arg0: i32) -> (i32, i32) {
    %c0_i32 = arith.constant 0 : i32
    %c0_i32_0 = arith.constant 0 : i32
    %c0_i32_1 = arith.constant 0 : i32
    return %c0_i32, %c0_i32_0 : i32, i32
  }
  func.func @transform_3(%arg0: i32) -> (i32, i32) {
    %c0_i32 = arith.constant 0 : i32
    %c0_i32_0 = arith.constant 0 : i32
    %c0_i32_1 = arith.constant 0 : i32
    return %c0_i32, %c0_i32_0 : i32, i32
  }
  func.func @transform_4(%arg0: i32) -> (i32, i32) {
    %c0_i32 = arith.constant 0 : i32
    %c0_i32_0 = arith.constant 0 : i32
    %c0_i32_1 = arith.constant 0 : i32
    return %c0_i32, %c0_i32_0 : i32, i32
  }
  func.func @transform_5(%arg0: i32) -> (i32, i32) {
    %c0_i32 = arith.constant 0 : i32
    %c0_i32_0 = arith.constant 0 : i32
    %c0_i32_1 = arith.constant 0 : i32
    return %c0_i32, %c0_i32_0 : i32, i32
  }
  func.func @transform_6(%arg0: i32) -> (i32, i32) {
    %c0_i32 = arith.constant 0 : i32
    %c0_i32_0 = arith.constant 0 : i32
    %c0_i32_1 = arith.constant 0 : i32
    return %c0_i32, %c0_i32_0 : i32, i32
  }
  func.func @transform_7(%arg0: i32) -> (i32, i32) {
    %c0_i32 = arith.constant 0 : i32
    %c0_i32_0 = arith.constant 0 : i32
    %c0_i32_1 = arith.constant 0 : i32
    return %c0_i32, %c0_i32_0 : i32, i32
  }
  func.func @transform_8(%arg0: i32) -> (i32, i32) {
    %c0_i32 = arith.constant 0 : i32
    %c0_i32_0 = arith.constant 0 : i32
    %c0_i32_1 = arith.constant 0 : i32
    return %c0_i32, %c0_i32_0 : i32, i32
  }
  func.func @transform_9(%arg0: i32) -> (i32, i32) {
    %c0_i32 = arith.constant 0 : i32
    %c0_i32_0 = arith.constant 0 : i32
    %c0_i32_1 = arith.constant 0 : i32
    return %c0_i32, %c0_i32_0 : i32, i32
  }
  func.func @transform_10(%arg0: i32) -> (i32, i32, i32) {
    %c0_i32 = arith.constant 0 : i32
    %c0_i32_0 = arith.constant 0 : i32
    %c0_i32_1 = arith.constant 0 : i32
    return %arg0, %c0_i32, %c0_i32_0 : i32, i32, i32
  }
}

module attributes {stable_mosaic.version = 11 : i64} {
  func.func @_mamba_kernel(%arg0: i32, %arg1: memref<1x5x32xf32, #tpu.memory_space<vmem>>, %arg2: memref<32x32xbf16, #tpu.memory_space<vmem>>, %arg3: memref<32x32xbf16, #tpu.memory_space<vmem>>, %arg4: memref<2x32xf32, #tpu.memory_space<vmem>>, %arg5: memref<1x32xf32, #tpu.memory_space<vmem>>, %arg6: memref<32x48xbf16, #tpu.memory_space<vmem>>, %arg7: memref<1x32xf32, #tpu.memory_space<vmem>>, %arg8: memref<8x32xf32, #tpu.memory_space<vmem>>, %arg9: memref<1x32xf32, #tpu.memory_space<vmem>>, %arg10: memref<32x32xbf16, #tpu.memory_space<vmem>>, %arg11: memref<1x5x32xf32, #tpu.memory_space<vmem>>, %arg12: memref<16x32xf32, #tpu.memory_space<vmem>>, %arg13: memref<8x32xf32, #tpu.memory_space<vmem>>, %arg14: memref<8x32xf32, #tpu.memory_space<vmem>>, %arg15: memref<8x8xf32, #tpu.memory_space<vmem>>, %arg16: memref<8x8xf32, #tpu.memory_space<vmem>>, %arg17: memref<8x32xf32, #tpu.memory_space<vmem>>) attributes {dimension_semantics = [#tpu.dimension_semantics<parallel>], iteration_bounds = array<i64: 2>, scalar_prefetch = 0 : i64, scratch_operands = 6 : i64, tpu.core_type = #tpu.core_type<tc>, window_params = [{transform_indices = @transform_0, window_bounds = array<i64: 1, 5, 32>}, {pipeline_mode = #tpu.pipeline_mode<synchronous>, transform_indices = @transform_1, window_bounds = array<i64: 32, 32>}, {pipeline_mode = #tpu.pipeline_mode<synchronous>, transform_indices = @transform_2, window_bounds = array<i64: 32, 32>}, {pipeline_mode = #tpu.pipeline_mode<synchronous>, transform_indices = @transform_3, window_bounds = array<i64: 2, 32>}, {pipeline_mode = #tpu.pipeline_mode<synchronous>, transform_indices = @transform_4, window_bounds = array<i64: 1, 32>}, {pipeline_mode = #tpu.pipeline_mode<synchronous>, transform_indices = @transform_5, window_bounds = array<i64: 32, 48>}, {pipeline_mode = #tpu.pipeline_mode<synchronous>, transform_indices = @transform_6, window_bounds = array<i64: 1, 32>}, {pipeline_mode = #tpu.pipeline_mode<synchronous>, transform_indices = @transform_7, window_bounds = array<i64: 8, 32>}, {pipeline_mode = #tpu.pipeline_mode<synchronous>, transform_indices = @transform_8, window_bounds = array<i64: 1, 32>}, {pipeline_mode = #tpu.pipeline_mode<synchronous>, transform_indices = @transform_9, window_bounds = array<i64: 32, 32>}, {transform_indices = @transform_10, window_bounds = array<i64: 1, 5, 32>}]} {
    %c0 = arith.constant 0 : index
    %c0_0 = arith.constant 0 : index
    %c0_1 = arith.constant 0 : index
    %0 = vector.load %arg1[%c0, %c0_0, %c0_1] : memref<1x5x32xf32, #tpu.memory_space<vmem>>, vector<1x5x32xf32>
    %1 = vector.shape_cast %0 : vector<1x5x32xf32> to vector<5x32xf32>
    %2 = arith.truncf %1 : vector<5x32xf32> to vector<5x32xbf16>
    %c0_2 = arith.constant 0 : index
    %c0_3 = arith.constant 0 : index
    %3 = vector.load %arg2[%c0_2, %c0_3] : memref<32x32xbf16, #tpu.memory_space<vmem>>, vector<32x32xbf16>
    %cst = arith.constant dense<0.000000e+00> : vector<5x32xf32>
    %4 = tpu.matmul %2, %3, %cst {dimension_numbers = #tpu.dot_dimension_numbers<[1], [0], [0], [1], [0, 0, 1, 1], [], []>} : vector<5x32xbf16>, vector<32x32xbf16>, vector<5x32xf32> -> vector<5x32xf32>
    %c0_4 = arith.constant 0 : index
    %c0_5 = arith.constant 0 : index
    %5 = vector.load %arg3[%c0_4, %c0_5] : memref<32x32xbf16, #tpu.memory_space<vmem>>, vector<32x32xbf16>
    %cst_6 = arith.constant dense<0.000000e+00> : vector<5x32xf32>
    %6 = tpu.matmul %2, %5, %cst_6 {dimension_numbers = #tpu.dot_dimension_numbers<[1], [0], [0], [1], [0, 0, 1, 1], [], []>} : vector<5x32xbf16>, vector<32x32xbf16>, vector<5x32xf32> -> vector<5x32xf32>
    %cst_7 = arith.constant 0.000000e+00 : f32
    %7 = vector.broadcast %cst_7 : f32 to vector<1x32xf32>
    %c0_8 = arith.constant 0 : index
    %c0_9 = arith.constant 0 : index
    %8 = vector.load %arg12[%c0_8, %c0_9] : memref<16x32xf32, #tpu.memory_space<vmem>>, vector<1x32xf32>
    tpu.vector_store %arg12[%c0_8, %c0_9], %7 {strides = array<i32>} : memref<16x32xf32, #tpu.memory_space<vmem>>, vector<1x32xf32>,
    %c1 = arith.constant 1 : index
    %c0_10 = arith.constant 0 : index
    %9 = vector.load %arg12[%c1, %c0_10] : memref<16x32xf32, #tpu.memory_space<vmem>>, vector<5x32xf32>
    tpu.vector_store %arg12[%c1, %c0_10], %4 {strides = array<i32>} : memref<16x32xf32, #tpu.memory_space<vmem>>, vector<5x32xf32>,
    %cst_11 = arith.constant 0.000000e+00 : f32
    %10 = vector.broadcast %cst_11 : f32 to vector<1x32xf32>
    %c6 = arith.constant 6 : index
    %c0_12 = arith.constant 0 : index
    %11 = vector.load %arg12[%c6, %c0_12] : memref<16x32xf32, #tpu.memory_space<vmem>>, vector<1x32xf32>
    tpu.vector_store %arg12[%c6, %c0_12], %10 {strides = array<i32>} : memref<16x32xf32, #tpu.memory_space<vmem>>, vector<1x32xf32>,
    %c0_13 = arith.constant 0 : index
    %c0_14 = arith.constant 0 : index
    %12 = vector.load %arg12[%c0_13, %c0_14] : memref<16x32xf32, #tpu.memory_space<vmem>>, vector<5x32xf32>
    %c0_15 = arith.constant 0 : index
    %c0_16 = arith.constant 0 : index
    %13 = vector.load %arg4[%c0_15, %c0_16] : memref<2x32xf32, #tpu.memory_space<vmem>>, vector<1x32xf32>
    %14 = vector.broadcast %13 : vector<1x32xf32> to vector<5x32xf32>
    %15 = arith.mulf %12, %14 : vector<5x32xf32>
    %c1_17 = arith.constant 1 : index
    %c0_18 = arith.constant 0 : index
    %16 = vector.load %arg4[%c1_17, %c0_18] : memref<2x32xf32, #tpu.memory_space<vmem>>, vector<1x32xf32>
    %17 = vector.broadcast %16 : vector<1x32xf32> to vector<5x32xf32>
    %18 = arith.mulf %4, %17 : vector<5x32xf32>
    %19 = arith.addf %15, %18 : vector<5x32xf32>
    %c0_19 = arith.constant 0 : index
    %c0_20 = arith.constant 0 : index
    %20 = vector.load %arg5[%c0_19, %c0_20] : memref<1x32xf32, #tpu.memory_space<vmem>>, vector<1x32xf32>
    %21 = vector.broadcast %20 : vector<1x32xf32> to vector<5x32xf32>
    %22 = arith.addf %19, %21 : vector<5x32xf32>
    %23 = arith.negf %22 : vector<5x32xf32>
    %24 = math.exp %23 : vector<5x32xf32>
    %cst_21 = arith.constant 1.000000e+00 : f32
    %25 = vector.broadcast %cst_21 : f32 to vector<5x32xf32>
    %26 = arith.addf %25, %24 : vector<5x32xf32>
    %27 = arith.divf %25, %26 : vector<5x32xf32>
    %28 = arith.mulf %22, %27 : vector<5x32xf32>
    %29 = arith.truncf %28 : vector<5x32xf32> to vector<5x32xbf16>
    %c0_22 = arith.constant 0 : index
    %c0_23 = arith.constant 0 : index
    %30 = vector.load %arg6[%c0_22, %c0_23] : memref<32x48xbf16, #tpu.memory_space<vmem>>, vector<32x48xbf16>
    %cst_24 = arith.constant dense<0.000000e+00> : vector<5x48xf32>
    %31 = tpu.matmul %29, %30, %cst_24 {dimension_numbers = #tpu.dot_dimension_numbers<[1], [0], [0], [1], [0, 0, 1, 1], [], []>} : vector<5x32xbf16>, vector<32x48xbf16>, vector<5x48xf32> -> vector<5x48xf32>
    %32 = vector.extract_strided_slice %31 {offsets = [0, 0], sizes = [5, 32], strides = [1, 1]} : vector<5x48xf32> to vector<5x32xf32>
    %c0_25 = arith.constant 0 : index
    %c0_26 = arith.constant 0 : index
    %33 = vector.load %arg7[%c0_25, %c0_26] : memref<1x32xf32, #tpu.memory_space<vmem>>, vector<1x32xf32>
    %34 = vector.broadcast %33 : vector<1x32xf32> to vector<5x32xf32>
    %35 = arith.addf %32, %34 : vector<5x32xf32>
    %cst_27 = arith.constant 0.000000e+00 : f32
    %36 = vector.broadcast %cst_27 : f32 to vector<5x32xf32>
    %37 = arith.maximumf %35, %36 : vector<5x32xf32>
    %38 = math.absf %35 : vector<5x32xf32>
    %cst_28 = arith.constant 0.000000e+00 : f32
    %39 = vector.broadcast %cst_28 : f32 to vector<5x32xf32>
    %40 = arith.subf %39, %38 : vector<5x32xf32>
    %41 = math.exp %40 : vector<5x32xf32>
    %cst_29 = arith.constant 1.000000e+00 : f32
    %42 = vector.broadcast %cst_29 : f32 to vector<5x32xf32>
    %43 = arith.addf %42, %41 : vector<5x32xf32>
    %44 = math.log %43 : vector<5x32xf32>
    %45 = arith.addf %37, %44 : vector<5x32xf32>
    %46 = vector.extract_strided_slice %31 {offsets = [0, 32], sizes = [5, 8], strides = [1, 1]} : vector<5x48xf32> to vector<5x8xf32>
    %47 = vector.extract_strided_slice %31 {offsets = [0, 40], sizes = [5, 8], strides = [1, 1]} : vector<5x48xf32> to vector<5x8xf32>
    %c0_30 = arith.constant 0 : index
    %c0_31 = arith.constant 0 : index
    %48 = vector.load %arg13[%c0_30, %c0_31] : memref<8x32xf32, #tpu.memory_space<vmem>>, vector<5x32xf32>
    tpu.vector_store %arg13[%c0_30, %c0_31], %45 {strides = array<i32>} : memref<8x32xf32, #tpu.memory_space<vmem>>, vector<5x32xf32>,
    %49 = arith.mulf %45, %28 : vector<5x32xf32>
    %c0_32 = arith.constant 0 : index
    %c0_33 = arith.constant 0 : index
    %50 = vector.load %arg14[%c0_32, %c0_33] : memref<8x32xf32, #tpu.memory_space<vmem>>, vector<5x32xf32>
    tpu.vector_store %arg14[%c0_32, %c0_33], %49 {strides = array<i32>} : memref<8x32xf32, #tpu.memory_space<vmem>>, vector<5x32xf32>,
    %c0_34 = arith.constant 0 : index
    %c0_35 = arith.constant 0 : index
    %51 = vector.load %arg15[%c0_34, %c0_35] : memref<8x8xf32, #tpu.memory_space<vmem>>, vector<5x8xf32>
    tpu.vector_store %arg15[%c0_34, %c0_35], %46 {strides = array<i32>} : memref<8x8xf32, #tpu.memory_space<vmem>>, vector<5x8xf32>,
    %c0_36 = arith.constant 0 : index
    %c0_37 = arith.constant 0 : index
    %52 = vector.load %arg16[%c0_36, %c0_37] : memref<8x8xf32, #tpu.memory_space<vmem>>, vector<5x8xf32>
    tpu.vector_store %arg16[%c0_36, %c0_37], %47 {strides = array<i32>} : memref<8x8xf32, #tpu.memory_space<vmem>>, vector<5x8xf32>,
    %cst_38 = arith.constant 0.000000e+00 : f32
    %53 = vector.broadcast %cst_38 : f32 to vector<3x32xf32>
    %c5 = arith.constant 5 : index
    %c0_39 = arith.constant 0 : index
    %54 = vector.load %arg13[%c5, %c0_39] : memref<8x32xf32, #tpu.memory_space<vmem>>, vector<3x32xf32>
    tpu.vector_store %arg13[%c5, %c0_39], %53 {strides = array<i32>} : memref<8x32xf32, #tpu.memory_space<vmem>>, vector<3x32xf32>,
    %cst_40 = arith.constant 0.000000e+00 : f32
    %55 = vector.broadcast %cst_40 : f32 to vector<3x32xf32>
    %c5_41 = arith.constant 5 : index
    %c0_42 = arith.constant 0 : index
    %56 = vector.load %arg14[%c5_41, %c0_42] : memref<8x32xf32, #tpu.memory_space<vmem>>, vector<3x32xf32>
    tpu.vector_store %arg14[%c5_41, %c0_42], %55 {strides = array<i32>} : memref<8x32xf32, #tpu.memory_space<vmem>>, vector<3x32xf32>,
    %cst_43 = arith.constant 0.000000e+00 : f32
    %57 = vector.broadcast %cst_43 : f32 to vector<3x8xf32>
    %c5_44 = arith.constant 5 : index
    %c0_45 = arith.constant 0 : index
    %58 = vector.load %arg15[%c5_44, %c0_45] : memref<8x8xf32, #tpu.memory_space<vmem>>, vector<3x8xf32>
    tpu.vector_store %arg15[%c5_44, %c0_45], %57 {strides = array<i32>} : memref<8x8xf32, #tpu.memory_space<vmem>>, vector<3x8xf32>,
    %cst_46 = arith.constant 0.000000e+00 : f32
    %59 = vector.broadcast %cst_46 : f32 to vector<3x8xf32>
    %c5_47 = arith.constant 5 : index
    %c0_48 = arith.constant 0 : index
    %60 = vector.load %arg16[%c5_47, %c0_48] : memref<8x8xf32, #tpu.memory_space<vmem>>, vector<3x8xf32>
    tpu.vector_store %arg16[%c5_47, %c0_48], %59 {strides = array<i32>} : memref<8x8xf32, #tpu.memory_space<vmem>>, vector<3x8xf32>,
    %c0_49 = arith.constant 0 : index
    %c0_50 = arith.constant 0 : index
    %61 = vector.load %arg8[%c0_49, %c0_50] : memref<8x32xf32, #tpu.memory_space<vmem>>, vector<8x32xf32>
    %cst_51 = arith.constant 0.000000e+00 : f32
    %62 = vector.broadcast %cst_51 : f32 to vector<8x32xf32>
    %c0_i32 = arith.constant 0 : i32
    %c8_i32 = arith.constant 8 : i32
    %63 = arith.muli %c0_i32, %c8_i32 : i32
    %64 = tpu.assume_multiple %63, 8 : i32
    %65 = arith.index_cast %64 : i32 to index
    %c0_52 = arith.constant 0 : index
    %66 = vector.load %arg13[%65, %c0_52] : memref<8x32xf32, #tpu.memory_space<vmem>>, vector<8x32xf32>
    %67 = arith.index_cast %64 : i32 to index
    %c0_53 = arith.constant 0 : index
    %68 = vector.load %arg14[%67, %c0_53] : memref<8x32xf32, #tpu.memory_space<vmem>>, vector<8x32xf32>
    %69 = arith.index_cast %64 : i32 to index
    %c0_54 = arith.constant 0 : index
    %70 = vector.load %arg15[%69, %c0_54] : memref<8x8xf32, #tpu.memory_space<vmem>>, vector<8x8xf32>
    %71 = arith.index_cast %64 : i32 to index
    %c0_55 = arith.constant 0 : index
    %72 = vector.load %arg16[%71, %c0_55] : memref<8x8xf32, #tpu.memory_space<vmem>>, vector<8x8xf32>
    %73 = vector.shape_cast %66 : vector<8x32xf32> to vector<8x1x32xf32>
    %74 = vector.shape_cast %61 : vector<8x32xf32> to vector<1x8x32xf32>
    %75 = vector.broadcast %73 : vector<8x1x32xf32> to vector<8x8x32xf32>
    %76 = vector.broadcast %74 : vector<1x8x32xf32> to vector<8x8x32xf32>
    %77 = arith.mulf %75, %76 : vector<8x8x32xf32>
    %78 = math.exp %77 : vector<8x8x32xf32>
    %79 = vector.shape_cast %70 : vector<8x8xf32> to vector<8x8x1xf32>
    %80 = vector.shape_cast %68 : vector<8x32xf32> to vector<8x1x32xf32>
    %81 = vector.broadcast %79 : vector<8x8x1xf32> to vector<8x8x32xf32>
    %82 = vector.broadcast %80 : vector<8x1x32xf32> to vector<8x8x32xf32>
    %83 = arith.mulf %81, %82 : vector<8x8x32xf32>
    %84 = vector.extract_strided_slice %78 {offsets = [0, 0, 0], sizes = [1, 8, 32], strides = [1, 1, 1]} : vector<8x8x32xf32> to vector<1x8x32xf32>
    %85 = vector.shape_cast %84 : vector<1x8x32xf32> to vector<8x32xf32>
    %86 = arith.mulf %85, %62 : vector<8x32xf32>
    %87 = vector.extract_strided_slice %83 {offsets = [0, 0, 0], sizes = [1, 8, 32], strides = [1, 1, 1]} : vector<8x8x32xf32> to vector<1x8x32xf32>
    %88 = vector.shape_cast %87 : vector<1x8x32xf32> to vector<8x32xf32>
    %89 = arith.addf %86, %88 : vector<8x32xf32>
    %90 = vector.extract_strided_slice %78 {offsets = [1, 0, 0], sizes = [1, 8, 32], strides = [1, 1, 1]} : vector<8x8x32xf32> to vector<1x8x32xf32>
    %91 = vector.shape_cast %90 : vector<1x8x32xf32> to vector<8x32xf32>
    %92 = arith.mulf %91, %89 : vector<8x32xf32>
    %93 = vector.extract_strided_slice %83 {offsets = [1, 0, 0], sizes = [1, 8, 32], strides = [1, 1, 1]} : vector<8x8x32xf32> to vector<1x8x32xf32>
    %94 = vector.shape_cast %93 : vector<1x8x32xf32> to vector<8x32xf32>
    %95 = arith.addf %92, %94 : vector<8x32xf32>
    %96 = vector.extract_strided_slice %78 {offsets = [2, 0, 0], sizes = [1, 8, 32], strides = [1, 1, 1]} : vector<8x8x32xf32> to vector<1x8x32xf32>
    %97 = vector.shape_cast %96 : vector<1x8x32xf32> to vector<8x32xf32>
    %98 = arith.mulf %97, %95 : vector<8x32xf32>
    %99 = vector.extract_strided_slice %83 {offsets = [2, 0, 0], sizes = [1, 8, 32], strides = [1, 1, 1]} : vector<8x8x32xf32> to vector<1x8x32xf32>
    %100 = vector.shape_cast %99 : vector<1x8x32xf32> to vector<8x32xf32>
    %101 = arith.addf %98, %100 : vector<8x32xf32>
    %102 = vector.extract_strided_slice %78 {offsets = [3, 0, 0], sizes = [1, 8, 32], strides = [1, 1, 1]} : vector<8x8x32xf32> to vector<1x8x32xf32>
    %103 = vector.shape_cast %102 : vector<1x8x32xf32> to vector<8x32xf32>
    %104 = arith.mulf %103, %101 : vector<8x32xf32>
    %105 = vector.extract_strided_slice %83 {offsets = [3, 0, 0], sizes = [1, 8, 32], strides = [1, 1, 1]} : vector<8x8x32xf32> to vector<1x8x32xf32>
    %106 = vector.shape_cast %105 : vector<1x8x32xf32> to vector<8x32xf32>
    %107 = arith.addf %104, %106 : vector<8x32xf32>
    %108 = vector.extract_strided_slice %78 {offsets = [4, 0, 0], sizes = [1, 8, 32], strides = [1, 1, 1]} : vector<8x8x32xf32> to vector<1x8x32xf32>
    %109 = vector.shape_cast %108 : vector<1x8x32xf32> to vector<8x32xf32>
    %110 = arith.mulf %109, %107 : vector<8x32xf32>
    %111 = vector.extract_strided_slice %83 {offsets = [4, 0, 0], sizes = [1, 8, 32], strides = [1, 1, 1]} : vector<8x8x32xf32> to vector<1x8x32xf32>
    %112 = vector.shape_cast %111 : vector<1x8x32xf32> to vector<8x32xf32>
    %113 = arith.addf %110, %112 : vector<8x32xf32>
    %114 = vector.extract_strided_slice %78 {offsets = [5, 0, 0], sizes = [1, 8, 32], strides = [1, 1, 1]} : vector<8x8x32xf32> to vector<1x8x32xf32>
    %115 = vector.shape_cast %114 : vector<1x8x32xf32> to vector<8x32xf32>
    %116 = arith.mulf %115, %113 : vector<8x32xf32>
    %117 = vector.extract_strided_slice %83 {offsets = [5, 0, 0], sizes = [1, 8, 32], strides = [1, 1, 1]} : vector<8x8x32xf32> to vector<1x8x32xf32>
    %118 = vector.shape_cast %117 : vector<1x8x32xf32> to vector<8x32xf32>
    %119 = arith.addf %116, %118 : vector<8x32xf32>
    %120 = vector.extract_strided_slice %78 {offsets = [6, 0, 0], sizes = [1, 8, 32], strides = [1, 1, 1]} : vector<8x8x32xf32> to vector<1x8x32xf32>
    %121 = vector.shape_cast %120 : vector<1x8x32xf32> to vector<8x32xf32>
    %122 = arith.mulf %121, %119 : vector<8x32xf32>
    %123 = vector.extract_strided_slice %83 {offsets = [6, 0, 0], sizes = [1, 8, 32], strides = [1, 1, 1]} : vector<8x8x32xf32> to vector<1x8x32xf32>
    %124 = vector.shape_cast %123 : vector<1x8x32xf32> to vector<8x32xf32>
    %125 = arith.addf %122, %124 : vector<8x32xf32>
    %126 = vector.extract_strided_slice %78 {offsets = [7, 0, 0], sizes = [1, 8, 32], strides = [1, 1, 1]} : vector<8x8x32xf32> to vector<1x8x32xf32>
    %127 = vector.shape_cast %126 : vector<1x8x32xf32> to vector<8x32xf32>
    %128 = arith.mulf %127, %125 : vector<8x32xf32>
    %129 = vector.extract_strided_slice %83 {offsets = [7, 0, 0], sizes = [1, 8, 32], strides = [1, 1, 1]} : vector<8x8x32xf32> to vector<1x8x32xf32>
    %130 = vector.shape_cast %129 : vector<1x8x32xf32> to vector<8x32xf32>
    %131 = arith.addf %128, %130 : vector<8x32xf32>
    %132 = vector.shape_cast %89 : vector<8x32xf32> to vector<1x8x32xf32>
    %133 = vector.shape_cast %95 : vector<8x32xf32> to vector<1x8x32xf32>
    %134 = vector.shape_cast %101 : vector<8x32xf32> to vector<1x8x32xf32>
    %135 = vector.shape_cast %107 : vector<8x32xf32> to vector<1x8x32xf32>
    %136 = vector.shape_cast %113 : vector<8x32xf32> to vector<1x8x32xf32>
    %137 = vector.shape_cast %119 : vector<8x32xf32> to vector<1x8x32xf32>
    %138 = vector.shape_cast %125 : vector<8x32xf32> to vector<1x8x32xf32>
    %139 = vector.shape_cast %131 : vector<8x32xf32> to vector<1x8x32xf32>
    %140 = tpu.concatenate %132, %133, %134, %135, %136, %137, %138, %139 in 0 : vector<1x8x32xf32>, vector<1x8x32xf32>, vector<1x8x32xf32>, vector<1x8x32xf32>, vector<1x8x32xf32>, vector<1x8x32xf32>, vector<1x8x32xf32>, vector<1x8x32xf32> -> vector<8x8x32xf32>
    %141 = vector.shape_cast %72 : vector<8x8xf32> to vector<8x8x1xf32>
    %142 = vector.broadcast %141 : vector<8x8x1xf32> to vector<8x8x32xf32>
    %143 = arith.mulf %140, %142 : vector<8x8x32xf32>
    %cst_56 = arith.constant dense<0.000000e+00> : vector<8x32xf32>
    %144 = vector.multi_reduction <add>, %143, %cst_56 [1] : vector<8x8x32xf32> to vector<8x32xf32>
    %145 = arith.index_cast %64 : i32 to index
    %c0_57 = arith.constant 0 : index
    %146 = vector.load %arg17[%145, %c0_57] : memref<8x32xf32, #tpu.memory_space<vmem>>, vector<8x32xf32>
    tpu.vector_store %arg17[%145, %c0_57], %144 {strides = array<i32>} : memref<8x32xf32, #tpu.memory_space<vmem>>, vector<8x32xf32>,
    %c1_i32 = arith.constant 1 : i32
    %c0_58 = arith.constant 0 : index
    %c0_59 = arith.constant 0 : index
    %147 = vector.load %arg17[%c0_58, %c0_59] : memref<8x32xf32, #tpu.memory_space<vmem>>, vector<5x32xf32>
    %c0_60 = arith.constant 0 : index
    %c0_61 = arith.constant 0 : index
    %148 = vector.load %arg9[%c0_60, %c0_61] : memref<1x32xf32, #tpu.memory_space<vmem>>, vector<1x32xf32>
    %149 = vector.broadcast %148 : vector<1x32xf32> to vector<5x32xf32>
    %150 = arith.mulf %149, %28 : vector<5x32xf32>
    %151 = arith.addf %147, %150 : vector<5x32xf32>
    %152 = arith.negf %6 : vector<5x32xf32>
    %153 = math.exp %152 : vector<5x32xf32>
    %cst_62 = arith.constant 1.000000e+00 : f32
    %154 = vector.broadcast %cst_62 : f32 to vector<5x32xf32>
    %155 = arith.addf %154, %153 : vector<5x32xf32>
    %156 = arith.divf %154, %155 : vector<5x32xf32>
    %157 = arith.mulf %6, %156 : vector<5x32xf32>
    %158 = arith.mulf %151, %157 : vector<5x32xf32>
    %159 = arith.truncf %158 : vector<5x32xf32> to vector<5x32xbf16>
    %c0_63 = arith.constant 0 : index
    %c0_64 = arith.constant 0 : index
    %160 = vector.load %arg10[%c0_63, %c0_64] : memref<32x32xbf16, #tpu.memory_space<vmem>>, vector<32x32xbf16>
    %cst_65 = arith.constant dense<0.000000e+00> : vector<5x32xf32>
    %161 = tpu.matmul %159, %160, %cst_65 {dimension_numbers = #tpu.dot_dimension_numbers<[1], [0], [0], [1], [0, 0, 1, 1], [], []>} : vector<5x32xbf16>, vector<32x32xbf16>, vector<5x32xf32> -> vector<5x32xf32>
    %c0_66 = arith.constant 0 : index
    %c0_67 = arith.constant 0 : index
    %c0_68 = arith.constant 0 : index
    %162 = vector.load %arg11[%c0_66, %c0_67, %c0_68] : memref<1x5x32xf32, #tpu.memory_space<vmem>>, vector<1x5x32xf32>
    %163 = vector.shape_cast %162 : vector<1x5x32xf32> to vector<5x32xf32>
    %164 = vector.shape_cast %161 : vector<5x32xf32> to vector<1x5x32xf32>
    tpu.vector_store %arg11[%c0_66, %c0_67, %c0_68], %164 {strides = array<i32>} : memref<1x5x32xf32, #tpu.memory_space<vmem>>, vector<1x5x32xf32>,
    return
  }
  func.func @transform_0(%arg0: i32) -> (i32, i32, i32) {
    %c0_i32 = arith.constant 0 : i32
    %c0_i32_0 = arith.constant 0 : i32
    %c0_i32_1 = arith.constant 0 : i32
    return %arg0, %c0_i32, %c0_i32_0 : i32, i32, i32
  }
  func.func @transform_1(%arg0: i32) -> (i32, i32) {
    %c0_i32 = arith.constant 0 : i32
    %c0_i32_0 = arith.constant 0 : i32
    %c0_i32_1 = arith.constant 0 : i32
    return %c0_i32, %c0_i32_0 : i32, i32
  }
  func.func @transform_2(%arg0: i32) -> (i32, i32) {
    %c0_i32 = arith.constant 0 : i32
    %c0_i32_0 = arith.constant 0 : i32
    %c0_i32_1 = arith.constant 0 : i32
    return %c0_i32, %c0_i32_0 : i32, i32
  }
  func.func @transform_3(%arg0: i32) -> (i32, i32) {
    %c0_i32 = arith.constant 0 : i32
    %c0_i32_0 = arith.constant 0 : i32
    %c0_i32_1 = arith.constant 0 : i32
    return %c0_i32, %c0_i32_0 : i32, i32
  }
  func.func @transform_4(%arg0: i32) -> (i32, i32) {
    %c0_i32 = arith.constant 0 : i32
    %c0_i32_0 = arith.constant 0 : i32
    %c0_i32_1 = arith.constant 0 : i32
    return %c0_i32, %c0_i32_0 : i32, i32
  }
  func.func @transform_5(%arg0: i32) -> (i32, i32) {
    %c0_i32 = arith.constant 0 : i32
    %c0_i32_0 = arith.constant 0 : i32
    %c0_i32_1 = arith.constant 0 : i32
    return %c0_i32, %c0_i32_0 : i32, i32
  }
  func.func @transform_6(%arg0: i32) -> (i32, i32) {
    %c0_i32 = arith.constant 0 : i32
    %c0_i32_0 = arith.constant 0 : i32
    %c0_i32_1 = arith.constant 0 : i32
    return %c0_i32, %c0_i32_0 : i32, i32
  }
  func.func @transform_7(%arg0: i32) -> (i32, i32) {
    %c0_i32 = arith.constant 0 : i32
    %c0_i32_0 = arith.constant 0 : i32
    %c0_i32_1 = arith.constant 0 : i32
    return %c0_i32, %c0_i32_0 : i32, i32
  }
  func.func @transform_8(%arg0: i32) -> (i32, i32) {
    %c0_i32 = arith.constant 0 : i32
    %c0_i32_0 = arith.constant 0 : i32
    %c0_i32_1 = arith.constant 0 : i32
    return %c0_i32, %c0_i32_0 : i32, i32
  }
  func.func @transform_9(%arg0: i32) -> (i32, i32) {
    %c0_i32 = arith.constant 0 : i32
    %c0_i32_0 = arith.constant 0 : i32
    %c0_i32_1 = arith.constant 0 : i32
    return %c0_i32, %c0_i32_0 : i32, i32
  }
  func.func @transform_10(%arg0: i32) -> (i32, i32, i32) {
    %c0_i32 = arith.constant 0 : i32
    %c0_i32_0 = arith.constant 0 : i32
    %c0_i32_1 = arith.constant 0 : i32
    return %arg0, %c0_i32, %c0_i32_0 : i32, i32, i32
  }
}

module attributes {stable_mosaic.version = 11 : i64} {
  func.func @_add3_ln_kernel(%arg0: i32, %arg1: memref<10x32xf32, #tpu.memory_space<vmem>>, %arg2: memref<10x32xf32, #tpu.memory_space<vmem>>, %arg3: memref<10x32xf32, #tpu.memory_space<vmem>>, %arg4: memref<1x32xf32, #tpu.memory_space<vmem>>, %arg5: memref<1x32xf32, #tpu.memory_space<vmem>>, %arg6: memref<10x32xf32, #tpu.memory_space<vmem>>) attributes {dimension_semantics = [#tpu.dimension_semantics<arbitrary>], iteration_bounds = array<i64: 1>, scalar_prefetch = 0 : i64, scratch_operands = 0 : i64, tpu.core_type = #tpu.core_type<tc>, window_params = [{transform_indices = @transform_0, window_bounds = array<i64: 10, 32>}, {transform_indices = @transform_1, window_bounds = array<i64: 10, 32>}, {transform_indices = @transform_2, window_bounds = array<i64: 10, 32>}, {pipeline_mode = #tpu.pipeline_mode<synchronous>, transform_indices = @transform_3, window_bounds = array<i64: 1, 32>}, {pipeline_mode = #tpu.pipeline_mode<synchronous>, transform_indices = @transform_4, window_bounds = array<i64: 1, 32>}, {transform_indices = @transform_5, window_bounds = array<i64: 10, 32>}]} {
    %c0 = arith.constant 0 : index
    %c0_0 = arith.constant 0 : index
    %0 = vector.load %arg1[%c0, %c0_0] : memref<10x32xf32, #tpu.memory_space<vmem>>, vector<10x32xf32>
    %c0_1 = arith.constant 0 : index
    %c0_2 = arith.constant 0 : index
    %1 = vector.load %arg2[%c0_1, %c0_2] : memref<10x32xf32, #tpu.memory_space<vmem>>, vector<10x32xf32>
    %2 = arith.addf %0, %1 : vector<10x32xf32>
    %c0_3 = arith.constant 0 : index
    %c0_4 = arith.constant 0 : index
    %3 = vector.load %arg3[%c0_3, %c0_4] : memref<10x32xf32, #tpu.memory_space<vmem>>, vector<10x32xf32>
    %4 = arith.addf %2, %3 : vector<10x32xf32>
    %cst = arith.constant dense<0.000000e+00> : vector<10xf32>
    %5 = vector.multi_reduction <add>, %4, %cst [1] : vector<10x32xf32> to vector<10xf32>
    %6 = vector.shape_cast %5 : vector<10xf32> to vector<10x1xf32>
    %cst_5 = arith.constant 3.200000e+01 : f32
    %7 = vector.broadcast %cst_5 : f32 to vector<10x1xf32>
    %8 = arith.divf %6, %7 : vector<10x1xf32>
    %9 = vector.broadcast %8 : vector<10x1xf32> to vector<10x32xf32>
    %10 = arith.subf %4, %9 : vector<10x32xf32>
    %11 = arith.mulf %10, %10 : vector<10x32xf32>
    %cst_6 = arith.constant dense<0.000000e+00> : vector<10xf32>
    %12 = vector.multi_reduction <add>, %11, %cst_6 [1] : vector<10x32xf32> to vector<10xf32>
    %13 = vector.shape_cast %12 : vector<10xf32> to vector<10x1xf32>
    %cst_7 = arith.constant 3.200000e+01 : f32
    %14 = vector.broadcast %cst_7 : f32 to vector<10x1xf32>
    %15 = arith.divf %13, %14 : vector<10x1xf32>
    %cst_8 = arith.constant 9.99999974E-6 : f32
    %16 = vector.broadcast %cst_8 : f32 to vector<10x1xf32>
    %17 = arith.addf %15, %16 : vector<10x1xf32>
    %18 = math.rsqrt %17 : vector<10x1xf32>
    %19 = vector.broadcast %18 : vector<10x1xf32> to vector<10x32xf32>
    %20 = arith.mulf %10, %19 : vector<10x32xf32>
    %c0_9 = arith.constant 0 : index
    %c0_10 = arith.constant 0 : index
    %21 = vector.load %arg4[%c0_9, %c0_10] : memref<1x32xf32, #tpu.memory_space<vmem>>, vector<1x32xf32>
    %22 = vector.broadcast %21 : vector<1x32xf32> to vector<10x32xf32>
    %23 = arith.mulf %20, %22 : vector<10x32xf32>
    %c0_11 = arith.constant 0 : index
    %c0_12 = arith.constant 0 : index
    %24 = vector.load %arg5[%c0_11, %c0_12] : memref<1x32xf32, #tpu.memory_space<vmem>>, vector<1x32xf32>
    %25 = vector.broadcast %24 : vector<1x32xf32> to vector<10x32xf32>
    %26 = arith.addf %23, %25 : vector<10x32xf32>
    %c0_13 = arith.constant 0 : index
    %c0_14 = arith.constant 0 : index
    %27 = vector.load %arg6[%c0_13, %c0_14] : memref<10x32xf32, #tpu.memory_space<vmem>>, vector<10x32xf32>
    tpu.vector_store %arg6[%c0_13, %c0_14], %26 {strides = array<i32>} : memref<10x32xf32, #tpu.memory_space<vmem>>, vector<10x32xf32>,
    return
  }
  func.func @transform_0(%arg0: i32) -> (i32, i32) {
    %c0_i32 = arith.constant 0 : i32
    %c0_i32_0 = arith.constant 0 : i32
    return %arg0, %c0_i32 : i32, i32
  }
  func.func @transform_1(%arg0: i32) -> (i32, i32) {
    %c0_i32 = arith.constant 0 : i32
    %c0_i32_0 = arith.constant 0 : i32
    return %arg0, %c0_i32 : i32, i32
  }
  func.func @transform_2(%arg0: i32) -> (i32, i32) {
    %c0_i32 = arith.constant 0 : i32
    %c0_i32_0 = arith.constant 0 : i32
    return %arg0, %c0_i32 : i32, i32
  }
  func.func @transform_3(%arg0: i32) -> (i32, i32) {
    %c0_i32 = arith.constant 0 : i32
    %c0_i32_0 = arith.constant 0 : i32
    %c0_i32_1 = arith.constant 0 : i32
    return %c0_i32, %c0_i32_0 : i32, i32
  }
  func.func @transform_4(%arg0: i32) -> (i32, i32) {
    %c0_i32 = arith.constant 0 : i32
    %c0_i32_0 = arith.constant 0 : i32
    %c0_i32_1 = arith.constant 0 : i32
    return %c0_i32, %c0_i32_0 : i32, i32
  }
  func.func @transform_5(%arg0: i32) -> (i32, i32) {
    %c0_i32 = arith.constant 0 : i32
    %c0_i32_0 = arith.constant 0 : i32
    return %arg0, %c0_i32 : i32, i32
  }
}

module attributes {stable_mosaic.version = 11 : i64} {
  func.func @_ffn_ln_kernel(%arg0: i32, %arg1: memref<10x32xf32, #tpu.memory_space<vmem>>, %arg2: memref<32x64xbf16, #tpu.memory_space<vmem>>, %arg3: memref<1x64xf32, #tpu.memory_space<vmem>>, %arg4: memref<64x32xbf16, #tpu.memory_space<vmem>>, %arg5: memref<1x32xf32, #tpu.memory_space<vmem>>, %arg6: memref<1x32xf32, #tpu.memory_space<vmem>>, %arg7: memref<1x32xf32, #tpu.memory_space<vmem>>, %arg8: memref<10x32xf32, #tpu.memory_space<vmem>>) attributes {dimension_semantics = [#tpu.dimension_semantics<arbitrary>], iteration_bounds = array<i64: 1>, scalar_prefetch = 0 : i64, scratch_operands = 0 : i64, tpu.core_type = #tpu.core_type<tc>, window_params = [{transform_indices = @transform_0, window_bounds = array<i64: 10, 32>}, {pipeline_mode = #tpu.pipeline_mode<synchronous>, transform_indices = @transform_1, window_bounds = array<i64: 32, 64>}, {pipeline_mode = #tpu.pipeline_mode<synchronous>, transform_indices = @transform_2, window_bounds = array<i64: 1, 64>}, {pipeline_mode = #tpu.pipeline_mode<synchronous>, transform_indices = @transform_3, window_bounds = array<i64: 64, 32>}, {pipeline_mode = #tpu.pipeline_mode<synchronous>, transform_indices = @transform_4, window_bounds = array<i64: 1, 32>}, {pipeline_mode = #tpu.pipeline_mode<synchronous>, transform_indices = @transform_5, window_bounds = array<i64: 1, 32>}, {pipeline_mode = #tpu.pipeline_mode<synchronous>, transform_indices = @transform_6, window_bounds = array<i64: 1, 32>}, {transform_indices = @transform_7, window_bounds = array<i64: 10, 32>}]} {
    %c0 = arith.constant 0 : index
    %c0_0 = arith.constant 0 : index
    %0 = vector.load %arg1[%c0, %c0_0] : memref<10x32xf32, #tpu.memory_space<vmem>>, vector<10x32xf32>
    %1 = arith.truncf %0 : vector<10x32xf32> to vector<10x32xbf16>
    %c0_1 = arith.constant 0 : index
    %c0_2 = arith.constant 0 : index
    %2 = vector.load %arg2[%c0_1, %c0_2] : memref<32x64xbf16, #tpu.memory_space<vmem>>, vector<32x64xbf16>
    %cst = arith.constant dense<0.000000e+00> : vector<10x64xf32>
    %3 = tpu.matmul %1, %2, %cst {dimension_numbers = #tpu.dot_dimension_numbers<[1], [0], [0], [1], [0, 0, 1, 1], [], []>} : vector<10x32xbf16>, vector<32x64xbf16>, vector<10x64xf32> -> vector<10x64xf32>
    %c0_3 = arith.constant 0 : index
    %c0_4 = arith.constant 0 : index
    %4 = vector.load %arg3[%c0_3, %c0_4] : memref<1x64xf32, #tpu.memory_space<vmem>>, vector<1x64xf32>
    %5 = vector.broadcast %4 : vector<1x64xf32> to vector<10x64xf32>
    %6 = arith.addf %3, %5 : vector<10x64xf32>
    %cst_5 = arith.constant 0.000000e+00 : f32
    %7 = vector.broadcast %cst_5 : f32 to vector<10x64xf32>
    %8 = arith.maximumf %6, %7 : vector<10x64xf32>
    %9 = arith.truncf %8 : vector<10x64xf32> to vector<10x64xbf16>
    %c0_6 = arith.constant 0 : index
    %c0_7 = arith.constant 0 : index
    %10 = vector.load %arg4[%c0_6, %c0_7] : memref<64x32xbf16, #tpu.memory_space<vmem>>, vector<64x32xbf16>
    %cst_8 = arith.constant dense<0.000000e+00> : vector<10x32xf32>
    %11 = tpu.matmul %9, %10, %cst_8 {dimension_numbers = #tpu.dot_dimension_numbers<[1], [0], [0], [1], [0, 0, 1, 1], [], []>} : vector<10x64xbf16>, vector<64x32xbf16>, vector<10x32xf32> -> vector<10x32xf32>
    %c0_9 = arith.constant 0 : index
    %c0_10 = arith.constant 0 : index
    %12 = vector.load %arg5[%c0_9, %c0_10] : memref<1x32xf32, #tpu.memory_space<vmem>>, vector<1x32xf32>
    %13 = vector.broadcast %12 : vector<1x32xf32> to vector<10x32xf32>
    %14 = arith.addf %11, %13 : vector<10x32xf32>
    %15 = arith.addf %0, %14 : vector<10x32xf32>
    %cst_11 = arith.constant dense<0.000000e+00> : vector<10xf32>
    %16 = vector.multi_reduction <add>, %15, %cst_11 [1] : vector<10x32xf32> to vector<10xf32>
    %17 = vector.shape_cast %16 : vector<10xf32> to vector<10x1xf32>
    %cst_12 = arith.constant 3.200000e+01 : f32
    %18 = vector.broadcast %cst_12 : f32 to vector<10x1xf32>
    %19 = arith.divf %17, %18 : vector<10x1xf32>
    %20 = vector.broadcast %19 : vector<10x1xf32> to vector<10x32xf32>
    %21 = arith.subf %15, %20 : vector<10x32xf32>
    %22 = arith.mulf %21, %21 : vector<10x32xf32>
    %cst_13 = arith.constant dense<0.000000e+00> : vector<10xf32>
    %23 = vector.multi_reduction <add>, %22, %cst_13 [1] : vector<10x32xf32> to vector<10xf32>
    %24 = vector.shape_cast %23 : vector<10xf32> to vector<10x1xf32>
    %cst_14 = arith.constant 3.200000e+01 : f32
    %25 = vector.broadcast %cst_14 : f32 to vector<10x1xf32>
    %26 = arith.divf %24, %25 : vector<10x1xf32>
    %cst_15 = arith.constant 9.99999974E-6 : f32
    %27 = vector.broadcast %cst_15 : f32 to vector<10x1xf32>
    %28 = arith.addf %26, %27 : vector<10x1xf32>
    %29 = math.rsqrt %28 : vector<10x1xf32>
    %30 = vector.broadcast %29 : vector<10x1xf32> to vector<10x32xf32>
    %31 = arith.mulf %21, %30 : vector<10x32xf32>
    %c0_16 = arith.constant 0 : index
    %c0_17 = arith.constant 0 : index
    %32 = vector.load %arg6[%c0_16, %c0_17] : memref<1x32xf32, #tpu.memory_space<vmem>>, vector<1x32xf32>
    %33 = vector.broadcast %32 : vector<1x32xf32> to vector<10x32xf32>
    %34 = arith.mulf %31, %33 : vector<10x32xf32>
    %c0_18 = arith.constant 0 : index
    %c0_19 = arith.constant 0 : index
    %35 = vector.load %arg7[%c0_18, %c0_19] : memref<1x32xf32, #tpu.memory_space<vmem>>, vector<1x32xf32>
    %36 = vector.broadcast %35 : vector<1x32xf32> to vector<10x32xf32>
    %37 = arith.addf %34, %36 : vector<10x32xf32>
    %c0_20 = arith.constant 0 : index
    %c0_21 = arith.constant 0 : index
    %38 = vector.load %arg8[%c0_20, %c0_21] : memref<10x32xf32, #tpu.memory_space<vmem>>, vector<10x32xf32>
    tpu.vector_store %arg8[%c0_20, %c0_21], %37 {strides = array<i32>} : memref<10x32xf32, #tpu.memory_space<vmem>>, vector<10x32xf32>,
    return
  }
  func.func @transform_0(%arg0: i32) -> (i32, i32) {
    %c0_i32 = arith.constant 0 : i32
    %c0_i32_0 = arith.constant 0 : i32
    return %arg0, %c0_i32 : i32, i32
  }
  func.func @transform_1(%arg0: i32) -> (i32, i32) {
    %c0_i32 = arith.constant 0 : i32
    %c0_i32_0 = arith.constant 0 : i32
    %c0_i32_1 = arith.constant 0 : i32
    return %c0_i32, %c0_i32_0 : i32, i32
  }
  func.func @transform_2(%arg0: i32) -> (i32, i32) {
    %c0_i32 = arith.constant 0 : i32
    %c0_i32_0 = arith.constant 0 : i32
    %c0_i32_1 = arith.constant 0 : i32
    return %c0_i32, %c0_i32_0 : i32, i32
  }
  func.func @transform_3(%arg0: i32) -> (i32, i32) {
    %c0_i32 = arith.constant 0 : i32
    %c0_i32_0 = arith.constant 0 : i32
    %c0_i32_1 = arith.constant 0 : i32
    return %c0_i32, %c0_i32_0 : i32, i32
  }
  func.func @transform_4(%arg0: i32) -> (i32, i32) {
    %c0_i32 = arith.constant 0 : i32
    %c0_i32_0 = arith.constant 0 : i32
    %c0_i32_1 = arith.constant 0 : i32
    return %c0_i32, %c0_i32_0 : i32, i32
  }
  func.func @transform_5(%arg0: i32) -> (i32, i32) {
    %c0_i32 = arith.constant 0 : i32
    %c0_i32_0 = arith.constant 0 : i32
    %c0_i32_1 = arith.constant 0 : i32
    return %c0_i32, %c0_i32_0 : i32, i32
  }
  func.func @transform_6(%arg0: i32) -> (i32, i32) {
    %c0_i32 = arith.constant 0 : i32
    %c0_i32_0 = arith.constant 0 : i32
    %c0_i32_1 = arith.constant 0 : i32
    return %c0_i32, %c0_i32_0 : i32, i32
  }
  func.func @transform_7(%arg0: i32) -> (i32, i32) {
    %c0_i32 = arith.constant 0 : i32
    %c0_i32_0 = arith.constant 0 : i32
    return %arg0, %c0_i32 : i32, i32
  }
}

module attributes {stable_mosaic.version = 11 : i64} {
  func.func @_ln_kernel(%arg0: i32, %arg1: memref<10x32xf32, #tpu.memory_space<vmem>>, %arg2: memref<1x32xf32, #tpu.memory_space<vmem>>, %arg3: memref<1x32xf32, #tpu.memory_space<vmem>>, %arg4: memref<10x32xf32, #tpu.memory_space<vmem>>) attributes {dimension_semantics = [#tpu.dimension_semantics<arbitrary>], iteration_bounds = array<i64: 1>, scalar_prefetch = 0 : i64, scratch_operands = 0 : i64, tpu.core_type = #tpu.core_type<tc>, window_params = [{transform_indices = @transform_0, window_bounds = array<i64: 10, 32>}, {pipeline_mode = #tpu.pipeline_mode<synchronous>, transform_indices = @transform_1, window_bounds = array<i64: 1, 32>}, {pipeline_mode = #tpu.pipeline_mode<synchronous>, transform_indices = @transform_2, window_bounds = array<i64: 1, 32>}, {transform_indices = @transform_3, window_bounds = array<i64: 10, 32>}]} {
    %c0 = arith.constant 0 : index
    %c0_0 = arith.constant 0 : index
    %0 = vector.load %arg1[%c0, %c0_0] : memref<10x32xf32, #tpu.memory_space<vmem>>, vector<10x32xf32>
    %cst = arith.constant dense<0.000000e+00> : vector<10xf32>
    %1 = vector.multi_reduction <add>, %0, %cst [1] : vector<10x32xf32> to vector<10xf32>
    %2 = vector.shape_cast %1 : vector<10xf32> to vector<10x1xf32>
    %cst_1 = arith.constant 3.200000e+01 : f32
    %3 = vector.broadcast %cst_1 : f32 to vector<10x1xf32>
    %4 = arith.divf %2, %3 : vector<10x1xf32>
    %5 = vector.broadcast %4 : vector<10x1xf32> to vector<10x32xf32>
    %6 = arith.subf %0, %5 : vector<10x32xf32>
    %7 = arith.mulf %6, %6 : vector<10x32xf32>
    %cst_2 = arith.constant dense<0.000000e+00> : vector<10xf32>
    %8 = vector.multi_reduction <add>, %7, %cst_2 [1] : vector<10x32xf32> to vector<10xf32>
    %9 = vector.shape_cast %8 : vector<10xf32> to vector<10x1xf32>
    %cst_3 = arith.constant 3.200000e+01 : f32
    %10 = vector.broadcast %cst_3 : f32 to vector<10x1xf32>
    %11 = arith.divf %9, %10 : vector<10x1xf32>
    %cst_4 = arith.constant 9.99999974E-6 : f32
    %12 = vector.broadcast %cst_4 : f32 to vector<10x1xf32>
    %13 = arith.addf %11, %12 : vector<10x1xf32>
    %14 = math.rsqrt %13 : vector<10x1xf32>
    %15 = vector.broadcast %14 : vector<10x1xf32> to vector<10x32xf32>
    %16 = arith.mulf %6, %15 : vector<10x32xf32>
    %c0_5 = arith.constant 0 : index
    %c0_6 = arith.constant 0 : index
    %17 = vector.load %arg2[%c0_5, %c0_6] : memref<1x32xf32, #tpu.memory_space<vmem>>, vector<1x32xf32>
    %18 = vector.broadcast %17 : vector<1x32xf32> to vector<10x32xf32>
    %19 = arith.mulf %16, %18 : vector<10x32xf32>
    %c0_7 = arith.constant 0 : index
    %c0_8 = arith.constant 0 : index
    %20 = vector.load %arg3[%c0_7, %c0_8] : memref<1x32xf32, #tpu.memory_space<vmem>>, vector<1x32xf32>
    %21 = vector.broadcast %20 : vector<1x32xf32> to vector<10x32xf32>
    %22 = arith.addf %19, %21 : vector<10x32xf32>
    %c0_9 = arith.constant 0 : index
    %c0_10 = arith.constant 0 : index
    %23 = vector.load %arg4[%c0_9, %c0_10] : memref<10x32xf32, #tpu.memory_space<vmem>>, vector<10x32xf32>
    tpu.vector_store %arg4[%c0_9, %c0_10], %22 {strides = array<i32>} : memref<10x32xf32, #tpu.memory_space<vmem>>, vector<10x32xf32>,
    return
  }
  func.func @transform_0(%arg0: i32) -> (i32, i32) {
    %c0_i32 = arith.constant 0 : i32
    %c0_i32_0 = arith.constant 0 : i32
    return %arg0, %c0_i32 : i32, i32
  }
  func.func @transform_1(%arg0: i32) -> (i32, i32) {
    %c0_i32 = arith.constant 0 : i32
    %c0_i32_0 = arith.constant 0 : i32
    %c0_i32_1 = arith.constant 0 : i32
    return %c0_i32, %c0_i32_0 : i32, i32
  }
  func.func @transform_2(%arg0: i32) -> (i32, i32) {
    %c0_i32 = arith.constant 0 : i32
    %c0_i32_0 = arith.constant 0 : i32
    %c0_i32_1 = arith.constant 0 : i32
    return %c0_i32, %c0_i32_0 : i32, i32
  }
  func.func @transform_3(%arg0: i32) -> (i32, i32) {
    %c0_i32 = arith.constant 0 : i32
    %c0_i32_0 = arith.constant 0 : i32
    return %arg0, %c0_i32 : i32, i32
  }
}

module attributes {stable_mosaic.version = 11 : i64} {
  func.func @_add_linear_kernel(%arg0: i32, %arg1: memref<8x32xf32, #tpu.memory_space<vmem>>, %arg2: memref<8x32xf32, #tpu.memory_space<vmem>>, %arg3: memref<32x8xbf16, #tpu.memory_space<vmem>>, %arg4: memref<1x8xf32, #tpu.memory_space<vmem>>, %arg5: memref<8x8xf32, #tpu.memory_space<vmem>>) attributes {dimension_semantics = [#tpu.dimension_semantics<arbitrary>], iteration_bounds = array<i64: 1>, scalar_prefetch = 0 : i64, scratch_operands = 0 : i64, tpu.core_type = #tpu.core_type<tc>, window_params = [{transform_indices = @transform_0, window_bounds = array<i64: 8, 32>}, {transform_indices = @transform_1, window_bounds = array<i64: 8, 32>}, {pipeline_mode = #tpu.pipeline_mode<synchronous>, transform_indices = @transform_2, window_bounds = array<i64: 32, 8>}, {pipeline_mode = #tpu.pipeline_mode<synchronous>, transform_indices = @transform_3, window_bounds = array<i64: 1, 8>}, {transform_indices = @transform_4, window_bounds = array<i64: 8, 8>}]} {
    %c0 = arith.constant 0 : index
    %c0_0 = arith.constant 0 : index
    %0 = vector.load %arg1[%c0, %c0_0] : memref<8x32xf32, #tpu.memory_space<vmem>>, vector<8x32xf32>
    %c0_1 = arith.constant 0 : index
    %c0_2 = arith.constant 0 : index
    %1 = vector.load %arg2[%c0_1, %c0_2] : memref<8x32xf32, #tpu.memory_space<vmem>>, vector<8x32xf32>
    %2 = arith.addf %0, %1 : vector<8x32xf32>
    %3 = arith.truncf %2 : vector<8x32xf32> to vector<8x32xbf16>
    %c0_3 = arith.constant 0 : index
    %c0_4 = arith.constant 0 : index
    %4 = vector.load %arg3[%c0_3, %c0_4] : memref<32x8xbf16, #tpu.memory_space<vmem>>, vector<32x8xbf16>
    %cst = arith.constant dense<0.000000e+00> : vector<8x8xf32>
    %5 = tpu.matmul %3, %4, %cst {dimension_numbers = #tpu.dot_dimension_numbers<[1], [0], [0], [1], [0, 0, 1, 1], [], []>} : vector<8x32xbf16>, vector<32x8xbf16>, vector<8x8xf32> -> vector<8x8xf32>
    %c0_5 = arith.constant 0 : index
    %c0_6 = arith.constant 0 : index
    %6 = vector.load %arg4[%c0_5, %c0_6] : memref<1x8xf32, #tpu.memory_space<vmem>>, vector<1x8xf32>
    %7 = vector.broadcast %6 : vector<1x8xf32> to vector<8x8xf32>
    %8 = arith.addf %5, %7 : vector<8x8xf32>
    %c0_7 = arith.constant 0 : index
    %c0_8 = arith.constant 0 : index
    %9 = vector.load %arg5[%c0_7, %c0_8] : memref<8x8xf32, #tpu.memory_space<vmem>>, vector<8x8xf32>
    tpu.vector_store %arg5[%c0_7, %c0_8], %8 {strides = array<i32>} : memref<8x8xf32, #tpu.memory_space<vmem>>, vector<8x8xf32>,
    return
  }
  func.func @transform_0(%arg0: i32) -> (i32, i32) {
    %c0_i32 = arith.constant 0 : i32
    %c0_i32_0 = arith.constant 0 : i32
    return %arg0, %c0_i32 : i32, i32
  }
  func.func @transform_1(%arg0: i32) -> (i32, i32) {
    %c0_i32 = arith.constant 0 : i32
    %c0_i32_0 = arith.constant 0 : i32
    return %arg0, %c0_i32 : i32, i32
  }
  func.func @transform_2(%arg0: i32) -> (i32, i32) {
    %c0_i32 = arith.constant 0 : i32
    %c0_i32_0 = arith.constant 0 : i32
    %c0_i32_1 = arith.constant 0 : i32
    return %c0_i32, %c0_i32_0 : i32, i32
  }
  func.func @transform_3(%arg0: i32) -> (i32, i32) {
    %c0_i32 = arith.constant 0 : i32
    %c0_i32_0 = arith.constant 0 : i32
    %c0_i32_1 = arith.constant 0 : i32
    return %c0_i32, %c0_i32_0 : i32, i32
  }
  func.func @transform_4(%arg0: i32) -> (i32, i32) {
    %c0_i32 = arith.constant 0 : i32
    %c0_i32_0 = arith.constant 0 : i32
    return %arg0, %c0_i32 : i32, i32
  }
}

</mosaic_0001>

<bundles_post_ra>
// kernel: _lambda_.15
= control target key start
LH: loop header
LB: loop body
LE: loop exit
PB: predicated region body
PF: predicated region fallthrough
CT: control target
= control target key end

     0   :  { %s355_s12 = smov 0   ;;  %s378_s0 = inlined_call_operand.vmem [shape: f32[32,8], index: 0, kind: input, shape index: {}]   ;;  %s379_s1 = inlined_call_operand.vmem [shape: bf16[8,32], index: 1, kind: input, shape index: {}]   ;;  %s380_s2 = inlined_call_operand.vmem [shape: f32[1,32], index: 2, kind: input, shape index: {}]   ;;  %s381_s3 = inlined_call_operand.vmem [shape: f32[32,32], index: 3, kind: output, shape index: {}]  }
   0x1 LB: > { %s294_s13 = sadd.s32 4294967295, %s331_s12   ;;  %p298_p0 = scmp.ge.s32.totalorder %s331_s12, 1  ;;  %s331_s12 = sphi %s355_s12, %s13_s12  }
   0x2   : > { %p138_p1 = scmp.lt.s32.totalorder %s331_s12, 3 }
   0x4   : > { %p139_p2 = pnand %p298_p0, %p138_p1 }
   0x5   : > { %v178_v0 = vld [vmem:[%s379_s1] sm:$0xf] (!%p139_p2)  ;;  %vm190_vm0 = vcmask (!%p139_p2), 1043456   ;;  %s299_s16 = sshll.u32 (!%p139_p2), %s294_s13, 1  ;;  %v333_v1 = vmov (!%p139_p2), 0.0   ;;  %vm334_vm1 = vmmov (!%p139_p2), 0  }
   0x6   : > { %142 = sbr.rel (%p139_p2) target bundleno = 236 (0xec), region = 32  ;;  %309 = vmatprep.subr.bf16.mxu0 (!%p139_p2), %v333_v1  ;;  %v192_v2 = vsel (!%p139_p2), %vm190_vm0, %v178_v0, 0  ;;  %311 = vmatprep.mubr.msk.bf16.mxu0 (!%p139_p2), %vm334_vm1, %v333_v1  ;;  %p163_p3 = scmp.lt.s32.totalorder (!%p139_p2), %s299_s16, 3  ;;  %vm186_vm2 = vcmask (!%p139_p2), 64512   ;;  %v303_v6 = vld [vmem:[%s380_s2] ss:$0 sm:$0xff] (!%p139_p2) }
   0x7   : > { %310 = vmatpush3.bf16.msra.mxu0 (!%p139_p2), %v192_v2  ;;  %vm235_vm3 = vcmask (!%p139_p2), 261120  }
   0xd   : > { %s383_s16 = smov (!%p163_p3, %s299_s16), 3 }
   0xe   : > { %s300_s17 = sshll.u32 %s383_s16, 3 }
   0xf   : > { %s166_s20 = scalar_lea.vmem %s378_s0, %s300_s17  ;;  %s172_s25 = scalar_lea.vmem %s381_s3, %s300_s17 }
  0x10   : > { %v175_v3 = vld [vmem:[%s166_s20] sm:$0xff]  ;;  %v176_v4 = vld [vmem:[%s166_s20 + $0x8] sm:$0xff] }
  0x11   : > { %v177_v5 = vpack.c.bf16 %v176_v4, %v175_v3 }
  0x13   : > { %312 = vmatmul.mubr.msk.bf16.vlgmr.msra.gmra.mrb[0].mxu0 %vm186_vm2, %v177_v5 }
  0xe6   : > { %v228_v7 = vpop.f32.mrb[0].mxu0 }
  0xe7   : > { %v229_v8 = vadd.f32 %v303_v6, %v228_v7  ;;  %v313_v9 = vpop.f32.mrb[1].mxu0 }
  0xe8   : > { %v231_v10 = vpop.f32.mrb[2].mxu0 }
  0xe9   : > { %236 = vst.msk [vmem:[%s172_s25] sm:$0xff] %vm235_vm3, %v229_v8  ;;  %v232_v11 = vadd.f32 %v303_v6, %v231_v10  ;;  %v314_v12 = vpop.f32.mrb[3].mxu0 }
  0xeb   : > { %237 = vst.msk [vmem:[%s172_s25 + $0x8] sm:$0xff] %vm235_vm3, %v232_v11 }
  0xec PF: > { %s13_s12 = sadd.s32 1, %s331_s12  }
  0xed   : > { %p10_p4 = scmp.ge.s32.totalorder %s13_s12, 4  }
  0xef   :  { %12 = sbr.rel (!%p10_p4) target bundleno = 1 (0x1), region = 62 }

// kernel: _lambda_.14
= control target key start
LH: loop header
LB: loop body
LE: loop exit
PB: predicated region body
PF: predicated region fallthrough
CT: control target
= control target key end

     0   :  { %s739_s13 = smov 0   ;;  %s784_s0 = inlined_call_operand.vmem [shape: f32[2,16,4], index: 0, kind: input, shape index: {}]   ;;  %s785_s1 = inlined_call_operand.vmem [shape: f32[4,1], index: 1, kind: input, shape index: {}]   ;;  %s786_s2 = inlined_call_operand.<no memory space> [shape: f32[1,1], index: 2, kind: input, shape index: {}]   ;;  %s787_s3 = inlined_call_operand.vmem [shape: f32[16,32], index: 3, kind: input, shape index: {}]   ;;  %s788_s4 = inlined_call_operand.vmem [shape: f32[1,32], index: 4, kind: input, shape index: {}]   ;;  %s789_s5 = inlined_call_operand.vmem [shape: f32[4,1], index: 5, kind: input, shape index: {}]   ;;  %s790_s7 = inlined_call_operand.vmem [shape: f32[16,32], index: 7, kind: input, shape index: {}]   ;;  %s791_s8 = inlined_call_operand.vmem [shape: f32[1,32], index: 8, kind: input, shape index: {}]   ;;  %s792_s9 = inlined_call_operand.vmem [shape: f32[2,2,32], index: 9, kind: output, shape index: {}]   ;;  %s793_s6 = inlined_call_operand.<no memory space> [shape: f32[1,1], index: 6, kind: input, shape index: {}]  }
   0x1   :  { %v14_v0 = vstv %s786_s2  ;;  %v16_v1 = vstv %s793_s6 }
   0x2   :  { %15 = vst [vmem:[#allocation2] sm:$0x1] %v14_v0  ;;  %17 = vst [vmem:[#allocation3] sm:$0x1] %v16_v1 }
   0x3 LB: > { %s628_s14 = sadd.s32 4294967295, %s680_s13   ;;  %p632_p0 = scmp.ge.s32.totalorder %s680_s13, 1  ;;  %s680_s13 = sphi %s739_s13, %s23_s13  }
   0x4   : > { %p291_p1 = scmp.lt.s32.totalorder %s680_s13, 3 }
   0x6   : > { %p292_p2 = pnand %p632_p0, %p291_p1 }
   0x7   : > { %v337_v2 = vld [vmem:[%s785_s1] sm:$0xf] (!%p292_p2)  ;;  %vm352_vm0 = vcmask (!%p292_p2), 1043456   ;;  %p326_p3 = scmp.lt.s32.totalorder (!%p292_p2), %s628_s14, 1  ;;  %vm345_vm1 = vcmask (!%p292_p2), 31744   ;;  %v682_v6 = vmov (!%p292_p2), 0  }
   0x8   : > { %295 = sbr.rel (%p292_p2) target bundleno = 390 (0x186), region = 56  ;;  %v431_v3 = vld [vmem:[%s789_s5] sm:$0xf] (!%p292_p2)  ;;  %653 = vmatprep.subr.msk.mxu0 (!%p292_p2), %vm352_vm0, %v337_v2  ;;  %673 = vset.pattern.permute.xlu1 (!%p292_p2), %v682_v6  ;;  %v544_v21 = vld [vmem:[%s790_s7 + $0x8] sm:$0xff] (!%p292_p2)  ;;  %vm531_vm2 = vcmask (!%p292_p2), 261120   ;;  %vm571_vm3 = vcmask (!%p292_p2), 1040384  }
   0x9   : > { %658 = vmatprep.subr.msk.mxu1 (!%p292_p2), %vm352_vm0, %v431_v3  ;;  %654 = vmatpush3.msk.msra.mxu0 (!%p292_p2), %vm352_vm0, %v337_v2  ;;  %v636_v7 = vld [vmem:[#allocation2] ss:$0 sm:$0xff] (!%p292_p2)  ;;  %v640_v8 = vld [vmem:[#allocation3] ss:$0 sm:$0xff] (!%p292_p2)  ;;  %v518_v22 = vld [vmem:[%s787_s3 + $0x8] sm:$0xff] (!%p292_p2)  ;;  %vm573_vm4 = vcmask (!%p292_p2), 254976  }
   0xa   : > { %659 = vmatpush3.msk.msra.mxu1 (!%p292_p2), %vm352_vm0, %v431_v3  ;;  %672 = vset.pattern.permute.xlu0 (!%p292_p2), %v682_v6  ;;  %v543_v17 = vld [vmem:[%s790_s7] sm:$0xff] (!%p292_p2) }
   0xb   : > { %v517_v19 = vld [vmem:[%s787_s3] sm:$0xff] (!%p292_p2) }
   0xc   : > { %v566_v45 = vld [vmem:[%s791_s8] sm:$0x1] (!%p292_p2) }
   0xd   : > { %v541_v48 = vld [vmem:[%s788_s4] sm:$0x1] (!%p292_p2) }
   0xf   : > { %s795_s14 = smov (!%p326_p3, %s628_s14), 1 }
  0x10   : > { %s646_s17 = sshll.u32 %s795_s14, 4  ;;  %s635_s10 = sshll.u32 %s795_s14, 1 }
  0x11   : > { %s330_s20 = scalar_lea.vmem %s784_s0, %s646_s17  ;;  %s334_s6 = scalar_lea.vmem %s792_s9, %s635_s10 }
  0x12   : > { %v335_v4 = vld [vmem:[%s330_s20] sm:$0xff]  ;;  %v336_v5 = vld [vmem:[%s330_s20 + $0x8] sm:$0xff] }
  0x13   : > { %655 = vmatprep.mubr.msk.f32.mxu0 %vm345_vm1, %v335_v4  ;;  %660 = vmatprep.mubr.msk.f32.mxu1 %vm345_vm1, %v335_v4 }
  0x14   : > { %656 = vmatmul.mubr.msk.f32.vlgmr.msra.gmra.mrb[0].mxu0 %vm345_vm1, %v336_v5  ;;  %661 = vmatmul.mubr.msk.f32.vlgmr.msra.gmra.mrb[0].mxu1 %vm345_vm1, %v336_v5 }
  0xe7   : > { %v657_v9 = vpop.f32.mrb[0].mxu0  ;;  %v662_v10 = vpop.f32.mrb[0].mxu1 }
  0xe8   : > { %v422_v11 = vpop.f32.mrb[1].mxu0  ;;  %v508_v12 = vpop.f32.mrb[1].mxu1  ;;  %v428_v15 = vadd.f32 %v657_v9, %v636_v7  ;;  %v514_v16 = vadd.f32 %v662_v10, %v640_v8 }
  0xe9   : > { %v423_v13 = vadd.f32 %v636_v7, %v422_v11  ;;  %v509_v14 = vadd.f32 %v640_v8, %v508_v12 }
  0xeb   : > { %547 = vperm.xlu0 %672, %v509_v14   ;;  %521 = vperm.xlu1 %673, %v423_v13  }
  0xef   : > { %552 = vperm.xlu0 %672, %v514_v16   ;;  %526 = vperm.xlu1 %673, %v428_v15  }
 0x16a   : > { %v548_v18 = vpop.permute.xlu0 %547  ;;  %v522_v20 = vpop.permute.xlu1 %521 }
 0x16b   : > { %v555_v23 = vmul.f32 %v548_v18, %v543_v17  ;;  %v529_v24 = vmul.f32 %v522_v20, %v517_v19 }
 0x16d   : > { %v557_v29 = vsel %vm531_vm2, %v555_v23, 0.0  ;;  %v532_v30 = vsel %vm531_vm2, %v529_v24, 0.0 }
 0x16e   : > { %v553_v25 = vpop.permute.xlu0 %552  ;;  %v527_v26 = vpop.permute.xlu1 %526 }
 0x16f   : > { %v556_v27 = vmul.f32 %v553_v25, %v544_v21  ;;  %v530_v28 = vmul.f32 %v527_v26, %v518_v22 }
 0x171   : > { %v558_v31 = vsel %vm531_vm2, %v556_v27, 0.0  ;;  %v533_v32 = vsel %vm531_vm2, %v530_v28, 0.0 }
 0x172   : > { %v559_v33 = vadd.f32 %v558_v31, %v557_v29  ;;  %v534_v34 = vadd.f32 %v533_v32, %v532_v30 }
 0x174   : > { %v560_v35 = vrot.slane %v559_v33, 4  ;;  %v535_v36 = vrot.slane %v534_v34, 4 }
 0x176   : > { %v561_v37 = vadd.f32 %v560_v35, %v559_v33  ;;  %v536_v38 = vadd.f32 %v535_v36, %v534_v34 }
 0x178   : > { %v562_v39 = vrot.slane %v561_v37, 2  ;;  %v537_v40 = vrot.slane %v536_v38, 2 }
 0x17a   : > { %v563_v41 = vadd.f32 %v562_v39, %v561_v37  ;;  %v538_v42 = vadd.f32 %v537_v40, %v536_v38 }
 0x17c   : > { %v564_v43 = vrot.slane %v563_v41, 1  ;;  %v539_v44 = vrot.slane %v538_v42, 1 }
 0x17e   : > { %v565_v46 = vadd.f32 %v564_v43, %v563_v41  ;;  %v540_v47 = vadd.f32 %v539_v44, %v538_v42 }
 0x180   : > { %v567_v49 = vadd.f32 %v566_v45, %v565_v46  ;;  %v542_v51 = vadd.f32 %v541_v48, %v540_v47 }
 0x182   : > { %v569_v50 = vrot.slane %v567_v49, 7 }
 0x184   : > { %v572_v52 = vsel %vm571_vm3, %v542_v51, %v569_v50 }
 0x185   : > { %574 = vst.msk [vmem:[%s334_s6] sm:$0x3] %vm573_vm4, %v572_v52 }
 0x186 PF: > { %s23_s13 = sadd.s32 1, %s680_s13  }
 0x187   : > { %p20_p4 = scmp.ge.s32.totalorder %s23_s13, 4  }
 0x189   :  { %22 = sbr.rel (!%p20_p4) target bundleno = 3 (0x3), region = 86 }

// kernel: _lambda_.16
= control target key start
LH: loop header
LB: loop body
LE: loop exit
PB: predicated region body
PF: predicated region fallthrough
CT: control target
= control target key end

     0   :  { %s2436_s13 = smov 0   ;;  %s3031_s0 = inlined_call_operand.vmem [shape: f32[2,17,32], index: 0, kind: input, shape index: {}]   ;;  %s3032_s1 = inlined_call_operand.vmem [shape: bf16[32,32], index: 1, kind: input, shape index: {}]   ;;  %s3033_s2 = inlined_call_operand.vmem [shape: bf16[32,32], index: 2, kind: input, shape index: {}]   ;;  %s3034_s3 = inlined_call_operand.vmem [shape: f32[2,32], index: 3, kind: input, shape index: {}]   ;;  %s3035_s4 = inlined_call_operand.vmem [shape: f32[1,32], index: 4, kind: input, shape index: {}]   ;;  %s3036_s5 = inlined_call_operand.vmem [shape: bf16[32,48], index: 5, kind: input, shape index: {}]   ;;  %s3037_s6 = inlined_call_operand.vmem [shape: f32[1,32], index: 6, kind: input, shape index: {}]   ;;  %s3038_s7 = inlined_call_operand.vmem [shape: f32[8,32], index: 7, kind: input, shape index: {}]   ;;  %s3039_s8 = inlined_call_operand.vmem [shape: f32[1,32], index: 8, kind: input, shape index: {}]   ;;  %s3040_s9 = inlined_call_operand.vmem [shape: bf16[32,32], index: 9, kind: input, shape index: {}]   ;;  %s3041_s10 = inlined_call_operand.vmem [shape: f32[2,17,32], index: 10, kind: output, shape index: {}]  }
   0x1 LB: > { %s2176_s14 = sadd.s32 4294967295, %s2375_s13   ;;  %p2180_p0 = scmp.ge.s32.totalorder %s2375_s13, 1  ;;  %s2375_s13 = sphi %s2436_s13, %s20_s13  }
   0x2   : > { %p312_p1 = scmp.lt.s32.totalorder %s2375_s13, 3 }
   0x4   : > { %p313_p2 = pnand %p2180_p0, %p312_p1 }
   0x6   : > { %316 = sbr.rel (%p313_p2) target bundleno = 1177 (0x499), region = 60 }
   0xd   : > { %v2273_v0 = vld [vmem:[%s3032_s1] sm:$0xff]   ;;  %p350_p3 = scmp.lt.s32.totalorder %s2176_s14, 1  ;;  %v2274_v1 = vld [vmem:[%s3032_s1 + $0x8] sm:$0xff]   ;;  %vm382_vm0 = vcmask 261120   ;;  %vm501_vm1 = vcmask 253952   ;;  %v2377_v7 = vmov 0.0  }
   0xe   : > { %2228 = vmatprep.subr.bf16.mxu0 %v2273_v0  ;;  %502 = vst.msk [vmem:[#allocation2] sm:$0x1] %vm501_vm1, %v2377_v7  ;;  %vm707_vm2 = vcmask 260096   ;;  %vm710_vm3 = vcmask 63488   ;;  %v2275_v8 = vld [vmem:[%s3036_s5] sm:$0xff]   ;;  %v2276_v9 = vld [vmem:[%s3036_s5 + $0x8] sm:$0xff]  }
   0xf   : > { %s3046_s14 = smov (!%p350_p3, %s2176_s14), 1  ;;  %2229 = vmatpush3.bf16.msra.mxu0 %v2273_v0  ;;  %708 = vst.msk [vmem:[#allocation3 + $0x11] sm:$0x7f] %vm707_vm2, %v2377_v7  ;;  %709 = vst.msk [vmem:[#allocation4 + $0x11] sm:$0x7f] %vm707_vm2, %v2377_v7  ;;  %s2378_s17 = smov 96  }
  0x10   : > { %2230 = vmatprep.subr.bf16.mxu0 %v2274_v1  ;;  %s2260_s19 = smul.u32 24, %s3046_s14  ;;  %711 = vst.msk [vmem:[#allocation5 + $0x11] sm:$0x7f] %vm710_vm3, %v2377_v7  ;;  %712 = vst.msk [vmem:[#allocation6 + $0x11] sm:$0x7f] %vm710_vm3, %v2377_v7  ;;  %s2379_s18 = smov 88  }
  0x11   : > { %v2192_v14 = vld [vmem:[%s3034_s3 + $0x1] ss:$0 sm:$0xff]  ;;  %v2191_v15 = vld [vmem:[%s3034_s3] ss:$0 sm:$0xff]  ;;  %vm693_vm4 = vcmask 57344   ;;  %vm690_vm5 = vcmask 64512  }
  0x12   : > { %s354_s22 = scalar_lea.vmem %s3031_s0, %s2260_s19  ;;  %v2193_v20 = vld [vmem:[%s3035_s4] ss:$0 sm:$0xff]  ;;  %vm1130_vm6 = vcmask 1041409   ;;  %vm1132_vm7 = vcmask 1042434   ;;  %vm1134_vm8 = vcmask 1043459   ;;  %vm1136_vm9 = vcmask 1044484   ;;  %s359_s16 = scalar_lea.vmem %s3041_s10, %s2260_s19 }
  0x13   : > { %2231 = vmatpush3.bf16.msra.mxu0 %v2274_v1  ;;  %v361_v2 = vld [vmem:[%s354_s22] sm:$0xff]  ;;  %v362_v3 = vld [vmem:[%s354_s22 + $0x8] sm:$0xff]  ;;  %v363_v4 = vld [vmem:[%s354_s22 + $0x10] sm:$0x1]  ;;  %vm1138_vm10 = vcmask 1045509   ;;  %vm1140_vm11 = vcmask 1046534  }
  0x14   : > { %v364_v5 = vpack.c.bf16 %v362_v3, %v361_v2  ;;  %v2458_v6 = vpack.c.bf16 %v363_v4, %v363_v4  ;;  %2244 = vmatprep.subr.bf16.mxu0 %v2275_v8  ;;  %v2201_v49 = vld [vmem:[%s3037_s6] ss:$0 sm:$0xff]  ;;  %vm1142_vm12 = vcmask 1047559  }
  0x16   : > { %2232 = vmatprep.mubr.msk.bf16.mxu0 %vm382_vm0, %v364_v5  ;;  %2240 = vmatprep.mubr.msk.bf16.mxu1 %vm382_vm0, %v364_v5 }
  0x17   : > { %2233 = vmatmul.mubr.msk.bf16.vlgmr.msra.gmra.mrb[0].mxu0 %vm382_vm0, %v2458_v6 }
  0x18   : > { %2245 = vmatpush3.bf16.msra.mxu0 %v2275_v8 }
  0x19   : > { %2246 = vmatprep.subr.bf16.mxu0 %v2276_v9 }
  0x1c   : > { %2247 = vmatpush3.bf16.msra.mxu0 %v2276_v9 }
  0xea   : > { %v2234_v10 = vpop.f32.mrb[0].mxu0 }
  0xeb   : > { %v423_v11 = vpop.f32.mrb[1].mxu0  ;;  %v525_v19 = vmul.f32 %v2234_v10, %v2192_v14 }
  0xec   : > { %503 = vst.msk [vmem:[#allocation2 + $0x1] sm:$0xff] %vm382_vm0, %v423_v11  ;;  %v2235_v12 = vpop.f32.mrb[2].mxu0  ;;  %v523_v18 = vmul.f32 %v2192_v14, %v423_v11 }
  0xed   : > { %v426_v13 = vpop.f32.mrb[3].mxu0 }
  0xee   : > { %504 = vst.msk [vmem:[#allocation2 + $0x9] sm:$0xff] %vm382_vm0, %v426_v13  ;;  %v524_v25 = vmul.f32 %v2192_v14, %v426_v13 }
  0xf3   : > { %v507_v16 = vld [vmem:[#allocation2] sm:$0xff] }
  0xf4   : > { %v515_v17 = vmul.f32 %v2191_v15, %v507_v16 }
  0xf5   : > { %v508_v21 = vld [vmem:[#allocation2 + $0x8] sm:$0xff]  ;;  %v509_v22 = vld [vmem:[#allocation2 + $0x10] sm:$0x1] }
  0xf6   : > { %v526_v23 = vadd.f32 %v523_v18, %v515_v17  ;;  %v516_v24 = vmul.f32 %v2191_v15, %v508_v21  ;;  %v517_v26 = vmul.f32 %v2191_v15, %v509_v22  ;;  %v2277_v17 = vld [vmem:[%s3033_s2] sm:$0xff]  }
  0xf7   : > { %2236 = vmatprep.subr.bf16.mxu1 %v2277_v17 }
  0xf8   : > { %v536_v27 = vadd.f32 %v2193_v20, %v526_v23  ;;  %v527_v28 = vadd.f32 %v524_v25, %v516_v24  ;;  %v528_v29 = vadd.f32 %v525_v19, %v517_v26  ;;  %2237 = vmatpush3.bf16.msra.mxu1 %v2277_v17  ;;  %v2278_v24 = vld [vmem:[%s3033_s2 + $0x8] sm:$0xff]   ;;  %v723_v26 = vlaneseq }
  0xf9   : > { %2238 = vmatprep.subr.bf16.mxu1 %v2278_v24 }
  0xfa   : > { %v2194_v30 = vmul.f32 -1.442695, %v536_v27  ;;  %v537_v31 = vadd.f32 %v2193_v20, %v527_v28  ;;  %v538_v32 = vadd.f32 %v2193_v20, %v528_v29  ;;  %v2520_v29 = vshrl.u32 %v723_v26, 7 }
  0xfc   : > { %2285 = vpow2.f32 %v2194_v30  ;;  %v2195_v33 = vmul.f32 -1.442695, %v537_v31  ;;  %v2196_v34 = vmul.f32 -1.442695, %v538_v32  ;;  %2239 = vmatpush3.bf16.msra.mxu1 %v2278_v24  ;;  %v2604_v24 = vsub.s32 6, %v2520_v29 }
  0xfe   : > { %2287 = vpow2.f32 %v2195_v33 }
  0xff   : > { %2289 = vpow2.f32 %v2196_v34  ;;  %2241 = vmatmul.mubr.msk.bf16.vlgmr.msra.gmra.mrb[0].mxu1 %vm382_vm0, %v2458_v6  ;;  %v2527_v34 = vsub.s32 0, %v2520_v29  ;;  %v2533_v6 = vld [vmem:[%s3038_s7] sm:$0xff] }
 0x106   : > { %v2286_v35 = vpop.eup %2285 }
 0x107   : > { %v548_v36 = vadd.f32 1.0, %v2286_v35 }
 0x108   : > { %v2288_v37 = vpop.eup %2287 }
 0x109   : > { %v2290_v38 = vpop.eup %2289  ;;  %2291 = vrcp.f32 %v548_v36  ;;  %v549_v39 = vadd.f32 1.0, %v2288_v37 }
 0x10a   : > { %v550_v40 = vadd.f32 1.0, %v2290_v38 }
 0x10b   : > { %2293 = vrcp.f32 %v549_v39 }
 0x10c   : > { %2295 = vrcp.f32 %v550_v40 }
 0x113   : > { %v2292_v41 = vpop.eup %2291 }
 0x114   : > { %v2482_v44 = vmul.f32 %v2292_v41, %v536_v27  ;;  %v2380_v27 = vmov 1966171168  }
 0x115   : > { %v2294_v42 = vpop.eup %2293  ;;  %v721_v28 = vunpack.c.l.s4 %v2380_v27 }
 0x116   : > { %v2296_v43 = vpop.eup %2295  ;;  %v2484_v45 = vmul.f32 %v2294_v42, %v537_v31 }
 0x117   : > { %v2486_v46 = vmul.f32 %v2296_v43, %v538_v32  ;;  %v722_v30 = vunpack.c.0.s8 %v721_v28 }
 0x118   : > { %v560_v47 = vpack.c.bf16 %v2484_v45, %v2482_v44 }
 0x119   : > { %3043 = vst [vmem:[#allocation8_spill] sm:$0xff] %v2486_v46  ;;  %v561_v48 = vpack.c.bf16 %v2486_v46, %v2486_v46  ;;  %v2523_v31 = vsub.s32 %v722_v30, %v2520_v29  ;;  %v2614_v30 = vsub.s32 7, %v2520_v29 }
 0x11a   : > { %2248 = vmatprep.mubr.msk.bf16.mxu0 %vm382_vm0, %v560_v47 }
 0x11b   : > { %2249 = vmatmul.mubr.msk.bf16.vlgmr.msra.gmra.mrb[4].mxu0 %vm382_vm0, %v561_v48 }
 0x1ee   : > { %v2497_v50 = vpop.f32.mrb[4].mxu0 }
 0x1ef   : > { %v641_v51 = vadd.f32 %v2497_v50, %v2201_v49  ;;  %685 = vrot.lane.b32.xlu1 %v2497_v50, %s2378_s17  ;;  %v618_v52 = vpop.f32.mrb[5].mxu0 }
 0x1f0   : > { %v639_v53 = vadd.f32 %v2201_v49, %v618_v52  ;;  %681 = vrot.lane.b32.xlu0 %v618_v52, %s2378_s17  ;;  %v2251_v54 = vpop.f32.mrb[6].mxu0 }
 0x1f1   : > { %v647_v55 = vand.u32 2147483647, %v641_v51  ;;  %v621_v56 = vpop.f32.mrb[7].mxu0  ;;  %v644_v11 = vmax.f32 %v641_v51, 0.0 }
 0x1f2   : > { %v645_v57 = vand.u32 2147483647, %v639_v53  ;;  %v640_v58 = vadd.f32 %v2201_v49, %v621_v56  ;;  %v642_v13 = vmax.f32 %v639_v53, 0.0 }
 0x1f3   : > { %v650_v59 = vsub.f32 0.0, %v647_v55  ;;  %695 = vrot.lane.b32.xlu1 %v618_v52, %s2379_s18 }
 0x1f4   : > { %v648_v60 = vsub.f32 0.0, %v645_v57  ;;  %v646_v61 = vand.u32 2147483647, %v640_v58  ;;  %683 = vrot.lane.b32.xlu0 %v621_v56, %s2378_s17  ;;  %v643_v19 = vmax.f32 %v640_v58, 0.0 }
 0x1f5   : > { %v655_v62 = vmul.f32 1.442695, %v650_v59 }
 0x1f6   : > { %v651_v63 = vmul.f32 1.442695, %v648_v60  ;;  %v649_v0 = vsub.f32 0.0, %v646_v61 }
 0x1f7   : > { %2297 = vpow2.f32 %v655_v62 }
 0x1f8   : > { %2299 = vpow2.f32 %v651_v63  ;;  %v653_v1 = vmul.f32 1.442695, %v649_v0  ;;  %697 = vrot.lane.b32.xlu0 %v621_v56, %s2379_s18 }
 0x1fa   : > { %2301 = vpow2.f32 %v653_v1 }
 0x201   : > { %v2298_v2 = vpop.eup %2297 }
 0x202   : > { %v2300_v3 = vpop.eup %2299  ;;  %v659_v4 = vadd.f32 1.0, %v2298_v2 }
 0x203   : > { %v657_v5 = vadd.f32 1.0, %v2300_v3 }
 0x204   : > { %v2302_v7 = vpop.eup %2301  ;;  %2303 = vlog2.f32 %v659_v4 }
 0x205   : > { %2305 = vlog2.f32 %v657_v5  ;;  %v658_v8 = vadd.f32 1.0, %v2302_v7 }
 0x207   : > { %2307 = vlog2.f32 %v658_v8  ;;  %v2573_v8 = vsub.s32 1, %v2520_v29 }
 0x20e   : > { %v2304_v9 = vpop.eup %2303 }
 0x20f   : > { %v2306_v10 = vpop.eup %2305  ;;  %v665_v12 = vmul.f32 0.6931472, %v2304_v9 }
 0x210   : > { %v661_v14 = vmul.f32 0.6931472, %v2306_v10 }
 0x211   : > { %v2308_v15 = vpop.eup %2307  ;;  %v668_v16 = vadd.f32 %v665_v12, %v644_v11 }
 0x212   : > { %v666_v18 = vadd.f32 %v661_v14, %v642_v13  ;;  %v663_v20 = vmul.f32 0.6931472, %v2308_v15  ;;  %v2582_v15 = vsub.s32 2, %v2520_v29 }
 0x213   : > { %671 = vst.msk [vmem:[#allocation3 + $0x10] sm:$0x1] %vm501_vm1, %v668_v16  ;;  %v674_v21 = vmul.f32 %v668_v16, %v2486_v46  ;;  %v2585_v16 = vsub.s32 3, %v2520_v29 }
 0x214   : > { %669 = vst.msk [vmem:[#allocation3] sm:$0xff] %vm382_vm0, %v666_v18  ;;  %v672_v22 = vmul.f32 %v666_v18, %v2482_v44  ;;  %v667_v23 = vadd.f32 %v663_v20, %v643_v19 }
 0x215   : > { %677 = vst.msk [vmem:[#allocation4 + $0x10] sm:$0x1] %vm501_vm1, %v674_v21  ;;  %v2596_v21 = vsub.s32 4, %v2520_v29 }
 0x216   : > { %675 = vst.msk [vmem:[#allocation4] sm:$0xff] %vm382_vm0, %v672_v22  ;;  %670 = vst.msk [vmem:[#allocation3 + $0x8] sm:$0xff] %vm382_vm0, %v667_v23  ;;  %v673_v25 = vmul.f32 %v667_v23, %v2484_v45  ;;  %v2599_v22 = vsub.s32 5, %v2520_v29 }
 0x218   : > { %676 = vst.msk [vmem:[#allocation4 + $0x8] sm:$0xff] %vm382_vm0, %v673_v25 }
 0x21a   : > { %v1577_v32 = vld [vmem:[#allocation3 + $0x10] sm:$0xff] }
 0x21b   : > { %v1592_v33 = vrot.slane %v1577_v32, %v2523_v31  ;;  %v1585_v39 = vcombine.high %v1577_v32, %v1577_v32 }
 0x21d   : > { %v1608_v35 = vrot.slane %v1592_v33, %v2523_v31  ;;  %v1600_v36 = vcombine.high %v1592_v33, %v1592_v33  ;;  %v1599_v48 = vrot.slane %v1585_v39, %v2523_v31 }
 0x21f   : > { %v1637_v37 = vrot.slane %v1608_v35, %v2527_v34  ;;  %v1622_v40 = vrot.slane %v1600_v36, %v2523_v31  ;;  %v1630_v41 = vcombine.high %v1608_v35, %v1608_v35  ;;  %v1615_v53 = vrot.slane %v1599_v48, %v2523_v31 }
 0x220   : > { %v1601_v54 = vcombine.high %v1599_v48, %v1599_v48  ;;  %v714_v48 = vld [vmem:[#allocation3] sm:$0xff] }
 0x221   : > { %v2537_v38 = vmul.f32 %v1637_v37, %v2533_v6  ;;  %v1641_v42 = vrot.slane %v1622_v40, %v2527_v34  ;;  %v1645_v43 = vrot.slane %v1630_v41, %v2527_v34  ;;  %v1632_v47 = vcombine.high %v1622_v40, %v1622_v40 }
 0x222   : > { %v1653_v56 = vrot.slane %v1615_v53, %v2527_v34  ;;  %v1629_v57 = vrot.slane %v1601_v54, %v2523_v31  ;;  %v1631_v58 = vcombine.high %v1615_v53, %v1615_v53 }
 0x223   : > { %v2544_v49 = vmul.f32 %v1641_v42, %v2533_v6  ;;  %v2547_v51 = vmul.f32 %v1645_v43, %v2533_v6  ;;  %v1649_v52 = vrot.slane %v1632_v47, %v2527_v34 }
 0x224   : > { %v2557_v59 = vmul.f32 %v1653_v56, %v2533_v6  ;;  %v1657_v60 = vrot.slane %v1629_v57, %v2527_v34  ;;  %v1661_v61 = vrot.slane %v1631_v58, %v2527_v34  ;;  %v1633_v62 = vcombine.high %v1629_v57, %v1629_v57 }
 0x225   : > { %v2552_v55 = vmul.f32 %v1649_v52, %v2533_v6  ;;  %v726_v52 = vrot.slane %v714_v48, %v2523_v31 }
 0x226   : > { %v2562_v63 = vmul.f32 %v1657_v60, %v2533_v6  ;;  %v2565_v0 = vmul.f32 %v1661_v61, %v2533_v6  ;;  %v1665_v1 = vrot.slane %v1633_v62, %v2527_v34  ;;  %v719_v62 = vcombine.high %v714_v48, %v714_v48 }
 0x227   : > { %v742_v53 = vrot.slane %v726_v52, %v2523_v31  ;;  %v734_v54 = vcombine.high %v726_v52, %v726_v52 }
 0x228   : > { %v2569_v2 = vmul.f32 %v1665_v1, %v2533_v6 }
 0x229   : > { %v771_v56 = vrot.slane %v742_v53, %v2527_v34  ;;  %v756_v57 = vrot.slane %v734_v54, %v2523_v31  ;;  %v764_v60 = vcombine.high %v742_v53, %v742_v53 }
 0x22b   : > { %v808_v58 = vmul.f32 %v771_v56, %v2533_v6  ;;  %v775_v61 = vrot.slane %v756_v57, %v2527_v34 }
 0x22d   : > { %v816_v1 = vmul.f32 1.442695, %v808_v58 }
 0x22f   : > { %2309 = vpow2.f32 %v816_v1 }
 0x261   : > { %v686_v3 = vpop.permute.xlu1 %685 }
 0x262   : > { %694 = vst.msk [vmem:[#allocation5 + $0x10] sm:$0x1] %vm693_vm4, %v686_v3  ;;  %v682_v4 = vpop.permute.xlu0 %681  ;;  %v779_v3 = vrot.slane %v764_v60, %v2527_v34 }
 0x263   : > { %691 = vst.msk [vmem:[#allocation5] sm:$0xff] %vm690_vm5, %v682_v4  ;;  %v809_v4 = vmul.f32 %v775_v61, %v2533_v6 }
 0x265   : > { %v696_v5 = vpop.permute.xlu1 %695 }
 0x266   : > { %704 = vst.msk [vmem:[#allocation6] sm:$0xff] %vm690_vm5, %v696_v5  ;;  %v684_v7 = vpop.permute.xlu0 %683  ;;  %v766_v5 = vcombine.high %v756_v57, %v756_v57 }
 0x267   : > { %692 = vst.msk [vmem:[#allocation5 + $0x8] sm:$0xff] %vm690_vm5, %v684_v7  ;;  %v733_v7 = vrot.slane %v719_v62, %v2523_v31 }
 0x269   : > { %v2577_v13 = vld [vmem:[#allocation5 + $0x10] sm:$0xff] }
 0x26a   : > { %v698_v9 = vpop.permute.xlu0 %697  ;;  %v716_v10 = vld [vmem:[#allocation5] sm:$0xff]  ;;  %v1701_v14 = vrot.slane %v2577_v13, %v2527_v34  ;;  %v1708_v19 = vrot.slane %v2577_v13, %v2573_v8  ;;  %v1715_v20 = vrot.slane %v2577_v13, %v2582_v15  ;;  %v1722_v25 = vrot.slane %v2577_v13, %v2585_v16 }
 0x26b   : > { %705 = vst.msk [vmem:[#allocation6 + $0x8] sm:$0xff] %vm690_vm5, %v698_v9  ;;  %v835_v11 = vrot.slane %v716_v10, %v2527_v34  ;;  %v842_v12 = vrot.slane %v716_v10, %v2573_v8  ;;  %v849_v17 = vrot.slane %v716_v10, %v2582_v15  ;;  %v856_v18 = vrot.slane %v716_v10, %v2585_v16  ;;  %v2648_v9 = vld [vmem:[#allocation4] sm:$0xff] }
 0x26c   : > { %v870_v23 = vrot.slane %v716_v10, %v2599_v22  ;;  %v877_v26 = vrot.slane %v716_v10, %v2604_v24  ;;  %v1736_v27 = vrot.slane %v2577_v13, %v2599_v22  ;;  %v1729_v28 = vrot.slane %v2577_v13, %v2596_v21 }
 0x26d   : > { %837 = vbcast.lane.b32.xlu1 %v835_v11, 256  ;;  %844 = vbcast.lane.b32.xlu0 %v842_v12, 256  ;;  %v884_v33 = vrot.slane %v716_v10, %v2614_v30  ;;  %v2621_v36 = vld [vmem:[#allocation6] sm:$0xff]  ;;  %v1743_v29 = vrot.slane %v2577_v13, %v2604_v24  ;;  %v818_v11 = vmul.f32 1.442695, %v809_v4  ;;  %v783_v12 = vrot.slane %v766_v5, %v2527_v34 }
 0x26e   : > { %v2616_v32 = vld [vmem:[#allocation5 + $0x8] sm:$0xff]  ;;  %v1005_v37 = vrot.slane %v2621_v36, %v2527_v34  ;;  %v1019_v41 = vrot.slane %v2621_v36, %v2582_v15  ;;  %v1012_v42 = vrot.slane %v2621_v36, %v2573_v8  ;;  %v889_v60 = vcombine.high %v2648_v9, %v2648_v9 }
 0x26f   : > { %v1271_v35 = vrot.slane %v2616_v32, %v2527_v34  ;;  %v1278_v39 = vrot.slane %v2616_v32, %v2573_v8  ;;  %v1285_v40 = vrot.slane %v2616_v32, %v2582_v15  ;;  %v1292_v43 = vrot.slane %v2616_v32, %v2585_v16 }
 0x270   : > { %v1299_v47 = vrot.slane %v2616_v32, %v2596_v21  ;;  %2311 = vpow2.f32 %v818_v11 }
 0x271   : > { %699 = vrot.lane.b32.xlu1 %v2497_v50, %s2379_s18  ;;  %1703 = vbcast.lane.b32.xlu0 %v1701_v14, 256  ;;  %v863_v50 = vrot.slane %v716_v10, %v2596_v21  ;;  %v810_v10 = vmul.f32 %v779_v3, %v2533_v6  ;;  %v749_v14 = vrot.slane %v733_v7, %v2523_v31 }
 0x275   : > { %851 = vbcast.lane.b32.xlu1 %v849_v17, 256  ;;  %858 = vbcast.lane.b32.xlu0 %v856_v18, 256  ;;  %v735_v17 = vcombine.high %v733_v7, %v733_v7  ;;  %v896_v18 = vrot.slane %v2648_v9, %v2523_v31 }
 0x279   : > { %1710 = vbcast.lane.b32.xlu1 %v1708_v19, 256  ;;  %1717 = vbcast.lane.b32.xlu0 %v1715_v20, 256  ;;  %v1579_v19 = vld [vmem:[#allocation4 + $0x10] sm:$0xff]  ;;  %v820_v20 = vmul.f32 1.442695, %v810_v10 }
 0x27a   : > { %v1755_v58 = vcombine.high %v1579_v19, %v1579_v19 }
 0x27b   : > { %2313 = vpow2.f32 %v820_v20 }
 0x27d   : > { %865 = vbcast.lane.b32.xlu1 %v863_v50, 256  ;;  %872 = vbcast.lane.b32.xlu0 %v870_v23, 256  ;;  %v811_v50 = vmul.f32 %v783_v12, %v2533_v6  ;;  %v787_v23 = vrot.slane %v749_v14, %v2527_v34 }
 0x281   : > { %1724 = vbcast.lane.b32.xlu1 %v1722_v25, 256  ;;  %879 = vbcast.lane.b32.xlu0 %v877_v26, 256  ;;  %v763_v25 = vrot.slane %v735_v17, %v2523_v31  ;;  %v912_v26 = vrot.slane %v896_v18, %v2523_v31 }
 0x283   : > { %v767_v54 = vcombine.high %v763_v25, %v763_v25  ;;  %v934_v7 = vcombine.high %v912_v26, %v912_v26 }
 0x285   : > { %1738 = vbcast.lane.b32.xlu1 %v1736_v27, 256  ;;  %1731 = vbcast.lane.b32.xlu0 %v1729_v28, 256  ;;  %v904_v27 = vcombine.high %v896_v18, %v896_v18  ;;  %v1762_v28 = vrot.slane %v1579_v19, %v2523_v31  ;;  %v799_v18 = vrot.slane %v767_v54, %v2527_v34 }
 0x287   : > { %v1770_v52 = vcombine.high %v1762_v28, %v1762_v28 }
 0x289   : > { %886 = vbcast.lane.b32.xlu1 %v884_v33, 256  ;;  %1273 = vbcast.lane.b32.xlu0 %v1271_v35, 256  ;;  %v765_v33 = vcombine.high %v749_v14, %v749_v14  ;;  %v2310_v35 = vpop.eup %2309  ;;  %v1792_v14 = vrot.slane %v1770_v52, %v2523_v31 }
 0x28a   : > { %v986_v57 = vmul.f32 0.0, %v2310_v35  ;;  %v2312_v10 = vpop.eup %2311  ;;  %v903_v35 = vrot.slane %v889_v60, %v2523_v31 }
 0x28b   : > { %v795_v53 = vrot.slane %v765_v33, %v2527_v34  ;;  %v949_v33 = vrot.slane %v934_v7, %v2527_v34  ;;  %v1811_v52 = vrot.slane %v1792_v14, %v2527_v34 }
 0x28d   : > { %1007 = vbcast.lane.b32.xlu1 %v1005_v37, 256  ;;  %1745 = vbcast.lane.b32.xlu0 %v1743_v29, 256  ;;  %v822_v37 = vmul.f32 1.442695, %v811_v50  ;;  %v812_v29 = vmul.f32 %v787_v23, %v2533_v6  ;;  %v814_v17 = vmul.f32 %v795_v53, %v2533_v6 }
 0x28f   : > { %2315 = vpow2.f32 %v822_v37  ;;  %v824_v61 = vmul.f32 1.442695, %v812_v29  ;;  %v2314_v37 = vpop.eup %2313 }
 0x291   : > { %1280 = vbcast.lane.b32.xlu1 %v1278_v39, 256  ;;  %1287 = vbcast.lane.b32.xlu0 %v1285_v40, 256  ;;  %v791_v39 = vrot.slane %v763_v25, %v2527_v34  ;;  %v941_v40 = vrot.slane %v912_v26, %v2527_v34  ;;  %2317 = vpow2.f32 %v824_v61  ;;  %v905_v61 = vcombine.high %v903_v35, %v903_v35 }
 0x293   : > { %v813_v62 = vmul.f32 %v791_v39, %v2533_v6 }
 0x295   : > { %1021 = vbcast.lane.b32.xlu1 %v1019_v41, 256  ;;  %1014 = vbcast.lane.b32.xlu0 %v1012_v42, 256  ;;  %v926_v41 = vrot.slane %v904_v27, %v2523_v31  ;;  %v1778_v42 = vrot.slane %v1762_v28, %v2523_v31  ;;  %v826_v25 = vmul.f32 1.442695, %v813_v62  ;;  %v1802_v62 = vcombine.high %v1792_v14, %v1792_v14 }
 0x297   : > { %v945_v4 = vrot.slane %v926_v41, %v2527_v34  ;;  %v1807_v5 = vrot.slane %v1778_v42, %v2527_v34  ;;  %v1800_v9 = vcombine.high %v1778_v42, %v1778_v42  ;;  %v936_v23 = vcombine.high %v926_v41, %v926_v41 }
 0x298   : > { %v1769_v42 = vrot.slane %v1755_v58, %v2523_v31  ;;  %2319 = vpow2.f32 %v826_v25  ;;  %v919_v58 = vrot.slane %v903_v35, %v2523_v31 }
 0x299   : > { %1294 = vbcast.lane.b32.xlu1 %v1292_v43, 256  ;;  %1301 = vbcast.lane.b32.xlu0 %v1299_v47, 256  ;;  %v2665_v43 = vld [vmem:[#allocation3 + $0x8] sm:$0xff]  ;;  %v1815_v53 = vrot.slane %v1800_v9, %v2527_v34  ;;  %v953_v54 = vrot.slane %v936_v23, %v2527_v34 }
 0x29a   : > { %v1162_v1 = vrot.slane %v2665_v43, %v2523_v31  ;;  %v1771_v35 = vcombine.high %v1769_v42, %v1769_v42 }
 0x29c   : > { %v1178_v26 = vrot.slane %v1162_v1, %v2523_v31  ;;  %v1170_v27 = vcombine.high %v1162_v1, %v1162_v1  ;;  %v2316_v1 = vpop.eup %2315 }
 0x29e   : > { %v1200_v25 = vcombine.high %v1178_v26, %v1178_v26 }
 0x2df   : > { %v838_v47 = vpop.permute.xlu1 %837  ;;  %v845_v48 = vpop.permute.xlu0 %844 }
 0x2e0   : > { %v978_v56 = vmul.f32 %v941_v40, %v838_v47  ;;  %v979_v20 = vmul.f32 %v945_v4, %v845_v48  ;;  %v828_v40 = vmul.f32 1.442695, %v814_v17  ;;  %v815_v47 = vmul.f32 %v799_v18, %v2533_v6 }
 0x2e2   : > { %v2673_v3 = vadd.f32 %v986_v57, %v978_v56  ;;  %v1207_v56 = vrot.slane %v1178_v26, %v2527_v34  ;;  %v1192_v57 = vrot.slane %v1170_v27, %v2523_v31  ;;  %2321 = vpow2.f32 %v828_v40 }
 0x2e3   : > { %v700_v11 = vpop.permute.xlu1 %699  ;;  %v1704_v12 = vpop.permute.xlu0 %1703  ;;  %v1819_v40 = vrot.slane %v1802_v62, %v2527_v34  ;;  %v1215_v62 = vrot.slane %v1200_v25, %v2527_v34 }
 0x2e4   : > { %v988_v19 = vmul.f32 %v2312_v10, %v2673_v3  ;;  %706 = vst.msk [vmem:[#allocation6 + $0x10] sm:$0x1] %vm693_vm4, %v700_v11  ;;  %v2682_v50 = vmul.f32 %v1807_v5, %v1704_v12  ;;  %v830_v11 = vmul.f32 1.442695, %v815_v47  ;;  %v1155_v12 = vcombine.high %v2665_v43, %v2665_v43 }
 0x2e5   : > { %v1211_v23 = vrot.slane %v1192_v57, %v2527_v34  ;;  %v957_v43 = vrot.slane %v919_v58, %v2527_v34  ;;  %v935_v47 = vcombine.high %v919_v58, %v919_v58 }
 0x2e6   : > { %v2685_v28 = vadd.f32 %v988_v19, %v979_v20  ;;  %v1244_v20 = vmul.f32 %v1207_v56, %v2533_v6  ;;  %2323 = vpow2.f32 %v830_v11 }
 0x2e7   : > { %v852_v29 = vpop.permute.xlu1 %851  ;;  %v859_v39 = vpop.permute.xlu0 %858  ;;  %v965_v11 = vrot.slane %v935_v47, %v2527_v34 }
 0x2e8   : > { %v980_v41 = vmul.f32 %v949_v33, %v852_v29  ;;  %v990_v48 = vmul.f32 %v2314_v37, %v2685_v28  ;;  %v981_v4 = vmul.f32 %v953_v54, %v859_v39  ;;  %v933_v33 = vrot.slane %v905_v61, %v2523_v31  ;;  %v2318_v37 = vpop.eup %2317 }
 0x2e9   : > { %v1313_v54 = vrot.slane %v2616_v32, %v2604_v24  ;;  %v1252_v56 = vmul.f32 1.442695, %v1244_v20  ;;  %v1245_v61 = vmul.f32 %v1211_v23, %v2533_v6 }
 0x2ea   : > { %v2697_v60 = vadd.f32 %v990_v48, %v980_v41  ;;  %v1202_v41 = vcombine.high %v1192_v57, %v1192_v57  ;;  %v2721_v48 = vrot.slane %v1155_v12, %v2523_v31  ;;  %v961_v57 = vrot.slane %v933_v33, %v2527_v34 }
 0x2eb   : > { %v1711_v5 = vpop.permute.xlu1 %1710  ;;  %v1718_v7 = vpop.permute.xlu0 %1717  ;;  %v2700_v10 = vld [vmem:[#allocation6 + $0x10] sm:$0xff]  ;;  %2325 = vpow2.f32 %v1252_v56 }
 0x2ec   : > { %v992_v9 = vmul.f32 %v2316_v1, %v2697_v60  ;;  %v2705_v17 = vmul.f32 %v1811_v52, %v1711_v5  ;;  %v2707_v18 = vmul.f32 %v1815_v53, %v1718_v7  ;;  %v1871_v14 = vrot.slane %v2700_v10, %v2527_v34  ;;  %v2320_v5 = vpop.eup %2319 }
 0x2ed   : > { %v1878_v19 = vrot.slane %v2700_v10, %v2573_v8  ;;  %v1306_v53 = vrot.slane %v2616_v32, %v2599_v22  ;;  %v2734_v1 = vrot.slane %v1771_v35, %v2523_v31  ;;  %v2743_v20 = vrot.slane %v2721_v48, %v2523_v31  ;;  %v2322_v35 = vpop.eup %2321 }
 0x2ee   : > { %v2715_v27 = vadd.f32 %v992_v9, %v981_v4  ;;  %1873 = vbcast.lane.b32.xlu1 %v1871_v14, 256  ;;  %v1785_v4 = vrot.slane %v1769_v42, %v2523_v31  ;;  %v937_v9 = vcombine.high %v933_v33, %v933_v33  ;;  %v2738_v14 = vld [vmem:[#allocation4 + $0x8] sm:$0xff]  ;;  %v1026_v42 = vrot.slane %v2621_v36, %v2585_v16 }
 0x2ef   : > { %1880 = vbcast.lane.b32.xlu0 %v1878_v19, 256  ;;  %v866_v29 = vpop.permute.xlu1 %865  ;;  %v873_v39 = vpop.permute.xlu0 %872  ;;  %v1219_v19 = vrot.slane %v1202_v41, %v2527_v34  ;;  %v1033_v33 = vrot.slane %v2621_v36, %v2596_v21  ;;  %v1827_v41 = vrot.slane %v2734_v1, %v2527_v34 }
 0x2f0   : > { %v982_v26 = vmul.f32 %v957_v43, %v866_v29  ;;  %v994_v52 = vmul.f32 %v2318_v37, %v2715_v27  ;;  %v983_v25 = vmul.f32 %v961_v57, %v873_v39  ;;  %v1254_v37 = vmul.f32 1.442695, %v1245_v61 }
 0x2f1   : > { %v1246_v29 = vmul.f32 %v1215_v62, %v2533_v6  ;;  %v1823_v39 = vrot.slane %v1785_v4, %v2527_v34  ;;  %v1247_v56 = vmul.f32 %v1219_v19, %v2533_v6  ;;  %v1801_v19 = vcombine.high %v1785_v4, %v1785_v4 }
 0x2f2   : > { %v2730_v58 = vadd.f32 %v994_v52, %v982_v26  ;;  %1308 = vbcast.lane.b32.xlu1 %v1306_v53, 256  ;;  %v1320_v53 = vrot.slane %v2616_v32, %v2614_v30  ;;  %2327 = vpow2.f32 %v1254_v37  ;;  %v2324_v32 = vpop.eup %2323  ;;  %v1040_v37 = vrot.slane %v2621_v36, %v2599_v22 }
 0x2f3   : > { %1315 = vbcast.lane.b32.xlu0 %v1313_v54, 256  ;;  %v1725_v7 = vpop.permute.xlu1 %1724  ;;  %v880_v12 = vpop.permute.xlu0 %879  ;;  %v969_v54 = vrot.slane %v937_v9, %v2527_v34 }
 0x2f4   : > { %v996_v23 = vmul.f32 %v2320_v5, %v2730_v58  ;;  %v2746_v43 = vmul.f32 %v1819_v40, %v1725_v7  ;;  %v1332_v40 = vrot.slane %v2738_v14, %v2523_v31  ;;  %v984_v62 = vmul.f32 %v965_v11, %v880_v12 }
 0x2f5   : > { %v1750_v7 = vrot.slane %v2577_v13, %v2614_v30  ;;  %v1885_v13 = vrot.slane %v2700_v10, %v2582_v15 }
 0x2f6   : > { %v2753_v47 = vadd.f32 %v996_v23, %v983_v25  ;;  %1028 = vbcast.lane.b32.xlu1 %v1026_v42, 256  ;;  %v1256_v23 = vmul.f32 1.442695, %v1246_v29  ;;  %v1223_v25 = vrot.slane %v2743_v20, %v2527_v34  ;;  %v1348_v9 = vrot.slane %v1332_v40, %v2523_v31 }
 0x2f7   : > { %1035 = vbcast.lane.b32.xlu0 %v1033_v33, 256  ;;  %v1739_v26 = vpop.permute.xlu1 %1738  ;;  %v1732_v52 = vpop.permute.xlu0 %1731  ;;  %v1340_v11 = vcombine.high %v1332_v40, %v1332_v40  ;;  %v1258_v29 = vmul.f32 1.442695, %v1247_v56  ;;  %v1831_v40 = vrot.slane %v1801_v19, %v2527_v34 }
 0x2f8   : > { %v998_v61 = vmul.f32 %v2322_v35, %v2753_v47  ;;  %v2765_v57 = vmul.f32 %v1827_v41, %v1739_v26  ;;  %v2767_v5 = vmul.f32 %v1823_v39, %v1732_v52  ;;  %2329 = vpow2.f32 %v1256_v23 }
 0x2f9   : > { %v1248_v39 = vmul.f32 %v1223_v25, %v2533_v6  ;;  %v1377_v4 = vrot.slane %v1348_v9, %v2527_v34  ;;  %v1362_v52 = vrot.slane %v1340_v11, %v2523_v31  ;;  %v1892_v23 = vrot.slane %v2700_v10, %v2585_v16 }
 0x2fa   : > { %v2773_v42 = vadd.f32 %v998_v61, %v984_v62  ;;  %1322 = vbcast.lane.b32.xlu1 %v1320_v53, 256  ;;  %v2326_v53 = vpop.eup %2325  ;;  %v1899_v25 = vrot.slane %v2700_v10, %v2596_v21  ;;  %2331 = vpow2.f32 %v1258_v29  ;;  %v1047_v29 = vrot.slane %v2621_v36, %v2604_v24 }
 0x2fb   : > { %1752 = vbcast.lane.b32.xlu0 %v1750_v7, 256  ;;  %v887_v12 = vpop.permute.xlu1 %886  ;;  %v1274_v35 = vpop.permute.xlu0 %1273  ;;  %v1381_v11 = vrot.slane %v1362_v52, %v2527_v34 }
 0x2fc   : > { %v985_v33 = vmul.f32 %v969_v54, %v887_v12  ;;  %v1000_v41 = vmul.f32 %v2324_v32, %v2773_v42  ;;  %v1414_v62 = vmul.f32 %v1377_v4, %v1274_v35  ;;  %v1260_v32 = vmul.f32 1.442695, %v1248_v39 }
 0x2fd   : > { %v1370_v12 = vcombine.high %v1348_v9, %v1348_v9  ;;  %v1325_v35 = vcombine.high %v2738_v14, %v2738_v14  ;;  %v1054_v9 = vrot.slane %v2621_v36, %v2614_v30 }
 0x2fe   : > { %v2782_v26 = vadd.f32 %v1000_v41, %v985_v33  ;;  %1887 = vbcast.lane.b32.xlu1 %v1885_v13, 256  ;;  %v2801_v33 = vpop.f32.mrb[0].mxu1  ;;  %v2328_v41 = vpop.eup %2327  ;;  %2333 = vpow2.f32 %v1260_v32  ;;  %v1906_v32 = vrot.slane %v2700_v10, %v2599_v22 }
 0x2ff   : > { %1042 = vbcast.lane.b32.xlu0 %v1040_v37, 256  ;;  %v2787_v54 = vpop.permute.xlu1 %1007  ;;  %v1746_v61 = vpop.permute.xlu0 %1745 }
 0x300   : > { %v1422_v7 = vmul.f32 %v2326_v53, %v2782_v26  ;;  %v2790_v56 = vmul.f32 %v1831_v40, %v1746_v61  ;;  %v2806_v39 = vpop.f32.mrb[1].mxu1  ;;  %v1385_v61 = vrot.slane %v1370_v12, %v2527_v34 }
 0x301   : > { %v2243_v53 = vpop.f32.mrb[2].mxu1 }
 0x302   : > { %v2796_v19 = vadd.f32 %v1422_v7, %v1414_v62  ;;  %1894 = vbcast.lane.b32.xlu1 %v1892_v23, 256  ;;  %v1153_v62 = vld [vmem:[#allocation6 + $0x8] sm:$0xff]  ;;  %v1372_v7 = vcombine.high %v1362_v52, %v1362_v52  ;;  %v2814_v23 = vrot.slane %v1325_v35, %v2523_v31 }
 0x303   : > { %1901 = vbcast.lane.b32.xlu0 %v1899_v25, 256  ;;  %v1281_v13 = vpop.permute.xlu1 %1280  ;;  %v1288_v37 = vpop.permute.xlu0 %1287  ;;  %v1448_v12 = vrot.slane %v1153_v62, %v2573_v8  ;;  %v1441_v53 = vrot.slane %v1153_v62, %v2527_v34  ;;  %v1455_v8 = vrot.slane %v1153_v62, %v2582_v15  ;;  %v1476_v15 = vrot.slane %v1153_v62, %v2599_v22  ;;  %v2284_v22 = vld [vmem:[%s3040_s9 + $0x8] sm:$0xff]  }
 0x304   : > { %v1415_v4 = vmul.f32 %v1381_v11, %v1281_v13  ;;  %v1424_v40 = vmul.f32 %v2328_v41, %v2796_v19  ;;  %v2816_v25 = vpop.f32.mrb[3].mxu1  ;;  %v2330_v11 = vpop.eup %2329  ;;  %v1416_v46 = vmul.f32 %v1385_v61, %v1288_v37  ;;  %v1389_v52 = vrot.slane %v1372_v7, %v2527_v34 }
 0x305   : > { %v2827_v35 = vrot.slane %v2814_v23, %v2523_v31 }
 0x306   : > { %v2810_v14 = vadd.f32 %v1424_v40, %v1415_v4  ;;  %1049 = vbcast.lane.b32.xlu1 %v1047_v29, 256  ;;  %v2332_v40 = vpop.eup %2331 }
 0x307   : > { %1056 = vbcast.lane.b32.xlu0 %v1054_v9, 256  ;;  %v1022_v41 = vpop.permute.xlu1 %1021  ;;  %v1015_v13 = vpop.permute.xlu0 %1014  ;;  %v1393_v7 = vrot.slane %v2827_v35, %v2527_v34 }
 0x308   : > { %v1426_v36 = vmul.f32 %v2330_v11, %v2810_v14  ;;  %v2334_v11 = vpop.eup %2333 }
 0x30a   : > { %v2822_v4 = vadd.f32 %v1426_v36, %v1416_v46  ;;  %1908 = vbcast.lane.b32.xlu1 %v1906_v32, 256 }
 0x30b   : > { %1450 = vbcast.lane.b32.xlu0 %v1448_v12, 256  ;;  %v1295_v29 = vpop.permute.xlu1 %1294  ;;  %v1302_v61 = vpop.permute.xlu0 %1301  ;;  %v1469_v12 = vrot.slane %v1153_v62, %v2596_v21  ;;  %v2283_v21 = vld [vmem:[%s3040_s9] sm:$0xff]  }
 0x30c   : > { %v1417_v37 = vmul.f32 %v1389_v52, %v1295_v29  ;;  %v1428_v9 = vmul.f32 %v2332_v40, %v2822_v4  ;;  %v1418_v36 = vmul.f32 %v1393_v7, %v1302_v61  ;;  %v1462_v52 = vrot.slane %v1153_v62, %v2585_v16  ;;  %2252 = vmatprep.subr.bf16.mxu1 %v2283_v21 }
 0x30d   : > { %v1483_v29 = vrot.slane %v1153_v62, %v2604_v24  ;;  %v1920_v16 = vrot.slane %v2700_v10, %v2614_v30  ;;  %2253 = vmatpush3.bf16.msra.mxu1 %v2283_v21  ;;  %v1059_v7 = vmul.f32 %v1015_v13, %v2685_v28 }
 0x30e   : > { %v2832_v46 = vadd.f32 %v1428_v9, %v1417_v37  ;;  %1443 = vbcast.lane.b32.xlu1 %v1441_v53, 256  ;;  %v1490_v37 = vrot.slane %v1153_v62, %v2614_v30  ;;  %v1913_v9 = vrot.slane %v2700_v10, %v2604_v24  ;;  %2254 = vmatprep.subr.bf16.mxu1 %v2284_v22 }
 0x30f   : > { %1457 = vbcast.lane.b32.xlu0 %v1455_v8, 256  ;;  %v1171_v24 = vcombine.high %v2721_v48, %v2721_v48  ;;  %v1201_v10 = vcombine.high %v2743_v20, %v2743_v20 }
 0x310   : > { %v1430_v32 = vmul.f32 %v2334_v11, %v2832_v46  ;;  %v1058_v11 = vmul.f32 %v2787_v54, %v2673_v3  ;;  %v1341_v3 = vcombine.high %v2814_v23, %v2814_v23  ;;  %v1371_v23 = vcombine.high %v2827_v35, %v2827_v35 }
 0x311   : > { %2255 = vmatpush3.bf16.msra.mxu1 %v2284_v22  ;;  %v1199_v62 = vrot.slane %v1171_v24, %v2523_v31  ;;  %v1231_v61 = vrot.slane %v1201_v10, %v2527_v34 }
 0x312   : > { %v2839_v40 = vadd.f32 %v1430_v32, %v1418_v36  ;;  %1471 = vbcast.lane.b32.xlu1 %v1469_v12, 256  ;;  %v1060_v12 = vmul.f32 %v1022_v41, %v2697_v60  ;;  %v1066_v20 = vsel %vm382_vm0, %v1058_v11, 0.0  ;;  %v1369_v60 = vrot.slane %v1341_v3, %v2523_v31 }
 0x313   : > { %1464 = vbcast.lane.b32.xlu0 %v1462_v52, 256  ;;  %v1227_v30 = vrot.slane %v1199_v62, %v2527_v34  ;;  %v1203_v8 = vcombine.high %v1199_v62, %v1199_v62  ;;  %v1250_v48 = vmul.f32 %v1231_v61, %v2533_v6  ;;  %v1073_v52 = vsel %vm382_vm0, %v1059_v7, 0.0 }
 0x314   : > { %v1080_v28 = vsel %vm382_vm0, %v1060_v12, 0.0  ;;  %v1074_v13 = vrot.slane %v1073_v52, 4  ;;  %v1067_v54 = vrot.slane %v1066_v20, 4  ;;  %v1373_v61 = vcombine.high %v1369_v60, %v1369_v60 }
 0x315   : > { %v1249_v53 = vmul.f32 %v1227_v30, %v2533_v6  ;;  %v1235_v32 = vrot.slane %v1203_v8, %v2527_v34  ;;  %v1397_v30 = vrot.slane %v1369_v60, %v2527_v34  ;;  %v1684_v31 = vmul.f32 1.442695, %v2544_v49 }
 0x316   : > { %1478 = vbcast.lane.b32.xlu1 %v1476_v15, 256  ;;  %v1264_v15 = vmul.f32 1.442695, %v1250_v48  ;;  %v1068_v21 = vadd.f32 %v1067_v54, %v1066_v20  ;;  %v1803_v49 = vcombine.high %v2734_v1, %v2734_v1 }
 0x317   : > { %1485 = vbcast.lane.b32.xlu0 %v1483_v29, 256  ;;  %v1262_v36 = vmul.f32 1.442695, %v1249_v53  ;;  %v1251_v29 = vmul.f32 %v1235_v32, %v2533_v6  ;;  %v1682_v6 = vmul.f32 1.442695, %v2537_v38 }
 0x318   : > { %v1069_v8 = vrot.slane %v1068_v21, 2  ;;  %v1686_v38 = vmul.f32 1.442695, %v2547_v51 }
 0x319   : > { %2335 = vpow2.f32 %v1262_v36 }
 0x31a   : > { %1492 = vbcast.lane.b32.xlu1 %v1490_v37, 256  ;;  %v1081_v37 = vrot.slane %v1080_v28, 4  ;;  %2337 = vpow2.f32 %v1264_v15  ;;  %v1405_v15 = vrot.slane %v1373_v61, %v2527_v34 }
 0x31b   : > { %1915 = vbcast.lane.b32.xlu0 %v1913_v9, 256  ;;  %v1266_v9 = vmul.f32 1.442695, %v1251_v29  ;;  %v1688_v29 = vmul.f32 1.442695, %v2552_v55 }
 0x31c   : > { %v1082_v24 = vadd.f32 %v1081_v37, %v1080_v28  ;;  %v1070_v28 = vadd.f32 %v1069_v8, %v1068_v21  ;;  %v1692_v55 = vmul.f32 1.442695, %v2562_v63 }
 0x31d   : > { %2339 = vpow2.f32 %v1266_v9 }
 0x31e   : > { %1922 = vbcast.lane.b32.xlu1 %v1920_v16, 256  ;;  %v1075_v16 = vadd.f32 %v1074_v13, %v1073_v52  ;;  %v1083_v48 = vrot.slane %v1082_v24, 2  ;;  %2341 = vpow2.f32 %v1682_v6  ;;  %v1401_v52 = vrot.slane %v1371_v23, %v2527_v34 }
 0x31f   : > { %2343 = vpow2.f32 %v1684_v31 }
 0x320   : > { %v1076_v62 = vrot.slane %v1075_v16, 2  ;;  %v1084_v37 = vadd.f32 %v1083_v48, %v1082_v24  ;;  %2345 = vpow2.f32 %v1686_v38  ;;  %v1071_v24 = vrot.slane %v1070_v28, 1 }
 0x321   : > { %2347 = vpow2.f32 %v1688_v29 }
 0x322   : > { %v1077_v32 = vadd.f32 %v1076_v62, %v1075_v16  ;;  %v1690_v16 = vmul.f32 1.442695, %v2557_v59  ;;  %v1085_v61 = vrot.slane %v1084_v37, 1  ;;  %v1072_v38 = vadd.f32 %v1071_v24, %v1070_v28 }
 0x323   : > { %v2336_v10 = vpop.eup %2335 }
 0x324   : > { %v1432_v11 = vmul.f32 %v2336_v10, %v2839_v40  ;;  %v2338_v35 = vpop.eup %2337  ;;  %v1078_v60 = vrot.slane %v1077_v32, 1  ;;  %2349 = vpow2.f32 %v1690_v16  ;;  %v1086_v29 = vadd.f32 %v1085_v61, %v1084_v37 }
 0x325   : > { %2351 = vpow2.f32 %v1692_v55  ;;  %v2204_v16 = vmul.f32 -1.442695, %v2816_v25  ;;  %v2929_v61 = vmul.f32 -1.442695, %v2801_v33 }
 0x326   : > { %v1079_v8 = vadd.f32 %v1078_v60, %v1077_v32 }
 0x327   : > { %v2340_v21 = vpop.eup %2339 }
 0x360   : > { %v2875_v41 = vpop.permute.xlu1 %1873 }
 0x361   : > { %v2877_v22 = vpop.permute.xlu0 %1880 }
 0x364   : > { %v1309_v53 = vpop.permute.xlu1 %1308 }
 0x365   : > { %v1419_v7 = vmul.f32 %v1397_v30, %v1309_v53  ;;  %v1316_v36 = vpop.permute.xlu0 %1315 }
 0x366   : > { %v1420_v13 = vmul.f32 %v1401_v52, %v1316_v36 }
 0x367   : > { %v2886_v12 = vadd.f32 %v1432_v11, %v1419_v7  ;;  %v2342_v11 = vpop.eup %2341 }
 0x368   : > { %v1029_v20 = vpop.permute.xlu1 %1028  ;;  %v2344_v32 = vpop.eup %2343 }
 0x369   : > { %v1434_v3 = vmul.f32 %v2338_v35, %v2886_v12  ;;  %v1061_v51 = vmul.f32 %v1029_v20, %v2715_v27  ;;  %v1036_v54 = vpop.permute.xlu0 %1035  ;;  %v1694_v27 = vmul.f32 1.442695, %v2565_v0  ;;  %v2909_v0 = vrot.slane %v1803_v49, %v2527_v34 }
 0x36a   : > { %v1062_v9 = vmul.f32 %v1036_v54, %v2730_v58  ;;  %v2346_v54 = vpop.eup %2345 }
 0x36b   : > { %v2897_v6 = vadd.f32 %v1434_v3, %v1420_v13  ;;  %v1087_v1 = vsel %vm382_vm0, %v1061_v51, 0.0  ;;  %2353 = vpow2.f32 %v1694_v27  ;;  %v1131_v51 = vsel %vm1130_vm6, %v1079_v8, %v1072_v38 }
 0x36c   : > { %v1088_v62 = vrot.slane %v1087_v1, 4  ;;  %v1094_v30 = vsel %vm382_vm0, %v1062_v9, 0.0  ;;  %v1323_v23 = vpop.permute.xlu1 %1322  ;;  %v2203_v9 = vmul.f32 -1.442695, %v2806_v39 }
 0x36d   : > { %v1095_v58 = vrot.slane %v1094_v30, 4  ;;  %v1421_v10 = vmul.f32 %v1405_v15, %v1323_v23  ;;  %v1436_v59 = vmul.f32 %v2340_v21, %v2897_v6  ;;  %v2904_v53 = vpop.permute.xlu0 %1752  ;;  %v1696_v15 = vmul.f32 1.442695, %v2569_v2 }
 0x36e   : > { %v1089_v31 = vadd.f32 %v1088_v62, %v1087_v1  ;;  %v2348_v62 = vpop.eup %2347 }
 0x36f   : > { %v1096_v63 = vadd.f32 %v1095_v58, %v1094_v30  ;;  %v2906_v7 = vadd.f32 %v1436_v59, %v1421_v10  ;;  %2355 = vpow2.f32 %v1696_v15  ;;  %v2350_v10 = vpop.eup %2349 }
 0x370   : > { %v1090_v36 = vrot.slane %v1089_v31, 2  ;;  %v1888_v48 = vpop.permute.xlu1 %1887  ;;  %2357 = vpow2.f32 %v2203_v9  ;;  %v2352_v8 = vpop.eup %2351 }
 0x371   : > { %v1097_v52 = vrot.slane %v1096_v63, 2  ;;  %v1852_v35 = vmul.f32 %v2342_v11, %v2906_v7  ;;  %v1043_v20 = vpop.permute.xlu0 %1042  ;;  %2359 = vpow2.f32 %v2204_v16 }
 0x372   : > { %v1091_v13 = vadd.f32 %v1090_v36, %v1089_v31  ;;  %v1063_v3 = vmul.f32 %v1043_v20, %v2753_v47  ;;  %2361 = vpow2.f32 %v2929_v61  ;;  %v1851_v61 = vmul.f32 %v2909_v0, %v2904_v53 }
 0x373   : > { %v1098_v34 = vadd.f32 %v1097_v52, %v1096_v63  ;;  %v1853_v49 = vadd.f32 %v1852_v35, %v2682_v50  ;;  %v1133_v50 = vsel %vm1132_vm7, %v1086_v29, %v1131_v51 }
 0x374   : > { %v1092_v28 = vrot.slane %v1091_v13, 1  ;;  %v1101_v2 = vsel %vm382_vm0, %v1063_v3, 0.0  ;;  %v2919_v60 = vpop.permute.xlu1 %1894 }
 0x375   : > { %v1099_v37 = vrot.slane %v1098_v34, 1  ;;  %v1924_v1 = vmul.f32 %v2875_v41, %v1853_v49  ;;  %v1854_v47 = vmul.f32 %v2344_v32, %v1853_v49  ;;  %v1102_v55 = vrot.slane %v1101_v2, 4  ;;  %v2922_v21 = vpop.permute.xlu0 %1901  ;;  %v2932_v52 = vpop.eup %2353 }
 0x376   : > { %v1093_v30 = vadd.f32 %v1092_v28, %v1091_v13 }
 0x377   : > { %v1100_v23 = vadd.f32 %v1099_v37, %v1098_v34  ;;  %v1932_v27 = vsel %vm382_vm0, %v1924_v1, 0.0  ;;  %v1855_v24 = vadd.f32 %v1854_v47, %v2705_v17  ;;  %v1103_v58 = vadd.f32 %v1102_v55, %v1101_v2 }
 0x378   : > { %v1135_v59 = vsel %vm1134_vm8, %v1093_v30, %v1133_v50  ;;  %v1933_v41 = vrot.slane %v1932_v27, 4  ;;  %v1050_v31 = vpop.permute.xlu1 %1049 }
 0x379   : > { %v1856_v63 = vmul.f32 %v2346_v54, %v1855_v24  ;;  %v1925_v11 = vmul.f32 %v2877_v22, %v1855_v24  ;;  %v1104_v36 = vrot.slane %v1103_v58, 2  ;;  %v1057_v38 = vpop.permute.xlu0 %1056  ;;  %v1064_v35 = vmul.f32 %v1050_v31, %v2773_v42  ;;  %v2944_v50 = vpop.eup %2355 }
 0x37a   : > { %v1934_v17 = vadd.f32 %v1933_v41, %v1932_v27  ;;  %v1065_v20 = vmul.f32 %v1057_v38, %v2782_v26  ;;  %v1137_v15 = vsel %vm1136_vm9, %v1100_v23, %v1135_v59 }
 0x37b   : > { %v1857_v32 = vadd.f32 %v1856_v63, %v2707_v18  ;;  %v1939_v29 = vsel %vm382_vm0, %v1925_v11, 0.0  ;;  %v1105_v13 = vadd.f32 %v1104_v36, %v1103_v58  ;;  %v1108_v22 = vsel %vm382_vm0, %v1064_v35, 0.0 }
 0x37c   : > { %v1935_v3 = vrot.slane %v1934_v17, 2  ;;  %v1940_v51 = vrot.slane %v1939_v29, 4  ;;  %v1115_v34 = vsel %vm382_vm0, %v1065_v20, 0.0  ;;  %v1909_v49 = vpop.permute.xlu1 %1908  ;;  %v1109_v42 = vrot.slane %v1108_v22, 4 }
 0x37d   : > { %v1926_v54 = vmul.f32 %v1888_v48, %v1857_v32  ;;  %v1106_v28 = vrot.slane %v1105_v13, 1  ;;  %v1858_v9 = vmul.f32 %v2348_v62, %v1857_v32  ;;  %v1451_v16 = vpop.permute.xlu0 %1450  ;;  %v1116_v37 = vrot.slane %v1115_v34, 4 }
 0x37e   : > { %v1936_v26 = vadd.f32 %v1935_v3, %v1934_v17  ;;  %v1941_v2 = vadd.f32 %v1940_v51, %v1939_v29  ;;  %v1495_v18 = vmul.f32 %v1451_v16, %v2810_v14  ;;  %v1110_v30 = vadd.f32 %v1109_v42, %v1108_v22  ;;  %v2948_v14 = vpop.eup %2357 }
 0x37f   : > { %v1946_v1 = vsel %vm382_vm0, %v1926_v54, 0.0  ;;  %v1107_v47 = vadd.f32 %v1106_v28, %v1105_v13  ;;  %v1859_v55 = vadd.f32 %v1858_v9, %v2746_v43  ;;  %v1117_v62 = vadd.f32 %v1116_v37, %v1115_v34  ;;  %v2950_v38 = vpop.eup %2359 }
 0x380   : > { %v1937_v23 = vrot.slane %v1936_v26, 1  ;;  %v1942_v48 = vrot.slane %v1941_v2, 2  ;;  %v1947_v27 = vrot.slane %v1946_v1, 4  ;;  %v1111_v41 = vrot.slane %v1110_v30, 2  ;;  %v1444_v36 = vpop.permute.xlu1 %1443 }
 0x381   : > { %v1139_v24 = vsel %vm1138_vm10, %v1107_v47, %v1137_v15  ;;  %v1927_v58 = vmul.f32 %v2919_v60, %v1859_v55  ;;  %v1860_v59 = vmul.f32 %v2350_v10, %v1859_v55  ;;  %v1118_v43 = vrot.slane %v1117_v62, 2  ;;  %v1458_v13 = vpop.permute.xlu0 %1457 }
 0x382   : > { %v1938_v31 = vadd.f32 %v1937_v23, %v1936_v26  ;;  %v1943_v63 = vadd.f32 %v1942_v48, %v1941_v2  ;;  %v1948_v11 = vadd.f32 %v1947_v27, %v1946_v1  ;;  %v1112_v20 = vadd.f32 %v1111_v41, %v1110_v30 }
 0x383   : > { %v1953_v17 = vsel %vm382_vm0, %v1927_v58, 0.0  ;;  %v1861_v35 = vadd.f32 %v1860_v59, %v2767_v5  ;;  %v1509_v15 = vsel %vm382_vm0, %v1495_v18, 0.0  ;;  %v1119_v29 = vadd.f32 %v1118_v43, %v1117_v62 }
 0x384   : > { %v1944_v32 = vrot.slane %v1943_v63, 1  ;;  %v1949_v60 = vrot.slane %v1948_v11, 2  ;;  %v1954_v10 = vrot.slane %v1953_v17, 4  ;;  %v1113_v51 = vrot.slane %v1112_v20, 1 }
 0x385   : > { %v1928_v3 = vmul.f32 %v2922_v21, %v1861_v35  ;;  %v1862_v22 = vmul.f32 %v2352_v8, %v1861_v35  ;;  %v1510_v34 = vrot.slane %v1509_v15, 4  ;;  %v1120_v42 = vrot.slane %v1119_v29, 1  ;;  %v1472_v21 = vpop.permute.xlu1 %1471 }
 0x386   : > { %v1945_v54 = vadd.f32 %v1944_v32, %v1943_v63  ;;  %v1950_v28 = vadd.f32 %v1949_v60, %v1948_v11  ;;  %v1955_v9 = vadd.f32 %v1954_v10, %v1953_v17  ;;  %v1114_v5 = vadd.f32 %v1113_v51, %v1112_v20 }
 0x387   : > { %v1960_v16 = vsel %vm382_vm0, %v1928_v3, 0.0  ;;  %v2958_v26 = vadd.f32 %v1862_v22, %v2765_v57  ;;  %v1511_v2 = vadd.f32 %v1510_v34, %v1509_v15  ;;  %v1121_v55 = vadd.f32 %v1120_v42, %v1119_v29  ;;  %v1465_v57 = vpop.permute.xlu0 %1464 }
 0x388   : > { %v1951_v37 = vrot.slane %v1950_v28, 1  ;;  %v1996_v18 = vsel %vm1130_vm6, %v1945_v54, %v1938_v31  ;;  %v1956_v1 = vrot.slane %v1955_v9, 2  ;;  %v1961_v47 = vrot.slane %v1960_v16, 4 }
 0x389   : > { %v1141_v8 = vsel %vm1140_vm11, %v1114_v5, %v1139_v24  ;;  %v1929_v30 = vmul.f32 %v1909_v49, %v2958_v26  ;;  %v1512_v23 = vrot.slane %v1511_v2, 2  ;;  %v1494_v58 = vmul.f32 %v1444_v36, %v2796_v19  ;;  %v1479_v10 = vpop.permute.xlu1 %1478 }
 0x38a   : > { %v1952_v48 = vadd.f32 %v1951_v37, %v1950_v28  ;;  %v1957_v27 = vadd.f32 %v1956_v1, %v1955_v9  ;;  %v1962_v62 = vadd.f32 %v1961_v47, %v1960_v16  ;;  %v1143_v59 = vsel %vm1142_vm12, %v1121_v55, %v1141_v8 }
 0x38b   : > { %v1967_v41 = vsel %vm382_vm0, %v1929_v30, 0.0  ;;  %v1513_v31 = vadd.f32 %v1512_v23, %v1511_v2  ;;  %v1496_v63 = vmul.f32 %v1458_v13, %v2822_v4  ;;  %1145 = vst.msk [vmem:[#allocation7] sm:$0xff] %vm382_vm0, %v1143_v59  ;;  %v1502_v35 = vsel %vm382_vm0, %v1494_v58, 0.0  ;;  %v1486_v28 = vpop.permute.xlu0 %1485 }
 0x38c   : > { %v1997_v11 = vsel %vm1132_vm7, %v1952_v48, %v1996_v18  ;;  %v1958_v24 = vrot.slane %v1957_v27, 1  ;;  %v1963_v43 = vrot.slane %v1962_v62, 2  ;;  %v1968_v49 = vrot.slane %v1967_v41, 4 }
 0x38d   : > { %v1514_v17 = vrot.slane %v1513_v31, 1  ;;  %v1516_v19 = vsel %vm382_vm0, %v1496_v63, 0.0  ;;  %v1498_v36 = vmul.f32 %v1472_v21, %v2839_v40  ;;  %v1503_v60 = vrot.slane %v1502_v35, 4  ;;  %v1493_v48 = vpop.permute.xlu1 %1492 }
 0x38e   : > { %v1959_v20 = vadd.f32 %v1958_v24, %v1957_v27  ;;  %v1964_v15 = vadd.f32 %v1963_v43, %v1962_v62  ;;  %v1969_v32 = vadd.f32 %v1968_v49, %v1967_v41  ;;  %v1517_v29 = vrot.slane %v1516_v19, 4 }
 0x38f   : > { %v1515_v4 = vadd.f32 %v1514_v17, %v1513_v31  ;;  %v1530_v13 = vsel %vm382_vm0, %v1498_v36, 0.0  ;;  %v1497_v3 = vmul.f32 %v1465_v57, %v2832_v46  ;;  %v1504_v54 = vadd.f32 %v1503_v60, %v1502_v35 }
 0x390   : > { %v1998_v51 = vsel %vm1134_vm8, %v1959_v20, %v1997_v11  ;;  %v1965_v22 = vrot.slane %v1964_v15, 1  ;;  %v1970_v34 = vrot.slane %v1969_v32, 2  ;;  %v1518_v9 = vadd.f32 %v1517_v29, %v1516_v19 }
 0x391   : > { %v1531_v42 = vrot.slane %v1530_v13, 4  ;;  %v1523_v40 = vsel %vm382_vm0, %v1497_v3, 0.0  ;;  %v1499_v16 = vmul.f32 %v1479_v10, %v2886_v12  ;;  %v1505_v37 = vrot.slane %v1504_v54, 2 }
 0x392   : > { %v1966_v5 = vadd.f32 %v1965_v22, %v1964_v15  ;;  %v1971_v2 = vadd.f32 %v1970_v34, %v1969_v32  ;;  %v1524_v18 = vrot.slane %v1523_v40, 4  ;;  %v1519_v1 = vrot.slane %v1518_v9, 2 }
 0x393   : > { %v1532_v47 = vadd.f32 %v1531_v42, %v1530_v13  ;;  %v1537_v46 = vsel %vm382_vm0, %v1499_v16, 0.0  ;;  %v1500_v21 = vmul.f32 %v1486_v28, %v2897_v6  ;;  %v1506_v30 = vadd.f32 %v1505_v37, %v1504_v54  ;;  %v1916_v28 = vpop.permute.xlu0 %1915 }
 0x394   : > { %v1999_v8 = vsel %vm1136_vm9, %v1966_v5, %v1998_v51  ;;  %v1972_v55 = vrot.slane %v1971_v2, 1  ;;  %v1525_v23 = vadd.f32 %v1524_v18, %v1523_v40  ;;  %v1520_v27 = vadd.f32 %v1519_v1, %v1518_v9  ;;  %v1923_v1 = vpop.permute.xlu1 %1922 }
 0x395   : > { %v1533_v62 = vrot.slane %v1532_v47, 2  ;;  %v1538_v58 = vrot.slane %v1537_v46, 4  ;;  %v1544_v12 = vsel %vm382_vm0, %v1500_v21, 0.0  ;;  %v1507_v59 = vrot.slane %v1506_v30, 1 }
 0x396   : > { %v1973_v57 = vadd.f32 %v1972_v55, %v1971_v2  ;;  %v1526_v41 = vrot.slane %v1525_v23, 2  ;;  %v1545_v31 = vrot.slane %v1544_v12, 4  ;;  %v1521_v63 = vrot.slane %v1520_v27, 1 }
 0x397   : > { %v1534_v11 = vadd.f32 %v1533_v62, %v1532_v47  ;;  %v1539_v24 = vadd.f32 %v1538_v58, %v1537_v46  ;;  %v1501_v6 = vmul.f32 %v1493_v48, %v2906_v7  ;;  %v1508_v49 = vadd.f32 %v1507_v59, %v1506_v30  ;;  %v2202_v58 = vld [vmem:[%s3039_s8] ss:$0 sm:$0xff] }
 0x398   : > { %v2983_v43 = vsel %vm1138_vm10, %v1973_v57, %v1999_v8  ;;  %v1527_v17 = vadd.f32 %v1526_v41, %v1525_v23  ;;  %v1546_v35 = vadd.f32 %v1545_v31, %v1544_v12  ;;  %v1522_v19 = vadd.f32 %v1521_v63, %v1520_v27  ;;  %v2362_v23 = vpop.eup %2361  ;;  %v2006_v63 = vld [vmem:[#allocation7] sm:$0xff] }
 0x399   : > { %v1535_v36 = vrot.slane %v1534_v11, 1  ;;  %v1540_v20 = vrot.slane %v1539_v24, 2  ;;  %v1551_v15 = vsel %vm382_vm0, %v1501_v6, 0.0  ;;  %v1566_v32 = vsel %vm1130_vm6, %v1515_v4, %v1508_v49 }
 0x39a   : > { %v1528_v60 = vrot.slane %v1527_v17, 1  ;;  %v1547_v10 = vrot.slane %v1546_v35, 2  ;;  %v1552_v29 = vrot.slane %v1551_v15, 4  ;;  %v1864_v3 = vmul.f32 %v2932_v52, %v2958_v26 }
 0x39b   : > { %v1536_v13 = vadd.f32 %v1535_v36, %v1534_v11  ;;  %v1541_v7 = vadd.f32 %v1540_v20, %v1539_v24  ;;  %v2031_v51 = vadd.f32 1.0, %v2948_v14  ;;  %v2032_v9 = vadd.f32 1.0, %v2950_v38 }
 0x39c   : > { %v1529_v22 = vadd.f32 %v1528_v60, %v1527_v17  ;;  %v1548_v34 = vadd.f32 %v1547_v10, %v1546_v35  ;;  %v1553_v54 = vadd.f32 %v1552_v29, %v1551_v15  ;;  %v1567_v4 = vsel %vm1132_vm7, %v1522_v19, %v1566_v32 }
 0x39d   : > { %v1542_v42 = vrot.slane %v1541_v7, 1  ;;  %v1865_v40 = vadd.f32 %v1864_v3, %v2790_v56  ;;  %2363 = vrcp.f32 %v2031_v51  ;;  %v2033_v59 = vadd.f32 1.0, %v2362_v23 }
 0x39e   : > { %v1568_v16 = vsel %vm1134_vm8, %v1529_v22, %v1567_v4  ;;  %v1549_v5 = vrot.slane %v1548_v34, 1  ;;  %v1554_v52 = vrot.slane %v1553_v54, 2  ;;  %2365 = vrcp.f32 %v2032_v9 }
 0x39f   : > { %v1543_v26 = vadd.f32 %v1542_v42, %v1541_v7  ;;  %v1569_v14 = vsel %vm1136_vm9, %v1536_v13, %v1568_v16  ;;  %v1930_v2 = vmul.f32 %v1916_v28, %v1865_v40  ;;  %v1866_v37 = vmul.f32 %v2944_v50, %v1865_v40 }
 0x3a0   : > { %v1550_v18 = vadd.f32 %v1549_v5, %v1548_v34  ;;  %v1555_v38 = vadd.f32 %v1554_v52, %v1553_v54  ;;  %v2016_v24 = vmul.f32 %v2202_v58, %v2482_v44  ;;  %v2017_v35 = vmul.f32 %v2202_v58, %v2484_v45 }
 0x3a1   : > { %v1570_v47 = vsel %vm1138_vm10, %v1543_v26, %v1569_v14  ;;  %v1974_v56 = vsel %vm382_vm0, %v1930_v2, 0.0  ;;  %v1867_v46 = vadd.f32 %v1866_v37, %v1851_v61  ;;  %2367 = vrcp.f32 %v2033_v59 }
 0x3a2   : > { %v1571_v53 = vsel %vm1140_vm11, %v1550_v18, %v1570_v47  ;;  %v1556_v0 = vrot.slane %v1555_v38, 1  ;;  %v1975_v21 = vrot.slane %v1974_v56, 4  ;;  %v2019_v19 = vadd.f32 %v2016_v24, %v2006_v63 }
 0x3a3   : > { %v1931_v8 = vmul.f32 %v1923_v1, %v1867_v46 }
 0x3a4   : > { %v1557_v55 = vadd.f32 %v1556_v0, %v1555_v38  ;;  %v1976_v30 = vadd.f32 %v1975_v21, %v1974_v56 }
 0x3a5   : > { %v1981_v50 = vsel %vm382_vm0, %v1931_v8, 0.0 }
 0x3a6   : > { %v1572_v48 = vsel %vm1142_vm12, %v1557_v55, %v1571_v53  ;;  %v1977_v27 = vrot.slane %v1976_v30, 2  ;;  %v1982_v62 = vrot.slane %v1981_v50, 4 }
 0x3a7   : > { %1575 = vst.msk [vmem:[#allocation7 + $0x8] sm:$0xff] %vm382_vm0, %v1572_v48  ;;  %v2364_v11 = vpop.eup %2363 }
 0x3a8   : > { %v1978_v12 = vadd.f32 %v1977_v27, %v1976_v30  ;;  %v1983_v57 = vadd.f32 %v1982_v62, %v1981_v50  ;;  %v2366_v6 = vpop.eup %2365  ;;  %v2040_v32 = vmul.f32 %v2364_v11, %v2806_v39 }
 0x3a9   : > { %v2041_v60 = vmul.f32 %v2366_v6, %v2816_v25 }
 0x3aa   : > { %v1979_v41 = vrot.slane %v1978_v12, 1  ;;  %v1984_v31 = vrot.slane %v1983_v57, 2  ;;  %v2043_v44 = vmul.f32 %v2040_v32, %v2019_v19 }
 0x3ab   : > { %v2368_v3 = vpop.eup %2367 }
 0x3ac   : > { %v1980_v49 = vadd.f32 %v1979_v41, %v1978_v12  ;;  %v1985_v17 = vadd.f32 %v1984_v31, %v1983_v57  ;;  %v2042_v39 = vmul.f32 %v2368_v3, %v2801_v33 }
 0x3ae   : > { %v2001_v36 = vsel %vm1140_vm11, %v1980_v49, %v2983_v43  ;;  %v1986_v20 = vrot.slane %v1985_v17, 1  ;;  %v2007_v15 = vld [vmem:[#allocation7 + $0x8] sm:$0xff]  ;;  %v3044_v43 = vld [vmem:[#allocation8_spill] sm:$0xff] }
 0x3af   : > { %v2020_v10 = vadd.f32 %v2017_v35, %v2007_v15  ;;  %v2018_v51 = vmul.f32 %v2202_v58, %v3044_v43 }
 0x3b0   : > { %v1987_v29 = vadd.f32 %v1986_v20, %v1985_v17 }
 0x3b1   : > { %v2044_v13 = vmul.f32 %v2041_v60, %v2020_v10 }
 0x3b2   : > { %v2002_v7 = vsel %vm1142_vm12, %v1987_v29, %v2001_v36 }
 0x3b3   : > { %2005 = vst.msk [vmem:[#allocation7 + $0x10] sm:$0xff] %vm382_vm0, %v2002_v7  ;;  %v2046_v45 = vpack.c.bf16 %v2044_v13, %v2043_v44 }
 0x3b5   : > { %2256 = vmatprep.mubr.msk.bf16.mxu1 %vm382_vm0, %v2046_v45 }
 0x3ba   : > { %v2008_v22 = vld [vmem:[#allocation7 + $0x10] sm:$0x1] }
 0x3bb   : > { %v2021_v34 = vadd.f32 %v2018_v51, %v2008_v22 }
 0x3bd   : > { %v2045_v25 = vmul.f32 %v2042_v39, %v2021_v34 }
 0x3bf   : > { %v2047_v54 = vpack.c.bf16 %v2045_v25, %v2045_v25 }
 0x3c1   : > { %2257 = vmatmul.mubr.msk.bf16.vlgmr.msra.gmra.mrb[4].mxu1 %vm382_vm0, %v2047_v54 }
 0x494   : > { %v2258_v28 = vpop.f32.mrb[4].mxu1 }
 0x495   : > { %2120 = vst.msk [vmem:[%s359_s16 + $0x10] sm:$0x1] %vm501_vm1, %v2258_v28  ;;  %v2104_v9 = vpop.f32.mrb[5].mxu1 }
 0x496   : > { %2118 = vst.msk [vmem:[%s359_s16] sm:$0xff] %vm382_vm0, %v2104_v9  ;;  %v2259_v4 = vpop.f32.mrb[6].mxu1 }
 0x497   : > { %v2107_v42 = vpop.f32.mrb[7].mxu1 }
 0x498   : > { %2119 = vst.msk [vmem:[%s359_s16 + $0x8] sm:$0xff] %vm382_vm0, %v2107_v42 }
 0x499 PF: > { %s20_s13 = sadd.s32 1, %s2375_s13  }
 0x49a   : > { %p17_p4 = scmp.ge.s32.totalorder %s20_s13, 4  }
 0x49c   :  { %19 = sbr.rel (!%p17_p4) target bundleno = 1 (0x1), region = 100 }

// kernel: _lambda_.17
= control target key start
LH: loop header
LB: loop body
LE: loop exit
PB: predicated region body
PF: predicated region fallthrough
CT: control target
= control target key end

     0   :  { %s2438_s13 = smov 0   ;;  %s3089_s0 = inlined_call_operand.vmem [shape: f32[2,17,32], index: 0, kind: input, shape index: {}]   ;;  %s3090_s1 = inlined_call_operand.vmem [shape: bf16[32,32], index: 1, kind: input, shape index: {}]   ;;  %s3091_s2 = inlined_call_operand.vmem [shape: bf16[32,32], index: 2, kind: input, shape index: {}]   ;;  %s3092_s3 = inlined_call_operand.vmem [shape: f32[2,32], index: 3, kind: input, shape index: {}]   ;;  %s3093_s4 = inlined_call_operand.vmem [shape: f32[1,32], index: 4, kind: input, shape index: {}]   ;;  %s3094_s5 = inlined_call_operand.vmem [shape: bf16[32,48], index: 5, kind: input, shape index: {}]   ;;  %s3095_s6 = inlined_call_operand.vmem [shape: f32[1,32], index: 6, kind: input, shape index: {}]   ;;  %s3096_s7 = inlined_call_operand.vmem [shape: f32[8,32], index: 7, kind: input, shape index: {}]   ;;  %s3097_s8 = inlined_call_operand.vmem [shape: f32[1,32], index: 8, kind: input, shape index: {}]   ;;  %s3098_s9 = inlined_call_operand.vmem [shape: bf16[32,32], index: 9, kind: input, shape index: {}]   ;;  %s3099_s10 = inlined_call_operand.vmem [shape: f32[2,17,32], index: 10, kind: output, shape index: {}]  }
   0x1 LB: > { %s2176_s14 = sadd.s32 4294967295, %s2377_s13   ;;  %p2180_p0 = scmp.ge.s32.totalorder %s2377_s13, 1  ;;  %s2377_s13 = sphi %s2438_s13, %s20_s13  }
   0x2   : > { %p312_p1 = scmp.lt.s32.totalorder %s2377_s13, 3 }
   0x4   : > { %p313_p2 = pnand %p2180_p0, %p312_p1 }
   0x5   : > { %v2273_v0 = vld [vmem:[%s3090_s1] sm:$0xff] (!%p313_p2)   ;;  %p350_p3 = scmp.lt.s32.totalorder (!%p313_p2), %s2176_s14, 1  ;;  %v2274_v1 = vld [vmem:[%s3090_s1 + $0x8] sm:$0xff] (!%p313_p2)   ;;  %vm382_vm0 = vcmask (!%p313_p2), 261120   ;;  %vm501_vm1 = vcmask (!%p313_p2), 253952   ;;  %v2379_v7 = vmov (!%p313_p2), 0.0  }
   0x6   : > { %316 = sbr.rel (%p313_p2) target bundleno = 1175 (0x497), region = 60  ;;  %2228 = vmatprep.subr.bf16.mxu0 (!%p313_p2), %v2273_v0  ;;  %506 = vst.msk [vmem:[#allocation2 + $0x12] sm:$0x1] (!%p313_p2), %vm501_vm1, %v2379_v7  ;;  %v2275_v8 = vld [vmem:[%s3094_s5] sm:$0xff] (!%p313_p2)   ;;  %v2276_v9 = vld [vmem:[%s3094_s5 + $0x8] sm:$0xff] (!%p313_p2)   ;;  %vm707_vm2 = vcmask (!%p313_p2), 260096  }
   0x7   : > { %2229 = vmatpush3.bf16.msra.mxu0 (!%p313_p2), %v2273_v0  ;;  %v2191_v11 = vld [vmem:[%s3092_s3] ss:$0 sm:$0xff] (!%p313_p2)  ;;  %v2192_v12 = vld [vmem:[%s3092_s3 + $0x1] ss:$0 sm:$0xff] (!%p313_p2)  ;;  %708 = vst.msk [vmem:[#allocation3 + $0x11] sm:$0x7f] (!%p313_p2), %vm707_vm2, %v2379_v7 }
   0x8   : > { %2230 = vmatprep.subr.bf16.mxu0 (!%p313_p2), %v2274_v1  ;;  %v2193_v19 = vld [vmem:[%s3093_s4] ss:$0 sm:$0xff] (!%p313_p2)  ;;  %709 = vst.msk [vmem:[#allocation4 + $0x11] sm:$0x7f] (!%p313_p2), %vm707_vm2, %v2379_v7  ;;  %vm710_vm3 = vcmask (!%p313_p2), 63488   ;;  %s2380_s17 = smov (!%p313_p2), 96  }
   0x9   : > { %711 = vst.msk [vmem:[#allocation5 + $0x11] sm:$0x7f] (!%p313_p2), %vm710_vm3, %v2379_v7  ;;  %712 = vst.msk [vmem:[#allocation6 + $0x11] sm:$0x7f] (!%p313_p2), %vm710_vm3, %v2379_v7  ;;  %v2201_v49 = vld [vmem:[%s3095_s6] ss:$0 sm:$0xff] (!%p313_p2) }
   0xa   : > { %vm693_vm4 = vcmask (!%p313_p2), 57344   ;;  %vm690_vm5 = vcmask (!%p313_p2), 64512   ;;  %s2382_s25 = smov (!%p313_p2), 88   ;;  %vm1134_vm6 = vcmask (!%p313_p2), 1041409   ;;  %vm1136_vm7 = vcmask (!%p313_p2), 1042434  }
   0xb   : > { %2231 = vmatpush3.bf16.msra.mxu0 (!%p313_p2), %v2274_v1  ;;  %vm1138_vm8 = vcmask (!%p313_p2), 1043459   ;;  %vm1140_vm9 = vcmask (!%p313_p2), 1044484   ;;  %vm1142_vm10 = vcmask (!%p313_p2), 1045509   ;;  %vm1144_vm11 = vcmask (!%p313_p2), 1046534  }
   0xc   : > { %2244 = vmatprep.subr.bf16.mxu0 (!%p313_p2), %v2275_v8  ;;  %vm1146_vm12 = vcmask (!%p313_p2), 1047559  }
   0xd   : > { %s3101_s14 = smov (!%p350_p3, %s2176_s14), 1  ;;  %v509_v10 = vld [vmem:[#allocation2 + $0x12] sm:$0x1] }
   0xe   : > { %s2260_s19 = smul.u32 24, %s3101_s14  ;;  %v517_v13 = vmul.f32 %v2191_v11, %v509_v10 }
  0x10   : > { %s354_s22 = scalar_lea.vmem %s3089_s0, %s2260_s19  ;;  %s359_s16 = scalar_lea.vmem %s3099_s10, %s2260_s19 }
  0x11   : > { %v361_v2 = vld [vmem:[%s354_s22] sm:$0xff]  ;;  %v362_v3 = vld [vmem:[%s354_s22 + $0x8] sm:$0xff]  ;;  %v363_v4 = vld [vmem:[%s354_s22 + $0x10] sm:$0x1] }
  0x12   : > { %v364_v5 = vpack.c.bf16 %v362_v3, %v361_v2  ;;  %v2460_v6 = vpack.c.bf16 %v363_v4, %v363_v4 }
  0x14   : > { %2232 = vmatprep.mubr.msk.bf16.mxu0 %vm382_vm0, %v364_v5  ;;  %2240 = vmatprep.mubr.msk.bf16.mxu1 %vm382_vm0, %v364_v5 }
  0x15   : > { %2233 = vmatmul.mubr.msk.bf16.vlgmr.msra.gmra.mrb[0].mxu0 %vm382_vm0, %v2460_v6 }
  0x16   : > { %2245 = vmatpush3.bf16.msra.mxu0 %v2275_v8 }
  0x17   : > { %2246 = vmatprep.subr.bf16.mxu0 %v2276_v9 }
  0x1a   : > { %2247 = vmatpush3.bf16.msra.mxu0 %v2276_v9 }
  0xe8   : > { %v2234_v14 = vpop.f32.mrb[0].mxu0 }
  0xe9   : > { %505 = vst.msk [vmem:[#allocation2 + $0x11] sm:$0x1] %vm501_vm1, %v2234_v14  ;;  %v525_v15 = vmul.f32 %v2234_v14, %v2192_v12  ;;  %v423_v16 = vpop.f32.mrb[1].mxu0 }
  0xea   : > { %503 = vst.msk [vmem:[#allocation2 + $0x1] sm:$0xff] %vm382_vm0, %v423_v16  ;;  %v2235_v17 = vpop.f32.mrb[2].mxu0  ;;  %v523_v25 = vmul.f32 %v2192_v12, %v423_v16 }
  0xeb   : > { %v528_v18 = vadd.f32 %v525_v15, %v517_v13  ;;  %v426_v20 = vpop.f32.mrb[3].mxu0 }
  0xec   : > { %504 = vst.msk [vmem:[#allocation2 + $0x9] sm:$0xff] %vm382_vm0, %v426_v20  ;;  %v524_v27 = vmul.f32 %v2192_v12, %v426_v20 }
  0xed   : > { %v538_v21 = vadd.f32 %v2193_v19, %v528_v18 }
  0xef   : > { %v2196_v22 = vmul.f32 -1.442695, %v538_v21 }
  0xf1   : > { %2287 = vpow2.f32 %v2196_v22 }
  0xf3   : > { %v508_v23 = vld [vmem:[#allocation2 + $0xa] sm:$0xff]  ;;  %v507_v24 = vld [vmem:[#allocation2 + $0x2] sm:$0xff] }
  0xf4   : > { %v516_v26 = vmul.f32 %v2191_v11, %v508_v23  ;;  %v515_v28 = vmul.f32 %v2191_v11, %v507_v24  ;;  %v2278_v23 = vld [vmem:[%s3091_s2] sm:$0xff]  }
  0xf5   : > { %2236 = vmatprep.subr.bf16.mxu1 %v2278_v23 }
  0xf6   : > { %v527_v29 = vadd.f32 %v524_v27, %v516_v26  ;;  %v526_v30 = vadd.f32 %v523_v25, %v515_v28  ;;  %2237 = vmatpush3.bf16.msra.mxu1 %v2278_v23  ;;  %v2279_v25 = vld [vmem:[%s3091_s2 + $0x8] sm:$0xff]   ;;  %v2381_v26 = vmov 1966171168   ;;  %v727_v28 = vlaneseq }
  0xf7   : > { %2238 = vmatprep.subr.bf16.mxu1 %v2279_v25  ;;  %v725_v27 = vunpack.c.l.s4 %v2381_v26 }
  0xf8   : > { %v537_v31 = vadd.f32 %v2193_v19, %v527_v29  ;;  %v536_v32 = vadd.f32 %v2193_v19, %v526_v30  ;;  %v2534_v30 = vshrl.u32 %v727_v28, 7 }
  0xf9   : > { %v726_v29 = vunpack.c.0.s8 %v725_v27 }
  0xfa   : > { %v2195_v33 = vmul.f32 -1.442695, %v537_v31  ;;  %v2194_v34 = vmul.f32 -1.442695, %v536_v32  ;;  %2239 = vmatpush3.bf16.msra.mxu1 %v2279_v25  ;;  %v2616_v23 = vsub.s32 1, %v2534_v30 }
  0xfb   : > { %v2288_v35 = vpop.eup %2287 }
  0xfc   : > { %2289 = vpow2.f32 %v2195_v33  ;;  %v550_v36 = vadd.f32 1.0, %v2288_v35  ;;  %v2537_v33 = vsub.s32 %v726_v29, %v2534_v30 }
  0xfd   : > { %2291 = vpow2.f32 %v2194_v34  ;;  %2241 = vmatmul.mubr.msk.bf16.vlgmr.msra.gmra.mrb[0].mxu1 %vm382_vm0, %v2460_v6  ;;  %v2543_v6 = vsub.s32 0, %v2534_v30 }
  0xfe   : > { %2293 = vrcp.f32 %v550_v36 }
 0x106   : > { %v2290_v37 = vpop.eup %2289 }
 0x107   : > { %v2292_v38 = vpop.eup %2291  ;;  %v549_v39 = vadd.f32 1.0, %v2290_v37 }
 0x108   : > { %v548_v40 = vadd.f32 1.0, %v2292_v38  ;;  %v2294_v41 = vpop.eup %2293 }
 0x109   : > { %2295 = vrcp.f32 %v549_v39  ;;  %v2486_v44 = vmul.f32 %v2294_v41, %v538_v21 }
 0x10a   : > { %2297 = vrcp.f32 %v548_v40 }
 0x10b   : > { %v561_v48 = vpack.c.bf16 %v2486_v44, %v2486_v44 }
 0x113   : > { %v2296_v42 = vpop.eup %2295 }
 0x114   : > { %v2298_v43 = vpop.eup %2297  ;;  %v2488_v45 = vmul.f32 %v2296_v42, %v537_v31 }
 0x115   : > { %v2490_v46 = vmul.f32 %v2298_v43, %v536_v32  ;;  %v2550_v43 = vld [vmem:[%s3096_s7] sm:$0xff] }
 0x117   : > { %v560_v47 = vpack.c.bf16 %v2488_v45, %v2490_v46 }
 0x119   : > { %2248 = vmatprep.mubr.msk.bf16.mxu0 %vm382_vm0, %v560_v47 }
 0x11a   : > { %2249 = vmatmul.mubr.msk.bf16.vlgmr.msra.gmra.mrb[4].mxu0 %vm382_vm0, %v561_v48 }
 0x1ed   : > { %v2505_v50 = vpop.f32.mrb[4].mxu0 }
 0x1ee   : > { %v641_v51 = vadd.f32 %v2505_v50, %v2201_v49  ;;  %685 = vrot.lane.b32.xlu0 %v2505_v50, %s2380_s17  ;;  %v2509_v52 = vpop.f32.mrb[5].mxu0 }
 0x1ef   : > { %v639_v53 = vadd.f32 %v2201_v49, %v2509_v52  ;;  %681 = vrot.lane.b32.xlu1 %v2509_v52, %s2380_s17  ;;  %v2251_v54 = vpop.f32.mrb[6].mxu0 }
 0x1f0   : > { %v647_v55 = vand.u32 2147483647, %v641_v51  ;;  %v2513_v56 = vpop.f32.mrb[7].mxu0  ;;  %v644_v11 = vmax.f32 %v641_v51, 0.0 }
 0x1f1   : > { %v645_v57 = vand.u32 2147483647, %v639_v53  ;;  %v640_v58 = vadd.f32 %v2201_v49, %v2513_v56  ;;  %v642_v13 = vmax.f32 %v639_v53, 0.0 }
 0x1f2   : > { %v650_v59 = vsub.f32 0.0, %v647_v55  ;;  %683 = vrot.lane.b32.xlu0 %v2513_v56, %s2380_s17 }
 0x1f3   : > { %v648_v60 = vsub.f32 0.0, %v645_v57  ;;  %v646_v61 = vand.u32 2147483647, %v640_v58  ;;  %v643_v18 = vmax.f32 %v640_v58, 0.0 }
 0x1f4   : > { %v655_v62 = vmul.f32 1.442695, %v650_v59 }
 0x1f5   : > { %v651_v63 = vmul.f32 1.442695, %v648_v60  ;;  %v649_v0 = vsub.f32 0.0, %v646_v61 }
 0x1f6   : > { %2299 = vpow2.f32 %v655_v62 }
 0x1f7   : > { %2301 = vpow2.f32 %v651_v63  ;;  %v653_v1 = vmul.f32 1.442695, %v649_v0 }
 0x1f9   : > { %2303 = vpow2.f32 %v653_v1 }
 0x200   : > { %v2300_v2 = vpop.eup %2299 }
 0x201   : > { %v2302_v3 = vpop.eup %2301  ;;  %v659_v4 = vadd.f32 1.0, %v2300_v2 }
 0x202   : > { %v657_v5 = vadd.f32 1.0, %v2302_v3 }
 0x203   : > { %v2304_v7 = vpop.eup %2303  ;;  %2305 = vlog2.f32 %v659_v4 }
 0x204   : > { %2307 = vlog2.f32 %v657_v5  ;;  %v658_v8 = vadd.f32 1.0, %v2304_v7 }
 0x206   : > { %2309 = vlog2.f32 %v658_v8 }
 0x20d   : > { %v2306_v9 = vpop.eup %2305 }
 0x20e   : > { %v2308_v10 = vpop.eup %2307  ;;  %v665_v12 = vmul.f32 0.6931472, %v2306_v9  ;;  %v2589_v9 = vsub.s32 7, %v2534_v30 }
 0x20f   : > { %v661_v14 = vmul.f32 0.6931472, %v2308_v10  ;;  %v2592_v10 = vsub.s32 6, %v2534_v30 }
 0x210   : > { %v2310_v15 = vpop.eup %2309  ;;  %v668_v16 = vadd.f32 %v665_v12, %v644_v11 }
 0x211   : > { %v666_v17 = vadd.f32 %v661_v14, %v642_v13  ;;  %v663_v19 = vmul.f32 0.6931472, %v2310_v15  ;;  %v2597_v14 = vsub.s32 5, %v2534_v30  ;;  %v2600_v15 = vsub.s32 4, %v2534_v30 }
 0x212   : > { %671 = vst.msk [vmem:[#allocation3 + $0x10] sm:$0x1] %vm501_vm1, %v668_v16  ;;  %v674_v20 = vmul.f32 %v668_v16, %v2486_v44 }
 0x213   : > { %669 = vst.msk [vmem:[#allocation3] sm:$0xff] %vm382_vm0, %v666_v17  ;;  %v672_v21 = vmul.f32 %v666_v17, %v2490_v46  ;;  %v667_v22 = vadd.f32 %v663_v19, %v643_v18  ;;  %v2605_v18 = vsub.s32 3, %v2534_v30  ;;  %v2608_v19 = vsub.s32 2, %v2534_v30 }
 0x214   : > { %677 = vst.msk [vmem:[#allocation4 + $0x10] sm:$0x1] %vm501_vm1, %v674_v20 }
 0x215   : > { %675 = vst.msk [vmem:[#allocation4] sm:$0xff] %vm382_vm0, %v672_v21  ;;  %670 = vst.msk [vmem:[#allocation3 + $0x8] sm:$0xff] %vm382_vm0, %v667_v22  ;;  %v673_v24 = vmul.f32 %v667_v22, %v2488_v45 }
 0x217   : > { %676 = vst.msk [vmem:[#allocation4 + $0x8] sm:$0xff] %vm382_vm0, %v673_v24 }
 0x21a   : > { %v1581_v31 = vld [vmem:[#allocation3] sm:$0xff] }
 0x21b   : > { %v1586_v32 = vcombine.high %v1581_v31, %v1581_v31  ;;  %v1593_v35 = vrot.slane %v1581_v31, %v2537_v33 }
 0x21d   : > { %v1600_v34 = vrot.slane %v1586_v32, %v2537_v33  ;;  %v1601_v40 = vcombine.high %v1593_v35, %v1593_v35  ;;  %v1609_v53 = vrot.slane %v1593_v35, %v2537_v33 }
 0x21f   : > { %v1602_v36 = vcombine.high %v1600_v34, %v1600_v34  ;;  %v1616_v37 = vrot.slane %v1600_v34, %v2537_v33  ;;  %v1623_v54 = vrot.slane %v1601_v40, %v2537_v33  ;;  %v1631_v58 = vcombine.high %v1609_v53, %v1609_v53  ;;  %v715_v40 = vld [vmem:[#allocation3 + $0x10] sm:$0xff] }
 0x220   : > { %v1638_v60 = vrot.slane %v1609_v53, %v2543_v6 }
 0x221   : > { %v1630_v38 = vrot.slane %v1602_v36, %v2537_v33  ;;  %v1632_v39 = vcombine.high %v1616_v37, %v1616_v37  ;;  %v1654_v57 = vrot.slane %v1616_v37, %v2543_v6  ;;  %v1633_v59 = vcombine.high %v1623_v54, %v1623_v54 }
 0x222   : > { %v1642_v61 = vrot.slane %v1623_v54, %v2543_v6  ;;  %v1646_v62 = vrot.slane %v1631_v58, %v2543_v6  ;;  %v2574_v1 = vmul.f32 %v1638_v60, %v2550_v43  ;;  %v2646_v54 = vld [vmem:[#allocation4 + $0x10] sm:$0xff] }
 0x223   : > { %v1634_v41 = vcombine.high %v1630_v38, %v1630_v38  ;;  %v1658_v42 = vrot.slane %v1630_v38, %v2543_v6  ;;  %v1662_v47 = vrot.slane %v1632_v39, %v2543_v6  ;;  %v1650_v63 = vrot.slane %v1633_v59, %v2543_v6 }
 0x224   : > { %v2571_v0 = vmul.f32 %v1654_v57, %v2550_v43  ;;  %v2577_v2 = vmul.f32 %v1642_v61, %v2550_v43  ;;  %v2580_v3 = vmul.f32 %v1646_v62, %v2550_v43  ;;  %v893_v59 = vcombine.high %v2646_v54, %v2646_v54 }
 0x225   : > { %v1666_v48 = vrot.slane %v1634_v41, %v2543_v6  ;;  %v2555_v49 = vmul.f32 %v1658_v42, %v2550_v43  ;;  %v2558_v51 = vmul.f32 %v1662_v47, %v2550_v43  ;;  %v2583_v4 = vmul.f32 %v1650_v63, %v2550_v43 }
 0x226   : > { %v723_v41 = vcombine.high %v715_v40, %v715_v40  ;;  %v907_v62 = vrot.slane %v893_v59, %v2537_v33 }
 0x227   : > { %v2563_v55 = vmul.f32 %v1666_v48, %v2550_v43 }
 0x228   : > { %v737_v42 = vrot.slane %v723_v41, %v2537_v33 }
 0x22a   : > { %v739_v47 = vcombine.high %v737_v42, %v737_v42  ;;  %v753_v58 = vrot.slane %v737_v42, %v2537_v33 }
 0x22c   : > { %v767_v48 = vrot.slane %v739_v47, %v2537_v33  ;;  %v769_v61 = vcombine.high %v753_v58, %v753_v58 }
 0x22e   : > { %v771_v53 = vcombine.high %v767_v48, %v767_v48 }
 0x230   : > { %v803_v57 = vrot.slane %v771_v53, %v2543_v6 }
 0x232   : > { %v819_v60 = vmul.f32 %v803_v57, %v2550_v43 }
 0x260   : > { %v686_v5 = vpop.permute.xlu0 %685 }
 0x261   : > { %694 = vst.msk [vmem:[#allocation5 + $0x10] sm:$0x1] %vm693_vm4, %v686_v5  ;;  %v682_v7 = vpop.permute.xlu1 %681 }
 0x262   : > { %691 = vst.msk [vmem:[#allocation5] sm:$0xff] %vm690_vm5, %v682_v7  ;;  %v834_v7 = vmul.f32 1.442695, %v819_v60 }
 0x264   : > { %v684_v8 = vpop.permute.xlu0 %683  ;;  %2311 = vpow2.f32 %v834_v7 }
 0x265   : > { %692 = vst.msk [vmem:[#allocation5 + $0x8] sm:$0xff] %vm690_vm5, %v684_v8  ;;  %v799_v8 = vrot.slane %v769_v61, %v2543_v6 }
 0x268   : > { %v719_v11 = vld [vmem:[#allocation5 + $0x10] sm:$0xff] }
 0x269   : > { %v888_v12 = vrot.slane %v719_v11, %v2589_v9  ;;  %v881_v13 = vrot.slane %v719_v11, %v2592_v10  ;;  %v874_v16 = vrot.slane %v719_v11, %v2597_v14  ;;  %v867_v17 = vrot.slane %v719_v11, %v2600_v15  ;;  %v1583_v24 = vld [vmem:[#allocation5] sm:$0xff] }
 0x26a   : > { %v860_v20 = vrot.slane %v719_v11, %v2605_v18  ;;  %v853_v21 = vrot.slane %v719_v11, %v2608_v19  ;;  %v839_v22 = vrot.slane %v719_v11, %v2543_v6  ;;  %v846_v25 = vrot.slane %v719_v11, %v2616_v23 }
 0x26b   : > { %890 = vbcast.lane.b32.xlu1 %v888_v12, 256  ;;  %883 = vbcast.lane.b32.xlu0 %v881_v13, 256  ;;  %v1744_v26 = vrot.slane %v1583_v24, %v2592_v10  ;;  %v1730_v28 = vrot.slane %v1583_v24, %v2600_v15  ;;  %v1716_v31 = vrot.slane %v1583_v24, %v2608_v19 }
 0x26c   : > { %v1723_v32 = vrot.slane %v1583_v24, %v2605_v18  ;;  %v1702_v36 = vrot.slane %v1583_v24, %v2543_v6  ;;  %v1709_v37 = vrot.slane %v1583_v24, %v2616_v23  ;;  %v909_v11 = vcombine.high %v907_v62, %v907_v62 }
 0x26f   : > { %876 = vbcast.lane.b32.xlu1 %v874_v16, 256  ;;  %869 = vbcast.lane.b32.xlu0 %v867_v17, 256  ;;  %v818_v16 = vmul.f32 %v799_v8, %v2550_v43  ;;  %v2661_v17 = vrot.slane %v909_v11, %v2537_v33 }
 0x273   : > { %697 = vrot.lane.b32.xlu1 %v2513_v56, %s2382_s25  ;;  %695 = vrot.lane.b32.xlu0 %v2509_v52, %s2382_s25  ;;  %v1751_v56 = vrot.slane %v1583_v24, %v2589_v9  ;;  %v2621_v52 = vld [vmem:[#allocation5 + $0x8] sm:$0xff] }
 0x274   : > { %v1325_v27 = vrot.slane %v2621_v52, %v2589_v9  ;;  %v1318_v29 = vrot.slane %v2621_v52, %v2592_v10  ;;  %v1311_v30 = vrot.slane %v2621_v52, %v2597_v14  ;;  %v1304_v34 = vrot.slane %v2621_v52, %v2600_v15 }
 0x275   : > { %v1297_v35 = vrot.slane %v2621_v52, %v2605_v18  ;;  %v1290_v38 = vrot.slane %v2621_v52, %v2608_v19  ;;  %v1283_v39 = vrot.slane %v2621_v52, %v2616_v23  ;;  %v1276_v41 = vrot.slane %v2621_v52, %v2543_v6 }
 0x277   : > { %862 = vbcast.lane.b32.xlu1 %v860_v20, 256  ;;  %855 = vbcast.lane.b32.xlu0 %v853_v21, 256 }
 0x27b   : > { %699 = vrot.lane.b32.xlu1 %v2505_v50, %s2382_s25  ;;  %841 = vbcast.lane.b32.xlu0 %v839_v22, 256  ;;  %v1737_v50 = vrot.slane %v1583_v24, %v2597_v14  ;;  %v832_v22 = vmul.f32 1.442695, %v818_v16  ;;  %v795_v24 = vrot.slane %v767_v48, %v2543_v6 }
 0x27d   : > { %2313 = vpow2.f32 %v832_v22 }
 0x27f   : > { %848 = vbcast.lane.b32.xlu1 %v846_v25, 256  ;;  %1753 = vbcast.lane.b32.xlu0 %v1751_v56, 256  ;;  %v730_v25 = vrot.slane %v715_v40, %v2537_v33  ;;  %v941_v56 = vcombine.high %v2661_v17, %v2661_v17 }
 0x281   : > { %v2706_v7 = vrot.slane %v730_v25, %v2537_v33 }
 0x283   : > { %1746 = vbcast.lane.b32.xlu1 %v1744_v26, 256  ;;  %1327 = vbcast.lane.b32.xlu0 %v1325_v27, 256  ;;  %v817_v27 = vmul.f32 %v795_v24, %v2550_v43  ;;  %v768_v22 = vcombine.high %v2706_v7, %v2706_v7 }
 0x287   : > { %1732 = vbcast.lane.b32.xlu1 %v1730_v28, 256  ;;  %1739 = vbcast.lane.b32.xlu0 %v1737_v50, 256  ;;  %v738_v28 = vcombine.high %v730_v25, %v730_v25  ;;  %v973_v50 = vrot.slane %v941_v56, %v2543_v6  ;;  %v965_v25 = vrot.slane %v2661_v17, %v2543_v6 }
 0x28b   : > { %1320 = vbcast.lane.b32.xlu1 %v1318_v29, 256  ;;  %1313 = vbcast.lane.b32.xlu0 %v1311_v30, 256 }
 0x28f   : > { %1718 = vbcast.lane.b32.xlu1 %v1716_v31, 256  ;;  %1725 = vbcast.lane.b32.xlu0 %v1723_v32, 256  ;;  %v2312_v31 = vpop.eup %2311 }
 0x290   : > { %v990_v40 = vmul.f32 0.0, %v2312_v31 }
 0x293   : > { %1306 = vbcast.lane.b32.xlu1 %v1304_v34, 256  ;;  %1299 = vbcast.lane.b32.xlu0 %v1297_v35, 256 }
 0x297   : > { %1704 = vbcast.lane.b32.xlu1 %v1702_v36, 256  ;;  %1711 = vbcast.lane.b32.xlu0 %v1709_v37, 256  ;;  %v2681_v36 = vrot.slane %v907_v62, %v2537_v33  ;;  %v830_v37 = vmul.f32 1.442695, %v817_v27  ;;  %v900_v27 = vrot.slane %v2646_v54, %v2537_v33 }
 0x299   : > { %v939_v47 = vcombine.high %v2681_v36, %v2681_v36  ;;  %2315 = vpow2.f32 %v830_v37 }
 0x29b   : > { %1292 = vbcast.lane.b32.xlu1 %v1290_v38, 256  ;;  %1285 = vbcast.lane.b32.xlu0 %v1283_v39, 256  ;;  %v791_v38 = vrot.slane %v753_v58, %v2543_v6  ;;  %v2685_v39 = vrot.slane %v738_v28, %v2537_v33  ;;  %v2314_v58 = vpop.eup %2313  ;;  %v969_v52 = vrot.slane %v939_v47, %v2543_v6 }
 0x29d   : > { %v816_v48 = vmul.f32 %v791_v38, %v2550_v43  ;;  %v770_v53 = vcombine.high %v2685_v39, %v2685_v39 }
 0x29f   : > { %v828_v62 = vmul.f32 1.442695, %v816_v48 }
 0x2a1   : > { %2317 = vpow2.f32 %v828_v62 }
 0x2a3   : > { %v2316_v24 = vpop.eup %2315 }
 0x2dd   : > { %v891_v63 = vpop.permute.xlu1 %890  ;;  %v884_v5 = vpop.permute.xlu0 %883 }
 0x2de   : > { %v989_v35 = vmul.f32 %v973_v50, %v891_v63  ;;  %v787_v63 = vrot.slane %v770_v53, %v2543_v6  ;;  %v988_v8 = vmul.f32 %v969_v52, %v884_v5 }
 0x2e0   : > { %v2689_v42 = vadd.f32 %v990_v40, %v989_v35  ;;  %v908_v35 = vcombine.high %v900_v27, %v900_v27 }
 0x2e1   : > { %v2655_v12 = vpop.permute.xlu1 %876  ;;  %v2657_v13 = vpop.permute.xlu0 %869 }
 0x2e2   : > { %v992_v60 = vmul.f32 %v2314_v58, %v2689_v42  ;;  %v987_v31 = vmul.f32 %v965_v25, %v2655_v12  ;;  %v2318_v12 = vpop.eup %2317  ;;  %v2745_v48 = vrot.slane %v908_v35, %v2537_v33  ;;  %v775_v25 = vrot.slane %v2706_v7, %v2543_v6 }
 0x2e4   : > { %v2710_v16 = vadd.f32 %v992_v60, %v988_v8  ;;  %v940_v62 = vcombine.high %v2745_v48, %v2745_v48 }
 0x2e5   : > { %v698_v20 = vpop.permute.xlu1 %697  ;;  %v696_v21 = vpop.permute.xlu0 %695 }
 0x2e6   : > { %705 = vst.msk [vmem:[#allocation6 + $0x8] sm:$0xff] %vm690_vm5, %v698_v20  ;;  %704 = vst.msk [vmem:[#allocation6] sm:$0xff] %vm690_vm5, %v696_v21  ;;  %v815_v21 = vmul.f32 %v787_v63, %v2550_v43  ;;  %v994_v56 = vmul.f32 %v2316_v24, %v2710_v16  ;;  %v2766_v24 = vrot.slane %v900_v27, %v2537_v33 }
 0x2e8   : > { %v826_v50 = vmul.f32 1.442695, %v815_v21  ;;  %v957_v21 = vrot.slane %v940_v62, %v2543_v6  ;;  %v938_v27 = vcombine.high %v2766_v24, %v2766_v24 }
 0x2e9   : > { %v2669_v26 = vpop.permute.xlu1 %862 }
 0x2ea   : > { %2319 = vpow2.f32 %v826_v50  ;;  %v985_v50 = vmul.f32 %v957_v21, %v2669_v26  ;;  %v856_v26 = vpop.permute.xlu0 %855 }
 0x2ed   : > { %v700_v29 = vpop.permute.xlu1 %699  ;;  %v2673_v30 = vld [vmem:[#allocation6] sm:$0xff]  ;;  %v1158_v8 = vld [vmem:[#allocation6 + $0x8] sm:$0xff] }
 0x2ee   : > { %706 = vst.msk [vmem:[#allocation6 + $0x10] sm:$0x1] %vm693_vm4, %v700_v29  ;;  %v1879_v32 = vrot.slane %v2673_v30, %v2616_v23  ;;  %v1872_v34 = vrot.slane %v2673_v30, %v2543_v6  ;;  %v1886_v11 = vrot.slane %v2673_v30, %v2608_v19  ;;  %v1893_v28 = vrot.slane %v2673_v30, %v2605_v18 }
 0x2ef   : > { %v783_v29 = vrot.slane %v768_v22, %v2543_v6  ;;  %v1900_v17 = vrot.slane %v2673_v30, %v2600_v15  ;;  %v1907_v53 = vrot.slane %v2673_v30, %v2597_v14  ;;  %v1921_v21 = vrot.slane %v2673_v30, %v2589_v9 }
 0x2f0   : > { %1881 = vbcast.lane.b32.xlu1 %v1879_v32, 256  ;;  %1874 = vbcast.lane.b32.xlu0 %v1872_v34, 256  ;;  %v2728_v32 = vld [vmem:[#allocation3 + $0x8] sm:$0xff]  ;;  %v2732_v34 = vadd.f32 %v994_v56, %v987_v31  ;;  %v1460_v31 = vrot.slane %v1158_v8, %v2608_v19 }
 0x2f1   : > { %v814_v37 = vmul.f32 %v783_v29, %v2550_v43  ;;  %v1160_v38 = vcombine.high %v2728_v32, %v2728_v32 }
 0x2f2   : > { %v996_v47 = vmul.f32 %v2318_v12, %v2732_v34 }
 0x2f3   : > { %v824_v58 = vmul.f32 1.442695, %v814_v37  ;;  %v1174_v52 = vrot.slane %v1160_v38, %v2537_v33  ;;  %v1474_v38 = vrot.slane %v1158_v8, %v2600_v15 }
 0x2f4   : > { %1278 = vbcast.lane.b32.xlu1 %v1276_v41, 256  ;;  %v961_v41 = vrot.slane %v2681_v36, %v2543_v6  ;;  %v1914_v36 = vrot.slane %v2673_v30, %v2592_v10 }
 0x2f5   : > { %v2696_v57 = vld [vmem:[#allocation6 + $0x10] sm:$0xff]  ;;  %2321 = vpow2.f32 %v824_v58  ;;  %v1495_v58 = vrot.slane %v1158_v8, %v2589_v9 }
 0x2f6   : > { %v1016_v59 = vrot.slane %v2696_v57, %v2616_v23  ;;  %v1009_v61 = vrot.slane %v2696_v57, %v2543_v6  ;;  %v1023_v20 = vrot.slane %v2696_v57, %v2608_v19  ;;  %v1030_v5 = vrot.slane %v2696_v57, %v2605_v18  ;;  %v2788_v19 = vld [vmem:[#allocation4 + $0x8] sm:$0xff] }
 0x2f7   : > { %v1037_v54 = vrot.slane %v2696_v57, %v2600_v15  ;;  %v1044_v40 = vrot.slane %v2696_v57, %v2597_v14  ;;  %v986_v60 = vmul.f32 %v961_v41, %v2657_v13  ;;  %v1051_v63 = vrot.slane %v2696_v57, %v2592_v10  ;;  %v2320_v13 = vpop.eup %2319 }
 0x2f8   : > { %1018 = vbcast.lane.b32.xlu1 %v1016_v59, 256  ;;  %1011 = vbcast.lane.b32.xlu0 %v1009_v61, 256  ;;  %v779_v59 = vrot.slane %v2685_v39, %v2543_v6  ;;  %v2792_v41 = vrot.slane %v1174_v52, %v2537_v33  ;;  %v1330_v15 = vcombine.high %v2788_v19, %v2788_v19 }
 0x2f9   : > { %v2755_v61 = vadd.f32 %v996_v47, %v986_v60  ;;  %v2794_v47 = vpop.f32.mrb[0].mxu1 }
 0x2fa   : > { %v813_v39 = vmul.f32 %v779_v59, %v2550_v43 }
 0x2fb   : > { %v998_v22 = vmul.f32 %v2320_v13, %v2755_v61  ;;  %v1058_v13 = vrot.slane %v2696_v57, %v2589_v9 }
 0x2fc   : > { %1888 = vbcast.lane.b32.xlu1 %v1886_v11, 256  ;;  %1025 = vbcast.lane.b32.xlu0 %v1023_v20, 256  ;;  %v1176_v11 = vcombine.high %v1174_v52, %v1174_v52  ;;  %v1453_v20 = vrot.slane %v1158_v8, %v2616_v23  ;;  %v822_v56 = vmul.f32 1.442695, %v813_v39  ;;  %v1467_v23 = vrot.slane %v1158_v8, %v2605_v18 }
 0x2fd   : > { %v2776_v29 = vadd.f32 %v998_v22, %v985_v50  ;;  %v953_v18 = vrot.slane %v938_v27, %v2543_v6  ;;  %v945_v27 = vrot.slane %v2766_v24, %v2543_v6 }
 0x2fe   : > { %2323 = vpow2.f32 %v822_v56  ;;  %v842_v56 = vpop.permute.xlu0 %841 }
 0x2ff   : > { %v2322_v35 = vpop.eup %2321 }
 0x300   : > { %1032 = vbcast.lane.b32.xlu1 %v1030_v5, 256  ;;  %1895 = vbcast.lane.b32.xlu0 %v1893_v28, 256  ;;  %v1446_v5 = vrot.slane %v1158_v8, %v2543_v6  ;;  %v2772_v28 = vrot.slane %v1176_v11, %v2537_v33  ;;  %v1000_v37 = vmul.f32 %v2322_v35, %v2776_v29  ;;  %v849_v11 = vpop.permute.xlu1 %848 }
 0x301   : > { %v1167_v35 = vrot.slane %v2728_v32, %v2537_v33 }
 0x302   : > { %v1208_v7 = vcombine.high %v2772_v28, %v2772_v28  ;;  %v2825_v30 = vpop.permute.xlu0 %1753 }
 0x304   : > { %1902 = vbcast.lane.b32.xlu1 %v1900_v17, 256  ;;  %1039 = vbcast.lane.b32.xlu0 %v1037_v54, 256  ;;  %v812_v17 = vmul.f32 %v775_v25, %v2550_v43  ;;  %v1481_v54 = vrot.slane %v1158_v8, %v2597_v14  ;;  %v2796_v14 = vpop.f32.mrb[1].mxu1 }
 0x305   : > { %v2243_v59 = vpop.f32.mrb[2].mxu1 }
 0x306   : > { %v820_v12 = vmul.f32 1.442695, %v812_v17  ;;  %v2804_v62 = vpop.f32.mrb[3].mxu1 }
 0x308   : > { %1046 = vbcast.lane.b32.xlu1 %v1044_v40, 256  ;;  %1909 = vbcast.lane.b32.xlu0 %v1907_v53, 256  ;;  %v1240_v40 = vrot.slane %v1208_v7, %v2543_v6  ;;  %v984_v53 = vmul.f32 %v953_v18, %v856_v26  ;;  %2325 = vpow2.f32 %v820_v12  ;;  %v2324_v39 = vpop.eup %2323  ;;  %v1232_v7 = vrot.slane %v2772_v28, %v2543_v6 }
 0x309   : > { %v982_v26 = vmul.f32 %v945_v27, %v842_v56 }
 0x30a   : > { %v2799_v60 = vadd.f32 %v1000_v37, %v984_v53  ;;  %v1256_v52 = vmul.f32 %v1240_v40, %v2550_v43  ;;  %v1254_v24 = vmul.f32 %v1232_v7, %v2550_v43  ;;  %v1328_v40 = vpop.permute.xlu0 %1327 }
 0x30c   : > { %1916 = vbcast.lane.b32.xlu1 %v1914_v36, 256  ;;  %1053 = vbcast.lane.b32.xlu0 %v1051_v63, 256  ;;  %v1488_v36 = vrot.slane %v1158_v8, %v2592_v10  ;;  %v1206_v63 = vcombine.high %v2792_v41, %v2792_v41  ;;  %v1002_v10 = vmul.f32 %v2324_v39, %v2799_v60  ;;  %v1271_v22 = vmul.f32 1.442695, %v1256_v52  ;;  %v2286_v39 = vld [vmem:[%s3098_s9 + $0x8] sm:$0xff]  }
 0x30d   : > { %v1344_v8 = vrot.slane %v1330_v15, %v2537_v33  ;;  %v1267_v32 = vmul.f32 1.442695, %v1254_v24  ;;  %v1228_v15 = vrot.slane %v2792_v41, %v2543_v6  ;;  %v1337_v24 = vrot.slane %v2788_v19, %v2537_v33 }
 0x30e   : > { %2327 = vpow2.f32 %v1271_v22 }
 0x30f   : > { %v1346_v57 = vcombine.high %v1344_v8, %v1344_v8  ;;  %v1360_v28 = vrot.slane %v1344_v8, %v2537_v33 }
 0x310   : > { %1455 = vbcast.lane.b32.xlu1 %v1453_v20, 256  ;;  %1448 = vbcast.lane.b32.xlu0 %v1446_v5, 256  ;;  %v949_v20 = vrot.slane %v2745_v48, %v2543_v6  ;;  %v1236_v5 = vrot.slane %v1206_v63, %v2543_v6  ;;  %v2285_v63 = vld [vmem:[%s3098_s9] sm:$0xff]  }
 0x311   : > { %v1374_v9 = vrot.slane %v1346_v57, %v2537_v33  ;;  %2252 = vmatprep.subr.bf16.mxu1 %v2285_v63  ;;  %v1183_v57 = vrot.slane %v1167_v35, %v2537_v33 }
 0x312   : > { %v983_v25 = vmul.f32 %v949_v20, %v849_v11  ;;  %v1255_v48 = vmul.f32 %v1236_v5, %v2550_v43  ;;  %v1253_v20 = vmul.f32 %v1228_v15, %v2550_v43  ;;  %2253 = vmatpush3.bf16.msra.mxu1 %v2285_v63  ;;  %v2855_v5 = vpop.permute.xlu0 %1739 }
 0x313   : > { %v1378_v37 = vcombine.high %v1374_v9, %v1374_v9  ;;  %2254 = vmatprep.subr.bf16.mxu1 %v2286_v39 }
 0x314   : > { %1469 = vbcast.lane.b32.xlu1 %v1467_v23, 256  ;;  %1462 = vbcast.lane.b32.xlu0 %v1460_v31, 256  ;;  %v2818_v50 = vadd.f32 %v1002_v10, %v983_v25  ;;  %v2326_v23 = vpop.eup %2325  ;;  %v1269_v17 = vmul.f32 1.442695, %v1255_v48  ;;  %v1265_v25 = vmul.f32 1.442695, %v1253_v20 }
 0x315   : > { %v1410_v53 = vrot.slane %v1378_v37, %v2543_v6 }
 0x316   : > { %v1004_v31 = vmul.f32 %v2326_v23, %v2818_v50  ;;  %2329 = vpow2.f32 %v1269_v17  ;;  %2255 = vmatpush3.bf16.msra.mxu1 %v2286_v39  ;;  %v1314_v7 = vpop.permute.xlu0 %1313 }
 0x317   : > { %v1426_v52 = vmul.f32 %v1410_v53, %v1328_v40  ;;  %2331 = vpow2.f32 %v1267_v32 }
 0x318   : > { %1483 = vbcast.lane.b32.xlu1 %v1481_v54, 256  ;;  %1476 = vbcast.lane.b32.xlu0 %v1474_v38, 256  ;;  %v2831_v54 = vpop.permute.xlu1 %1746  ;;  %v2833_v18 = vadd.f32 %v1004_v31, %v982_v26  ;;  %v1175_v38 = vcombine.high %v1167_v35, %v1167_v35  ;;  %v2328_v12 = vpop.eup %2327  ;;  %2333 = vpow2.f32 %v1265_v25  ;;  %v1205_v31 = vcombine.high %v1183_v57, %v1183_v57 }
 0x319   : > { %v1402_v26 = vrot.slane %v1374_v9, %v2543_v6  ;;  %v1398_v9 = vrot.slane %v1360_v28, %v2543_v6 }
 0x31a   : > { %v2875_v39 = vpop.permute.xlu0 %1725 }
 0x31b   : > { %v1424_v40 = vmul.f32 %v1402_v26, %v1314_v7  ;;  %v1582_v7 = vld [vmem:[#allocation4] sm:$0xff] }
 0x31c   : > { %1497 = vbcast.lane.b32.xlu1 %v1495_v58, 256  ;;  %1490 = vbcast.lane.b32.xlu0 %v1488_v36, 256  ;;  %v1427_v58 = vmul.f32 %v2328_v12, %v2833_v18  ;;  %v2839_v59 = vpop.permute.xlu1 %1732  ;;  %v1197_v36 = vrot.slane %v1175_v38, %v2537_v33  ;;  %v1220_v12 = vrot.slane %v1205_v31, %v2543_v6 }
 0x31e   : > { %v2850_v11 = vadd.f32 %v1427_v58, %v1426_v52  ;;  %v1207_v10 = vcombine.high %v1197_v36, %v1197_v36  ;;  %v1345_v58 = vcombine.high %v1337_v24, %v1337_v24  ;;  %v1251_v32 = vmul.f32 %v1220_v12, %v2550_v43  ;;  %v1300_v25 = vpop.permute.xlu0 %1299 }
 0x31f   : > { %v1216_v20 = vrot.slane %v1197_v36, %v2543_v6  ;;  %v1212_v36 = vrot.slane %v1183_v57, %v2543_v6  ;;  %v1756_v12 = vcombine.high %v1582_v7, %v1582_v7 }
 0x320   : > { %1060 = vbcast.lane.b32.xlu1 %v1058_v13, 256  ;;  %1923 = vbcast.lane.b32.xlu0 %v1921_v21, 256  ;;  %v1376_v13 = vcombine.high %v1360_v28, %v1360_v28  ;;  %v2330_v41 = vpop.eup %2329  ;;  %v1321_v8 = vpop.permute.xlu1 %1320  ;;  %v1224_v56 = vrot.slane %v1207_v10, %v2543_v6  ;;  %v1367_v19 = vrot.slane %v1345_v58, %v2537_v33 }
 0x321   : > { %v1429_v22 = vmul.f32 %v2330_v41, %v2850_v11  ;;  %v2332_v17 = vpop.eup %2331  ;;  %v1770_v57 = vrot.slane %v1756_v12, %v2537_v33 }
 0x322   : > { %v1406_v21 = vrot.slane %v1376_v13, %v2543_v6  ;;  %v1252_v27 = vmul.f32 %v1224_v56, %v2550_v43  ;;  %v2334_v15 = vpop.eup %2333  ;;  %v1261_v13 = vmul.f32 1.442695, %v1251_v32 }
 0x324   : > { %v1425_v48 = vmul.f32 %v1406_v21, %v1321_v8  ;;  %v2866_v38 = vpop.permute.xlu1 %1718  ;;  %v1263_v35 = vmul.f32 1.442695, %v1252_v27  ;;  %v1377_v8 = vcombine.high %v1367_v19, %v1367_v19  ;;  %v1250_v21 = vmul.f32 %v1216_v20, %v2550_v43 }
 0x325   : > { %v1772_v20 = vcombine.high %v1770_v57, %v1770_v57 }
 0x326   : > { %v2859_v23 = vadd.f32 %v1429_v22, %v1425_v48  ;;  %2335 = vpow2.f32 %v1263_v35  ;;  %v1394_v28 = vrot.slane %v1377_v8, %v2543_v6  ;;  %v1353_v48 = vrot.slane %v1337_v24, %v2537_v33 }
 0x327   : > { %2337 = vpow2.f32 %v1261_v13  ;;  %v1259_v31 = vmul.f32 1.442695, %v1250_v21  ;;  %v1249_v35 = vmul.f32 %v1212_v36, %v2550_v43  ;;  %v1697_v13 = vmul.f32 1.442695, %v2563_v55 }
 0x328   : > { %v1431_v37 = vmul.f32 %v2332_v17, %v2859_v23  ;;  %v1307_v52 = vpop.permute.xlu1 %1306  ;;  %v1422_v17 = vmul.f32 %v1394_v28, %v1300_v25  ;;  %v1386_v8 = vrot.slane %v1367_v19, %v2543_v6  ;;  %v1800_v25 = vrot.slane %v1772_v20, %v2537_v33 }
 0x329   : > { %v1423_v10 = vmul.f32 %v1398_v9, %v1307_v52  ;;  %2339 = vpow2.f32 %v1259_v31  ;;  %v1257_v52 = vmul.f32 1.442695, %v1249_v35  ;;  %v1693_v55 = vmul.f32 1.442695, %v2555_v49 }
 0x32a   : > { %v2869_v53 = vadd.f32 %v1431_v37, %v1424_v40  ;;  %v1375_v37 = vcombine.high %v1353_v48, %v1353_v48  ;;  %v1804_v36 = vcombine.high %v1800_v25, %v1800_v25  ;;  %v1382_v19 = vrot.slane %v1353_v48, %v2543_v6 }
 0x32b   : > { %2341 = vpow2.f32 %v1257_v52 }
 0x32c   : > { %v1433_v63 = vmul.f32 %v2334_v15, %v2869_v53  ;;  %v2884_v27 = vpop.permute.xlu1 %1704  ;;  %v1390_v32 = vrot.slane %v1375_v37, %v2543_v6  ;;  %v2892_v15 = vpop.permute.xlu0 %1711  ;;  %2343 = vpow2.f32 %v1697_v13  ;;  %v1836_v49 = vrot.slane %v1804_v36, %v2543_v6 }
 0x32e   : > { %v2878_v41 = vadd.f32 %v1433_v63, %v1423_v10  ;;  %v1852_v48 = vmul.f32 %v1836_v49, %v2825_v30 }
 0x330   : > { %v2336_v22 = vpop.eup %2335  ;;  %v1293_v58 = vpop.permute.xlu1 %1292 }
 0x331   : > { %v1435_v56 = vmul.f32 %v2336_v22, %v2878_v41  ;;  %v2338_v40 = vpop.eup %2337  ;;  %v1421_v9 = vmul.f32 %v1390_v32, %v1293_v58  ;;  %v1286_v10 = vpop.permute.xlu0 %1285  ;;  %v1695_v22 = vmul.f32 1.442695, %v2558_v51  ;;  %v1763_v51 = vrot.slane %v1582_v7, %v2537_v33 }
 0x332   : > { %v1420_v28 = vmul.f32 %v1386_v8, %v1286_v10  ;;  %v1691_v32 = vmul.f32 1.442695, %v2571_v0  ;;  %v1689_v8 = vmul.f32 1.442695, %v2583_v4 }
 0x333   : > { %v2887_v26 = vadd.f32 %v1435_v56, %v1422_v17  ;;  %v2340_v43 = vpop.eup %2339  ;;  %2345 = vpow2.f32 %v1695_v22  ;;  %v1786_v17 = vrot.slane %v1770_v57, %v2537_v33  ;;  %v1771_v13 = vcombine.high %v1763_v51, %v1763_v51 }
 0x334   : > { %2347 = vpow2.f32 %v1693_v55  ;;  %v2205_v22 = vmul.f32 -1.442695, %v2794_v47  ;;  %v1779_v30 = vrot.slane %v1763_v51, %v2537_v33 }
 0x335   : > { %v1437_v24 = vmul.f32 %v2338_v40, %v2887_v26  ;;  %v2342_v37 = vpop.eup %2341  ;;  %2349 = vpow2.f32 %v1691_v32 }
 0x336   : > { %v2344_v57 = vpop.eup %2343  ;;  %2351 = vpow2.f32 %v1689_v8  ;;  %v1801_v32 = vcombine.high %v1779_v30, %v1779_v30 }
 0x337   : > { %v2895_v63 = vadd.f32 %v1437_v24, %v1421_v9  ;;  %v1802_v24 = vcombine.high %v1786_v17, %v1786_v17  ;;  %2353 = vpow2.f32 %v2205_v22  ;;  %v1808_v22 = vrot.slane %v1779_v30, %v2543_v6 }
 0x339   : > { %v1439_v21 = vmul.f32 %v2340_v43, %v2895_v63  ;;  %v1832_v0 = vrot.slane %v1802_v24, %v2543_v6  ;;  %v2204_v24 = vmul.f32 -1.442695, %v2804_v62 }
 0x33b   : > { %v2904_v31 = vadd.f32 %v1439_v21, %v1420_v28  ;;  %v1851_v36 = vmul.f32 %v1832_v0, %v2831_v54  ;;  %v2203_v54 = vmul.f32 -1.442695, %v2796_v14 }
 0x33d   : > { %v1441_v58 = vmul.f32 %v2342_v37, %v2904_v31  ;;  %v2346_v28 = vpop.eup %2345 }
 0x362   : > { %v2902_v56 = vpop.permute.xlu1 %1881  ;;  %v2910_v12 = vpop.permute.xlu0 %1874 }
 0x366   : > { %v1279_v35 = vpop.permute.xlu1 %1278 }
 0x367   : > { %v1419_v40 = vmul.f32 %v1382_v19, %v1279_v35 }
 0x369   : > { %v2915_v52 = vadd.f32 %v1441_v58, %v1419_v40  ;;  %v1687_v40 = vmul.f32 1.442695, %v2580_v3 }
 0x36a   : > { %v1019_v9 = vpop.permute.xlu1 %1018  ;;  %v1012_v20 = vpop.permute.xlu0 %1011 }
 0x36b   : > { %v1853_v7 = vmul.f32 %v2344_v57, %v2915_v52  ;;  %v1063_v43 = vmul.f32 %v1019_v9, %v2818_v50  ;;  %v1062_v10 = vmul.f32 %v1012_v20, %v2833_v18  ;;  %v1828_v50 = vrot.slane %v1800_v25, %v2543_v6  ;;  %v2348_v25 = vpop.eup %2347 }
 0x36c   : > { %v2932_v18 = vrot.slane %v1771_v13, %v2537_v33  ;;  %v1685_v20 = vmul.f32 1.442695, %v2577_v2  ;;  %2355 = vpow2.f32 %v1687_v40  ;;  %v2350_v8 = vpop.eup %2349 }
 0x36d   : > { %v2923_v21 = vadd.f32 %v1853_v7, %v1852_v48  ;;  %v1077_v37 = vsel %vm382_vm0, %v1063_v43, 0.0  ;;  %v1070_v35 = vsel %vm382_vm0, %v1062_v10, 0.0  ;;  %v1850_v33 = vmul.f32 %v1828_v50, %v2855_v5 }
 0x36e   : > { %v2927_v55 = vpop.permute.xlu1 %1888  ;;  %v1026_v19 = vpop.permute.xlu0 %1025  ;;  %v1078_v9 = vrot.slane %v1077_v37, 4  ;;  %v1071_v48 = vrot.slane %v1070_v35, 4  ;;  %v1824_v7 = vrot.slane %v1786_v17, %v2543_v6  ;;  %v1683_v5 = vmul.f32 1.442695, %v2574_v1 }
 0x36f   : > { %v1855_v4 = vmul.f32 %v2346_v28, %v2923_v21  ;;  %v1064_v58 = vmul.f32 %v1026_v19, %v2799_v60  ;;  %v1803_v60 = vcombine.high %v2932_v18, %v2932_v18  ;;  %2357 = vpow2.f32 %v2203_v54  ;;  %v2352_v54 = vpop.eup %2351 }
 0x370   : > { %v1849_v0 = vmul.f32 %v1824_v7, %v2839_v59  ;;  %v1072_v50 = vadd.f32 %v1071_v48, %v1070_v35  ;;  %2359 = vpow2.f32 %v2204_v24  ;;  %v1812_v59 = vrot.slane %v2932_v18, %v2543_v6 }
 0x371   : > { %v2938_v51 = vadd.f32 %v1855_v4, %v1851_v36  ;;  %v1084_v10 = vsel %vm382_vm0, %v1064_v58, 0.0  ;;  %v1079_v36 = vadd.f32 %v1078_v9, %v1077_v37  ;;  %v1820_v1 = vrot.slane %v1803_v60, %v2543_v6 }
 0x372   : > { %v1033_v49 = vpop.permute.xlu1 %1032  ;;  %v1896_v13 = vpop.permute.xlu0 %1895  ;;  %2361 = vpow2.f32 %v1685_v20  ;;  %v1085_v19 = vrot.slane %v1084_v10, 4  ;;  %v2963_v35 = vmul.f32 %v1808_v22, %v2884_v27 }
 0x373   : > { %v1857_v57 = vmul.f32 %v2348_v25, %v2938_v51  ;;  %v1065_v3 = vmul.f32 %v1033_v49, %v2776_v29  ;;  %v1816_v29 = vrot.slane %v1801_v32, %v2543_v6  ;;  %2363 = vpow2.f32 %v1683_v5  ;;  %v2354_v49 = vpop.eup %2353 }
 0x374   : > { %v1848_v37 = vmul.f32 %v1820_v1, %v2875_v39  ;;  %v1080_v24 = vrot.slane %v1079_v36, 2  ;;  %v1086_v18 = vadd.f32 %v1085_v19, %v1084_v10  ;;  %v2033_v5 = vadd.f32 1.0, %v2354_v49 }
 0x375   : > { %v1858_v43 = vadd.f32 %v1857_v57, %v1850_v33  ;;  %v1091_v17 = vsel %vm382_vm0, %v1065_v3, 0.0  ;;  %v1847_v25 = vmul.f32 %v1816_v29, %v2866_v38  ;;  %v1846_v38 = vmul.f32 %v1812_v59, %v2892_v15 }
 0x376   : > { %v1903_v28 = vpop.permute.xlu1 %1902  ;;  %v1040_v4 = vpop.permute.xlu0 %1039  ;;  %v1092_v30 = vrot.slane %v1091_v17, 4  ;;  %2365 = vrcp.f32 %v2033_v5 }
 0x377   : > { %v1859_v2 = vmul.f32 %v2350_v8, %v1858_v43  ;;  %v1066_v40 = vmul.f32 %v1040_v4, %v2755_v61  ;;  %v1073_v61 = vrot.slane %v1072_v50, 2  ;;  %v2356_v20 = vpop.eup %2355 }
 0x378   : > { %v1093_v60 = vadd.f32 %v1092_v30, %v1091_v17 }
 0x379   : > { %v1860_v58 = vadd.f32 %v1859_v2, %v1849_v0  ;;  %v1098_v33 = vsel %vm382_vm0, %v1066_v40, 0.0  ;;  %v2358_v22 = vpop.eup %2357 }
 0x37a   : > { %v1047_v32 = vpop.permute.xlu1 %1046  ;;  %v1910_v6 = vpop.permute.xlu0 %1909  ;;  %v1099_v48 = vrot.slane %v1098_v33, 4 }
 0x37b   : > { %v1861_v57 = vmul.f32 %v2352_v54, %v1860_v58  ;;  %v1929_v9 = vmul.f32 %v1903_v28, %v1860_v58  ;;  %v1067_v3 = vmul.f32 %v1047_v32, %v2732_v34  ;;  %v1930_v7 = vmul.f32 %v1910_v6, %v1858_v43  ;;  %v2360_v40 = vpop.eup %2359 }
 0x37c   : > { %v1100_v0 = vadd.f32 %v1099_v48, %v1098_v33  ;;  %v1081_v28 = vadd.f32 %v1080_v24, %v1079_v36  ;;  %v1074_v34 = vadd.f32 %v1073_v61, %v1072_v50  ;;  %v1087_v43 = vrot.slane %v1086_v18, 2 }
 0x37d   : > { %v1862_v39 = vadd.f32 %v1861_v57, %v1848_v37  ;;  %v1961_v27 = vsel %vm382_vm0, %v1929_v9, 0.0  ;;  %v1105_v29 = vsel %vm382_vm0, %v1067_v3, 0.0  ;;  %v1968_v15 = vsel %vm382_vm0, %v1930_v7, 0.0  ;;  %v2362_v37 = vpop.eup %2361 }
 0x37e   : > { %v1962_v8 = vrot.slane %v1961_v27, 4  ;;  %v1106_v4 = vrot.slane %v1105_v29, 4  ;;  %v1917_v1 = vpop.permute.xlu1 %1916  ;;  %v1054_v17 = vpop.permute.xlu0 %1053  ;;  %v1094_v58 = vrot.slane %v1093_v60, 2  ;;  %v1969_v54 = vrot.slane %v1968_v15, 4 }
 0x37f   : > { %v1863_v2 = vmul.f32 %v2356_v20, %v1862_v39  ;;  %v1928_v10 = vmul.f32 %v1896_v13, %v1862_v39  ;;  %v2972_v33 = vadd.f32 1.0, %v2358_v22  ;;  %v1101_v13 = vrot.slane %v1100_v0, 2  ;;  %v2364_v32 = vpop.eup %2363 }
 0x380   : > { %v1963_v19 = vadd.f32 %v1962_v8, %v1961_v27  ;;  %v1107_v24 = vadd.f32 %v1106_v4, %v1105_v29  ;;  %v1970_v61 = vadd.f32 %v1969_v54, %v1968_v15  ;;  %v1082_v57 = vrot.slane %v1081_v28, 1 }
 0x381   : > { %v1864_v59 = vadd.f32 %v1863_v2, %v1847_v25  ;;  %v1954_v30 = vsel %vm382_vm0, %v1928_v10, 0.0  ;;  %v1075_v9 = vrot.slane %v1074_v34, 1  ;;  %v2975_v6 = vadd.f32 1.0, %v2360_v40 }
 0x382   : > { %v1955_v36 = vrot.slane %v1954_v30, 4  ;;  %v1964_v25 = vrot.slane %v1963_v19, 2  ;;  %v2978_v7 = vadd.f32 %v1087_v43, %v1086_v18  ;;  %v2980_v39 = vadd.f32 %v1094_v58, %v1093_v60  ;;  %v1456_v27 = vpop.permute.xlu1 %1455  ;;  %v1449_v29 = vpop.permute.xlu0 %1448 }
 0x383   : > { %v1865_v49 = vmul.f32 %v2362_v37, %v1864_v59  ;;  %v1927_v50 = vmul.f32 %v2927_v55, %v1864_v59  ;;  %v2982_v8 = vadd.f32 %v1101_v13, %v1100_v0  ;;  %v1931_v55 = vmul.f32 %v1917_v1, %v2938_v51 }
 0x384   : > { %v1956_v5 = vadd.f32 %v1955_v36, %v1954_v30  ;;  %v1108_v10 = vrot.slane %v1107_v24, 2  ;;  %v1971_v4 = vrot.slane %v1970_v61, 2  ;;  %v2988_v15 = vadd.f32 %v1075_v9, %v1074_v34 }
 0x385   : > { %v1866_v48 = vadd.f32 %v1865_v49, %v1846_v38  ;;  %v1947_v3 = vsel %vm382_vm0, %v1927_v50, 0.0  ;;  %v2986_v38 = vadd.f32 %v1082_v57, %v1081_v28  ;;  %v1965_v60 = vadd.f32 %v1964_v25, %v1963_v19 }
 0x386   : > { %v1948_v20 = vrot.slane %v1947_v3, 4  ;;  %v1089_v0 = vrot.slane %v2978_v7, 1  ;;  %v1096_v51 = vrot.slane %v2980_v39, 1  ;;  %v1957_v59 = vrot.slane %v1956_v5, 2  ;;  %v1470_v54 = vpop.permute.xlu1 %1469  ;;  %v1463_v49 = vpop.permute.xlu0 %1462 }
 0x387   : > { %v1867_v22 = vmul.f32 %v2364_v32, %v1866_v48  ;;  %v1926_v2 = vmul.f32 %v2902_v56, %v1866_v48  ;;  %v1103_v56 = vrot.slane %v2982_v8, 1  ;;  %v1975_v58 = vsel %vm382_vm0, %v1931_v55, 0.0 }
 0x388   : > { %v1949_v18 = vadd.f32 %v1948_v20, %v1947_v3  ;;  %v2997_v34 = vadd.f32 %v1108_v10, %v1107_v24  ;;  %v1972_v30 = vadd.f32 %v1971_v4, %v1970_v61  ;;  %v1976_v19 = vrot.slane %v1975_v58, 4 }
 0x389   : > { %v1868_v43 = vadd.f32 %v1867_v22, %v2963_v35  ;;  %v1940_v40 = vsel %vm382_vm0, %v1926_v2, 0.0  ;;  %v2999_v35 = vpop.eup %2365  ;;  %v1966_v13 = vrot.slane %v1965_v60, 1  ;;  %v1068_v32 = vmul.f32 %v1054_v17, %v2710_v16 }
 0x38a   : > { %v1941_v1 = vrot.slane %v1940_v40, 4  ;;  %v1950_v36 = vrot.slane %v1949_v18, 2  ;;  %v1977_v57 = vadd.f32 %v1976_v19, %v1975_v58  ;;  %v1500_v9 = vmul.f32 %v1456_v27, %v2904_v31 }
 0x38b   : > { %v1925_v28 = vmul.f32 %v2910_v12, %v1868_v43  ;;  %v1499_v12 = vmul.f32 %v1449_v29, %v2915_v52  ;;  %v1958_v61 = vadd.f32 %v1957_v59, %v1956_v5  ;;  %v1112_v48 = vsel %vm382_vm0, %v1068_v32, 0.0  ;;  %v1484_v29 = vpop.permute.xlu1 %1483  ;;  %v1477_v59 = vpop.permute.xlu0 %1476 }
 0x38c   : > { %v1942_v37 = vadd.f32 %v1941_v1, %v1940_v40  ;;  %v1973_v3 = vrot.slane %v1972_v30, 1  ;;  %v1978_v20 = vrot.slane %v1977_v57, 2  ;;  %v1514_v55 = vsel %vm382_vm0, %v1500_v9, 0.0 }
 0x38d   : > { %v1933_v50 = vsel %vm382_vm0, %v1925_v28, 0.0  ;;  %v1507_v22 = vsel %vm382_vm0, %v1499_v12, 0.0  ;;  %v1967_v2 = vadd.f32 %v1966_v13, %v1965_v60  ;;  %v1515_v10 = vrot.slane %v1514_v55, 4 }
 0x38e   : > { %v1934_v24 = vrot.slane %v1933_v50, 4  ;;  %v1943_v25 = vrot.slane %v1942_v37, 2  ;;  %v1951_v4 = vadd.f32 %v1950_v36, %v1949_v18  ;;  %v1113_v31 = vrot.slane %v1112_v48, 4 }
 0x38f   : > { %v1508_v27 = vrot.slane %v1507_v22, 4  ;;  %v1502_v52 = vmul.f32 %v1470_v54, %v2887_v26  ;;  %v1959_v43 = vrot.slane %v1958_v61, 1  ;;  %v1516_v40 = vadd.f32 %v1515_v10, %v1514_v55 }
 0x390   : > { %v1935_v16 = vadd.f32 %v1934_v24, %v1933_v50  ;;  %v1944_v17 = vadd.f32 %v1943_v25, %v1942_v37  ;;  %v1501_v1 = vmul.f32 %v1463_v49, %v2895_v63  ;;  %v1974_v58 = vadd.f32 %v1973_v3, %v1972_v30  ;;  %v1498_v3 = vpop.permute.xlu1 %1497 }
 0x391   : > { %v1979_v28 = vadd.f32 %v1978_v20, %v1977_v57  ;;  %v1509_v19 = vadd.f32 %v1508_v27, %v1507_v22  ;;  %v1528_v60 = vsel %vm382_vm0, %v1502_v52, 0.0  ;;  %v1517_v36 = vrot.slane %v1516_v40, 2 }
 0x392   : > { %v1936_v5 = vrot.slane %v1935_v16, 2  ;;  %v1945_v18 = vrot.slane %v1944_v17, 1  ;;  %v1529_v13 = vrot.slane %v1528_v60, 4  ;;  %v1952_v26 = vrot.slane %v1951_v4, 1 }
 0x393   : > { %v1114_v54 = vadd.f32 %v1113_v31, %v1112_v48  ;;  %v1510_v32 = vrot.slane %v1509_v19, 2  ;;  %v1521_v50 = vsel %vm382_vm0, %v1501_v1, 0.0  ;;  %v1518_v63 = vadd.f32 %v1517_v36, %v1516_v40  ;;  %v1491_v48 = vpop.permute.xlu0 %1490 }
 0x394   : > { %v1937_v37 = vadd.f32 %v1936_v5, %v1935_v16  ;;  %v1530_v49 = vadd.f32 %v1529_v13, %v1528_v60  ;;  %v1522_v30 = vrot.slane %v1521_v50, 4  ;;  %v1980_v57 = vrot.slane %v1979_v28, 1 }
 0x395   : > { %v1511_v12 = vadd.f32 %v1510_v32, %v1509_v19  ;;  %v1504_v24 = vmul.f32 %v1484_v29, %v2869_v53  ;;  %v1503_v25 = vmul.f32 %v1477_v59, %v2878_v41  ;;  %v1946_v55 = vadd.f32 %v1945_v18, %v1944_v17  ;;  %v1061_v32 = vpop.permute.xlu1 %1060 }
 0x396   : > { %v1938_v9 = vrot.slane %v1937_v37, 1  ;;  %v1531_v22 = vrot.slane %v1530_v49, 2  ;;  %v1523_v16 = vadd.f32 %v1522_v30, %v1521_v50  ;;  %v1953_v10 = vadd.f32 %v1952_v26, %v1951_v4 }
 0x397   : > { %v1519_v31 = vrot.slane %v1518_v63, 1  ;;  %v1542_v27 = vsel %vm382_vm0, %v1504_v24, 0.0  ;;  %v1535_v52 = vsel %vm382_vm0, %v1503_v25, 0.0  ;;  %v1960_v40 = vadd.f32 %v1959_v43, %v1958_v61 }
 0x398   : > { %v1939_v20 = vadd.f32 %v1938_v9, %v1937_v37  ;;  %v1512_v1 = vrot.slane %v1511_v12, 1  ;;  %v1524_v19 = vrot.slane %v1523_v16, 2  ;;  %v1981_v41 = vadd.f32 %v1980_v57, %v1979_v28  ;;  %v1924_v28 = vpop.permute.xlu0 %1923 }
 0x399   : > { %v1115_v29 = vrot.slane %v1114_v54, 2  ;;  %v1543_v59 = vrot.slane %v1542_v27, 4  ;;  %v1532_v60 = vadd.f32 %v1531_v22, %v1530_v49  ;;  %v1536_v4 = vrot.slane %v1535_v52, 4 }
 0x39a   : > { %v1997_v5 = vsel %vm1134_vm6, %v1946_v55, %v1939_v20  ;;  %v1525_v37 = vadd.f32 %v1524_v19, %v1523_v16  ;;  %v1520_v36 = vadd.f32 %v1519_v31, %v1518_v63  ;;  %v1506_v26 = vmul.f32 %v1498_v3, %v2850_v11 }
 0x39b   : > { %v1998_v53 = vsel %vm1136_vm7, %v1953_v10, %v1997_v5  ;;  %v1544_v13 = vadd.f32 %v1543_v59, %v1542_v27  ;;  %v1513_v43 = vadd.f32 %v1512_v1, %v1511_v12  ;;  %v1537_v9 = vadd.f32 %v1536_v4, %v1535_v52 }
 0x39c   : > { %v1999_v17 = vsel %vm1138_vm8, %v1960_v40, %v1998_v53  ;;  %v1526_v50 = vrot.slane %v1525_v37, 1  ;;  %v1556_v49 = vsel %vm382_vm0, %v1506_v26, 0.0  ;;  %v1505_v24 = vmul.f32 %v1491_v48, %v2859_v23 }
 0x39d   : > { %v2000_v18 = vsel %vm1140_vm9, %v1967_v2, %v1999_v17  ;;  %v1545_v57 = vrot.slane %v1544_v13, 2  ;;  %v1533_v2 = vrot.slane %v1532_v60, 1  ;;  %v1538_v63 = vrot.slane %v1537_v9, 2 }
 0x39e   : > { %v2001_v61 = vsel %vm1142_vm10, %v1974_v58, %v2000_v18  ;;  %v1557_v25 = vrot.slane %v1556_v49, 4  ;;  %v1069_v11 = vmul.f32 %v1061_v32, %v2689_v42  ;;  %v1527_v3 = vadd.f32 %v1526_v50, %v1525_v37 }
 0x39f   : > { %v3023_v30 = vsel %vm1144_vm11, %v1981_v41, %v2001_v61  ;;  %v1546_v20 = vadd.f32 %v1545_v57, %v1544_v13  ;;  %v1549_v58 = vsel %vm382_vm0, %v1505_v24, 0.0  ;;  %v1932_v12 = vmul.f32 %v1924_v28, %v2923_v21 }
 0x3a0   : > { %v1110_v55 = vrot.slane %v2997_v34, 1  ;;  %v1539_v22 = vadd.f32 %v1538_v63, %v1537_v9  ;;  %v1558_v16 = vadd.f32 %v1557_v25, %v1556_v49  ;;  %v1550_v10 = vrot.slane %v1549_v58, 4 }
 0x3a1   : > { %v1116_v31 = vadd.f32 %v1115_v29, %v1114_v54  ;;  %v1571_v27 = vsel %vm1134_vm6, %v1520_v36, %v1513_v43  ;;  %v1119_v23 = vsel %vm382_vm0, %v1069_v11, 0.0  ;;  %v1982_v48 = vsel %vm382_vm0, %v1932_v12, 0.0 }
 0x3a2   : > { %v1540_v52 = vrot.slane %v1539_v22, 1  ;;  %v1559_v42 = vrot.slane %v1558_v16, 2  ;;  %v1551_v5 = vadd.f32 %v1550_v10, %v1549_v58  ;;  %v1120_v40 = vrot.slane %v1119_v23, 4  ;;  %v2202_v58 = vld [vmem:[%s3097_s8] ss:$0 sm:$0xff] }
 0x3a3   : > { %v1534_v1 = vadd.f32 %v1533_v2, %v1532_v60  ;;  %v1572_v21 = vsel %vm1136_vm7, %v1527_v3, %v1571_v27  ;;  %v1547_v19 = vrot.slane %v1546_v20, 1  ;;  %v1983_v53 = vrot.slane %v1982_v48, 4 }
 0x3a4   : > { %v1541_v41 = vadd.f32 %v1540_v52, %v1539_v22  ;;  %v1560_v59 = vadd.f32 %v1559_v42, %v1558_v16  ;;  %v1552_v17 = vrot.slane %v1551_v5, 2  ;;  %v1121_v54 = vadd.f32 %v1120_v40, %v1119_v23 }
 0x3a5   : > { %v1135_v29 = vsel %vm1134_vm6, %v2986_v38, %v2988_v15  ;;  %v1090_v37 = vadd.f32 %v1089_v0, %v2978_v7  ;;  %v1117_v4 = vrot.slane %v1116_v31, 1  ;;  %v1984_v18 = vadd.f32 %v1983_v53, %v1982_v48 }
 0x3a6   : > { %v1097_v60 = vadd.f32 %v1096_v51, %v2980_v39  ;;  %v1561_v36 = vrot.slane %v1560_v59, 1  ;;  %v1553_v13 = vadd.f32 %v1552_v17, %v1551_v5  ;;  %v1122_v26 = vrot.slane %v1121_v54, 2 }
 0x3a7   : > { %v1104_v32 = vadd.f32 %v1103_v56, %v2982_v8  ;;  %v1548_v61 = vadd.f32 %v1547_v19, %v1546_v20  ;;  %v1573_v38 = vsel %vm1138_vm8, %v1534_v1, %v1572_v21  ;;  %v1985_v15 = vrot.slane %v1984_v18, 2 }
 0x3a8   : > { %v1111_v43 = vadd.f32 %v1110_v55, %v2997_v34  ;;  %v1574_v7 = vsel %vm1140_vm9, %v1541_v41, %v1573_v38  ;;  %v1554_v0 = vrot.slane %v1553_v13, 1  ;;  %v1123_v50 = vadd.f32 %v1122_v26, %v1121_v54 }
 0x3a9   : > { %v1137_v9 = vsel %vm1136_vm7, %v1090_v37, %v1135_v29  ;;  %v1118_v39 = vadd.f32 %v1117_v4, %v1116_v31  ;;  %v1562_v51 = vadd.f32 %v1561_v36, %v1560_v59  ;;  %v1986_v28 = vadd.f32 %v1985_v15, %v1984_v18 }
 0x3aa   : > { %2367 = vrcp.f32 %v2972_v33  ;;  %v1139_v57 = vsel %vm1138_vm8, %v1097_v60, %v1137_v9  ;;  %v1555_v8 = vadd.f32 %v1554_v0, %v1553_v13  ;;  %v1124_v56 = vrot.slane %v1123_v50, 1 }
 0x3ab   : > { %2369 = vrcp.f32 %v2975_v6  ;;  %v1141_v49 = vsel %vm1140_vm9, %v1104_v32, %v1139_v57  ;;  %v1575_v34 = vsel %vm1142_vm10, %v1548_v61, %v1574_v7  ;;  %v1987_v24 = vrot.slane %v1986_v28, 1 }
 0x3ac   : > { %v1143_v2 = vsel %vm1142_vm10, %v1111_v43, %v1141_v49  ;;  %v1576_v63 = vsel %vm1144_vm11, %v1555_v8, %v1575_v34  ;;  %v1125_v25 = vadd.f32 %v1124_v56, %v1123_v50  ;;  %v2017_v55 = vmul.f32 %v2202_v58, %v2488_v45 }
 0x3ad   : > { %v1145_v11 = vsel %vm1144_vm11, %v1118_v39, %v1143_v2  ;;  %v1577_v33 = vsel %vm1146_vm12, %v1562_v51, %v1576_v63  ;;  %v1988_v3 = vadd.f32 %v1987_v24, %v1986_v28  ;;  %v2018_v16 = vmul.f32 %v2202_v58, %v2486_v44 }
 0x3ae   : > { %1580 = vst.msk [vmem:[#allocation7 + $0x8] sm:$0xff] %vm382_vm0, %v1577_v33  ;;  %v1147_v20 = vsel %vm1146_vm12, %v1125_v25, %v1145_v11  ;;  %v2016_v31 = vmul.f32 %v2202_v58, %v2490_v46 }
 0x3af   : > { %1150 = vst.msk [vmem:[#allocation7 + $0x10] sm:$0xff] %vm382_vm0, %v1147_v20  ;;  %v2003_v6 = vsel %vm1146_vm12, %v1988_v3, %v3023_v30  ;;  %v2042_v30 = vmul.f32 %v2999_v35, %v2794_v47 }
 0x3b0   : > { %2005 = vst.msk [vmem:[#allocation7] sm:$0xff] %vm382_vm0, %v2003_v6 }
 0x3b4   : > { %v2368_v12 = vpop.eup %2367 }
 0x3b5   : > { %v2370_v22 = vpop.eup %2369  ;;  %v2007_v10 = vld [vmem:[#allocation7 + $0x8] sm:$0xff]  ;;  %v2040_v42 = vmul.f32 %v2368_v12, %v2796_v14 }
 0x3b6   : > { %v2020_v27 = vadd.f32 %v2017_v55, %v2007_v10  ;;  %v2008_v23 = vld [vmem:[#allocation7 + $0x10] sm:$0x1]  ;;  %v2041_v5 = vmul.f32 %v2370_v22, %v2804_v62 }
 0x3b7   : > { %v2006_v48 = vld [vmem:[#allocation7] sm:$0xff]  ;;  %v2021_v52 = vadd.f32 %v2018_v16, %v2008_v23 }
 0x3b8   : > { %v2019_v40 = vadd.f32 %v2016_v31, %v2006_v48  ;;  %v2044_v21 = vmul.f32 %v2041_v5, %v2020_v27 }
 0x3b9   : > { %v2045_v45 = vmul.f32 %v2042_v30, %v2021_v52 }
 0x3ba   : > { %v2043_v1 = vmul.f32 %v2040_v42, %v2019_v40 }
 0x3bb   : > { %v2047_v44 = vpack.c.bf16 %v2045_v45, %v2045_v45 }
 0x3bc   : > { %v2046_v19 = vpack.c.bf16 %v2044_v21, %v2043_v1 }
 0x3be   : > { %2256 = vmatprep.mubr.msk.bf16.mxu1 %vm382_vm0, %v2046_v19 }
 0x3bf   : > { %2257 = vmatmul.mubr.msk.bf16.vlgmr.msra.gmra.mrb[4].mxu1 %vm382_vm0, %v2047_v44 }
 0x492   : > { %v2258_v46 = vpop.f32.mrb[4].mxu1 }
 0x493   : > { %2120 = vst.msk [vmem:[%s359_s16 + $0x10] sm:$0x1] %vm501_vm1, %v2258_v46  ;;  %v2104_v47 = vpop.f32.mrb[5].mxu1 }
 0x494   : > { %2118 = vst.msk [vmem:[%s359_s16] sm:$0xff] %vm382_vm0, %v2104_v47  ;;  %v2259_v14 = vpop.f32.mrb[6].mxu1 }
 0x495   : > { %v2107_v62 = vpop.f32.mrb[7].mxu1 }
 0x496   : > { %2119 = vst.msk [vmem:[%s359_s16 + $0x8] sm:$0xff] %vm382_vm0, %v2107_v62 }
 0x497 PF: > { %s20_s13 = sadd.s32 1, %s2377_s13  }
 0x498   : > { %p17_p4 = scmp.ge.s32.totalorder %s20_s13, 4  }
 0x49a   :  { %19 = sbr.rel (!%p17_p4) target bundleno = 1 (0x1), region = 100 }

// kernel: _lambda_.18
= control target key start
LH: loop header
LB: loop body
LE: loop exit
PB: predicated region body
PF: predicated region fallthrough
CT: control target
= control target key end

     0   :  { %vm45_vm0 = vcmask 261120   ;;  %vm58_vm1 = vcmask 254976   ;;  %s269_s0 = inlined_call_operand.vmem [shape: f32[34,32], index: 0, kind: input, shape index: {}]   ;;  %s270_s1 = inlined_call_operand.vmem [shape: f32[34,32], index: 1, kind: input, shape index: {}]   ;;  %s271_s2 = inlined_call_operand.vmem [shape: f32[34,32], index: 2, kind: input, shape index: {}]   ;;  %s272_s3 = inlined_call_operand.vmem [shape: f32[1,32], index: 3, kind: input, shape index: {}]   ;;  %s273_s4 = inlined_call_operand.vmem [shape: f32[1,32], index: 4, kind: input, shape index: {}]   ;;  %s274_s5 = inlined_call_operand.vmem [shape: f32[34,32], index: 5, kind: output, shape index: {}]  }
   0x1   :  { %v20_v0 = vld [vmem:[%s269_s0] sm:$0xff]  ;;  %v22_v4 = vld [vmem:[%s269_s0 + $0x10] sm:$0xff]  ;;  %v21_v8 = vld [vmem:[%s269_s0 + $0x8] sm:$0xff] }
   0x2   :  { %v25_v1 = vld [vmem:[%s270_s1] sm:$0xff]  ;;  %v27_v5 = vld [vmem:[%s270_s1 + $0x10] sm:$0xff]  ;;  %v26_v9 = vld [vmem:[%s270_s1 + $0x8] sm:$0xff] }
   0x3   :  { %v35_v2 = vld [vmem:[%s271_s2] sm:$0xff]  ;;  %v30_v3 = vadd.f32 %v25_v1, %v20_v0  ;;  %v37_v6 = vld [vmem:[%s271_s2 + $0x10] sm:$0xff]  ;;  %v32_v7 = vadd.f32 %v27_v5, %v22_v4  ;;  %v36_v10 = vld [vmem:[%s271_s2 + $0x8] sm:$0xff]  ;;  %v31_v12 = vadd.f32 %v26_v9, %v21_v8 }
   0x4   :  { %v23_v13 = vld [vmem:[%s269_s0 + $0x18] sm:$0xff]  ;;  %v24_v18 = vld [vmem:[%s269_s0 + $0x20] sm:$0x3] }
   0x5   :  { %v40_v11 = vadd.f32 %v35_v2, %v30_v3  ;;  %v28_v14 = vld [vmem:[%s270_s1 + $0x18] sm:$0xff]  ;;  %v42_v16 = vadd.f32 %v37_v6, %v32_v7  ;;  %v29_v19 = vld [vmem:[%s270_s1 + $0x20] sm:$0x3]  ;;  %v41_v22 = vadd.f32 %v36_v10, %v31_v12 }
   0x6   :  { %v38_v15 = vld [vmem:[%s271_s2 + $0x18] sm:$0xff]  ;;  %v33_v17 = vadd.f32 %v28_v14, %v23_v13  ;;  %v39_v20 = vld [vmem:[%s271_s2 + $0x20] sm:$0x3]  ;;  %v34_v23 = vadd.f32 %v29_v19, %v24_v18 }
   0x7   :  { %v46_v21 = vsel %vm45_vm0, %v40_v11, 0.0  ;;  %v52_v24 = vsel %vm45_vm0, %v42_v16, 0.0  ;;  %v49_v26 = vsel %vm45_vm0, %v41_v22, 0.0  ;;  %v146_v7 = vld [vmem:[%s272_s3] ss:$0 sm:$0xff] }
   0x8   :  { %47 = vadd.xlane.f32.xlu0 %v46_v21  ;;  %v43_v25 = vadd.f32 %v38_v15, %v33_v17  ;;  %53 = vadd.xlane.f32.xlu1 %v52_v24  ;;  %v44_v27 = vadd.f32 %v39_v20, %v34_v23  ;;  %v147_v9 = vld [vmem:[%s273_s4] ss:$0 sm:$0xff] }
   0xa   :  { %v55_v28 = vsel %vm45_vm0, %v43_v25, 0.0  ;;  %v59_v29 = vsel %vm58_vm1, %v44_v27, 0.0 }
   0xc   :  { %50 = vadd.xlane.f32.xlu0 %v49_v26  ;;  %56 = vadd.xlane.f32.xlu1 %v55_v28 }
  0x10   :  { %60 = vadd.xlane.f32.xlu0 %v59_v29 }
  0x95   :  { %v48_v30 = vpop.xlane.xlu0 %47  ;;  %v54_v32 = vpop.xlane.xlu1 %53 }
  0x96   :  { %v63_v31 = vmul.f32 0.03125, %v48_v30  ;;  %v65_v33 = vmul.f32 0.03125, %v54_v32 }
  0x98   :  { %v68_v34 = vsub.f32 %v40_v11, %v63_v31  ;;  %v70_v35 = vsub.f32 %v42_v16, %v65_v33 }
  0x99   :  { %v51_v36 = vpop.xlane.xlu0 %50  ;;  %v57_v38 = vpop.xlane.xlu1 %56 }
  0x9a   :  { %v64_v37 = vmul.f32 0.03125, %v51_v36  ;;  %v73_v39 = vmul.f32 %v68_v34, %v68_v34  ;;  %v66_v40 = vmul.f32 0.03125, %v57_v38  ;;  %v75_v41 = vmul.f32 %v70_v35, %v70_v35 }
  0x9c   :  { %v69_v42 = vsub.f32 %v41_v22, %v64_v37  ;;  %v78_v43 = vsel %vm45_vm0, %v73_v39, 0.0  ;;  %v71_v44 = vsub.f32 %v43_v25, %v66_v40  ;;  %v84_v47 = vsel %vm45_vm0, %v75_v41, 0.0 }
  0x9d   :  { %79 = vadd.xlane.f32.xlu1 %v78_v43  ;;  %v61_v45 = vpop.xlane.xlu0 %60 }
  0x9e   :  { %v67_v46 = vmul.f32 0.03125, %v61_v45  ;;  %v74_v48 = vmul.f32 %v69_v42, %v69_v42  ;;  %v76_v49 = vmul.f32 %v71_v44, %v71_v44 }
  0xa0   :  { %v72_v50 = vsub.f32 %v44_v27, %v67_v46  ;;  %v81_v51 = vsel %vm45_vm0, %v74_v48, 0.0  ;;  %v87_v52 = vsel %vm45_vm0, %v76_v49, 0.0 }
  0xa1   :  { %85 = vadd.xlane.f32.xlu1 %v84_v47  ;;  %82 = vadd.xlane.f32.xlu0 %v81_v51 }
  0xa2   :  { %v77_v53 = vmul.f32 %v72_v50, %v72_v50 }
  0xa4   :  { %v90_v54 = vsel %vm58_vm1, %v77_v53, 0.0 }
  0xa5   :  { %88 = vadd.xlane.f32.xlu0 %v87_v52  ;;  %91 = vadd.xlane.f32.xlu1 %v90_v54 }
 0x12a   :  { %v80_v55 = vpop.xlane.xlu1 %79 }
 0x12b   :  { %v93_v56 = vmul.f32 0.03125, %v80_v55 }
 0x12d   :  { %v98_v57 = vadd.f32 1e-05, %v93_v56 }
 0x12e   :  { %v86_v58 = vpop.xlane.xlu1 %85  ;;  %v83_v59 = vpop.xlane.xlu0 %82 }
 0x12f   :  { %148 = vrsqrt.f32 %v98_v57  ;;  %v95_v60 = vmul.f32 0.03125, %v86_v58  ;;  %v94_v61 = vmul.f32 0.03125, %v83_v59 }
 0x131   :  { %v100_v62 = vadd.f32 1e-05, %v95_v60  ;;  %v99_v63 = vadd.f32 1e-05, %v94_v61 }
 0x132   :  { %v92_v0 = vpop.xlane.xlu1 %91  ;;  %v89_v1 = vpop.xlane.xlu0 %88 }
 0x133   :  { %150 = vrsqrt.f32 %v100_v62  ;;  %v97_v2 = vmul.f32 0.03125, %v92_v0  ;;  %v96_v3 = vmul.f32 0.03125, %v89_v1 }
 0x134   :  { %152 = vrsqrt.f32 %v99_v63 }
 0x135   :  { %v102_v4 = vadd.f32 1e-05, %v97_v2  ;;  %v101_v5 = vadd.f32 1e-05, %v96_v3 }
 0x137   :  { %154 = vrsqrt.f32 %v102_v4 }
 0x138   :  { %156 = vrsqrt.f32 %v101_v5 }
 0x139   :  { %v149_v6 = vpop.eup %148 }
 0x13a   :  { %v108_v8 = vmul.f32 %v149_v6, %v68_v34 }
 0x13c   :  { %v120_v10 = vmul.f32 %v146_v7, %v108_v8 }
 0x13d   :  { %v151_v11 = vpop.eup %150 }
 0x13e   :  { %v153_v12 = vpop.eup %152  ;;  %v132_v13 = vadd.f32 %v147_v9, %v120_v10  ;;  %v110_v14 = vmul.f32 %v151_v11, %v70_v35 }
 0x13f   :  { %v109_v15 = vmul.f32 %v153_v12, %v69_v42 }
 0x140   :  { %137 = vst.msk [vmem:[%s274_s5] sm:$0xff] %vm45_vm0, %v132_v13  ;;  %v122_v16 = vmul.f32 %v146_v7, %v110_v14 }
 0x141   :  { %v155_v17 = vpop.eup %154  ;;  %v121_v18 = vmul.f32 %v146_v7, %v109_v15 }
 0x142   :  { %v157_v19 = vpop.eup %156  ;;  %v134_v20 = vadd.f32 %v147_v9, %v122_v16  ;;  %v112_v21 = vmul.f32 %v155_v17, %v72_v50 }
 0x143   :  { %v133_v22 = vadd.f32 %v147_v9, %v121_v18  ;;  %v111_v23 = vmul.f32 %v157_v19, %v71_v44 }
 0x144   :  { %139 = vst.msk [vmem:[%s274_s5 + $0x10] sm:$0xff] %vm45_vm0, %v134_v20  ;;  %v124_v24 = vmul.f32 %v146_v7, %v112_v21 }
 0x145   :  { %138 = vst.msk [vmem:[%s274_s5 + $0x8] sm:$0xff] %vm45_vm0, %v133_v22  ;;  %v123_v25 = vmul.f32 %v146_v7, %v111_v23 }
 0x146   :  { %v136_v26 = vadd.f32 %v147_v9, %v124_v24 }
 0x147   :  { %v135_v27 = vadd.f32 %v147_v9, %v123_v25 }
 0x148   :  { %141 = vst.msk [vmem:[%s274_s5 + $0x20] sm:$0x3] %vm58_vm1, %v136_v26 }
 0x149   :  { %140 = vst.msk [vmem:[%s274_s5 + $0x18] sm:$0xff] %vm45_vm0, %v135_v27 }

// kernel: _lambda_.19
= control target key start
LH: loop header
LB: loop body
LE: loop exit
PB: predicated region body
PF: predicated region fallthrough
CT: control target
= control target key end

     0   :  { %v424_v0 = vmov 0.0   ;;  %vm425_vm0 = vmmov 0   ;;  %vm58_vm1 = vcmask 261120   ;;  %vm171_vm2 = vcmask 523264   ;;  %s586_s1 = inlined_call_operand.vmem [shape: bf16[32,64], index: 1, kind: input, shape index: {}]   ;;  %s587_s0 = inlined_call_operand.vmem [shape: f32[34,32], index: 0, kind: input, shape index: {}]   ;;  %s588_s3 = inlined_call_operand.vmem [shape: bf16[64,32], index: 3, kind: input, shape index: {}]   ;;  %s589_s2 = inlined_call_operand.vmem [shape: f32[1,64], index: 2, kind: input, shape index: {}]   ;;  %s590_s4 = inlined_call_operand.vmem [shape: f32[1,32], index: 4, kind: input, shape index: {}]   ;;  %s591_s5 = inlined_call_operand.vmem [shape: f32[1,32], index: 5, kind: input, shape index: {}]   ;;  %s592_s6 = inlined_call_operand.vmem [shape: f32[1,32], index: 6, kind: input, shape index: {}]   ;;  %s593_s7 = inlined_call_operand.vmem [shape: f32[34,32], index: 7, kind: output, shape index: {}]  }
   0x1   :  { %370 = vmatprep.subr.bf16.mxu0 %v424_v0  ;;  %v408_v1 = vld [vmem:[%s586_s1] sm:$0xff]   ;;  %374 = vmatprep.mubr.msk.bf16.mxu0 %vm425_vm0, %v424_v0  ;;  %v409_v2 = vld [vmem:[%s586_s1 + $0x8] sm:$0xff]   ;;  %v504_v8 = vld [vmem:[%s587_s0 + $0x10] sm:$0xff]  ;;  %vm254_vm3 = vcmask 254976  }
   0x2   :  { %386 = vmatprep.subr.bf16.mxu1 %v424_v0  ;;  %394 = vmatprep.mubr.msk.bf16.mxu1 %vm425_vm0, %v424_v0  ;;  %v481_v3 = vld [vmem:[%s587_s0] sm:$0xff]  ;;  %v486_v4 = vld [vmem:[%s587_s0 + $0x8] sm:$0xff]  ;;  %v509_v9 = vld [vmem:[%s587_s0 + $0x18] sm:$0xff] }
   0x3   :  { %371 = vmatpush3.bf16.msra.mxu0 %v408_v1  ;;  %v410_v5 = vld [vmem:[%s588_s3] sm:$0xff]   ;;  %v32_v6 = vpack.c.bf16 %v486_v4, %v481_v3  ;;  %v411_v7 = vld [vmem:[%s588_s3 + $0x8] sm:$0xff]   ;;  %v33_v10 = vpack.c.bf16 %v509_v9, %v504_v8  ;;  %v412_v13 = vld [vmem:[%s588_s3 + $0x10] sm:$0xff]  }
   0x4   :  { %372 = vmatprep.subr.bf16.mxu0 %v424_v0  ;;  %387 = vmatpush3.bf16.msra.mxu1 %v410_v5  ;;  %v520_v11 = vld [vmem:[%s587_s0 + $0x20] sm:$0x3]  ;;  %v413_v14 = vld [vmem:[%s588_s3 + $0x18] sm:$0xff]  }
   0x5   :  { %388 = vmatprep.subr.bf16.mxu1 %v424_v0  ;;  %v34_v12 = vpack.c.bf16 %v520_v11, %v520_v11  ;;  %v342_v15 = vld [vmem:[%s589_s2] ss:$0 sm:$0xff] }
   0x6   :  { %v348_v41 = vld [vmem:[%s590_s4] ss:$0 sm:$0xff] }
   0x7   :  { %373 = vmatpush3.bf16.msra.mxu0 %v409_v2 }
   0x8   :  { %389 = vmatpush3.bf16.msra.mxu1 %v411_v7 }
   0x9   :  { %390 = vmatprep.subr.bf16.mxu1 %v424_v0 }
   0xa   :  { %375 = vmatmul.mubr.msk.bf16.vlgmr.msra.gmra.mrb[0].mxu0 %vm58_vm1, %v32_v6 }
   0xb   :  { %378 = vmatprep.mubr.msk.bf16.mxu0 %vm425_vm0, %v424_v0 }
   0xc   :  { %391 = vmatpush3.bf16.msra.mxu1 %v412_v13 }
   0xd   :  { %392 = vmatprep.subr.bf16.mxu1 %v424_v0 }
  0x10   :  { %393 = vmatpush3.bf16.msra.mxu1 %v413_v14 }
  0x12   :  { %379 = vmatmul.mubr.msk.bf16.gmra.mrb[4].mxu0 %vm58_vm1, %v33_v10 }
  0x13   :  { %382 = vmatprep.mubr.msk.bf16.mxu0 %vm425_vm0, %v424_v0 }
  0x1a   :  { %383 = vmatmul.mubr.msk.bf16.gmra.mrb[8].mxu0 %vm58_vm1, %v34_v12 }
  0xdd   :  { %v102_v16 = vpop.f32.mrb[0].mxu0 }
  0xde   :  { %v103_v17 = vadd.f32 %v342_v15, %v102_v16  ;;  %v376_v18 = vpop.f32.mrb[1].mxu0 }
  0xdf   :  { %v105_v19 = vpop.f32.mrb[2].mxu0 }
  0xe0   :  { %v106_v20 = vadd.f32 %v342_v15, %v105_v19  ;;  %v377_v21 = vpop.f32.mrb[3].mxu0  ;;  %v124_v22 = vmax.f32 %v103_v17, 0.0 }
  0xe2   :  { %v125_v23 = vmax.f32 %v106_v20, 0.0 }
  0xe4   :  { %v129_v24 = vpack.c.bf16 %v125_v23, %v124_v22 }
  0xe5   :  { %v110_v25 = vpop.f32.mrb[4].mxu0 }
  0xe6   :  { %v111_v26 = vadd.f32 %v342_v15, %v110_v25  ;;  %v380_v27 = vpop.f32.mrb[5].mxu0  ;;  %395 = vmatmul.mubr.msk.bf16.vlgmr.msra.gmra.mrb[0].mxu1 %vm171_vm2, %v129_v24 }
  0xe7   :  { %v113_v28 = vpop.f32.mrb[6].mxu0  ;;  %398 = vmatprep.mubr.msk.bf16.mxu1 %vm425_vm0, %v424_v0 }
  0xe8   :  { %v114_v29 = vadd.f32 %v342_v15, %v113_v28  ;;  %v381_v30 = vpop.f32.mrb[7].mxu0  ;;  %v126_v31 = vmax.f32 %v111_v26, 0.0 }
  0xea   :  { %v127_v32 = vmax.f32 %v114_v29, 0.0 }
  0xec   :  { %v130_v33 = vpack.c.bf16 %v127_v32, %v126_v31 }
  0xed   :  { %v118_v34 = vpop.f32.mrb[8].mxu0 }
  0xee   :  { %v119_v35 = vadd.f32 %v342_v15, %v118_v34  ;;  %v384_v36 = vpop.f32.mrb[9].mxu0  ;;  %399 = vmatmul.mubr.msk.bf16.gmra.mrb[4].mxu1 %vm171_vm2, %v130_v33 }
  0xef   :  { %v121_v37 = vpop.f32.mrb[10].mxu0  ;;  %402 = vmatprep.mubr.msk.bf16.mxu1 %vm425_vm0, %v424_v0 }
  0xf0   :  { %v128_v38 = vmax.f32 %v119_v35, 0.0  ;;  %v385_v39 = vpop.f32.mrb[11].mxu0 }
  0xf2   :  { %v131_v40 = vpack.c.bf16 %v128_v38, %v128_v38 }
  0xf6   :  { %403 = vmatmul.mubr.msk.bf16.gmra.mrb[8].mxu1 %vm171_vm2, %v131_v40 }
 0x1b9   :  { %v215_v42 = vpop.f32.mrb[0].mxu1 }
 0x1ba   :  { %v216_v43 = vadd.f32 %v348_v41, %v215_v42  ;;  %v396_v44 = vpop.f32.mrb[1].mxu1  ;;  %v356_v42 = vld [vmem:[%s591_s5] ss:$0 sm:$0xff] }
 0x1bb   :  { %v218_v45 = vpop.f32.mrb[2].mxu1 }
 0x1bc   :  { %v219_v46 = vadd.f32 %v348_v41, %v218_v45  ;;  %v397_v47 = vpop.f32.mrb[3].mxu1  ;;  %v237_v48 = vadd.f32 %v216_v43, %v481_v3 }
 0x1be   :  { %v242_v49 = vsel %vm58_vm1, %v237_v48, 0.0  ;;  %v238_v50 = vadd.f32 %v219_v46, %v486_v4  ;;  %v357_v46 = vld [vmem:[%s592_s6] ss:$0 sm:$0xff] }
 0x1bf   :  { %243 = vadd.xlane.f32.xlu0 %v242_v49 }
 0x1c0   :  { %v245_v54 = vsel %vm58_vm1, %v238_v50, 0.0 }
 0x1c1   :  { %v223_v51 = vpop.f32.mrb[4].mxu1 }
 0x1c2   :  { %v224_v52 = vadd.f32 %v348_v41, %v223_v51  ;;  %v400_v53 = vpop.f32.mrb[5].mxu1 }
 0x1c3   :  { %246 = vadd.xlane.f32.xlu0 %v245_v54  ;;  %v226_v55 = vpop.f32.mrb[6].mxu1 }
 0x1c4   :  { %v227_v56 = vadd.f32 %v348_v41, %v226_v55  ;;  %v401_v57 = vpop.f32.mrb[7].mxu1  ;;  %v239_v58 = vadd.f32 %v224_v52, %v504_v8 }
 0x1c6   :  { %v248_v59 = vsel %vm58_vm1, %v239_v58, 0.0  ;;  %v240_v60 = vadd.f32 %v227_v56, %v509_v9 }
 0x1c7   :  { %249 = vadd.xlane.f32.xlu1 %v248_v59 }
 0x1c8   :  { %v251_v0 = vsel %vm58_vm1, %v240_v60, 0.0 }
 0x1c9   :  { %v231_v61 = vpop.f32.mrb[8].mxu1 }
 0x1ca   :  { %v232_v62 = vadd.f32 %v348_v41, %v231_v61  ;;  %v404_v63 = vpop.f32.mrb[9].mxu1 }
 0x1cb   :  { %252 = vadd.xlane.f32.xlu1 %v251_v0  ;;  %v234_v1 = vpop.f32.mrb[10].mxu1 }
 0x1cc   :  { %v405_v2 = vpop.f32.mrb[11].mxu1  ;;  %v241_v3 = vadd.f32 %v232_v62, %v520_v11 }
 0x1ce   :  { %v255_v4 = vsel %vm254_vm3, %v241_v3, 0.0 }
 0x1cf   :  { %256 = vadd.xlane.f32.xlu0 %v255_v4 }
 0x24c   :  { %v244_v5 = vpop.xlane.xlu0 %243 }
 0x24d   :  { %v259_v6 = vmul.f32 0.03125, %v244_v5 }
 0x24f   :  { %v264_v7 = vsub.f32 %v237_v48, %v259_v6 }
 0x250   :  { %v247_v8 = vpop.xlane.xlu0 %246 }
 0x251   :  { %v260_v9 = vmul.f32 0.03125, %v247_v8  ;;  %v269_v10 = vmul.f32 %v264_v7, %v264_v7 }
 0x253   :  { %v265_v12 = vsub.f32 %v238_v50, %v260_v9  ;;  %v274_v13 = vsel %vm58_vm1, %v269_v10, 0.0 }
 0x254   :  { %v250_v14 = vpop.xlane.xlu1 %249  ;;  %275 = vadd.xlane.f32.xlu1 %v274_v13 }
 0x255   :  { %v261_v15 = vmul.f32 0.03125, %v250_v14  ;;  %v270_v16 = vmul.f32 %v265_v12, %v265_v12 }
 0x257   :  { %v266_v17 = vsub.f32 %v239_v58, %v261_v15  ;;  %v277_v18 = vsel %vm58_vm1, %v270_v16, 0.0 }
 0x258   :  { %v253_v11 = vpop.xlane.xlu1 %252  ;;  %278 = vadd.xlane.f32.xlu0 %v277_v18 }
 0x259   :  { %v262_v19 = vmul.f32 0.03125, %v253_v11  ;;  %v271_v20 = vmul.f32 %v266_v17, %v266_v17 }
 0x25b   :  { %v267_v21 = vsub.f32 %v240_v60, %v262_v19  ;;  %v280_v22 = vsel %vm58_vm1, %v271_v20, 0.0 }
 0x25c   :  { %281 = vadd.xlane.f32.xlu1 %v280_v22  ;;  %v257_v23 = vpop.xlane.xlu0 %256 }
 0x25d   :  { %v263_v24 = vmul.f32 0.03125, %v257_v23  ;;  %v272_v25 = vmul.f32 %v267_v21, %v267_v21 }
 0x25f   :  { %v268_v26 = vsub.f32 %v241_v3, %v263_v24  ;;  %v283_v27 = vsel %vm58_vm1, %v272_v25, 0.0 }
 0x260   :  { %284 = vadd.xlane.f32.xlu0 %v283_v27 }
 0x261   :  { %v273_v28 = vmul.f32 %v268_v26, %v268_v26 }
 0x263   :  { %v286_v29 = vsel %vm254_vm3, %v273_v28, 0.0 }
 0x264   :  { %287 = vadd.xlane.f32.xlu1 %v286_v29 }
 0x2e1   :  { %v276_v30 = vpop.xlane.xlu1 %275 }
 0x2e2   :  { %v289_v31 = vmul.f32 0.03125, %v276_v30 }
 0x2e4   :  { %v294_v32 = vadd.f32 1e-05, %v289_v31 }
 0x2e5   :  { %v279_v33 = vpop.xlane.xlu0 %278 }
 0x2e6   :  { %414 = vrsqrt.f32 %v294_v32  ;;  %v290_v34 = vmul.f32 0.03125, %v279_v33 }
 0x2e8   :  { %v295_v35 = vadd.f32 1e-05, %v290_v34 }
 0x2e9   :  { %v282_v36 = vpop.xlane.xlu1 %281 }
 0x2ea   :  { %416 = vrsqrt.f32 %v295_v35  ;;  %v291_v37 = vmul.f32 0.03125, %v282_v36 }
 0x2ec   :  { %v296_v38 = vadd.f32 1e-05, %v291_v37 }
 0x2ed   :  { %v285_v39 = vpop.xlane.xlu0 %284 }
 0x2ee   :  { %418 = vrsqrt.f32 %v296_v38  ;;  %v292_v40 = vmul.f32 0.03125, %v285_v39 }
 0x2f0   :  { %v415_v41 = vpop.eup %414  ;;  %v297_v43 = vadd.f32 1e-05, %v292_v40 }
 0x2f1   :  { %v304_v44 = vmul.f32 %v415_v41, %v264_v7  ;;  %v288_v45 = vpop.xlane.xlu1 %287 }
 0x2f2   :  { %420 = vrsqrt.f32 %v297_v43  ;;  %v293_v47 = vmul.f32 0.03125, %v288_v45 }
 0x2f3   :  { %v316_v48 = vmul.f32 %v356_v42, %v304_v44 }
 0x2f4   :  { %v417_v49 = vpop.eup %416  ;;  %v298_v50 = vadd.f32 1e-05, %v293_v47 }
 0x2f5   :  { %v328_v51 = vadd.f32 %v357_v46, %v316_v48  ;;  %v305_v52 = vmul.f32 %v417_v49, %v265_v12 }
 0x2f6   :  { %422 = vrsqrt.f32 %v298_v50 }
 0x2f7   :  { %333 = vst.msk [vmem:[%s593_s7] sm:$0xff] %vm58_vm1, %v328_v51  ;;  %v317_v53 = vmul.f32 %v356_v42, %v305_v52 }
 0x2f8   :  { %v419_v54 = vpop.eup %418 }
 0x2f9   :  { %v329_v55 = vadd.f32 %v357_v46, %v317_v53  ;;  %v306_v56 = vmul.f32 %v419_v54, %v266_v17 }
 0x2fb   :  { %334 = vst.msk [vmem:[%s593_s7 + $0x8] sm:$0xff] %vm58_vm1, %v329_v55  ;;  %v318_v57 = vmul.f32 %v356_v42, %v306_v56 }
 0x2fc   :  { %v421_v58 = vpop.eup %420 }
 0x2fd   :  { %v330_v59 = vadd.f32 %v357_v46, %v318_v57  ;;  %v307_v60 = vmul.f32 %v421_v58, %v267_v21 }
 0x2ff   :  { %335 = vst.msk [vmem:[%s593_s7 + $0x10] sm:$0xff] %vm58_vm1, %v330_v59  ;;  %v319_v61 = vmul.f32 %v356_v42, %v307_v60 }
 0x300   :  { %v423_v62 = vpop.eup %422 }
 0x301   :  { %v331_v63 = vadd.f32 %v357_v46, %v319_v61  ;;  %v308_v0 = vmul.f32 %v423_v62, %v268_v26 }
 0x303   :  { %336 = vst.msk [vmem:[%s593_s7 + $0x18] sm:$0xff] %vm58_vm1, %v331_v63  ;;  %v320_v1 = vmul.f32 %v356_v42, %v308_v0 }
 0x305   :  { %v332_v2 = vadd.f32 %v357_v46, %v320_v1 }
 0x307   :  { %337 = vst.msk [vmem:[%s593_s7 + $0x20] sm:$0x3] %vm254_vm3, %v332_v2 }

// kernel: _lambda_.20
= control target key start
LH: loop header
LB: loop body
LE: loop exit
PB: predicated region body
PF: predicated region fallthrough
CT: control target
= control target key end

     0   :  { %vm19_vm0 = vcmask 261120   ;;  %vm32_vm1 = vcmask 254976   ;;  %s203_s0 = inlined_call_operand.vmem [shape: f32[34,32], index: 0, kind: input, shape index: {}]   ;;  %s204_s1 = inlined_call_operand.vmem [shape: f32[1,32], index: 1, kind: input, shape index: {}]   ;;  %s205_s2 = inlined_call_operand.vmem [shape: f32[1,32], index: 2, kind: input, shape index: {}]   ;;  %s206_s3 = inlined_call_operand.vmem [shape: f32[34,32], index: 3, kind: output, shape index: {}]  }
   0x1   :  { %v14_v0 = vld [vmem:[%s203_s0] sm:$0xff]  ;;  %v16_v1 = vld [vmem:[%s203_s0 + $0x10] sm:$0xff]  ;;  %v15_v2 = vld [vmem:[%s203_s0 + $0x8] sm:$0xff] }
   0x2   :  { %v20_v3 = vsel %vm19_vm0, %v14_v0, 0.0  ;;  %v26_v4 = vsel %vm19_vm0, %v16_v1, 0.0  ;;  %v17_v5 = vld [vmem:[%s203_s0 + $0x18] sm:$0xff]  ;;  %v23_v6 = vsel %vm19_vm0, %v15_v2, 0.0  ;;  %v18_v8 = vld [vmem:[%s203_s0 + $0x20] sm:$0x3] }
   0x3   :  { %21 = vadd.xlane.f32.xlu0 %v20_v3  ;;  %27 = vadd.xlane.f32.xlu1 %v26_v4  ;;  %v29_v7 = vsel %vm19_vm0, %v17_v5, 0.0  ;;  %v33_v9 = vsel %vm32_vm1, %v18_v8, 0.0  ;;  %v120_v51 = vld [vmem:[%s204_s1] ss:$0 sm:$0xff] }
   0x4   :  { %v121_v53 = vld [vmem:[%s205_s2] ss:$0 sm:$0xff] }
   0x7   :  { %24 = vadd.xlane.f32.xlu0 %v23_v6  ;;  %30 = vadd.xlane.f32.xlu1 %v29_v7 }
   0xb   :  { %34 = vadd.xlane.f32.xlu0 %v33_v9 }
  0x90   :  { %v22_v10 = vpop.xlane.xlu0 %21  ;;  %v28_v11 = vpop.xlane.xlu1 %27 }
  0x91   :  { %v37_v12 = vmul.f32 0.03125, %v22_v10  ;;  %v39_v13 = vmul.f32 0.03125, %v28_v11 }
  0x93   :  { %v42_v14 = vsub.f32 %v14_v0, %v37_v12  ;;  %v44_v15 = vsub.f32 %v16_v1, %v39_v13 }
  0x94   :  { %v25_v16 = vpop.xlane.xlu0 %24  ;;  %v31_v17 = vpop.xlane.xlu1 %30 }
  0x95   :  { %v38_v18 = vmul.f32 0.03125, %v25_v16  ;;  %v40_v19 = vmul.f32 0.03125, %v31_v17  ;;  %v47_v20 = vmul.f32 %v42_v14, %v42_v14  ;;  %v49_v21 = vmul.f32 %v44_v15, %v44_v15 }
  0x97   :  { %v43_v22 = vsub.f32 %v15_v2, %v38_v18  ;;  %v45_v23 = vsub.f32 %v17_v5, %v40_v19  ;;  %v52_v24 = vsel %vm19_vm0, %v47_v20, 0.0  ;;  %v58_v27 = vsel %vm19_vm0, %v49_v21, 0.0 }
  0x98   :  { %53 = vadd.xlane.f32.xlu1 %v52_v24  ;;  %v35_v25 = vpop.xlane.xlu0 %34 }
  0x99   :  { %v41_v26 = vmul.f32 0.03125, %v35_v25  ;;  %v48_v28 = vmul.f32 %v43_v22, %v43_v22  ;;  %v50_v29 = vmul.f32 %v45_v23, %v45_v23 }
  0x9b   :  { %v46_v30 = vsub.f32 %v18_v8, %v41_v26  ;;  %v55_v31 = vsel %vm19_vm0, %v48_v28, 0.0  ;;  %v61_v32 = vsel %vm19_vm0, %v50_v29, 0.0 }
  0x9c   :  { %59 = vadd.xlane.f32.xlu1 %v58_v27  ;;  %56 = vadd.xlane.f32.xlu0 %v55_v31 }
  0x9d   :  { %v51_v33 = vmul.f32 %v46_v30, %v46_v30 }
  0x9f   :  { %v64_v34 = vsel %vm32_vm1, %v51_v33, 0.0 }
  0xa0   :  { %62 = vadd.xlane.f32.xlu0 %v61_v32  ;;  %65 = vadd.xlane.f32.xlu1 %v64_v34 }
 0x125   :  { %v54_v35 = vpop.xlane.xlu1 %53 }
 0x126   :  { %v67_v36 = vmul.f32 0.03125, %v54_v35 }
 0x128   :  { %v72_v37 = vadd.f32 1e-05, %v67_v36 }
 0x129   :  { %v60_v38 = vpop.xlane.xlu1 %59  ;;  %v57_v39 = vpop.xlane.xlu0 %56 }
 0x12a   :  { %122 = vrsqrt.f32 %v72_v37  ;;  %v69_v40 = vmul.f32 0.03125, %v60_v38  ;;  %v68_v41 = vmul.f32 0.03125, %v57_v39 }
 0x12c   :  { %v74_v42 = vadd.f32 1e-05, %v69_v40  ;;  %v73_v43 = vadd.f32 1e-05, %v68_v41 }
 0x12d   :  { %v66_v44 = vpop.xlane.xlu1 %65  ;;  %v63_v45 = vpop.xlane.xlu0 %62 }
 0x12e   :  { %124 = vrsqrt.f32 %v74_v42  ;;  %v71_v46 = vmul.f32 0.03125, %v66_v44  ;;  %v70_v47 = vmul.f32 0.03125, %v63_v45 }
 0x12f   :  { %126 = vrsqrt.f32 %v73_v43 }
 0x130   :  { %v76_v48 = vadd.f32 1e-05, %v71_v46  ;;  %v75_v49 = vadd.f32 1e-05, %v70_v47 }
 0x132   :  { %128 = vrsqrt.f32 %v76_v48 }
 0x133   :  { %130 = vrsqrt.f32 %v75_v49 }
 0x134   :  { %v123_v50 = vpop.eup %122 }
 0x135   :  { %v82_v52 = vmul.f32 %v123_v50, %v42_v14 }
 0x137   :  { %v94_v54 = vmul.f32 %v120_v51, %v82_v52 }
 0x138   :  { %v125_v55 = vpop.eup %124 }
 0x139   :  { %v127_v56 = vpop.eup %126  ;;  %v106_v57 = vadd.f32 %v121_v53, %v94_v54  ;;  %v84_v58 = vmul.f32 %v125_v55, %v44_v15 }
 0x13a   :  { %v83_v59 = vmul.f32 %v127_v56, %v43_v22 }
 0x13b   :  { %111 = vst.msk [vmem:[%s206_s3] sm:$0xff] %vm19_vm0, %v106_v57  ;;  %v96_v60 = vmul.f32 %v120_v51, %v84_v58 }
 0x13c   :  { %v129_v61 = vpop.eup %128  ;;  %v95_v62 = vmul.f32 %v120_v51, %v83_v59 }
 0x13d   :  { %v131_v63 = vpop.eup %130  ;;  %v108_v0 = vadd.f32 %v121_v53, %v96_v60  ;;  %v86_v1 = vmul.f32 %v129_v61, %v46_v30 }
 0x13e   :  { %v107_v2 = vadd.f32 %v121_v53, %v95_v62  ;;  %v85_v3 = vmul.f32 %v131_v63, %v45_v23 }
 0x13f   :  { %113 = vst.msk [vmem:[%s206_s3 + $0x10] sm:$0xff] %vm19_vm0, %v108_v0  ;;  %v98_v4 = vmul.f32 %v120_v51, %v86_v1 }
 0x140   :  { %112 = vst.msk [vmem:[%s206_s3 + $0x8] sm:$0xff] %vm19_vm0, %v107_v2  ;;  %v97_v5 = vmul.f32 %v120_v51, %v85_v3 }
 0x141   :  { %v110_v6 = vadd.f32 %v121_v53, %v98_v4 }
 0x142   :  { %v109_v7 = vadd.f32 %v121_v53, %v97_v5 }
 0x143   :  { %115 = vst.msk [vmem:[%s206_s3 + $0x20] sm:$0x3] %vm32_vm1, %v110_v6 }
 0x144   :  { %114 = vst.msk [vmem:[%s206_s3 + $0x18] sm:$0xff] %vm19_vm0, %v109_v7 }

// kernel: _lambda_.21
= control target key start
LH: loop header
LB: loop body
LE: loop exit
PB: predicated region body
PF: predicated region fallthrough
CT: control target
= control target key end

     0   :  { %v359_v0 = vmov 0.0   ;;  %vm360_vm0 = vmmov 0   ;;  %vm254_vm1 = vcmask 261120   ;;  %s451_s1 = inlined_call_operand.vmem [shape: bf16[128,128], index: 1, kind: input, shape index: {}]   ;;  %s452_s0 = inlined_call_operand.vmem [shape: f32[8,128], index: 0, kind: input, shape index: {}]   ;;  %s453_s3 = inlined_call_operand.vmem [shape: bf16[128,32], index: 3, kind: input, shape index: {}]   ;;  %s454_s2 = inlined_call_operand.vmem [shape: f32[1,128], index: 2, kind: input, shape index: {}]   ;;  %s455_s4 = inlined_call_operand.vmem [shape: f32[1,32], index: 4, kind: input, shape index: {}]   ;;  %s456_s5 = inlined_call_operand.vmem [shape: f32[8,32], index: 5, kind: output, shape index: {}]  }
   0x1   :  { %297 = vmatprep.subr.bf16.mxu0 %v359_v0  ;;  %v339_v1 = vld [vmem:[%s451_s1] sm:$0xff]   ;;  %313 = vmatprep.mubr.msk.bf16.mxu0 %vm360_vm0, %v359_v0  ;;  %v340_v2 = vld [vmem:[%s451_s1 + $0x8] sm:$0xff]   ;;  %v341_v3 = vld [vmem:[%s451_s1 + $0x10] sm:$0xff]  }
   0x2   :  { %317 = vmatprep.subr.bf16.mxu1 %v359_v0  ;;  %333 = vmatprep.mubr.msk.bf16.mxu1 %vm360_vm0, %v359_v0  ;;  %v342_v4 = vld [vmem:[%s451_s1 + $0x18] sm:$0xff]   ;;  %v343_v5 = vld [vmem:[%s451_s1 + $0x20] sm:$0xff]   ;;  %v344_v6 = vld [vmem:[%s451_s1 + $0x28] sm:$0xff]  }
   0x3   :  { %298 = vmatpush3.bf16.msra.mxu0 %v339_v1  ;;  %v345_v7 = vld [vmem:[%s451_s1 + $0x30] sm:$0xff]   ;;  %v346_v8 = vld [vmem:[%s451_s1 + $0x38] sm:$0xff]   ;;  %v21_v9 = vld [vmem:[%s452_s0] sm:$0xff] }
   0x4   :  { %299 = vmatprep.subr.bf16.mxu0 %v359_v0  ;;  %v22_v10 = vpack.c.bf16 %v21_v9, %v21_v9  ;;  %v347_v11 = vld [vmem:[%s453_s3] sm:$0xff]   ;;  %v348_v12 = vld [vmem:[%s453_s3 + $0x8] sm:$0xff]   ;;  %v349_v13 = vld [vmem:[%s453_s3 + $0x10] sm:$0xff]  }
   0x5   :  { %318 = vmatpush3.bf16.msra.mxu1 %v347_v11  ;;  %v350_v14 = vld [vmem:[%s453_s3 + $0x18] sm:$0xff]   ;;  %v351_v15 = vld [vmem:[%s453_s3 + $0x20] sm:$0xff]   ;;  %v352_v16 = vld [vmem:[%s453_s3 + $0x28] sm:$0xff]  }
   0x6   :  { %319 = vmatprep.subr.bf16.mxu1 %v359_v0  ;;  %v353_v17 = vld [vmem:[%s453_s3 + $0x30] sm:$0xff]   ;;  %v354_v18 = vld [vmem:[%s453_s3 + $0x38] sm:$0xff]   ;;  %v260_v19 = vld [vmem:[%s454_s2] ss:$0 sm:$0xff] }
   0x7   :  { %300 = vmatpush3.bf16.msra.mxu0 %v340_v2  ;;  %v270_v32 = vld [vmem:[%s455_s4] ss:$0 sm:$0xff] }
   0x8   :  { %301 = vmatprep.subr.bf16.mxu0 %v359_v0 }
   0x9   :  { %320 = vmatpush3.bf16.msra.mxu1 %v348_v12 }
   0xa   :  { %321 = vmatprep.subr.bf16.mxu1 %v359_v0 }
   0xb   :  { %302 = vmatpush3.bf16.msra.mxu0 %v341_v3 }
   0xc   :  { %303 = vmatprep.subr.bf16.mxu0 %v359_v0 }
   0xd   :  { %322 = vmatpush3.bf16.msra.mxu1 %v349_v13 }
   0xe   :  { %323 = vmatprep.subr.bf16.mxu1 %v359_v0 }
   0xf   :  { %304 = vmatpush3.bf16.msra.mxu0 %v342_v4 }
  0x10   :  { %305 = vmatprep.subr.bf16.mxu0 %v359_v0 }
  0x11   :  { %324 = vmatpush3.bf16.msra.mxu1 %v350_v14 }
  0x12   :  { %325 = vmatprep.subr.bf16.mxu1 %v359_v0 }
  0x13   :  { %306 = vmatpush3.bf16.msra.mxu0 %v343_v5 }
  0x14   :  { %307 = vmatprep.subr.bf16.mxu0 %v359_v0 }
  0x15   :  { %326 = vmatpush3.bf16.msra.mxu1 %v351_v15 }
  0x16   :  { %327 = vmatprep.subr.bf16.mxu1 %v359_v0 }
  0x17   :  { %308 = vmatpush3.bf16.msra.mxu0 %v344_v6 }
  0x18   :  { %309 = vmatprep.subr.bf16.mxu0 %v359_v0 }
  0x19   :  { %328 = vmatpush3.bf16.msra.mxu1 %v352_v16 }
  0x1a   :  { %329 = vmatprep.subr.bf16.mxu1 %v359_v0 }
  0x1b   :  { %310 = vmatpush3.bf16.msra.mxu0 %v345_v7 }
  0x1c   :  { %311 = vmatprep.subr.bf16.mxu0 %v359_v0 }
  0x1d   :  { %330 = vmatpush3.bf16.msra.mxu1 %v353_v17 }
  0x1e   :  { %331 = vmatprep.subr.bf16.mxu1 %v359_v0 }
  0x1f   :  { %312 = vmatpush3.bf16.msra.mxu0 %v346_v8 }
  0x21   :  { %332 = vmatpush3.bf16.msra.mxu1 %v354_v18 }
  0x22   :  { %314 = vmatmul.mubr.bf16.vlgmr.msra.gmra.mrb[0].mxu0 %v22_v10 }
  0xf5   :  { %v128_v20 = vpop.f32.mrb[0].mxu0 }
  0xf6   :  { %v129_v21 = vadd.f32 %v260_v19, %v128_v20  ;;  %v315_v22 = vpop.f32.mrb[1].mxu0 }
  0xf7   :  { %v131_v23 = vpop.f32.mrb[2].mxu0 }
  0xf8   :  { %v269_v24 = vmul.f32 -1.442695, %v129_v21  ;;  %v316_v25 = vpop.f32.mrb[3].mxu0 }
  0xfa   :  { %355 = vpow2.f32 %v269_v24 }
 0x104   :  { %v356_v26 = vpop.eup %355 }
 0x105   :  { %v137_v27 = vadd.f32 1.0, %v356_v26 }
 0x107   :  { %357 = vrcp.f32 %v137_v27 }
 0x111   :  { %v358_v28 = vpop.eup %357 }
 0x112   :  { %v140_v29 = vmul.f32 %v358_v28, %v129_v21 }
 0x114   :  { %v141_v30 = vmul.f32 %v140_v29, %v21_v9 }
 0x116   :  { %v142_v31 = vpack.c.bf16 %v141_v30, %v141_v30 }
 0x118   :  { %334 = vmatmul.mubr.bf16.vlgmr.msra.gmra.mrb[0].mxu1 %v142_v31 }
 0x1eb   :  { %v248_v33 = vpop.f32.mrb[0].mxu1 }
 0x1ec   :  { %v249_v34 = vadd.f32 %v270_v32, %v248_v33  ;;  %v335_v35 = vpop.f32.mrb[1].mxu1 }
 0x1ed   :  { %v251_v36 = vpop.f32.mrb[2].mxu1 }
 0x1ee   :  { %255 = vst.msk [vmem:[%s456_s5] sm:$0xff] %vm254_vm1, %v249_v34  ;;  %v336_v37 = vpop.f32.mrb[3].mxu1 }

// kernel: _lambda_.23
= control target key start
LH: loop header
LB: loop body
LE: loop exit
PB: predicated region body
PF: predicated region fallthrough
CT: control target
= control target key end

     0   :  { %s1360_s13 = smov 0   ;;  %s1522_s0 = inlined_call_operand.vmem [shape: f32[2,5,32], index: 0, kind: input, shape index: {}]   ;;  %s1523_s1 = inlined_call_operand.vmem [shape: bf16[32,32], index: 1, kind: input, shape index: {}]   ;;  %s1524_s2 = inlined_call_operand.vmem [shape: bf16[32,32], index: 2, kind: input, shape index: {}]   ;;  %s1525_s3 = inlined_call_operand.vmem [shape: f32[2,32], index: 3, kind: input, shape index: {}]   ;;  %s1526_s4 = inlined_call_operand.vmem [shape: f32[1,32], index: 4, kind: input, shape index: {}]   ;;  %s1527_s5 = inlined_call_operand.vmem [shape: bf16[32,48], index: 5, kind: input, shape index: {}]   ;;  %s1528_s6 = inlined_call_operand.vmem [shape: f32[1,32], index: 6, kind: input, shape index: {}]   ;;  %s1529_s7 = inlined_call_operand.vmem [shape: f32[8,32], index: 7, kind: input, shape index: {}]   ;;  %s1530_s8 = inlined_call_operand.vmem [shape: f32[1,32], index: 8, kind: input, shape index: {}]   ;;  %s1531_s9 = inlined_call_operand.vmem [shape: bf16[32,32], index: 9, kind: input, shape index: {}]   ;;  %s1532_s10 = inlined_call_operand.vmem [shape: f32[2,5,32], index: 10, kind: output, shape index: {}]  }
   0x1 LB: > { %s1169_s14 = sadd.s32 4294967295, %s1298_s13   ;;  %p1173_p0 = scmp.ge.s32.totalorder %s1298_s13, 1  ;;  %s1298_s13 = sphi %s1360_s13, %s20_s13  }
   0x2   : > { %p311_p1 = scmp.lt.s32.totalorder %s1298_s13, 3 }
   0x4   : > { %p312_p2 = pnand %p1173_p0, %p311_p1 }
   0x5   : > { %v1254_v0 = vld [vmem:[%s1523_s1] sm:$0xff] (!%p312_p2)   ;;  %v1300_v1 = vmov (!%p312_p2), 0.0   ;;  %v1255_v2 = vld [vmem:[%s1523_s1 + $0x8] sm:$0xff] (!%p312_p2)   ;;  %vm1301_vm0 = vmmov (!%p312_p2), 0   ;;  %p347_p3 = scmp.lt.s32.totalorder (!%p312_p2), %s1169_s14, 1  ;;  %vm374_vm1 = vcmask (!%p312_p2), 261120   ;;  %v614_v43 = vlaneseq (!%p312_p2) }
   0x6   : > { %315 = sbr.rel (%p312_p2) target bundleno = 1010 (0x3f2), region = 60  ;;  %1209 = vmatprep.subr.bf16.mxu0 (!%p312_p2), %v1300_v1  ;;  %1217 = vmatprep.subr.bf16.mxu1 (!%p312_p2), %v1300_v1  ;;  %vm474_vm2 = vcmask (!%p312_p2), 253952   ;;  %v1256_v5 = vld [vmem:[%s1527_s5] sm:$0xff] (!%p312_p2)   ;;  %v1257_v6 = vld [vmem:[%s1527_s5 + $0x8] sm:$0xff] (!%p312_p2)   ;;  %vm476_vm3 = vcmask (!%p312_p2), 258048   ;;  %vm598_vm4 = vcmask (!%p312_p2), 256000  }
   0x7   : > { %1210 = vmatpush3.bf16.msra.mxu0 (!%p312_p2), %v1254_v0  ;;  %1213 = vmatprep.mubr.msk.bf16.mxu0 (!%p312_p2), %vm1301_vm0, %v1300_v1  ;;  %478 = vst.msk [vmem:[#allocation2 + $0x6] sm:$0x1] (!%p312_p2), %vm474_vm2, %v1300_v1  ;;  %v1182_v11 = vld [vmem:[%s1525_s3] ss:$0 sm:$0xff] (!%p312_p2)  ;;  %v1183_v12 = vld [vmem:[%s1525_s3 + $0x1] ss:$0 sm:$0xff] (!%p312_p2) }
   0x8   : > { %1211 = vmatprep.subr.bf16.mxu0 (!%p312_p2), %v1300_v1  ;;  %1221 = vmatprep.mubr.msk.bf16.mxu1 (!%p312_p2), %vm1301_vm0, %v1300_v1  ;;  %v1184_v16 = vld [vmem:[%s1526_s4] ss:$0 sm:$0xff] (!%p312_p2)  ;;  %v1259_v26 = vld [vmem:[%s1524_s2 + $0x8] sm:$0xff] (!%p312_p2)   ;;  %599 = vst.msk [vmem:[#allocation3 + $0x5] sm:$0x7] (!%p312_p2), %vm598_vm4, %v1300_v1  ;;  %vm601_vm5 = vcmask (!%p312_p2), 59392  }
   0x9   : > { %v1258_v25 = vld [vmem:[%s1524_s2] sm:$0xff] (!%p312_p2)   ;;  %600 = vst.msk [vmem:[#allocation4 + $0x5] sm:$0x7] (!%p312_p2), %vm598_vm4, %v1300_v1  ;;  %s1303_s23 = smov (!%p312_p2), 88   ;;  %vm592_vm6 = vcmask (!%p312_p2), 61440   ;;  %v615_v45 = vshrl.u32 (!%p312_p2), %v614_v43, 7 }
   0xa   : > { %1218 = vmatpush3.bf16.msra.mxu1 (!%p312_p2), %v1258_v25  ;;  %602 = vst.msk [vmem:[#allocation5 + $0x5] sm:$0x7] (!%p312_p2), %vm601_vm5, %v1300_v1  ;;  %603 = vst.msk [vmem:[#allocation6 + $0x5] sm:$0x7] (!%p312_p2), %vm601_vm5, %v1300_v1  ;;  %v1189_v27 = vld [vmem:[%s1528_s6] ss:$0 sm:$0xff] (!%p312_p2) }
   0xb   : > { %1212 = vmatpush3.bf16.msra.mxu0 (!%p312_p2), %v1255_v2  ;;  %1219 = vmatprep.subr.bf16.mxu1 (!%p312_p2), %v1300_v1  ;;  %v774_v47 = vsub.s32 (!%p312_p2), 7, %v615_v45  ;;  %v760_v48 = vsub.s32 (!%p312_p2), 5, %v615_v45  ;;  %v767_v52 = vsub.s32 (!%p312_p2), 6, %v615_v45  ;;  %v746_v53 = vsub.s32 (!%p312_p2), 3, %v615_v45 }
   0xc   : > { %1225 = vmatprep.subr.bf16.mxu0 (!%p312_p2), %v1300_v1  ;;  %v753_v56 = vsub.s32 (!%p312_p2), 4, %v615_v45  ;;  %v732_v57 = vsub.s32 (!%p312_p2), 1, %v615_v45  ;;  %v739_v0 = vsub.s32 (!%p312_p2), 2, %v615_v45  ;;  %vm1021_vm7 = vcmask (!%p312_p2), 1041409  }
   0xd   : > { %s1534_s14 = smov (!%p347_p3, %s1169_s14), 1  ;;  %vm1023_vm8 = vcmask 1042434   ;;  %vm1025_vm9 = vcmask 1043459   ;;  %vm1027_vm10 = vcmask 1044484   ;;  %vm1029_vm11 = vcmask 1045509  }
   0xe   : > { %s1174_s19 = sshll.u32 %s1534_s14, 3  ;;  %1220 = vmatpush3.bf16.msra.mxu1 %v1259_v26  ;;  %vm1031_vm12 = vcmask 1046534   ;;  %vm1033_vm13 = vcmask 1047559  }
   0xf   : > { %s350_s22 = scalar_lea.vmem %s1522_s0, %s1174_s19  ;;  %1233 = vmatprep.subr.bf16.mxu1 %v1300_v1  ;;  %s354_s16 = scalar_lea.vmem %s1532_s10, %s1174_s19 }
  0x10   : > { %v356_v3 = vld [vmem:[%s350_s22] sm:$0x1f]  ;;  %s1302_s22 = smov 96  }
  0x11   : > { %v357_v4 = vpack.c.bf16 %v356_v3, %v356_v3  ;;  %v1439_v3 = vsub.s32 0, %v615_v45 }
  0x13   : > { %1214 = vmatmul.mubr.msk.bf16.vlgmr.msra.gmra.mrb[0].mxu0 %vm374_vm1, %v357_v4  ;;  %1222 = vmatmul.mubr.msk.bf16.vlgmr.msra.gmra.mrb[0].mxu1 %vm374_vm1, %v357_v4 }
  0x14   : > { %1229 = vmatprep.mubr.msk.bf16.mxu0 %vm1301_vm0, %v1300_v1  ;;  %1226 = vmatpush3.bf16.msra.mxu0 %v1256_v5 }
  0x15   : > { %1227 = vmatprep.subr.bf16.mxu0 %v1300_v1  ;;  %1237 = vmatprep.mubr.msk.bf16.mxu1 %vm1301_vm0, %v1300_v1 }
  0x18   : > { %1228 = vmatpush3.bf16.msra.mxu0 %v1257_v6 }
  0xe6   : > { %v412_v7 = vpop.f32.mrb[0].mxu0  ;;  %v1437_v58 = vpop.f32.mrb[0].mxu1 }
  0xe7   : > { %477 = vst.msk [vmem:[#allocation2 + $0x1] sm:$0x1f] %vm476_vm3, %v412_v7  ;;  %v1215_v8 = vpop.f32.mrb[1].mxu0  ;;  %v491_v15 = vmul.f32 %v1183_v12, %v412_v7  ;;  %v1223_v59 = vpop.f32.mrb[1].mxu1 }
  0xe8   : > { %v415_v9 = vpop.f32.mrb[2].mxu0  ;;  %v471_v60 = vpop.f32.mrb[2].mxu1 }
  0xe9   : > { %v1216_v10 = vpop.f32.mrb[3].mxu0  ;;  %v1224_v61 = vpop.f32.mrb[3].mxu1 }
  0xee   : > { %v479_v13 = vld [vmem:[#allocation2 + $0x2] sm:$0x1f] }
  0xef   : > { %v485_v14 = vmul.f32 %v1182_v11, %v479_v13 }
  0xf1   : > { %v492_v17 = vadd.f32 %v491_v15, %v485_v14  ;;  %v1262_v14 = vld [vmem:[%s1531_s9] sm:$0xff]   ;;  %v1263_v15 = vld [vmem:[%s1531_s9 + $0x8] sm:$0xff]  }
  0xf2   : > { %1234 = vmatpush3.bf16.msra.mxu1 %v1262_v14 }
  0xf3   : > { %v500_v18 = vadd.f32 %v1184_v16, %v492_v17  ;;  %1235 = vmatprep.subr.bf16.mxu1 %v1300_v1  ;;  %v1304_v16 = vmov 1966171168  }
  0xf4   : > { %v612_v17 = vunpack.c.l.s4 %v1304_v16 }
  0xf5   : > { %v1185_v19 = vmul.f32 -1.442695, %v500_v18 }
  0xf6   : > { %1236 = vmatpush3.bf16.msra.mxu1 %v1263_v15 }
  0xf7   : > { %1264 = vpow2.f32 %v1185_v19  ;;  %v613_v19 = vunpack.c.0.s8 %v612_v17 }
 0x101   : > { %v1265_v20 = vpop.eup %1264 }
 0x102   : > { %v504_v21 = vadd.f32 1.0, %v1265_v20 }
 0x104   : > { %1266 = vrcp.f32 %v504_v21  ;;  %v1450_v21 = vsub.s32 %v613_v19, %v615_v45 }
 0x10e   : > { %v1267_v22 = vpop.eup %1266 }
 0x10f   : > { %v1411_v23 = vmul.f32 %v1267_v22, %v500_v18 }
 0x111   : > { %v508_v24 = vpack.c.bf16 %v1411_v23, %v1411_v23 }
 0x113   : > { %1230 = vmatmul.mubr.msk.bf16.vlgmr.msra.gmra.mrb[4].mxu0 %vm374_vm1, %v508_v24 }
 0x1e6   : > { %v562_v28 = vpop.f32.mrb[4].mxu0 }
 0x1e7   : > { %v575_v29 = vadd.f32 %v1189_v27, %v562_v28  ;;  %589 = vrot.lane.b32.xlu0 %v562_v28, %s1302_s22  ;;  %v1231_v30 = vpop.f32.mrb[5].mxu0 }
 0x1e8   : > { %v565_v31 = vpop.f32.mrb[6].mxu0 }
 0x1e9   : > { %v577_v32 = vand.u32 2147483647, %v575_v29  ;;  %v1232_v33 = vpop.f32.mrb[7].mxu0  ;;  %v576_v39 = vmax.f32 %v575_v29, 0.0  ;;  %v1460_v31 = vld [vmem:[%s1529_s7] sm:$0xff] }
 0x1eb   : > { %v578_v34 = vsub.f32 0.0, %v577_v32  ;;  %594 = vrot.lane.b32.xlu0 %v562_v28, %s1303_s23 }
 0x1ed   : > { %v579_v35 = vmul.f32 1.442695, %v578_v34 }
 0x1ef   : > { %1268 = vpow2.f32 %v579_v35 }
 0x1f9   : > { %v1269_v36 = vpop.eup %1268 }
 0x1fa   : > { %v581_v37 = vadd.f32 1.0, %v1269_v36 }
 0x1fc   : > { %1270 = vlog2.f32 %v581_v37 }
 0x206   : > { %v1271_v38 = vpop.eup %1270 }
 0x207   : > { %v583_v40 = vmul.f32 0.6931472, %v1271_v38 }
 0x209   : > { %v584_v41 = vadd.f32 %v583_v40, %v576_v39 }
 0x20b   : > { %585 = vst.msk [vmem:[#allocation3] sm:$0x1f] %vm476_vm3, %v584_v41  ;;  %v586_v42 = vmul.f32 %v584_v41, %v1411_v23 }
 0x20d   : > { %587 = vst.msk [vmem:[#allocation4] sm:$0x1f] %vm476_vm3, %v586_v42 }
 0x212   : > { %v605_v18 = vld [vmem:[#allocation3] sm:$0xff] }
 0x213   : > { %v610_v20 = vcombine.high %v605_v18, %v605_v18  ;;  %v617_v1 = vrot.slane %v605_v18, %v1450_v21 }
 0x214   : > { %v606_v28 = vld [vmem:[#allocation4] sm:$0xff] }
 0x215   : > { %v624_v22 = vrot.slane %v610_v20, %v1450_v21  ;;  %v780_v32 = vcombine.high %v606_v28, %v606_v28  ;;  %v625_v34 = vcombine.high %v617_v1, %v617_v1  ;;  %v633_v42 = vrot.slane %v617_v1, %v1450_v21 }
 0x216   : > { %v787_v61 = vrot.slane %v606_v28, %v1450_v21 }
 0x217   : > { %v626_v24 = vcombine.high %v624_v22, %v624_v22  ;;  %v640_v27 = vrot.slane %v624_v22, %v1450_v21  ;;  %v794_v36 = vrot.slane %v780_v32, %v1450_v21  ;;  %v647_v40 = vrot.slane %v625_v34, %v1450_v21 }
 0x218   : > { %v662_v17 = vrot.slane %v633_v42, %v1439_v3 }
 0x219   : > { %v654_v25 = vrot.slane %v626_v24, %v1450_v21  ;;  %v656_v30 = vcombine.high %v640_v27, %v640_v27  ;;  %v796_v41 = vcombine.high %v794_v36, %v794_v36  ;;  %v657_v45 = vcombine.high %v647_v40, %v647_v40 }
 0x21b   : > { %v658_v26 = vcombine.high %v654_v25, %v654_v25  ;;  %v686_v35 = vrot.slane %v656_v30, %v1439_v3  ;;  %v682_v38 = vrot.slane %v654_v25, %v1439_v3 }
 0x21d   : > { %v690_v29 = vrot.slane %v658_v26, %v1439_v3  ;;  %v705_v39 = vmul.f32 %v686_v35, %v1460_v31  ;;  %v704_v43 = vmul.f32 %v682_v38, %v1460_v31 }
 0x21f   : > { %v706_v33 = vmul.f32 %v690_v29, %v1460_v31  ;;  %v699_v29 = vmul.f32 %v662_v17, %v1460_v31 }
 0x221   : > { %v721_v37 = vmul.f32 1.442695, %v706_v33  ;;  %v803_v33 = vrot.slane %v787_v61, %v1450_v21 }
 0x223   : > { %1272 = vpow2.f32 %v721_v37 }
 0x259   : > { %v590_v44 = vpop.permute.xlu0 %589 }
 0x25a   : > { %593 = vst.msk [vmem:[#allocation5] sm:$0x1f] %vm592_vm6, %v590_v44  ;;  %v719_v44 = vmul.f32 1.442695, %v705_v39  ;;  %v707_v39 = vmul.f32 1.442695, %v699_v29 }
 0x25c   : > { %1274 = vpow2.f32 %v719_v44 }
 0x25d   : > { %v595_v46 = vpop.permute.xlu0 %594 }
 0x25e   : > { %597 = vst.msk [vmem:[#allocation6] sm:$0x1f] %vm592_vm6, %v595_v46  ;;  %v678_v46 = vrot.slane %v640_v27, %v1439_v3 }
 0x261   : > { %v607_v49 = vld [vmem:[#allocation5] sm:$0xff] }
 0x262   : > { %v775_v50 = vrot.slane %v607_v49, %v774_v47  ;;  %v761_v51 = vrot.slane %v607_v49, %v760_v48  ;;  %v768_v54 = vrot.slane %v607_v49, %v767_v52  ;;  %v747_v55 = vrot.slane %v607_v49, %v746_v53 }
 0x263   : > { %v754_v62 = vrot.slane %v607_v49, %v753_v56  ;;  %v733_v63 = vrot.slane %v607_v49, %v732_v57  ;;  %v740_v4 = vrot.slane %v607_v49, %v739_v0  ;;  %v726_v6 = vrot.slane %v607_v49, %v1439_v3 }
 0x264   : > { %777 = vbcast.lane.b32.xlu1 %v775_v50, 256  ;;  %763 = vbcast.lane.b32.xlu0 %v761_v51, 256  ;;  %v717_v49 = vmul.f32 1.442695, %v704_v43  ;;  %v674_v50 = vrot.slane %v657_v45, %v1439_v3  ;;  %v703_v51 = vmul.f32 %v678_v46, %v1460_v31 }
 0x265   : > { %v608_v2 = vld [vmem:[#allocation6] sm:$0xff] }
 0x266   : > { %v896_v5 = vrot.slane %v608_v2, %v1439_v3  ;;  %v910_v7 = vrot.slane %v608_v2, %v739_v0  ;;  %v903_v8 = vrot.slane %v608_v2, %v732_v57  ;;  %v924_v9 = vrot.slane %v608_v2, %v753_v56 }
 0x267   : > { %v917_v10 = vrot.slane %v608_v2, %v746_v53  ;;  %v938_v11 = vrot.slane %v608_v2, %v767_v52  ;;  %v931_v12 = vrot.slane %v608_v2, %v760_v48  ;;  %v945_v13 = vrot.slane %v608_v2, %v774_v47 }
 0x268   : > { %770 = vbcast.lane.b32.xlu1 %v768_v54, 256  ;;  %749 = vbcast.lane.b32.xlu0 %v747_v55, 256  ;;  %v824_v47 = vrot.slane %v796_v41, %v1450_v21  ;;  %v655_v48 = vcombine.high %v633_v42, %v633_v42  ;;  %v810_v53 = vrot.slane %v794_v36, %v1450_v21  ;;  %v1273_v54 = vpop.eup %1272  ;;  %1276 = vpow2.f32 %v717_v49 }
 0x269   : > { %v702_v55 = vmul.f32 %v674_v50, %v1460_v31  ;;  %v715_v56 = vmul.f32 1.442695, %v703_v51  ;;  %v877_v2 = vmul.f32 0.0, %v1273_v54  ;;  %v825_v42 = vcombine.high %v803_v33, %v803_v33 }
 0x26a   : > { %v828_v52 = vcombine.high %v824_v47, %v824_v47  ;;  %v670_v57 = vrot.slane %v655_v48, %v1439_v3  ;;  %v826_v60 = vcombine.high %v810_v53, %v810_v53  ;;  %v852_v18 = vrot.slane %v824_v47, %v1439_v3 }
 0x26b   : > { %1278 = vpow2.f32 %v715_v56  ;;  %v848_v30 = vrot.slane %v810_v53, %v1439_v3  ;;  %v840_v47 = vrot.slane %v825_v42, %v1439_v3 }
 0x26c   : > { %756 = vbcast.lane.b32.xlu1 %v754_v62, 256  ;;  %735 = vbcast.lane.b32.xlu0 %v733_v63, 256  ;;  %v860_v59 = vrot.slane %v828_v52, %v1439_v3 }
 0x270   : > { %742 = vbcast.lane.b32.xlu1 %v740_v4, 256  ;;  %898 = vbcast.lane.b32.xlu0 %v896_v5, 256  ;;  %v713_v4 = vmul.f32 1.442695, %v702_v55  ;;  %v666_v5 = vrot.slane %v647_v40, %v1439_v3 }
 0x272   : > { %1280 = vpow2.f32 %v713_v4  ;;  %v700_v15 = vmul.f32 %v666_v5, %v1460_v31 }
 0x274   : > { %728 = vbcast.lane.b32.xlu1 %v726_v6, 256  ;;  %912 = vbcast.lane.b32.xlu0 %v910_v7, 256  ;;  %v701_v6 = vmul.f32 %v670_v57, %v1460_v31  ;;  %v709_v28 = vmul.f32 1.442695, %v700_v15 }
 0x276   : > { %v711_v16 = vmul.f32 1.442695, %v701_v6 }
 0x278   : > { %905 = vbcast.lane.b32.xlu1 %v903_v8, 256  ;;  %926 = vbcast.lane.b32.xlu0 %v924_v9, 256  ;;  %v856_v8 = vrot.slane %v826_v60, %v1439_v3  ;;  %v795_v9 = vcombine.high %v787_v61, %v787_v61  ;;  %1282 = vpow2.f32 %v711_v16 }
 0x279   : > { %1284 = vpow2.f32 %v709_v28 }
 0x27a   : > { %v817_v20 = vrot.slane %v795_v9, %v1450_v21  ;;  %1286 = vpow2.f32 %v707_v39 }
 0x27c   : > { %919 = vbcast.lane.b32.xlu1 %v917_v10, 256  ;;  %940 = vbcast.lane.b32.xlu0 %v938_v11, 256  ;;  %v1275_v10 = vpop.eup %1274  ;;  %v827_v1 = vcombine.high %v817_v20, %v817_v20  ;;  %v836_v53 = vrot.slane %v817_v20, %v1439_v3 }
 0x27d   : > { %v1277_v22 = vpop.eup %1276 }
 0x27e   : > { %v1279_v34 = vpop.eup %1278  ;;  %v844_v40 = vrot.slane %v827_v1, %v1439_v3 }
 0x27f   : > { %v1281_v43 = vpop.eup %1280 }
 0x280   : > { %933 = vbcast.lane.b32.xlu1 %v931_v12, 256 }
 0x282   : > { %v1283_v48 = vpop.eup %1282 }
 0x283   : > { %v1285_v56 = vpop.eup %1284 }
 0x284   : > { %947 = vbcast.lane.b32.xlu1 %v945_v13, 256 }
 0x2d6   : > { %v778_v62 = vpop.permute.xlu1 %777  ;;  %v764_v63 = vpop.permute.xlu0 %763 }
 0x2d7   : > { %v876_v0 = vmul.f32 %v860_v59, %v778_v62  ;;  %v874_v26 = vmul.f32 %v852_v18, %v764_v63 }
 0x2d9   : > { %v1481_v7 = vadd.f32 %v877_v2, %v876_v0  ;;  %v832_v2 = vrot.slane %v803_v33, %v1439_v3 }
 0x2da   : > { %v771_v11 = vpop.permute.xlu1 %770  ;;  %v750_v12 = vpop.permute.xlu0 %749 }
 0x2db   : > { %v875_v13 = vmul.f32 %v856_v8, %v771_v11  ;;  %v879_v14 = vmul.f32 %v1275_v10, %v1481_v7  ;;  %v872_v45 = vmul.f32 %v844_v40, %v750_v12  ;;  %v1287_v10 = vpop.eup %1286  ;;  %v1191_v11 = vmul.f32 -1.442695, %v1437_v58 }
 0x2dd   : > { %v880_v19 = vadd.f32 %v879_v14, %v875_v13  ;;  %1288 = vpow2.f32 %v1191_v11 }
 0x2de   : > { %v757_v24 = vpop.permute.xlu1 %756  ;;  %v736_v25 = vpop.permute.xlu0 %735 }
 0x2df   : > { %v881_v27 = vmul.f32 %v1277_v22, %v880_v19  ;;  %v873_v37 = vmul.f32 %v848_v30, %v757_v24  ;;  %v870_v57 = vmul.f32 %v836_v53, %v736_v25 }
 0x2e1   : > { %v882_v32 = vadd.f32 %v881_v27, %v874_v26 }
 0x2e2   : > { %v743_v35 = vpop.permute.xlu1 %742  ;;  %v899_v36 = vpop.permute.xlu0 %898 }
 0x2e3   : > { %v883_v38 = vmul.f32 %v1279_v34, %v882_v32  ;;  %v871_v51 = vmul.f32 %v840_v47, %v743_v35 }
 0x2e5   : > { %v884_v41 = vadd.f32 %v883_v38, %v873_v37 }
 0x2e6   : > { %v729_v44 = vpop.permute.xlu1 %728  ;;  %v913_v31 = vpop.permute.xlu0 %912 }
 0x2e7   : > { %v885_v46 = vmul.f32 %v1281_v43, %v884_v41  ;;  %v869_v12 = vmul.f32 %v832_v2, %v729_v44 }
 0x2e9   : > { %v886_v21 = vadd.f32 %v885_v46, %v872_v45 }
 0x2ea   : > { %v906_v49 = vpop.permute.xlu1 %905  ;;  %v927_v50 = vpop.permute.xlu0 %926 }
 0x2eb   : > { %v887_v52 = vmul.f32 %v1283_v48, %v886_v21  ;;  %v953_v54 = vmul.f32 %v927_v50, %v884_v41 }
 0x2ed   : > { %v888_v55 = vadd.f32 %v887_v52, %v871_v51  ;;  %v985_v4 = vsel %vm374_vm1, %v953_v54, 0.0  ;;  %v1289_v51 = vpop.eup %1288 }
 0x2ee   : > { %v920_v59 = vpop.permute.xlu1 %919  ;;  %v941_v60 = vpop.permute.xlu0 %940  ;;  %v986_v18 = vrot.slane %v985_v4, 4 }
 0x2ef   : > { %v889_v61 = vmul.f32 %v1285_v56, %v888_v55  ;;  %v951_v62 = vmul.f32 %v913_v31, %v888_v55  ;;  %v952_v63 = vmul.f32 %v920_v59, %v886_v21  ;;  %v955_v0 = vmul.f32 %v941_v60, %v880_v19 }
 0x2f0   : > { %v987_v1 = vadd.f32 %v986_v18, %v985_v4 }
 0x2f1   : > { %v890_v5 = vadd.f32 %v889_v61, %v870_v57  ;;  %v971_v6 = vsel %vm374_vm1, %v951_v62, 0.0  ;;  %v978_v8 = vsel %vm374_vm1, %v952_v63, 0.0  ;;  %v999_v9 = vsel %vm374_vm1, %v955_v0, 0.0 }
 0x2f2   : > { %v972_v13 = vrot.slane %v971_v6, 4  ;;  %v979_v14 = vrot.slane %v978_v8, 4  ;;  %v934_v15 = vpop.permute.xlu1 %933  ;;  %v1000_v19 = vrot.slane %v999_v9, 4  ;;  %v988_v43 = vrot.slane %v987_v1, 2 }
 0x2f3   : > { %v891_v16 = vmul.f32 %v1287_v10, %v890_v5  ;;  %v950_v17 = vmul.f32 %v906_v49, %v890_v5  ;;  %v954_v3 = vmul.f32 %v934_v15, %v882_v32  ;;  %v1050_v61 = vadd.f32 1.0, %v1289_v51 }
 0x2f4   : > { %v973_v22 = vadd.f32 %v972_v13, %v971_v6  ;;  %v980_v27 = vadd.f32 %v979_v14, %v978_v8  ;;  %v1001_v35 = vadd.f32 %v1000_v19, %v999_v9  ;;  %v989_v49 = vadd.f32 %v988_v43, %v987_v1  ;;  %v1190_v19 = vld [vmem:[%s1530_s8] ss:$0 sm:$0xff] }
 0x2f5   : > { %v892_v20 = vadd.f32 %v891_v16, %v869_v12  ;;  %v964_v24 = vsel %vm374_vm1, %v950_v17, 0.0  ;;  %v992_v25 = vsel %vm374_vm1, %v954_v3, 0.0  ;;  %1290 = vrcp.f32 %v1050_v61 }
 0x2f6   : > { %v965_v26 = vrot.slane %v964_v24, 4  ;;  %v948_v28 = vpop.permute.xlu1 %947  ;;  %v993_v30 = vrot.slane %v992_v25, 4  ;;  %v974_v37 = vrot.slane %v973_v22, 2  ;;  %v981_v42 = vrot.slane %v980_v27, 2 }
 0x2f7   : > { %v949_v29 = vmul.f32 %v899_v36, %v892_v20  ;;  %v956_v33 = vmul.f32 %v948_v28, %v1481_v7  ;;  %v1002_v47 = vrot.slane %v1001_v35, 2  ;;  %v990_v62 = vrot.slane %v989_v49, 1 }
 0x2f8   : > { %v966_v34 = vadd.f32 %v965_v26, %v964_v24  ;;  %v994_v38 = vadd.f32 %v993_v30, %v992_v25  ;;  %v975_v46 = vadd.f32 %v974_v37, %v973_v22  ;;  %v982_v48 = vadd.f32 %v981_v42, %v980_v27 }
 0x2f9   : > { %v957_v32 = vsel %vm374_vm1, %v949_v29, 0.0  ;;  %v1006_v39 = vsel %vm374_vm1, %v956_v33, 0.0  ;;  %v1003_v56 = vadd.f32 %v1002_v47, %v1001_v35  ;;  %v991_v10 = vadd.f32 %v990_v62, %v989_v49 }
 0x2fa   : > { %v958_v40 = vrot.slane %v957_v32, 4  ;;  %v967_v41 = vrot.slane %v966_v34, 2  ;;  %v1007_v44 = vrot.slane %v1006_v39, 4  ;;  %v995_v36 = vrot.slane %v994_v38, 2 }
 0x2fb   : > { %v976_v55 = vrot.slane %v975_v46, 1  ;;  %v983_v59 = vrot.slane %v982_v48, 1  ;;  %v1004_v5 = vrot.slane %v1003_v56, 1  ;;  %v1045_v22 = vmul.f32 %v1190_v19, %v1411_v23 }
 0x2fc   : > { %v959_v31 = vadd.f32 %v958_v40, %v957_v32  ;;  %v968_v45 = vadd.f32 %v967_v41, %v966_v34  ;;  %v1008_v21 = vadd.f32 %v1007_v44, %v1006_v39  ;;  %v996_v54 = vadd.f32 %v995_v36, %v994_v38 }
 0x2fd   : > { %v977_v4 = vadd.f32 %v976_v55, %v975_v46  ;;  %v984_v8 = vadd.f32 %v983_v59, %v982_v48  ;;  %v1005_v14 = vadd.f32 %v1004_v5, %v1003_v56 }
 0x2fe   : > { %v960_v7 = vrot.slane %v959_v31, 2  ;;  %v1009_v50 = vrot.slane %v1008_v21, 2  ;;  %v969_v53 = vrot.slane %v968_v45, 1  ;;  %v997_v2 = vrot.slane %v996_v54, 1 }
 0x2ff   : > { %v1291_v20 = vpop.eup %1290 }
 0x300   : > { %v961_v52 = vadd.f32 %v960_v7, %v959_v31  ;;  %v1010_v60 = vadd.f32 %v1009_v50, %v1008_v21  ;;  %v970_v0 = vadd.f32 %v969_v53, %v968_v45  ;;  %v998_v13 = vadd.f32 %v997_v2, %v996_v54 }
 0x301   : > { %v1053_v25 = vmul.f32 %v1291_v20, %v1437_v58 }
 0x302   : > { %v962_v57 = vrot.slane %v961_v52, 1  ;;  %v1011_v9 = vrot.slane %v1010_v60, 1 }
 0x304   : > { %v963_v63 = vadd.f32 %v962_v57, %v961_v52  ;;  %v1012_v17 = vadd.f32 %v1011_v9, %v1010_v60 }
 0x306   : > { %v1022_v6 = vsel %vm1021_vm7, %v970_v0, %v963_v63 }
 0x307   : > { %v1024_v11 = vsel %vm1023_vm8, %v977_v4, %v1022_v6 }
 0x308   : > { %v1026_v12 = vsel %vm1025_vm9, %v984_v8, %v1024_v11 }
 0x309   : > { %v1028_v15 = vsel %vm1027_vm10, %v991_v10, %v1026_v12 }
 0x30a   : > { %v1030_v16 = vsel %vm1029_vm11, %v998_v13, %v1028_v15 }
 0x30b   : > { %v1032_v18 = vsel %vm1031_vm12, %v1005_v14, %v1030_v16 }
 0x30c   : > { %v1034_v3 = vsel %vm1033_vm13, %v1012_v17, %v1032_v18 }
 0x30d   : > { %1036 = vst.msk [vmem:[#allocation7] sm:$0xff] %vm374_vm1, %v1034_v3 }
 0x314   : > { %v1037_v24 = vld [vmem:[#allocation7] sm:$0x1f] }
 0x315   : > { %v1046_v26 = vadd.f32 %v1045_v22, %v1037_v24 }
 0x317   : > { %v1054_v27 = vmul.f32 %v1053_v25, %v1046_v26 }
 0x319   : > { %v1055_v28 = vpack.c.bf16 %v1054_v27, %v1054_v27 }
 0x31b   : > { %1238 = vmatmul.mubr.msk.bf16.vlgmr.msra.gmra.mrb[4].mxu1 %vm374_vm1, %v1055_v28 }
 0x3ee   : > { %v1109_v29 = vpop.f32.mrb[4].mxu1 }
 0x3ef   : > { %1115 = vst.msk [vmem:[%s354_s16] sm:$0x1f] %vm476_vm3, %v1109_v29  ;;  %v1239_v1 = vpop.f32.mrb[5].mxu1 }
 0x3f0   : > { %v1112_v30 = vpop.f32.mrb[6].mxu1 }
 0x3f1   : > { %v1240_v33 = vpop.f32.mrb[7].mxu1 }
 0x3f2 PF: > { %s20_s13 = sadd.s32 1, %s1298_s13  }
 0x3f3   : > { %p17_p4 = scmp.ge.s32.totalorder %s20_s13, 4  }
 0x3f5   :  { %19 = sbr.rel (!%p17_p4) target bundleno = 1 (0x1), region = 90 }

// kernel: _lambda_.22
= control target key start
LH: loop header
LB: loop body
LE: loop exit
PB: predicated region body
PF: predicated region fallthrough
CT: control target
= control target key end

     0   :  { %s1360_s13 = smov 0   ;;  %s1518_s0 = inlined_call_operand.vmem [shape: f32[2,5,32], index: 0, kind: input, shape index: {}]   ;;  %s1519_s1 = inlined_call_operand.vmem [shape: bf16[32,32], index: 1, kind: input, shape index: {}]   ;;  %s1520_s2 = inlined_call_operand.vmem [shape: bf16[32,32], index: 2, kind: input, shape index: {}]   ;;  %s1521_s3 = inlined_call_operand.vmem [shape: f32[2,32], index: 3, kind: input, shape index: {}]   ;;  %s1522_s4 = inlined_call_operand.vmem [shape: f32[1,32], index: 4, kind: input, shape index: {}]   ;;  %s1523_s5 = inlined_call_operand.vmem [shape: bf16[32,48], index: 5, kind: input, shape index: {}]   ;;  %s1524_s6 = inlined_call_operand.vmem [shape: f32[1,32], index: 6, kind: input, shape index: {}]   ;;  %s1525_s7 = inlined_call_operand.vmem [shape: f32[8,32], index: 7, kind: input, shape index: {}]   ;;  %s1526_s8 = inlined_call_operand.vmem [shape: f32[1,32], index: 8, kind: input, shape index: {}]   ;;  %s1527_s9 = inlined_call_operand.vmem [shape: bf16[32,32], index: 9, kind: input, shape index: {}]   ;;  %s1528_s10 = inlined_call_operand.vmem [shape: f32[2,5,32], index: 10, kind: output, shape index: {}]  }
   0x1 LB: > { %s1169_s14 = sadd.s32 4294967295, %s1298_s13   ;;  %p1173_p0 = scmp.ge.s32.totalorder %s1298_s13, 1  ;;  %s1298_s13 = sphi %s1360_s13, %s20_s13  }
   0x2   : > { %p311_p1 = scmp.lt.s32.totalorder %s1298_s13, 3 }
   0x4   : > { %p312_p2 = pnand %p1173_p0, %p311_p1 }
   0x5   : > { %v1254_v0 = vld [vmem:[%s1519_s1] sm:$0xff] (!%p312_p2)   ;;  %v1300_v1 = vmov (!%p312_p2), 0.0   ;;  %v1255_v2 = vld [vmem:[%s1519_s1 + $0x8] sm:$0xff] (!%p312_p2)   ;;  %vm1301_vm0 = vmmov (!%p312_p2), 0   ;;  %p347_p3 = scmp.lt.s32.totalorder (!%p312_p2), %s1169_s14, 1  ;;  %vm374_vm1 = vcmask (!%p312_p2), 261120   ;;  %v614_v43 = vlaneseq (!%p312_p2) }
   0x6   : > { %315 = sbr.rel (%p312_p2) target bundleno = 1004 (0x3ec), region = 60  ;;  %1209 = vmatprep.subr.bf16.mxu0 (!%p312_p2), %v1300_v1  ;;  %1217 = vmatprep.subr.bf16.mxu1 (!%p312_p2), %v1300_v1  ;;  %vm474_vm2 = vcmask (!%p312_p2), 253952   ;;  %v1256_v5 = vld [vmem:[%s1523_s5] sm:$0xff] (!%p312_p2)   ;;  %v1257_v6 = vld [vmem:[%s1523_s5 + $0x8] sm:$0xff] (!%p312_p2)   ;;  %vm476_vm3 = vcmask (!%p312_p2), 258048   ;;  %vm598_vm4 = vcmask (!%p312_p2), 256000  }
   0x7   : > { %1210 = vmatpush3.bf16.msra.mxu0 (!%p312_p2), %v1254_v0  ;;  %1213 = vmatprep.mubr.msk.bf16.mxu0 (!%p312_p2), %vm1301_vm0, %v1300_v1  ;;  %475 = vst.msk [vmem:[#allocation2] sm:$0x1] (!%p312_p2), %vm474_vm2, %v1300_v1  ;;  %v1182_v11 = vld [vmem:[%s1521_s3] ss:$0 sm:$0xff] (!%p312_p2)  ;;  %v1183_v12 = vld [vmem:[%s1521_s3 + $0x1] ss:$0 sm:$0xff] (!%p312_p2) }
   0x8   : > { %1211 = vmatprep.subr.bf16.mxu0 (!%p312_p2), %v1300_v1  ;;  %1221 = vmatprep.mubr.msk.bf16.mxu1 (!%p312_p2), %vm1301_vm0, %v1300_v1  ;;  %v1184_v16 = vld [vmem:[%s1522_s4] ss:$0 sm:$0xff] (!%p312_p2)  ;;  %v1259_v26 = vld [vmem:[%s1520_s2 + $0x8] sm:$0xff] (!%p312_p2)   ;;  %599 = vst.msk [vmem:[#allocation3 + $0x5] sm:$0x7] (!%p312_p2), %vm598_vm4, %v1300_v1  ;;  %vm601_vm5 = vcmask (!%p312_p2), 59392  }
   0x9   : > { %v1258_v25 = vld [vmem:[%s1520_s2] sm:$0xff] (!%p312_p2)   ;;  %600 = vst.msk [vmem:[#allocation4 + $0x5] sm:$0x7] (!%p312_p2), %vm598_vm4, %v1300_v1  ;;  %s1303_s23 = smov (!%p312_p2), 88   ;;  %vm592_vm6 = vcmask (!%p312_p2), 61440   ;;  %v615_v47 = vshrl.u32 (!%p312_p2), %v614_v43, 7 }
   0xa   : > { %1218 = vmatpush3.bf16.msra.mxu1 (!%p312_p2), %v1258_v25  ;;  %602 = vst.msk [vmem:[#allocation5 + $0x5] sm:$0x7] (!%p312_p2), %vm601_vm5, %v1300_v1  ;;  %603 = vst.msk [vmem:[#allocation6 + $0x5] sm:$0x7] (!%p312_p2), %vm601_vm5, %v1300_v1  ;;  %v1189_v27 = vld [vmem:[%s1524_s6] ss:$0 sm:$0xff] (!%p312_p2) }
   0xb   : > { %1212 = vmatpush3.bf16.msra.mxu0 (!%p312_p2), %v1255_v2  ;;  %1219 = vmatprep.subr.bf16.mxu1 (!%p312_p2), %v1300_v1  ;;  %v739_v51 = vsub.s32 (!%p312_p2), 2, %v615_v47  ;;  %v1439_v52 = vsub.s32 (!%p312_p2), 0, %v615_v47  ;;  %v753_v56 = vsub.s32 (!%p312_p2), 4, %v615_v47  ;;  %v732_v57 = vsub.s32 (!%p312_p2), 1, %v615_v47 }
   0xc   : > { %1225 = vmatprep.subr.bf16.mxu0 (!%p312_p2), %v1300_v1  ;;  %v767_v60 = vsub.s32 (!%p312_p2), 6, %v615_v47  ;;  %v746_v61 = vsub.s32 (!%p312_p2), 3, %v615_v47  ;;  %v760_v0 = vsub.s32 (!%p312_p2), 5, %v615_v47  ;;  %vm1021_vm7 = vcmask (!%p312_p2), 1041409  }
   0xd   : > { %s1530_s14 = smov (!%p347_p3, %s1169_s14), 1  ;;  %vm1023_vm8 = vcmask 1042434   ;;  %vm1025_vm9 = vcmask 1043459   ;;  %vm1027_vm10 = vcmask 1044484   ;;  %vm1029_vm11 = vcmask 1045509  }
   0xe   : > { %s1174_s19 = sshll.u32 %s1530_s14, 3  ;;  %1220 = vmatpush3.bf16.msra.mxu1 %v1259_v26  ;;  %v1458_v26 = vld [vmem:[%s1525_s7] sm:$0xff]  ;;  %vm1031_vm12 = vcmask 1046534   ;;  %vm1033_vm13 = vcmask 1047559  }
   0xf   : > { %s350_s22 = scalar_lea.vmem %s1518_s0, %s1174_s19  ;;  %1233 = vmatprep.subr.bf16.mxu1 %v1300_v1  ;;  %s354_s16 = scalar_lea.vmem %s1528_s10, %s1174_s19 }
  0x10   : > { %v356_v3 = vld [vmem:[%s350_s22] sm:$0x1f]  ;;  %s1302_s22 = smov 96  }
  0x11   : > { %v357_v4 = vpack.c.bf16 %v356_v3, %v356_v3 }
  0x13   : > { %1214 = vmatmul.mubr.msk.bf16.vlgmr.msra.gmra.mrb[0].mxu0 %vm374_vm1, %v357_v4  ;;  %1222 = vmatmul.mubr.msk.bf16.vlgmr.msra.gmra.mrb[0].mxu1 %vm374_vm1, %v357_v4 }
  0x14   : > { %1229 = vmatprep.mubr.msk.bf16.mxu0 %vm1301_vm0, %v1300_v1  ;;  %1226 = vmatpush3.bf16.msra.mxu0 %v1256_v5  ;;  %v774_v5 = vsub.s32 7, %v615_v47 }
  0x15   : > { %1227 = vmatprep.subr.bf16.mxu0 %v1300_v1  ;;  %1237 = vmatprep.mubr.msk.bf16.mxu1 %vm1301_vm0, %v1300_v1 }
  0x18   : > { %1228 = vmatpush3.bf16.msra.mxu0 %v1257_v6 }
  0xe6   : > { %v412_v7 = vpop.f32.mrb[0].mxu0  ;;  %v1437_v45 = vpop.f32.mrb[0].mxu1 }
  0xe7   : > { %477 = vst.msk [vmem:[#allocation2 + $0x1] sm:$0x1f] %vm476_vm3, %v412_v7  ;;  %v1215_v8 = vpop.f32.mrb[1].mxu0  ;;  %v491_v15 = vmul.f32 %v1183_v12, %v412_v7  ;;  %v1223_v46 = vpop.f32.mrb[1].mxu1 }
  0xe8   : > { %v415_v9 = vpop.f32.mrb[2].mxu0  ;;  %v471_v48 = vpop.f32.mrb[2].mxu1 }
  0xe9   : > { %v1216_v10 = vpop.f32.mrb[3].mxu0  ;;  %v1224_v50 = vpop.f32.mrb[3].mxu1 }
  0xee   : > { %v479_v13 = vld [vmem:[#allocation2] sm:$0x1f] }
  0xef   : > { %v485_v14 = vmul.f32 %v1182_v11, %v479_v13 }
  0xf1   : > { %v492_v17 = vadd.f32 %v491_v15, %v485_v14  ;;  %v1262_v14 = vld [vmem:[%s1527_s9] sm:$0xff]   ;;  %v1263_v15 = vld [vmem:[%s1527_s9 + $0x8] sm:$0xff]  }
  0xf2   : > { %1234 = vmatpush3.bf16.msra.mxu1 %v1262_v14 }
  0xf3   : > { %v500_v18 = vadd.f32 %v1184_v16, %v492_v17  ;;  %1235 = vmatprep.subr.bf16.mxu1 %v1300_v1  ;;  %v1304_v16 = vmov 1966171168  }
  0xf4   : > { %v612_v17 = vunpack.c.l.s4 %v1304_v16 }
  0xf5   : > { %v1185_v19 = vmul.f32 -1.442695, %v500_v18 }
  0xf6   : > { %1236 = vmatpush3.bf16.msra.mxu1 %v1263_v15 }
  0xf7   : > { %1264 = vpow2.f32 %v1185_v19 }
 0x101   : > { %v1265_v20 = vpop.eup %1264 }
 0x102   : > { %v504_v21 = vadd.f32 1.0, %v1265_v20 }
 0x104   : > { %1266 = vrcp.f32 %v504_v21 }
 0x10e   : > { %v1267_v22 = vpop.eup %1266 }
 0x10f   : > { %v1411_v23 = vmul.f32 %v1267_v22, %v500_v18  ;;  %v613_v18 = vunpack.c.0.s8 %v612_v17 }
 0x111   : > { %v508_v24 = vpack.c.bf16 %v1411_v23, %v1411_v23  ;;  %v1450_v19 = vsub.s32 %v613_v18, %v615_v47 }
 0x113   : > { %1230 = vmatmul.mubr.msk.bf16.vlgmr.msra.gmra.mrb[4].mxu0 %vm374_vm1, %v508_v24 }
 0x1e6   : > { %v562_v28 = vpop.f32.mrb[4].mxu0 }
 0x1e7   : > { %v575_v29 = vadd.f32 %v1189_v27, %v562_v28  ;;  %589 = vrot.lane.b32.xlu0 %v562_v28, %s1302_s22  ;;  %v1231_v30 = vpop.f32.mrb[5].mxu0 }
 0x1e8   : > { %v565_v31 = vpop.f32.mrb[6].mxu0 }
 0x1e9   : > { %v577_v32 = vand.u32 2147483647, %v575_v29  ;;  %v1232_v33 = vpop.f32.mrb[7].mxu0  ;;  %v576_v39 = vmax.f32 %v575_v29, 0.0 }
 0x1eb   : > { %v578_v34 = vsub.f32 0.0, %v577_v32  ;;  %594 = vrot.lane.b32.xlu0 %v562_v28, %s1303_s23 }
 0x1ed   : > { %v579_v35 = vmul.f32 1.442695, %v578_v34 }
 0x1ef   : > { %1268 = vpow2.f32 %v579_v35 }
 0x1f9   : > { %v1269_v36 = vpop.eup %1268 }
 0x1fa   : > { %v581_v37 = vadd.f32 1.0, %v1269_v36 }
 0x1fc   : > { %1270 = vlog2.f32 %v581_v37 }
 0x206   : > { %v1271_v38 = vpop.eup %1270 }
 0x207   : > { %v583_v40 = vmul.f32 0.6931472, %v1271_v38 }
 0x209   : > { %v584_v41 = vadd.f32 %v583_v40, %v576_v39 }
 0x20b   : > { %585 = vst.msk [vmem:[#allocation3] sm:$0x1f] %vm476_vm3, %v584_v41  ;;  %v586_v42 = vmul.f32 %v584_v41, %v1411_v23 }
 0x20d   : > { %587 = vst.msk [vmem:[#allocation4] sm:$0x1f] %vm476_vm3, %v586_v42 }
 0x212   : > { %v605_v20 = vld [vmem:[#allocation3] sm:$0xff] }
 0x213   : > { %v617_v21 = vrot.slane %v605_v20, %v1450_v19  ;;  %v610_v28 = vcombine.high %v605_v20, %v605_v20 }
 0x214   : > { %v606_v36 = vld [vmem:[#allocation4] sm:$0xff] }
 0x215   : > { %v633_v22 = vrot.slane %v617_v21, %v1450_v19  ;;  %v625_v24 = vcombine.high %v617_v21, %v617_v21  ;;  %v624_v32 = vrot.slane %v610_v28, %v1450_v19  ;;  %v787_v42 = vrot.slane %v606_v36, %v1450_v19 }
 0x217   : > { %v662_v25 = vrot.slane %v633_v22, %v1439_v52  ;;  %v647_v1 = vrot.slane %v625_v24, %v1450_v19  ;;  %v655_v29 = vcombine.high %v633_v22, %v633_v22  ;;  %v640_v37 = vrot.slane %v624_v32, %v1450_v19 }
 0x218   : > { %v626_v38 = vcombine.high %v624_v32, %v624_v32  ;;  %v803_v48 = vrot.slane %v787_v42, %v1450_v19 }
 0x219   : > { %v699_v27 = vmul.f32 %v662_v25, %v1458_v26  ;;  %v666_v30 = vrot.slane %v647_v1, %v1439_v52  ;;  %v657_v33 = vcombine.high %v647_v1, %v647_v1  ;;  %v670_v34 = vrot.slane %v655_v29, %v1439_v52 }
 0x21a   : > { %v678_v43 = vrot.slane %v640_v37, %v1439_v52  ;;  %v654_v47 = vrot.slane %v626_v38, %v1450_v19 }
 0x21b   : > { %v707_v31 = vmul.f32 1.442695, %v699_v27  ;;  %v700_v35 = vmul.f32 %v666_v30, %v1458_v26  ;;  %v701_v39 = vmul.f32 %v670_v34, %v1458_v26  ;;  %v674_v41 = vrot.slane %v657_v33, %v1439_v52 }
 0x21c   : > { %v703_v50 = vmul.f32 %v678_v43, %v1458_v26 }
 0x21d   : > { %1272 = vpow2.f32 %v707_v31  ;;  %v709_v40 = vmul.f32 1.442695, %v700_v35  ;;  %v702_v46 = vmul.f32 %v674_v41, %v1458_v26 }
 0x21f   : > { %1274 = vpow2.f32 %v709_v40 }
 0x259   : > { %v590_v44 = vpop.permute.xlu0 %589 }
 0x25a   : > { %593 = vst.msk [vmem:[#allocation5] sm:$0x1f] %vm592_vm6, %v590_v44  ;;  %v711_v44 = vmul.f32 1.442695, %v701_v39 }
 0x25c   : > { %1276 = vpow2.f32 %v711_v44 }
 0x25d   : > { %v595_v49 = vpop.permute.xlu0 %594 }
 0x25e   : > { %597 = vst.msk [vmem:[#allocation6] sm:$0x1f] %vm592_vm6, %v595_v49  ;;  %v795_v49 = vcombine.high %v787_v42, %v787_v42 }
 0x261   : > { %v607_v53 = vld [vmem:[#allocation5] sm:$0xff] }
 0x262   : > { %v740_v54 = vrot.slane %v607_v53, %v739_v51  ;;  %v726_v55 = vrot.slane %v607_v53, %v1439_v52  ;;  %v754_v58 = vrot.slane %v607_v53, %v753_v56  ;;  %v733_v59 = vrot.slane %v607_v53, %v732_v57 }
 0x263   : > { %v768_v62 = vrot.slane %v607_v53, %v767_v60  ;;  %v747_v63 = vrot.slane %v607_v53, %v746_v61  ;;  %v761_v3 = vrot.slane %v607_v53, %v760_v0  ;;  %v775_v6 = vrot.slane %v607_v53, %v774_v5 }
 0x264   : > { %742 = vbcast.lane.b32.xlu0 %v740_v54, 256  ;;  %728 = vbcast.lane.b32.xlu1 %v726_v55, 256  ;;  %v713_v53 = vmul.f32 1.442695, %v702_v46  ;;  %v682_v54 = vrot.slane %v654_v47, %v1439_v52  ;;  %v656_v55 = vcombine.high %v640_v37, %v640_v37 }
 0x265   : > { %v608_v2 = vld [vmem:[#allocation6] sm:$0xff] }
 0x266   : > { %v903_v4 = vrot.slane %v608_v2, %v732_v57  ;;  %v896_v7 = vrot.slane %v608_v2, %v1439_v52  ;;  %v924_v8 = vrot.slane %v608_v2, %v753_v56  ;;  %v910_v9 = vrot.slane %v608_v2, %v739_v51  ;;  %v1273_v51 = vpop.eup %1272 }
 0x267   : > { %v938_v10 = vrot.slane %v608_v2, %v767_v60  ;;  %v917_v11 = vrot.slane %v608_v2, %v746_v61  ;;  %v931_v12 = vrot.slane %v608_v2, %v760_v0  ;;  %v945_v13 = vrot.slane %v608_v2, %v774_v5 }
 0x268   : > { %756 = vbcast.lane.b32.xlu0 %v754_v58, 256  ;;  %735 = vbcast.lane.b32.xlu1 %v733_v59, 256  ;;  %v832_v56 = vrot.slane %v803_v48, %v1439_v52  ;;  %v817_v57 = vrot.slane %v795_v49, %v1450_v19  ;;  %v877_v61 = vmul.f32 0.0, %v1273_v51  ;;  %1278 = vpow2.f32 %v713_v53 }
 0x269   : > { %v704_v0 = vmul.f32 %v682_v54, %v1458_v26  ;;  %v686_v2 = vrot.slane %v656_v55, %v1439_v52  ;;  %v825_v5 = vcombine.high %v803_v48, %v803_v48 }
 0x26a   : > { %v827_v18 = vcombine.high %v817_v57, %v817_v57 }
 0x26b   : > { %v705_v14 = vmul.f32 %v686_v2, %v1458_v26  ;;  %v840_v16 = vrot.slane %v825_v5, %v1439_v52 }
 0x26c   : > { %770 = vbcast.lane.b32.xlu0 %v768_v62, 256  ;;  %749 = vbcast.lane.b32.xlu1 %v747_v63, 256  ;;  %v780_v62 = vcombine.high %v606_v36, %v606_v36  ;;  %v715_v63 = vmul.f32 1.442695, %v703_v50  ;;  %v844_v30 = vrot.slane %v827_v18, %v1439_v52 }
 0x26d   : > { %v719_v27 = vmul.f32 1.442695, %v705_v14 }
 0x26e   : > { %1280 = vpow2.f32 %v715_v63 }
 0x270   : > { %763 = vbcast.lane.b32.xlu1 %v761_v3, 256  ;;  %905 = vbcast.lane.b32.xlu0 %v903_v4, 256  ;;  %v658_v3 = vcombine.high %v654_v47, %v654_v47 }
 0x272   : > { %v690_v15 = vrot.slane %v658_v3, %v1439_v52  ;;  %v1191_v3 = vmul.f32 -1.442695, %v1437_v45 }
 0x274   : > { %777 = vbcast.lane.b32.xlu0 %v775_v6, 256  ;;  %898 = vbcast.lane.b32.xlu1 %v896_v7, 256  ;;  %v836_v6 = vrot.slane %v817_v57, %v1439_v52  ;;  %v1275_v7 = vpop.eup %1274  ;;  %v706_v28 = vmul.f32 %v690_v15, %v1458_v26 }
 0x275   : > { %v1277_v20 = vpop.eup %1276 }
 0x276   : > { %v1279_v32 = vpop.eup %1278  ;;  %v721_v39 = vmul.f32 1.442695, %v706_v28 }
 0x278   : > { %926 = vbcast.lane.b32.xlu0 %v924_v8, 256  ;;  %912 = vbcast.lane.b32.xlu1 %v910_v9, 256  ;;  %v1281_v42 = vpop.eup %1280 }
 0x27c   : > { %940 = vbcast.lane.b32.xlu0 %v938_v10, 256  ;;  %919 = vbcast.lane.b32.xlu1 %v917_v11, 256 }
 0x280   : > { %933 = vbcast.lane.b32.xlu1 %v931_v12, 256  ;;  %v794_v12 = vrot.slane %v780_v62, %v1450_v19 }
 0x282   : > { %v796_v1 = vcombine.high %v794_v12, %v794_v12  ;;  %v810_v29 = vrot.slane %v794_v12, %v1450_v19 }
 0x284   : > { %947 = vbcast.lane.b32.xlu1 %v945_v13, 256  ;;  %v717_v13 = vmul.f32 1.442695, %v704_v0  ;;  %v824_v38 = vrot.slane %v796_v1, %v1450_v19  ;;  %v848_v40 = vrot.slane %v810_v29, %v1439_v52  ;;  %v826_v50 = vcombine.high %v810_v29, %v810_v29 }
 0x286   : > { %1282 = vpow2.f32 %v717_v13  ;;  %v852_v51 = vrot.slane %v824_v38, %v1439_v52  ;;  %v856_v63 = vrot.slane %v826_v50, %v1439_v52  ;;  %v828_v2 = vcombine.high %v824_v38, %v824_v38 }
 0x287   : > { %1284 = vpow2.f32 %v719_v27 }
 0x288   : > { %1286 = vpow2.f32 %v721_v39 }
 0x289   : > { %1288 = vpow2.f32 %v1191_v3 }
 0x290   : > { %v1283_v54 = vpop.eup %1282 }
 0x2d6   : > { %v729_v58 = vpop.permute.xlu1 %728  ;;  %v743_v59 = vpop.permute.xlu0 %742 }
 0x2d7   : > { %v869_v60 = vmul.f32 %v832_v56, %v729_v58  ;;  %v871_v24 = vmul.f32 %v840_v16, %v743_v59  ;;  %v860_v16 = vrot.slane %v828_v2, %v1439_v52 }
 0x2d9   : > { %v878_v4 = vadd.f32 %v877_v61, %v869_v60 }
 0x2da   : > { %v736_v8 = vpop.permute.xlu1 %735  ;;  %v757_v9 = vpop.permute.xlu0 %756 }
 0x2db   : > { %v870_v10 = vmul.f32 %v836_v6, %v736_v8  ;;  %v879_v11 = vmul.f32 %v1275_v7, %v878_v4  ;;  %v873_v46 = vmul.f32 %v848_v40, %v757_v9  ;;  %v1285_v7 = vpop.eup %1284 }
 0x2dd   : > { %v880_v17 = vadd.f32 %v879_v11, %v870_v10 }
 0x2de   : > { %v750_v21 = vpop.permute.xlu1 %749  ;;  %v771_v22 = vpop.permute.xlu0 %770 }
 0x2df   : > { %v881_v25 = vmul.f32 %v1277_v20, %v880_v17  ;;  %v872_v35 = vmul.f32 %v844_v30, %v750_v21  ;;  %v875_v12 = vmul.f32 %v856_v63, %v771_v22 }
 0x2e1   : > { %v882_v31 = vadd.f32 %v881_v25, %v871_v24  ;;  %v1287_v25 = vpop.eup %1286 }
 0x2e2   : > { %v764_v33 = vpop.permute.xlu1 %763  ;;  %v906_v34 = vpop.permute.xlu0 %905 }
 0x2e3   : > { %v883_v36 = vmul.f32 %v1279_v32, %v882_v31  ;;  %v950_v37 = vmul.f32 %v906_v34, %v880_v17  ;;  %v874_v55 = vmul.f32 %v852_v51, %v764_v33 }
 0x2e5   : > { %v884_v41 = vadd.f32 %v883_v36, %v872_v35  ;;  %v964_v26 = vsel %vm374_vm1, %v950_v37, 0.0 }
 0x2e6   : > { %v899_v43 = vpop.permute.xlu1 %898  ;;  %v778_v44 = vpop.permute.xlu0 %777  ;;  %v965_v48 = vrot.slane %v964_v26, 4 }
 0x2e7   : > { %v885_v47 = vmul.f32 %v1281_v42, %v884_v41  ;;  %v949_v49 = vmul.f32 %v899_v43, %v878_v4  ;;  %v876_v1 = vmul.f32 %v860_v16, %v778_v44 }
 0x2e8   : > { %v966_v60 = vadd.f32 %v965_v48, %v964_v26 }
 0x2e9   : > { %v886_v53 = vadd.f32 %v885_v47, %v873_v46  ;;  %v957_v19 = vsel %vm374_vm1, %v949_v49, 0.0 }
 0x2ea   : > { %v958_v56 = vrot.slane %v957_v19, 4  ;;  %v913_v57 = vpop.permute.xlu1 %912  ;;  %v927_v58 = vpop.permute.xlu0 %926  ;;  %v967_v13 = vrot.slane %v966_v60, 2 }
 0x2eb   : > { %v887_v59 = vmul.f32 %v1283_v54, %v886_v53  ;;  %v951_v61 = vmul.f32 %v913_v57, %v882_v31  ;;  %v953_v62 = vmul.f32 %v927_v58, %v886_v53 }
 0x2ec   : > { %v959_v0 = vadd.f32 %v958_v56, %v957_v19  ;;  %v968_v31 = vadd.f32 %v967_v13, %v966_v60  ;;  %v1289_v56 = vpop.eup %1288 }
 0x2ed   : > { %v888_v4 = vadd.f32 %v887_v59, %v874_v55  ;;  %v971_v5 = vsel %vm374_vm1, %v951_v61, 0.0  ;;  %v985_v6 = vsel %vm374_vm1, %v953_v62, 0.0  ;;  %v1050_v3 = vadd.f32 1.0, %v1289_v56 }
 0x2ee   : > { %v960_v8 = vrot.slane %v959_v0, 2  ;;  %v972_v9 = vrot.slane %v971_v5, 4  ;;  %v986_v10 = vrot.slane %v985_v6, 4  ;;  %v920_v11 = vpop.permute.xlu1 %919  ;;  %v941_v29 = vpop.permute.xlu0 %940  ;;  %v969_v42 = vrot.slane %v968_v31, 1 }
 0x2ef   : > { %v952_v14 = vmul.f32 %v920_v11, %v884_v41  ;;  %v889_v15 = vmul.f32 %v1285_v7, %v888_v4  ;;  %1290 = vrcp.f32 %v1050_v3 }
 0x2f0   : > { %v973_v17 = vadd.f32 %v972_v9, %v971_v5  ;;  %v987_v18 = vadd.f32 %v986_v10, %v985_v6  ;;  %v961_v20 = vadd.f32 %v960_v8, %v959_v0  ;;  %v970_v57 = vadd.f32 %v969_v42, %v968_v31 }
 0x2f1   : > { %v978_v21 = vsel %vm374_vm1, %v952_v14, 0.0  ;;  %v890_v24 = vadd.f32 %v889_v15, %v875_v12 }
 0x2f2   : > { %v974_v27 = vrot.slane %v973_v17, 2  ;;  %v979_v28 = vrot.slane %v978_v21, 4  ;;  %v934_v30 = vpop.permute.xlu1 %933  ;;  %v988_v35 = vrot.slane %v987_v18, 2  ;;  %v962_v36 = vrot.slane %v961_v20, 1 }
 0x2f3   : > { %v955_v22 = vmul.f32 %v941_v29, %v890_v24  ;;  %v954_v32 = vmul.f32 %v934_v30, %v888_v4  ;;  %v891_v33 = vmul.f32 %v1287_v25, %v890_v24 }
 0x2f4   : > { %v975_v34 = vadd.f32 %v974_v27, %v973_v17  ;;  %v980_v52 = vadd.f32 %v979_v28, %v978_v21  ;;  %v989_v47 = vadd.f32 %v988_v35, %v987_v18  ;;  %v963_v49 = vadd.f32 %v962_v36, %v961_v20  ;;  %v1190_v20 = vld [vmem:[%s1526_s8] ss:$0 sm:$0xff] }
 0x2f5   : > { %v999_v37 = vsel %vm374_vm1, %v955_v22, 0.0  ;;  %v992_v38 = vsel %vm374_vm1, %v954_v32, 0.0  ;;  %v892_v39 = vadd.f32 %v891_v33, %v876_v1  ;;  %v1045_v24 = vmul.f32 %v1190_v20, %v1411_v23 }
 0x2f6   : > { %v976_v40 = vrot.slane %v975_v34, 1  ;;  %v981_v41 = vrot.slane %v980_v52, 2  ;;  %v948_v26 = vpop.permute.xlu1 %947  ;;  %v1000_v43 = vrot.slane %v999_v37, 4  ;;  %v993_v44 = vrot.slane %v992_v38, 4 }
 0x2f7   : > { %v956_v46 = vmul.f32 %v948_v26, %v892_v39  ;;  %v990_v60 = vrot.slane %v989_v47, 1  ;;  %v1022_v63 = vsel %vm1021_vm7, %v970_v57, %v963_v49 }
 0x2f8   : > { %v982_v48 = vadd.f32 %v981_v41, %v980_v52  ;;  %v1001_v50 = vadd.f32 %v1000_v43, %v999_v37  ;;  %v994_v51 = vadd.f32 %v993_v44, %v992_v38  ;;  %v977_v19 = vadd.f32 %v976_v40, %v975_v34 }
 0x2f9   : > { %v1006_v53 = vsel %vm374_vm1, %v956_v46, 0.0  ;;  %v991_v9 = vadd.f32 %v990_v60, %v989_v47  ;;  %v1291_v21 = vpop.eup %1290 }
 0x2fa   : > { %v983_v54 = vrot.slane %v982_v48, 1  ;;  %v1007_v55 = vrot.slane %v1006_v53, 4  ;;  %v1002_v58 = vrot.slane %v1001_v50, 2  ;;  %v995_v59 = vrot.slane %v994_v51, 2 }
 0x2fb   : > { %v1024_v4 = vsel %vm1023_vm8, %v977_v19, %v1022_v63  ;;  %v1053_v1 = vmul.f32 %v1291_v21, %v1437_v45 }
 0x2fc   : > { %v984_v61 = vadd.f32 %v983_v54, %v982_v48  ;;  %v1008_v62 = vadd.f32 %v1007_v55, %v1006_v53  ;;  %v1003_v0 = vadd.f32 %v1002_v58, %v1001_v50  ;;  %v996_v2 = vadd.f32 %v995_v59, %v994_v51 }
 0x2fe   : > { %v1009_v5 = vrot.slane %v1008_v62, 2  ;;  %v1026_v6 = vsel %vm1025_vm9, %v984_v61, %v1024_v4  ;;  %v1004_v7 = vrot.slane %v1003_v0, 1  ;;  %v997_v8 = vrot.slane %v996_v2, 1 }
 0x2ff   : > { %v1028_v13 = vsel %vm1027_vm10, %v991_v9, %v1026_v6 }
 0x300   : > { %v1010_v10 = vadd.f32 %v1009_v5, %v1008_v62  ;;  %v1005_v11 = vadd.f32 %v1004_v7, %v1003_v0  ;;  %v998_v12 = vadd.f32 %v997_v8, %v996_v2 }
 0x302   : > { %v1011_v14 = vrot.slane %v1010_v10, 1  ;;  %v1030_v15 = vsel %vm1029_vm11, %v998_v12, %v1028_v13 }
 0x303   : > { %v1032_v17 = vsel %vm1031_vm12, %v1005_v11, %v1030_v15 }
 0x304   : > { %v1012_v16 = vadd.f32 %v1011_v14, %v1010_v10 }
 0x306   : > { %v1034_v18 = vsel %vm1033_vm13, %v1012_v16, %v1032_v17 }
 0x307   : > { %1036 = vst.msk [vmem:[#allocation7] sm:$0xff] %vm374_vm1, %v1034_v18 }
 0x30e   : > { %v1037_v25 = vld [vmem:[#allocation7] sm:$0x1f] }
 0x30f   : > { %v1046_v27 = vadd.f32 %v1045_v24, %v1037_v25 }
 0x311   : > { %v1054_v28 = vmul.f32 %v1053_v1, %v1046_v27 }
 0x313   : > { %v1055_v29 = vpack.c.bf16 %v1054_v28, %v1054_v28 }
 0x315   : > { %1238 = vmatmul.mubr.msk.bf16.vlgmr.msra.gmra.mrb[4].mxu1 %vm374_vm1, %v1055_v29 }
 0x3e8   : > { %v1109_v30 = vpop.f32.mrb[4].mxu1 }
 0x3e9   : > { %1115 = vst.msk [vmem:[%s354_s16] sm:$0x1f] %vm476_vm3, %v1109_v30  ;;  %v1239_v31 = vpop.f32.mrb[5].mxu1 }
 0x3ea   : > { %v1112_v22 = vpop.f32.mrb[6].mxu1 }
 0x3eb   : > { %v1240_v32 = vpop.f32.mrb[7].mxu1 }
 0x3ec PF: > { %s20_s13 = sadd.s32 1, %s1298_s13  }
 0x3ed   : > { %p17_p4 = scmp.ge.s32.totalorder %s20_s13, 4  }
 0x3ef   :  { %19 = sbr.rel (!%p17_p4) target bundleno = 1 (0x1), region = 90 }

// kernel: _lambda_.24
= control target key start
LH: loop header
LB: loop body
LE: loop exit
PB: predicated region body
PF: predicated region fallthrough
CT: control target
= control target key end

     0   :  { %vm30_vm0 = vcmask 261120   ;;  %vm34_vm1 = vcmask 254976   ;;  %s155_s0 = inlined_call_operand.vmem [shape: f32[10,32], index: 0, kind: input, shape index: {}]   ;;  %s156_s1 = inlined_call_operand.vmem [shape: f32[10,32], index: 1, kind: input, shape index: {}]   ;;  %s157_s2 = inlined_call_operand.vmem [shape: f32[10,32], index: 2, kind: input, shape index: {}]   ;;  %s158_s3 = inlined_call_operand.vmem [shape: f32[1,32], index: 3, kind: input, shape index: {}]   ;;  %s159_s4 = inlined_call_operand.vmem [shape: f32[1,32], index: 4, kind: input, shape index: {}]   ;;  %s160_s5 = inlined_call_operand.vmem [shape: f32[10,32], index: 5, kind: output, shape index: {}]  }
   0x1   :  { %v20_v0 = vld [vmem:[%s155_s0] sm:$0xff]  ;;  %v21_v4 = vld [vmem:[%s155_s0 + $0x8] sm:$0x3] }
   0x2   :  { %v22_v1 = vld [vmem:[%s156_s1] sm:$0xff]  ;;  %v23_v5 = vld [vmem:[%s156_s1 + $0x8] sm:$0x3] }
   0x3   :  { %v26_v2 = vld [vmem:[%s157_s2] sm:$0xff]  ;;  %v24_v3 = vadd.f32 %v22_v1, %v20_v0  ;;  %v27_v6 = vld [vmem:[%s157_s2 + $0x8] sm:$0x3]  ;;  %v25_v7 = vadd.f32 %v23_v5, %v21_v4 }
   0x4   :  { %v83_v29 = vld [vmem:[%s158_s3] ss:$0 sm:$0xff] }
   0x5   :  { %v28_v8 = vadd.f32 %v26_v2, %v24_v3  ;;  %v29_v9 = vadd.f32 %v27_v6, %v25_v7  ;;  %v84_v31 = vld [vmem:[%s159_s4] ss:$0 sm:$0xff] }
   0x7   :  { %v31_v10 = vsel %vm30_vm0, %v28_v8, 0.0  ;;  %v35_v11 = vsel %vm34_vm1, %v29_v9, 0.0 }
   0x8   :  { %32 = vadd.xlane.f32.xlu0 %v31_v10 }
   0xc   :  { %36 = vadd.xlane.f32.xlu0 %v35_v11 }
  0x95   :  { %v33_v12 = vpop.xlane.xlu0 %32 }
  0x96   :  { %v39_v13 = vmul.f32 0.03125, %v33_v12 }
  0x98   :  { %v41_v14 = vsub.f32 %v28_v8, %v39_v13 }
  0x99   :  { %v37_v15 = vpop.xlane.xlu0 %36 }
  0x9a   :  { %v40_v16 = vmul.f32 0.03125, %v37_v15  ;;  %v43_v17 = vmul.f32 %v41_v14, %v41_v14 }
  0x9c   :  { %v42_v18 = vsub.f32 %v29_v9, %v40_v16  ;;  %v45_v19 = vsel %vm30_vm0, %v43_v17, 0.0 }
  0x9d   :  { %46 = vadd.xlane.f32.xlu1 %v45_v19 }
  0x9e   :  { %v44_v20 = vmul.f32 %v42_v18, %v42_v18 }
  0xa0   :  { %v48_v21 = vsel %vm34_vm1, %v44_v20, 0.0 }
  0xa1   :  { %49 = vadd.xlane.f32.xlu1 %v48_v21 }
 0x12a   :  { %v47_v22 = vpop.xlane.xlu1 %46 }
 0x12b   :  { %v51_v23 = vmul.f32 0.03125, %v47_v22 }
 0x12d   :  { %v53_v24 = vadd.f32 1e-05, %v51_v23 }
 0x12e   :  { %v50_v25 = vpop.xlane.xlu1 %49 }
 0x12f   :  { %85 = vrsqrt.f32 %v53_v24  ;;  %v52_v26 = vmul.f32 0.03125, %v50_v25 }
 0x131   :  { %v54_v27 = vadd.f32 1e-05, %v52_v26 }
 0x133   :  { %87 = vrsqrt.f32 %v54_v27 }
 0x139   :  { %v86_v28 = vpop.eup %85 }
 0x13a   :  { %v57_v30 = vmul.f32 %v86_v28, %v41_v14 }
 0x13c   :  { %v66_v32 = vmul.f32 %v83_v29, %v57_v30 }
 0x13d   :  { %v88_v33 = vpop.eup %87 }
 0x13e   :  { %v75_v34 = vadd.f32 %v84_v31, %v66_v32  ;;  %v58_v35 = vmul.f32 %v88_v33, %v42_v18 }
 0x140   :  { %77 = vst.msk [vmem:[%s160_s5] sm:$0xff] %vm30_vm0, %v75_v34  ;;  %v67_v36 = vmul.f32 %v83_v29, %v58_v35 }
 0x142   :  { %v76_v37 = vadd.f32 %v84_v31, %v67_v36 }
 0x144   :  { %78 = vst.msk [vmem:[%s160_s5 + $0x8] sm:$0x3] %vm34_vm1, %v76_v37 }

// kernel: _lambda_.25
= control target key start
LH: loop header
LB: loop body
LE: loop exit
PB: predicated region body
PF: predicated region fallthrough
CT: control target
= control target key end

     0   :  { %v291_v0 = vmov 0.0   ;;  %vm292_vm0 = vmmov 0   ;;  %vm53_vm1 = vcmask 261120   ;;  %vm140_vm2 = vcmask 523264   ;;  %s382_s1 = inlined_call_operand.vmem [shape: bf16[32,64], index: 1, kind: input, shape index: {}]   ;;  %s383_s0 = inlined_call_operand.vmem [shape: f32[10,32], index: 0, kind: input, shape index: {}]   ;;  %s384_s3 = inlined_call_operand.vmem [shape: bf16[64,32], index: 3, kind: input, shape index: {}]   ;;  %s385_s2 = inlined_call_operand.vmem [shape: f32[1,64], index: 2, kind: input, shape index: {}]   ;;  %s386_s4 = inlined_call_operand.vmem [shape: f32[1,32], index: 4, kind: input, shape index: {}]   ;;  %s387_s5 = inlined_call_operand.vmem [shape: f32[1,32], index: 5, kind: input, shape index: {}]   ;;  %s388_s6 = inlined_call_operand.vmem [shape: f32[1,32], index: 6, kind: input, shape index: {}]   ;;  %s389_s7 = inlined_call_operand.vmem [shape: f32[10,32], index: 7, kind: output, shape index: {}]  }
   0x1   :  { %259 = vmatprep.subr.bf16.mxu0 %v291_v0  ;;  %v281_v1 = vld [vmem:[%s382_s1] sm:$0xff]   ;;  %263 = vmatprep.mubr.msk.bf16.mxu0 %vm292_vm0, %v291_v0  ;;  %v282_v2 = vld [vmem:[%s382_s1 + $0x8] sm:$0xff]   ;;  %v285_v8 = vld [vmem:[%s384_s3 + $0x10] sm:$0xff]   ;;  %vm190_vm3 = vcmask 254976  }
   0x2   :  { %267 = vmatprep.subr.bf16.mxu1 %v291_v0  ;;  %275 = vmatprep.mubr.msk.bf16.mxu1 %vm292_vm0, %v291_v0  ;;  %v27_v3 = vld [vmem:[%s383_s0] sm:$0xff]  ;;  %v28_v4 = vld [vmem:[%s383_s0 + $0x8] sm:$0x3]  ;;  %v286_v9 = vld [vmem:[%s384_s3 + $0x18] sm:$0xff]  }
   0x3   :  { %260 = vmatpush3.bf16.msra.mxu0 %v281_v1  ;;  %v283_v5 = vld [vmem:[%s384_s3] sm:$0xff]   ;;  %v284_v6 = vld [vmem:[%s384_s3 + $0x8] sm:$0xff]   ;;  %v29_v7 = vpack.c.bf16 %v28_v4, %v27_v3 }
   0x4   :  { %261 = vmatprep.subr.bf16.mxu0 %v291_v0  ;;  %268 = vmatpush3.bf16.msra.mxu1 %v283_v5  ;;  %v239_v10 = vld [vmem:[%s385_s2] ss:$0 sm:$0xff] }
   0x5   :  { %269 = vmatprep.subr.bf16.mxu1 %v291_v0  ;;  %v243_v20 = vld [vmem:[%s386_s4] ss:$0 sm:$0xff] }
   0x6   :  { %v249_v48 = vld [vmem:[%s387_s5] ss:$0 sm:$0xff] }
   0x7   :  { %262 = vmatpush3.bf16.msra.mxu0 %v282_v2  ;;  %v250_v50 = vld [vmem:[%s388_s6] ss:$0 sm:$0xff] }
   0x8   :  { %270 = vmatpush3.bf16.msra.mxu1 %v284_v6 }
   0x9   :  { %271 = vmatprep.subr.bf16.mxu1 %v291_v0 }
   0xa   :  { %264 = vmatmul.mubr.msk.bf16.vlgmr.msra.gmra.mrb[0].mxu0 %vm53_vm1, %v29_v7 }
   0xc   :  { %272 = vmatpush3.bf16.msra.mxu1 %v285_v8 }
   0xd   :  { %273 = vmatprep.subr.bf16.mxu1 %v291_v0 }
  0x10   :  { %274 = vmatpush3.bf16.msra.mxu1 %v286_v9 }
  0xdd   :  { %v91_v11 = vpop.f32.mrb[0].mxu0 }
  0xde   :  { %v92_v12 = vadd.f32 %v239_v10, %v91_v11  ;;  %v265_v13 = vpop.f32.mrb[1].mxu0 }
  0xdf   :  { %v94_v14 = vpop.f32.mrb[2].mxu0 }
  0xe0   :  { %v95_v15 = vadd.f32 %v239_v10, %v94_v14  ;;  %v266_v16 = vpop.f32.mrb[3].mxu0  ;;  %v98_v17 = vmax.f32 %v92_v12, 0.0 }
  0xe2   :  { %v99_v18 = vmax.f32 %v95_v15, 0.0 }
  0xe4   :  { %v100_v19 = vpack.c.bf16 %v99_v18, %v98_v17 }
  0xe6   :  { %276 = vmatmul.mubr.msk.bf16.vlgmr.msra.gmra.mrb[0].mxu1 %vm140_vm2, %v100_v19 }
 0x1b9   :  { %v178_v21 = vpop.f32.mrb[0].mxu1 }
 0x1ba   :  { %v179_v22 = vadd.f32 %v243_v20, %v178_v21  ;;  %v277_v23 = vpop.f32.mrb[1].mxu1 }
 0x1bb   :  { %v181_v24 = vpop.f32.mrb[2].mxu1 }
 0x1bc   :  { %v182_v25 = vadd.f32 %v243_v20, %v181_v24  ;;  %v278_v26 = vpop.f32.mrb[3].mxu1  ;;  %v185_v27 = vadd.f32 %v179_v22, %v27_v3 }
 0x1be   :  { %v187_v28 = vsel %vm53_vm1, %v185_v27, 0.0  ;;  %v186_v29 = vadd.f32 %v182_v25, %v28_v4 }
 0x1bf   :  { %188 = vadd.xlane.f32.xlu0 %v187_v28 }
 0x1c0   :  { %v191_v30 = vsel %vm190_vm3, %v186_v29, 0.0 }
 0x1c3   :  { %192 = vadd.xlane.f32.xlu0 %v191_v30 }
 0x24c   :  { %v189_v31 = vpop.xlane.xlu0 %188 }
 0x24d   :  { %v195_v32 = vmul.f32 0.03125, %v189_v31 }
 0x24f   :  { %v197_v33 = vsub.f32 %v185_v27, %v195_v32 }
 0x250   :  { %v193_v34 = vpop.xlane.xlu0 %192 }
 0x251   :  { %v196_v35 = vmul.f32 0.03125, %v193_v34  ;;  %v199_v36 = vmul.f32 %v197_v33, %v197_v33 }
 0x253   :  { %v198_v37 = vsub.f32 %v186_v29, %v196_v35  ;;  %v201_v38 = vsel %vm53_vm1, %v199_v36, 0.0 }
 0x254   :  { %202 = vadd.xlane.f32.xlu1 %v201_v38 }
 0x255   :  { %v200_v39 = vmul.f32 %v198_v37, %v198_v37 }
 0x257   :  { %v204_v40 = vsel %vm190_vm3, %v200_v39, 0.0 }
 0x258   :  { %205 = vadd.xlane.f32.xlu1 %v204_v40 }
 0x2e1   :  { %v203_v41 = vpop.xlane.xlu1 %202 }
 0x2e2   :  { %v207_v42 = vmul.f32 0.03125, %v203_v41 }
 0x2e4   :  { %v209_v43 = vadd.f32 1e-05, %v207_v42 }
 0x2e5   :  { %v206_v44 = vpop.xlane.xlu1 %205 }
 0x2e6   :  { %287 = vrsqrt.f32 %v209_v43  ;;  %v208_v45 = vmul.f32 0.03125, %v206_v44 }
 0x2e8   :  { %v210_v46 = vadd.f32 1e-05, %v208_v45 }
 0x2ea   :  { %289 = vrsqrt.f32 %v210_v46 }
 0x2f0   :  { %v288_v47 = vpop.eup %287 }
 0x2f1   :  { %v213_v49 = vmul.f32 %v288_v47, %v197_v33 }
 0x2f3   :  { %v222_v51 = vmul.f32 %v249_v48, %v213_v49 }
 0x2f4   :  { %v290_v52 = vpop.eup %289 }
 0x2f5   :  { %v231_v53 = vadd.f32 %v250_v50, %v222_v51  ;;  %v214_v54 = vmul.f32 %v290_v52, %v198_v37 }
 0x2f7   :  { %233 = vst.msk [vmem:[%s389_s7] sm:$0xff] %vm53_vm1, %v231_v53  ;;  %v223_v55 = vmul.f32 %v249_v48, %v214_v54 }
 0x2f9   :  { %v232_v56 = vadd.f32 %v250_v50, %v223_v55 }
 0x2fb   :  { %234 = vst.msk [vmem:[%s389_s7 + $0x8] sm:$0x3] %vm190_vm3, %v232_v56 }

// kernel: _lambda_.26
= control target key start
LH: loop header
LB: loop body
LE: loop exit
PB: predicated region body
PF: predicated region fallthrough
CT: control target
= control target key end

     0   :  { %vm16_vm0 = vcmask 261120   ;;  %vm20_vm1 = vcmask 254976   ;;  %s119_s0 = inlined_call_operand.vmem [shape: f32[10,32], index: 0, kind: input, shape index: {}]   ;;  %s120_s1 = inlined_call_operand.vmem [shape: f32[1,32], index: 1, kind: input, shape index: {}]   ;;  %s121_s2 = inlined_call_operand.vmem [shape: f32[1,32], index: 2, kind: input, shape index: {}]   ;;  %s122_s3 = inlined_call_operand.vmem [shape: f32[10,32], index: 3, kind: output, shape index: {}]  }
   0x1   :  { %v14_v0 = vld [vmem:[%s119_s0] sm:$0xff]  ;;  %v15_v1 = vld [vmem:[%s119_s0 + $0x8] sm:$0x3] }
   0x2   :  { %v17_v2 = vsel %vm16_vm0, %v14_v0, 0.0  ;;  %v21_v3 = vsel %vm20_vm1, %v15_v1, 0.0  ;;  %v69_v21 = vld [vmem:[%s120_s1] ss:$0 sm:$0xff] }
   0x3   :  { %18 = vadd.xlane.f32.xlu0 %v17_v2  ;;  %v70_v23 = vld [vmem:[%s121_s2] ss:$0 sm:$0xff] }
   0x7   :  { %22 = vadd.xlane.f32.xlu0 %v21_v3 }
  0x90   :  { %v19_v4 = vpop.xlane.xlu0 %18 }
  0x91   :  { %v25_v5 = vmul.f32 0.03125, %v19_v4 }
  0x93   :  { %v27_v6 = vsub.f32 %v14_v0, %v25_v5 }
  0x94   :  { %v23_v7 = vpop.xlane.xlu0 %22 }
  0x95   :  { %v26_v8 = vmul.f32 0.03125, %v23_v7  ;;  %v29_v9 = vmul.f32 %v27_v6, %v27_v6 }
  0x97   :  { %v28_v10 = vsub.f32 %v15_v1, %v26_v8  ;;  %v31_v11 = vsel %vm16_vm0, %v29_v9, 0.0 }
  0x98   :  { %32 = vadd.xlane.f32.xlu1 %v31_v11 }
  0x99   :  { %v30_v12 = vmul.f32 %v28_v10, %v28_v10 }
  0x9b   :  { %v34_v13 = vsel %vm20_vm1, %v30_v12, 0.0 }
  0x9c   :  { %35 = vadd.xlane.f32.xlu1 %v34_v13 }
 0x125   :  { %v33_v14 = vpop.xlane.xlu1 %32 }
 0x126   :  { %v37_v15 = vmul.f32 0.03125, %v33_v14 }
 0x128   :  { %v39_v16 = vadd.f32 1e-05, %v37_v15 }
 0x129   :  { %v36_v17 = vpop.xlane.xlu1 %35 }
 0x12a   :  { %71 = vrsqrt.f32 %v39_v16  ;;  %v38_v18 = vmul.f32 0.03125, %v36_v17 }
 0x12c   :  { %v40_v19 = vadd.f32 1e-05, %v38_v18 }
 0x12e   :  { %73 = vrsqrt.f32 %v40_v19 }
 0x134   :  { %v72_v20 = vpop.eup %71 }
 0x135   :  { %v43_v22 = vmul.f32 %v72_v20, %v27_v6 }
 0x137   :  { %v52_v24 = vmul.f32 %v69_v21, %v43_v22 }
 0x138   :  { %v74_v25 = vpop.eup %73 }
 0x139   :  { %v61_v26 = vadd.f32 %v70_v23, %v52_v24  ;;  %v44_v27 = vmul.f32 %v74_v25, %v28_v10 }
 0x13b   :  { %63 = vst.msk [vmem:[%s122_s3] sm:$0xff] %vm16_vm0, %v61_v26  ;;  %v53_v28 = vmul.f32 %v69_v21, %v44_v27 }
 0x13d   :  { %v62_v29 = vadd.f32 %v70_v23, %v53_v28 }
 0x13f   :  { %64 = vst.msk [vmem:[%s122_s3 + $0x8] sm:$0x3] %vm20_vm1, %v62_v29 }

// kernel: _lambda_.27
= control target key start
LH: loop header
LB: loop body
LE: loop exit
PB: predicated region body
PF: predicated region fallthrough
CT: control target
= control target key end

     0   :  { %v114_v0 = vmov 0.0   ;;  %vm115_vm0 = vmmov 0   ;;  %vm45_vm1 = vcmask 261120   ;;  %vm89_vm2 = vcmask 64512   ;;  %s159_s2 = inlined_call_operand.vmem [shape: bf16[32,8], index: 2, kind: input, shape index: {}]   ;;  %s160_s0 = inlined_call_operand.vmem [shape: f32[8,32], index: 0, kind: input, shape index: {}]   ;;  %s161_s1 = inlined_call_operand.vmem [shape: f32[8,32], index: 1, kind: input, shape index: {}]   ;;  %s162_s3 = inlined_call_operand.vmem [shape: f32[1,8], index: 3, kind: input, shape index: {}]   ;;  %s163_s4 = inlined_call_operand.vmem [shape: f32[8,8], index: 4, kind: output, shape index: {}]  }
   0x1   :  { %102 = vmatprep.subr.bf16.mxu0 %v114_v0  ;;  %v112_v1 = vld [vmem:[%s159_s2] sm:$0xff]   ;;  %106 = vmatprep.mubr.msk.bf16.mxu0 %vm115_vm0, %v114_v0  ;;  %v113_v2 = vld [vmem:[%s159_s2 + $0x8] sm:$0xff]  }
   0x2   :  { %103 = vmatpush3.bf16.msra.mxu0 %v112_v1  ;;  %v18_v3 = vld [vmem:[%s160_s0] sm:$0xff] }
   0x3   :  { %v19_v4 = vld [vmem:[%s161_s1] sm:$0xff]  ;;  %104 = vmatprep.subr.bf16.mxu0 %v114_v0 }
   0x4   :  { %v20_v5 = vadd.f32 %v19_v4, %v18_v3  ;;  %v95_v7 = vld [vmem:[%s162_s3] ss:$0 sm:$0xff] }
   0x6   :  { %v21_v6 = vpack.c.bf16 %v20_v5, %v20_v5  ;;  %105 = vmatpush3.bf16.msra.mxu0 %v113_v2 }
   0x9   :  { %107 = vmatmul.mubr.msk.bf16.vlgmr.msra.gmra.mrb[0].mxu0 %vm45_vm1, %v21_v6 }
  0xdc   :  { %v83_v8 = vpop.f32.mrb[0].mxu0 }
  0xdd   :  { %v84_v9 = vadd.f32 %v95_v7, %v83_v8  ;;  %v108_v10 = vpop.f32.mrb[1].mxu0 }
  0xde   :  { %v86_v11 = vpop.f32.mrb[2].mxu0 }
  0xdf   :  { %90 = vst.msk [vmem:[%s163_s4] sm:$0xff] %vm89_vm2, %v84_v9  ;;  %v109_v12 = vpop.f32.mrb[3].mxu0 }

</bundles_post_ra>
